<compile_context>
chip_gen: v7x
topology: tpu7x:2x2x1
jax: 0.10.0
libtpu: 0.0.40
codegen_flags: <defaults>
</compile_context>

<pallas_src>
import jax
import jax.numpy as jnp
from jax.experimental import pallas as pl
from jax.experimental.pallas import tpu as pltpu


def _round_up(x, m):
    return (x + m - 1) // m * m


def _vmem_limit_bytes():
    """Generation-aware scoped-VMEM budget."""
    try:
        cap = int(pltpu.get_tpu_info().vmem_capacity_bytes)
    except Exception:
        cap = 64 * 1024 * 1024          # conservative fallback (v7x-sized)
    return int(min(cap * 3 // 4, 100 * 1024 * 1024))


# ---------------------------------------------------------------------------
# Fused kernel: conv1+bn1+relu -> (VMEM) -> conv2+bn2 -> +residual -> relu.
# One grid step = one full image of one batch element.
# ---------------------------------------------------------------------------
def _make_fused_kernel(H_out, W_out, Cin_p, Cpad, in_kernel_im2col, has_proj):
    hw = H_out * W_out

    def _im2col3x3(load_band):
        # load_band(kh) -> (H_out, W_out + 2, C) row band (H is an outer dim,
        # so the per-kh band load is layout-aligned).  Taps are concatenated
        # along channels (lane axis); each chunk is a multiple of 128 lanes,
        # so the concat is lane-dense.
        cols = []
        for kh in range(3):
            band = load_band(kh)
            for kw in range(3):
                # TODO(synk): move this kw shift onto the XLU via pltpu.roll
                # once packed (bf16) sublane rotates lower cleanly; the value
                # slice is correct but pays a small sublane-relayout cost.
                cols.append(band[:, kw:kw + W_out, :])
        return jnp.concatenate(cols, axis=-1).reshape(hw, -1)

    def kernel(x_ref, sc_ref, w1_ref, b1_ref, w2_ref, b2_ref, *rest):
        if has_proj:
            wsc_ref, bsc_ref, out_ref, y_scr = rest
        else:
            out_ref, y_scr = rest

        # ---- conv1 (3x3) + bn1 + relu ------------------------------------
        if in_kernel_im2col:
            lhs1 = _im2col3x3(lambda kh: x_ref[0, pl.ds(kh, H_out), :, :])
        else:
            # stride != 1: taps were gathered in the wrapper (1x1 contraction).
            lhs1 = x_ref[0].reshape(hw, 9 * Cin_p)
        acc1 = jnp.dot(lhs1, w1_ref[...], preferred_element_type=jnp.float32)
        y = jnp.maximum(acc1 + b1_ref[...], 0.0)

        # Stage the conv1 activation (bf16, zero halo) in VMEM -- it never
        # touches HBM.
        y_scr[...] = jnp.zeros_like(y_scr)
        y_scr[pl.ds(1, H_out), pl.ds(1, W_out), :] = (
            y.reshape(H_out, W_out, Cpad).astype(y_scr.dtype))

        # ---- conv2 (3x3, stride 1) + bn2 ----------------------------------
        lhs2 = _im2col3x3(lambda kh: y_scr[pl.ds(kh, H_out), :, :])
        acc2 = jnp.dot(lhs2, w2_ref[...], preferred_element_type=jnp.float32)
        y2 = acc2 + b2_ref[...]

        # ---- shortcut ------------------------------------------------------
        if has_proj:
            res = jnp.dot(sc_ref[0].reshape(hw, Cin_p), wsc_ref[...],
                          preferred_element_type=jnp.float32) + bsc_ref[...]
        else:
            res = sc_ref[0].reshape(hw, Cpad).astype(jnp.float32)

        out = jnp.maximum(y2 + res, 0.0)
        out_ref[0] = out.reshape(H_out, W_out, Cpad).astype(out_ref.dtype)

    return kernel


# ---------------------------------------------------------------------------
# Wrapper: parameter folding / padding, tap gather for stride != 1, one
# pallas_call for the whole residual block.
# ---------------------------------------------------------------------------
def fold_bn(gamma, beta, mean, var, eps=1e-5):
    scale = gamma / jnp.sqrt(var + eps)
    bias = beta - mean * scale
    return scale, bias


def _fold_weight(w_khwc, scale, cin_p, cpad):
    """(KH,KW,Cin,Cout) * BN scale, zero-padded to (KH*KW*cin_p, cpad), bf16."""
    KH, KW, Ci, Co = w_khwc.shape
    w = w_khwc.astype(jnp.float32) * scale.astype(jnp.float32)[None, None, None, :]
    w = jnp.pad(w, ((0, 0), (0, 0), (0, cin_p - Ci), (0, cpad - Co)))
    return w.reshape(KH * KW * cin_p, cpad).astype(jnp.bfloat16)


def _pad_bias(bias, cpad):
    b = bias.astype(jnp.float32)
    return jnp.pad(b, (0, cpad - b.shape[0])).reshape(1, cpad)


def residual_block_forward(x_nchw, params, *, stride=1):
    """Pallas implementation of ResidualBlock.forward (inference-mode BN)."""
    # NCHW -> NHWC; bf16 end-to-end on the input/residual path (MXU operands).
    x = jnp.transpose(x_nchw, (0, 2, 3, 1)).astype(jnp.bfloat16)
    N, H, W, in_c = x.shape
    out_c = params["w1"].shape[-1]

    pad = 1
    H_out = (H + 2 * pad - 3) // stride + 1
    W_out = (W + 2 * pad - 3) // stride + 1
    Cin_p = _round_up(in_c, 128)          # lane-align the K-concatenation
    Cpad = _round_up(out_c, 128)          # lane-dense epilogue / stores
    has_proj = (stride != 1) or (in_c != out_c)

    # Channel-pad once; everything downstream stays lane-aligned at Cpad.
    x_c = jnp.pad(x, ((0, 0), (0, 0), (0, 0), (0, Cin_p - in_c)))
    x_sp = jnp.pad(x_c, ((0, 0), (pad, pad), (pad, pad), (0, 0)))

    if stride == 1:
        x1 = x_sp                                        # (N, H+2, W+2, Cin_p)
        in_kernel_im2col = True
        x1_block = (1, H + 2, W + 2, Cin_p)
    else:
        # Gather the strided taps in the wrapper so the kernel only does dense
        # unit-stride VMEM reads.
        taps = []
        for kh in range(3):
            for kw in range(3):
                taps.append(jax.lax.slice(
                    x_sp, (0, kh, kw, 0),
                    (N, kh + (H_out - 1) * stride + 1,
                     kw + (W_out - 1) * stride + 1, Cin_p),
                    (1, stride, stride, 1)))
        x1 = jnp.concatenate(taps, axis=-1)              # (N, H_out, W_out, 9*Cin_p)
        in_kernel_im2col = False
        x1_block = (1, H_out, W_out, 9 * Cin_p)

    # Shortcut input (bf16): identity, or the strided 1x1-conv input.
    if has_proj:
        sc = x_c[:, ::stride, ::stride, :]               # (N, H_out, W_out, Cin_p)
        sc_c = Cin_p
    else:
        sc = x_c                                         # Cin_p == Cpad here
        sc_c = Cpad

    # Fold BN scale into the conv weights; pad channels; bf16 for the MXU.
    w1 = _fold_weight(params["w1"], params["scale1"], Cin_p, Cpad)   # (9*Cin_p, Cpad)
    w2 = _fold_weight(params["w2"], params["scale2"], Cpad, Cpad)    # (9*Cpad, Cpad)
    b1 = _pad_bias(params["bias1"], Cpad)
    b2 = _pad_bias(params["bias2"], Cpad)

    args = [x1, sc, w1, b1, w2, b2]
    if has_proj:
        wsc = _fold_weight(params["w_sc"], params["scale_sc"], Cin_p, Cpad)  # (Cin_p, Cpad)
        bsc = _pad_bias(params["bias_sc"], Cpad)
        args += [wsc, bsc]

    hw = H_out * W_out
    flops = 2 * N * hw * (9 * Cin_p * Cpad + 9 * Cpad * Cpad)
    if has_proj:
        flops += 2 * N * hw * Cin_p * Cpad
    bytes_accessed = sum(int(a.size) * a.dtype.itemsize for a in args) \
        + N * hw * Cpad * 4

    kernel = _make_fused_kernel(H_out, W_out, Cin_p, Cpad, in_kernel_im2col,
                                has_proj)

    def _call(single_buffer_weights):
        resident = ({"pipeline_mode": pl.Buffered(1)}
                    if single_buffer_weights else {})
        in_specs = [
            pl.BlockSpec(x1_block, lambda n: (n, 0, 0, 0)),
            pl.BlockSpec((1, H_out, W_out, sc_c), lambda n: (n, 0, 0, 0)),
            pl.BlockSpec(w1.shape, lambda n: (0, 0), **resident),
            pl.BlockSpec(b1.shape, lambda n: (0, 0), **resident),
            pl.BlockSpec(w2.shape, lambda n: (0, 0), **resident),
            pl.BlockSpec(b2.shape, lambda n: (0, 0), **resident),
        ]
        if has_proj:
            in_specs += [
                pl.BlockSpec(args[6].shape, lambda n: (0, 0), **resident),
                pl.BlockSpec(args[7].shape, lambda n: (0, 0), **resident),
            ]
        return pl.pallas_call(
            kernel,
            out_shape=jax.ShapeDtypeStruct((N, H_out, W_out, Cpad), jnp.float32),
            grid_spec=pltpu.PrefetchScalarGridSpec(
                num_scalar_prefetch=0,
                grid=(N,),
                in_specs=in_specs,
                out_specs=pl.BlockSpec((1, H_out, W_out, Cpad),
                                       lambda n: (n, 0, 0, 0)),
                scratch_shapes=[
                    pltpu.VMEM((H_out + 2, W_out + 2, Cpad), jnp.bfloat16)],
            ),
            compiler_params=pltpu.CompilerParams(
                dimension_semantics=("parallel",),
                vmem_limit_bytes=_vmem_limit_bytes(),
            ),
            cost_estimate=pl.CostEstimate(
                flops=int(flops), transcendentals=0,
                bytes_accessed=int(bytes_accessed)),
        )(*args)

    try:
        # Weights / biases have constant index maps: keep them single-buffered
        # so the dead second buffer does not eat scoped VMEM (matters on v7x).
        out_pad = _call(True)
    except Exception:
        # Fallback for runtimes that reject single-buffered pipeline_mode.
        out_pad = _call(False)

    out = out_pad[..., :out_c]
    return jnp.transpose(out, (0, 3, 1, 2))              # NHWC -> NCHW


# ---------------------------------------------------------------------------
# Pure-JAX reference (mirrors the PyTorch forward with inference-mode BN).
# ---------------------------------------------------------------------------
def _reference(x, w1, w2, wsc, bn1, bn2, bnsc, stride):
    def conv(x, w, s, p):
        return jax.lax.conv_general_dilated(
            x, w, (s, s), ((p, p), (p, p)),
            dimension_numbers=("NCHW", "OIHW", "NCHW"))

    def bn(x, g, b, m, v, eps=1e-5):
        g, b, m, v = (a[None, :, None, None] for a in (g, b, m, v))
        return (x - m) / jnp.sqrt(v + eps) * g + b

    in_c, out_c = x.shape[1], w1.shape[0]
    if stride != 1 or in_c != out_c:
        residual = bn(conv(x, wsc, stride, 0), *bnsc)
    else:
        residual = x
    y = jnp.maximum(bn(conv(x, w1, stride, 1), *bn1), 0.0)
    y = bn(conv(y, w2, 1, 1), *bn2)
    return jnp.maximum(y + residual, 0.0)


if __name__ == "__main__":
    key = jax.random.PRNGKey(0)
    keys = jax.random.split(key, 12)

    def bn_params(k, c):
        gamma = 1.0 + 0.1 * jax.random.normal(k, (c,), jnp.float32)
        beta = 0.05 * jnp.arange(c, dtype=jnp.float32)
        mean = 0.01 * jnp.arange(c, dtype=jnp.float32)
        var = 1.0 + 0.02 * jnp.arange(c, dtype=jnp.float32)
        return gamma, beta, mean, var

    def make_params(w1, w2, wsc, bn1, bn2, bnsc):
        p = {"w1": jnp.transpose(w1, (2, 3, 1, 0)),      # OIHW -> (KH,KW,Cin,Cout)
             "w2": jnp.transpose(w2, (2, 3, 1, 0))}
        p["scale1"], p["bias1"] = fold_bn(*bn1)
        p["scale2"], p["bias2"] = fold_bn(*bn2)
        if wsc is not None:
            p["w_sc"] = jnp.transpose(wsc, (2, 3, 1, 0))
            p["scale_sc"], p["bias_sc"] = fold_bn(*bnsc)
        return p

    # --- config A: in_c != out_c (projection shortcut), stride 1 and 2 ----
    N, Cin, H, W, Cout = 2, 4, 16, 16, 8
    x = jax.random.normal(keys[0], (N, Cin, H, W), jnp.float32)
    w1 = 0.1 * jax.random.normal(keys[1], (Cout, Cin, 3, 3), jnp.float32)
    w2 = 0.1 * jax.random.normal(keys[2], (Cout, Cout, 3, 3), jnp.float32)
    wsc = 0.1 * jax.random.normal(keys[3], (Cout, Cin, 1, 1), jnp.float32)
    bn1, bn2, bnsc = (bn_params(keys[4], Cout), bn_params(keys[5], Cout),
                      bn_params(keys[6], Cout))
    params_a = make_params(w1, w2, wsc, bn1, bn2, bnsc)

    for stride in (1, 2):
        out = jax.block_until_ready(
            residual_block_forward(x, params_a, stride=stride))
        ref = _reference(x, w1, w2, wsc, bn1, bn2, bnsc, stride)
        assert out.shape == ref.shape, (stride, out.shape, ref.shape)
        err = float(jnp.max(jnp.abs(out - ref)))
        # bf16 MXU operands / bf16 intermediate -> loose tolerance vs pure f32.
        assert jnp.allclose(out, ref, atol=6e-2, rtol=3e-2), (stride, err)

    # --- config B: in_c == out_c, stride 1 (identity shortcut) ------------
    Cb = 8
    xb = jax.random.normal(keys[7], (N, Cb, H, W), jnp.float32)
    w1b = 0.1 * jax.random.normal(keys[8], (Cb, Cb, 3, 3), jnp.float32)
    w2b = 0.1 * jax.random.normal(keys[9], (Cb, Cb, 3, 3), jnp.float32)
    bn1b, bn2b = bn_params(keys[10], Cb), bn_params(keys[11], Cb)
    params_b = make_params(w1b, w2b, None, bn1b, bn2b, None)

    out_b = jax.block_until_ready(
        residual_block_forward(xb, params_b, stride=1))
    dummy_wsc = jnp.zeros((Cb, Cb, 1, 1), jnp.float32)
    ref_b = _reference(xb, w1b, w2b, dummy_wsc, bn1b, bn2b, bn1b, 1)
    assert out_b.shape == ref_b.shape, (out_b.shape, ref_b.shape)
    err_b = float(jnp.max(jnp.abs(out_b - ref_b)))
    assert jnp.allclose(out_b, ref_b, atol=6e-2, rtol=3e-2), err_b

    print("KERNEL_OK")
</pallas_src>

<mosaic_0001>
module attributes {stable_mosaic.version = 11 : i64} {
  func.func @kernel(%arg0: i32, %arg1: memref<1x18x18x128xbf16, #tpu.memory_space<vmem>>, %arg2: memref<1x16x16x128xbf16, #tpu.memory_space<vmem>>, %arg3: memref<1152x128xbf16, #tpu.memory_space<vmem>>, %arg4: memref<1x128xf32, #tpu.memory_space<vmem>>, %arg5: memref<1152x128xbf16, #tpu.memory_space<vmem>>, %arg6: memref<1x128xf32, #tpu.memory_space<vmem>>, %arg7: memref<128x128xbf16, #tpu.memory_space<vmem>>, %arg8: memref<1x128xf32, #tpu.memory_space<vmem>>, %arg9: memref<1x16x16x128xf32, #tpu.memory_space<vmem>>, %arg10: memref<18x18x128xbf16, #tpu.memory_space<vmem>>) attributes {dimension_semantics = [#tpu.dimension_semantics<parallel>], iteration_bounds = array<i64: 2>, scalar_prefetch = 0 : i64, scratch_operands = 1 : i64, tpu.core_type = #tpu.core_type<tc>, window_params = [{transform_indices = @transform_0, window_bounds = array<i64: 1, 18, 18, 128>}, {transform_indices = @transform_1, window_bounds = array<i64: 1, 16, 16, 128>}, {pipeline_mode = #tpu.pipeline_mode<synchronous>, transform_indices = @transform_2, window_bounds = array<i64: 1152, 128>}, {pipeline_mode = #tpu.pipeline_mode<synchronous>, transform_indices = @transform_3, window_bounds = array<i64: 1, 128>}, {pipeline_mode = #tpu.pipeline_mode<synchronous>, transform_indices = @transform_4, window_bounds = array<i64: 1152, 128>}, {pipeline_mode = #tpu.pipeline_mode<synchronous>, transform_indices = @transform_5, window_bounds = array<i64: 1, 128>}, {pipeline_mode = #tpu.pipeline_mode<synchronous>, transform_indices = @transform_6, window_bounds = array<i64: 128, 128>}, {pipeline_mode = #tpu.pipeline_mode<synchronous>, transform_indices = @transform_7, window_bounds = array<i64: 1, 128>}, {transform_indices = @transform_8, window_bounds = array<i64: 1, 16, 16, 128>}]} {
    %c0 = arith.constant 0 : index
    %c0_0 = arith.constant 0 : index
    %c0_1 = arith.constant 0 : index
    %c0_2 = arith.constant 0 : index
    %0 = vector.load %arg1[%c0, %c0_0, %c0_1, %c0_2] : memref<1x18x18x128xbf16, #tpu.memory_space<vmem>>, vector<1x16x18x128xbf16>
    %1 = vector.shape_cast %0 : vector<1x16x18x128xbf16> to vector<16x18x128xbf16>
    %2 = vector.extract_strided_slice %1 {offsets = [0, 0, 0], sizes = [16, 16, 128], strides = [1, 1, 1]} : vector<16x18x128xbf16> to vector<16x16x128xbf16>
    %3 = vector.extract_strided_slice %1 {offsets = [0, 1, 0], sizes = [16, 16, 128], strides = [1, 1, 1]} : vector<16x18x128xbf16> to vector<16x16x128xbf16>
    %4 = vector.extract_strided_slice %1 {offsets = [0, 2, 0], sizes = [16, 16, 128], strides = [1, 1, 1]} : vector<16x18x128xbf16> to vector<16x16x128xbf16>
    %c0_3 = arith.constant 0 : index
    %c1 = arith.constant 1 : index
    %c0_4 = arith.constant 0 : index
    %c0_5 = arith.constant 0 : index
    %5 = vector.load %arg1[%c0_3, %c1, %c0_4, %c0_5] : memref<1x18x18x128xbf16, #tpu.memory_space<vmem>>, vector<1x16x18x128xbf16>
    %6 = vector.shape_cast %5 : vector<1x16x18x128xbf16> to vector<16x18x128xbf16>
    %7 = vector.extract_strided_slice %6 {offsets = [0, 0, 0], sizes = [16, 16, 128], strides = [1, 1, 1]} : vector<16x18x128xbf16> to vector<16x16x128xbf16>
    %8 = vector.extract_strided_slice %6 {offsets = [0, 1, 0], sizes = [16, 16, 128], strides = [1, 1, 1]} : vector<16x18x128xbf16> to vector<16x16x128xbf16>
    %9 = vector.extract_strided_slice %6 {offsets = [0, 2, 0], sizes = [16, 16, 128], strides = [1, 1, 1]} : vector<16x18x128xbf16> to vector<16x16x128xbf16>
    %c0_6 = arith.constant 0 : index
    %c2 = arith.constant 2 : index
    %c0_7 = arith.constant 0 : index
    %c0_8 = arith.constant 0 : index
    %10 = vector.load %arg1[%c0_6, %c2, %c0_7, %c0_8] : memref<1x18x18x128xbf16, #tpu.memory_space<vmem>>, vector<1x16x18x128xbf16>
    %11 = vector.shape_cast %10 : vector<1x16x18x128xbf16> to vector<16x18x128xbf16>
    %12 = vector.extract_strided_slice %11 {offsets = [0, 0, 0], sizes = [16, 16, 128], strides = [1, 1, 1]} : vector<16x18x128xbf16> to vector<16x16x128xbf16>
    %13 = vector.extract_strided_slice %11 {offsets = [0, 1, 0], sizes = [16, 16, 128], strides = [1, 1, 1]} : vector<16x18x128xbf16> to vector<16x16x128xbf16>
    %14 = vector.extract_strided_slice %11 {offsets = [0, 2, 0], sizes = [16, 16, 128], strides = [1, 1, 1]} : vector<16x18x128xbf16> to vector<16x16x128xbf16>
    %15 = tpu.concatenate %2, %3, %4, %7, %8, %9, %12, %13, %14 in 2 : vector<16x16x128xbf16>, vector<16x16x128xbf16>, vector<16x16x128xbf16>, vector<16x16x128xbf16>, vector<16x16x128xbf16>, vector<16x16x128xbf16>, vector<16x16x128xbf16>, vector<16x16x128xbf16>, vector<16x16x128xbf16> -> vector<16x16x1152xbf16>
    %16 = vector.shape_cast %15 : vector<16x16x1152xbf16> to vector<256x1152xbf16>
    %c0_9 = arith.constant 0 : index
    %c0_10 = arith.constant 0 : index
    %17 = vector.load %arg3[%c0_9, %c0_10] : memref<1152x128xbf16, #tpu.memory_space<vmem>>, vector<1152x128xbf16>
    %cst = arith.constant dense<0.000000e+00> : vector<256x128xf32>
    %18 = tpu.matmul %16, %17, %cst {dimension_numbers = #tpu.dot_dimension_numbers<[1], [0], [0], [1], [0, 0, 1, 1], [], []>} : vector<256x1152xbf16>, vector<1152x128xbf16>, vector<256x128xf32> -> vector<256x128xf32>
    %c0_11 = arith.constant 0 : index
    %c0_12 = arith.constant 0 : index
    %19 = vector.load %arg4[%c0_11, %c0_12] : memref<1x128xf32, #tpu.memory_space<vmem>>, vector<1x128xf32>
    %20 = vector.broadcast %19 : vector<1x128xf32> to vector<256x128xf32>
    %21 = arith.addf %18, %20 : vector<256x128xf32>
    %cst_13 = arith.constant 0.000000e+00 : f32
    %22 = vector.broadcast %cst_13 : f32 to vector<256x128xf32>
    %23 = arith.maximumf %21, %22 : vector<256x128xf32>
    %cst_14 = arith.constant 0.000000e+00 : bf16
    %24 = vector.broadcast %cst_14 : bf16 to vector<18x18x128xbf16>
    %c0_15 = arith.constant 0 : index
    %c0_16 = arith.constant 0 : index
    %c0_17 = arith.constant 0 : index
    %25 = vector.load %arg10[%c0_15, %c0_16, %c0_17] : memref<18x18x128xbf16, #tpu.memory_space<vmem>>, vector<18x18x128xbf16>
    tpu.vector_store %arg10[%c0_15, %c0_16, %c0_17], %24 {strides = array<i32>} : memref<18x18x128xbf16, #tpu.memory_space<vmem>>, vector<18x18x128xbf16>,
    %26 = vector.shape_cast %23 : vector<256x128xf32> to vector<16x16x128xf32>
    %27 = arith.truncf %26 : vector<16x16x128xf32> to vector<16x16x128xbf16>
    %c1_18 = arith.constant 1 : index
    %c1_19 = arith.constant 1 : index
    %c0_20 = arith.constant 0 : index
    %28 = vector.load %arg10[%c1_18, %c1_19, %c0_20] : memref<18x18x128xbf16, #tpu.memory_space<vmem>>, vector<16x16x128xbf16>
    tpu.vector_store %arg10[%c1_18, %c1_19, %c0_20], %27 {strides = array<i32>} : memref<18x18x128xbf16, #tpu.memory_space<vmem>>, vector<16x16x128xbf16>,
    %c0_21 = arith.constant 0 : index
    %c0_22 = arith.constant 0 : index
    %c0_23 = arith.constant 0 : index
    %29 = vector.load %arg10[%c0_21, %c0_22, %c0_23] : memref<18x18x128xbf16, #tpu.memory_space<vmem>>, vector<16x18x128xbf16>
    %30 = vector.extract_strided_slice %29 {offsets = [0, 0, 0], sizes = [16, 16, 128], strides = [1, 1, 1]} : vector<16x18x128xbf16> to vector<16x16x128xbf16>
    %31 = vector.extract_strided_slice %29 {offsets = [0, 1, 0], sizes = [16, 16, 128], strides = [1, 1, 1]} : vector<16x18x128xbf16> to vector<16x16x128xbf16>
    %32 = vector.extract_strided_slice %29 {offsets = [0, 2, 0], sizes = [16, 16, 128], strides = [1, 1, 1]} : vector<16x18x128xbf16> to vector<16x16x128xbf16>
    %c1_24 = arith.constant 1 : index
    %c0_25 = arith.constant 0 : index
    %c0_26 = arith.constant 0 : index
    %33 = vector.load %arg10[%c1_24, %c0_25, %c0_26] : memref<18x18x128xbf16, #tpu.memory_space<vmem>>, vector<16x18x128xbf16>
    %34 = vector.extract_strided_slice %33 {offsets = [0, 0, 0], sizes = [16, 16, 128], strides = [1, 1, 1]} : vector<16x18x128xbf16> to vector<16x16x128xbf16>
    %35 = vector.extract_strided_slice %33 {offsets = [0, 1, 0], sizes = [16, 16, 128], strides = [1, 1, 1]} : vector<16x18x128xbf16> to vector<16x16x128xbf16>
    %36 = vector.extract_strided_slice %33 {offsets = [0, 2, 0], sizes = [16, 16, 128], strides = [1, 1, 1]} : vector<16x18x128xbf16> to vector<16x16x128xbf16>
    %c2_27 = arith.constant 2 : index
    %c0_28 = arith.constant 0 : index
    %c0_29 = arith.constant 0 : index
    %37 = vector.load %arg10[%c2_27, %c0_28, %c0_29] : memref<18x18x128xbf16, #tpu.memory_space<vmem>>, vector<16x18x128xbf16>
    %38 = vector.extract_strided_slice %37 {offsets = [0, 0, 0], sizes = [16, 16, 128], strides = [1, 1, 1]} : vector<16x18x128xbf16> to vector<16x16x128xbf16>
    %39 = vector.extract_strided_slice %37 {offsets = [0, 1, 0], sizes = [16, 16, 128], strides = [1, 1, 1]} : vector<16x18x128xbf16> to vector<16x16x128xbf16>
    %40 = vector.extract_strided_slice %37 {offsets = [0, 2, 0], sizes = [16, 16, 128], strides = [1, 1, 1]} : vector<16x18x128xbf16> to vector<16x16x128xbf16>
    %41 = tpu.concatenate %30, %31, %32, %34, %35, %36, %38, %39, %40 in 2 : vector<16x16x128xbf16>, vector<16x16x128xbf16>, vector<16x16x128xbf16>, vector<16x16x128xbf16>, vector<16x16x128xbf16>, vector<16x16x128xbf16>, vector<16x16x128xbf16>, vector<16x16x128xbf16>, vector<16x16x128xbf16> -> vector<16x16x1152xbf16>
    %42 = vector.shape_cast %41 : vector<16x16x1152xbf16> to vector<256x1152xbf16>
    %c0_30 = arith.constant 0 : index
    %c0_31 = arith.constant 0 : index
    %43 = vector.load %arg5[%c0_30, %c0_31] : memref<1152x128xbf16, #tpu.memory_space<vmem>>, vector<1152x128xbf16>
    %cst_32 = arith.constant dense<0.000000e+00> : vector<256x128xf32>
    %44 = tpu.matmul %42, %43, %cst_32 {dimension_numbers = #tpu.dot_dimension_numbers<[1], [0], [0], [1], [0, 0, 1, 1], [], []>} : vector<256x1152xbf16>, vector<1152x128xbf16>, vector<256x128xf32> -> vector<256x128xf32>
    %c0_33 = arith.constant 0 : index
    %c0_34 = arith.constant 0 : index
    %45 = vector.load %arg6[%c0_33, %c0_34] : memref<1x128xf32, #tpu.memory_space<vmem>>, vector<1x128xf32>
    %46 = vector.broadcast %45 : vector<1x128xf32> to vector<256x128xf32>
    %47 = arith.addf %44, %46 : vector<256x128xf32>
    %c0_35 = arith.constant 0 : index
    %c0_36 = arith.constant 0 : index
    %c0_37 = arith.constant 0 : index
    %c0_38 = arith.constant 0 : index
    %48 = vector.load %arg2[%c0_35, %c0_36, %c0_37, %c0_38] : memref<1x16x16x128xbf16, #tpu.memory_space<vmem>>, vector<1x16x16x128xbf16>
    %49 = vector.shape_cast %48 : vector<1x16x16x128xbf16> to vector<16x16x128xbf16>
    %50 = vector.shape_cast %49 : vector<16x16x128xbf16> to vector<256x128xbf16>
    %c0_39 = arith.constant 0 : index
    %c0_40 = arith.constant 0 : index
    %51 = vector.load %arg7[%c0_39, %c0_40] : memref<128x128xbf16, #tpu.memory_space<vmem>>, vector<128x128xbf16>
    %cst_41 = arith.constant dense<0.000000e+00> : vector<256x128xf32>
    %52 = tpu.matmul %50, %51, %cst_41 {dimension_numbers = #tpu.dot_dimension_numbers<[1], [0], [0], [1], [0, 0, 1, 1], [], []>} : vector<256x128xbf16>, vector<128x128xbf16>, vector<256x128xf32> -> vector<256x128xf32>
    %c0_42 = arith.constant 0 : index
    %c0_43 = arith.constant 0 : index
    %53 = vector.load %arg8[%c0_42, %c0_43] : memref<1x128xf32, #tpu.memory_space<vmem>>, vector<1x128xf32>
    %54 = vector.broadcast %53 : vector<1x128xf32> to vector<256x128xf32>
    %55 = arith.addf %52, %54 : vector<256x128xf32>
    %56 = arith.addf %47, %55 : vector<256x128xf32>
    %cst_44 = arith.constant 0.000000e+00 : f32
    %57 = vector.broadcast %cst_44 : f32 to vector<256x128xf32>
    %58 = arith.maximumf %56, %57 : vector<256x128xf32>
    %59 = vector.shape_cast %58 : vector<256x128xf32> to vector<16x16x128xf32>
    %c0_45 = arith.constant 0 : index
    %c0_46 = arith.constant 0 : index
    %c0_47 = arith.constant 0 : index
    %c0_48 = arith.constant 0 : index
    %60 = vector.load %arg9[%c0_45, %c0_46, %c0_47, %c0_48] : memref<1x16x16x128xf32, #tpu.memory_space<vmem>>, vector<1x16x16x128xf32>
    %61 = vector.shape_cast %60 : vector<1x16x16x128xf32> to vector<16x16x128xf32>
    %62 = vector.shape_cast %59 : vector<16x16x128xf32> to vector<1x16x16x128xf32>
    tpu.vector_store %arg9[%c0_45, %c0_46, %c0_47, %c0_48], %62 {strides = array<i32>} : memref<1x16x16x128xf32, #tpu.memory_space<vmem>>, vector<1x16x16x128xf32>,
    return
  }
  func.func @transform_0(%arg0: i32) -> (i32, i32, i32, i32) {
    %c0_i32 = arith.constant 0 : i32
    %c0_i32_0 = arith.constant 0 : i32
    %c0_i32_1 = arith.constant 0 : i32
    %c0_i32_2 = arith.constant 0 : i32
    return %arg0, %c0_i32, %c0_i32_0, %c0_i32_1 : i32, i32, i32, i32
  }
  func.func @transform_1(%arg0: i32) -> (i32, i32, i32, i32) {
    %c0_i32 = arith.constant 0 : i32
    %c0_i32_0 = arith.constant 0 : i32
    %c0_i32_1 = arith.constant 0 : i32
    %c0_i32_2 = arith.constant 0 : i32
    return %arg0, %c0_i32, %c0_i32_0, %c0_i32_1 : i32, i32, i32, i32
  }
  func.func @transform_2(%arg0: i32) -> (i32, i32) {
    %c0_i32 = arith.constant 0 : i32
    %c0_i32_0 = arith.constant 0 : i32
    %c0_i32_1 = arith.constant 0 : i32
    return %c0_i32, %c0_i32_0 : i32, i32
  }
  func.func @transform_3(%arg0: i32) -> (i32, i32) {
    %c0_i32 = arith.constant 0 : i32
    %c0_i32_0 = arith.constant 0 : i32
    %c0_i32_1 = arith.constant 0 : i32
    return %c0_i32, %c0_i32_0 : i32, i32
  }
  func.func @transform_4(%arg0: i32) -> (i32, i32) {
    %c0_i32 = arith.constant 0 : i32
    %c0_i32_0 = arith.constant 0 : i32
    %c0_i32_1 = arith.constant 0 : i32
    return %c0_i32, %c0_i32_0 : i32, i32
  }
  func.func @transform_5(%arg0: i32) -> (i32, i32) {
    %c0_i32 = arith.constant 0 : i32
    %c0_i32_0 = arith.constant 0 : i32
    %c0_i32_1 = arith.constant 0 : i32
    return %c0_i32, %c0_i32_0 : i32, i32
  }
  func.func @transform_6(%arg0: i32) -> (i32, i32) {
    %c0_i32 = arith.constant 0 : i32
    %c0_i32_0 = arith.constant 0 : i32
    %c0_i32_1 = arith.constant 0 : i32
    return %c0_i32, %c0_i32_0 : i32, i32
  }
  func.func @transform_7(%arg0: i32) -> (i32, i32) {
    %c0_i32 = arith.constant 0 : i32
    %c0_i32_0 = arith.constant 0 : i32
    %c0_i32_1 = arith.constant 0 : i32
    return %c0_i32, %c0_i32_0 : i32, i32
  }
  func.func @transform_8(%arg0: i32) -> (i32, i32, i32, i32) {
    %c0_i32 = arith.constant 0 : i32
    %c0_i32_0 = arith.constant 0 : i32
    %c0_i32_1 = arith.constant 0 : i32
    %c0_i32_2 = arith.constant 0 : i32
    return %arg0, %c0_i32, %c0_i32_0, %c0_i32_1 : i32, i32, i32, i32
  }
}

module attributes {stable_mosaic.version = 11 : i64} {
  func.func @kernel(%arg0: i32, %arg1: memref<1x18x18x128xbf16, #tpu.memory_space<vmem>>, %arg2: memref<1x16x16x128xbf16, #tpu.memory_space<vmem>>, %arg3: memref<1152x128xbf16, #tpu.memory_space<vmem>>, %arg4: memref<1x128xf32, #tpu.memory_space<vmem>>, %arg5: memref<1152x128xbf16, #tpu.memory_space<vmem>>, %arg6: memref<1x128xf32, #tpu.memory_space<vmem>>, %arg7: memref<128x128xbf16, #tpu.memory_space<vmem>>, %arg8: memref<1x128xf32, #tpu.memory_space<vmem>>, %arg9: memref<1x16x16x128xf32, #tpu.memory_space<vmem>>, %arg10: memref<18x18x128xbf16, #tpu.memory_space<vmem>>) attributes {dimension_semantics = [#tpu.dimension_semantics<parallel>], iteration_bounds = array<i64: 2>, scalar_prefetch = 0 : i64, scratch_operands = 1 : i64, tpu.core_type = #tpu.core_type<tc>, window_params = [{transform_indices = @transform_0, window_bounds = array<i64: 1, 18, 18, 128>}, {transform_indices = @transform_1, window_bounds = array<i64: 1, 16, 16, 128>}, {pipeline_mode = #tpu.pipeline_mode<synchronous>, transform_indices = @transform_2, window_bounds = array<i64: 1152, 128>}, {pipeline_mode = #tpu.pipeline_mode<synchronous>, transform_indices = @transform_3, window_bounds = array<i64: 1, 128>}, {pipeline_mode = #tpu.pipeline_mode<synchronous>, transform_indices = @transform_4, window_bounds = array<i64: 1152, 128>}, {pipeline_mode = #tpu.pipeline_mode<synchronous>, transform_indices = @transform_5, window_bounds = array<i64: 1, 128>}, {pipeline_mode = #tpu.pipeline_mode<synchronous>, transform_indices = @transform_6, window_bounds = array<i64: 128, 128>}, {pipeline_mode = #tpu.pipeline_mode<synchronous>, transform_indices = @transform_7, window_bounds = array<i64: 1, 128>}, {transform_indices = @transform_8, window_bounds = array<i64: 1, 16, 16, 128>}]} {
    %c0 = arith.constant 0 : index
    %c0_0 = arith.constant 0 : index
    %c0_1 = arith.constant 0 : index
    %c0_2 = arith.constant 0 : index
    %0 = vector.load %arg1[%c0, %c0_0, %c0_1, %c0_2] : memref<1x18x18x128xbf16, #tpu.memory_space<vmem>>, vector<1x16x18x128xbf16>
    %1 = vector.shape_cast %0 : vector<1x16x18x128xbf16> to vector<16x18x128xbf16>
    %2 = vector.extract_strided_slice %1 {offsets = [0, 0, 0], sizes = [16, 16, 128], strides = [1, 1, 1]} : vector<16x18x128xbf16> to vector<16x16x128xbf16>
    %3 = vector.extract_strided_slice %1 {offsets = [0, 1, 0], sizes = [16, 16, 128], strides = [1, 1, 1]} : vector<16x18x128xbf16> to vector<16x16x128xbf16>
    %4 = vector.extract_strided_slice %1 {offsets = [0, 2, 0], sizes = [16, 16, 128], strides = [1, 1, 1]} : vector<16x18x128xbf16> to vector<16x16x128xbf16>
    %c0_3 = arith.constant 0 : index
    %c1 = arith.constant 1 : index
    %c0_4 = arith.constant 0 : index
    %c0_5 = arith.constant 0 : index
    %5 = vector.load %arg1[%c0_3, %c1, %c0_4, %c0_5] : memref<1x18x18x128xbf16, #tpu.memory_space<vmem>>, vector<1x16x18x128xbf16>
    %6 = vector.shape_cast %5 : vector<1x16x18x128xbf16> to vector<16x18x128xbf16>
    %7 = vector.extract_strided_slice %6 {offsets = [0, 0, 0], sizes = [16, 16, 128], strides = [1, 1, 1]} : vector<16x18x128xbf16> to vector<16x16x128xbf16>
    %8 = vector.extract_strided_slice %6 {offsets = [0, 1, 0], sizes = [16, 16, 128], strides = [1, 1, 1]} : vector<16x18x128xbf16> to vector<16x16x128xbf16>
    %9 = vector.extract_strided_slice %6 {offsets = [0, 2, 0], sizes = [16, 16, 128], strides = [1, 1, 1]} : vector<16x18x128xbf16> to vector<16x16x128xbf16>
    %c0_6 = arith.constant 0 : index
    %c2 = arith.constant 2 : index
    %c0_7 = arith.constant 0 : index
    %c0_8 = arith.constant 0 : index
    %10 = vector.load %arg1[%c0_6, %c2, %c0_7, %c0_8] : memref<1x18x18x128xbf16, #tpu.memory_space<vmem>>, vector<1x16x18x128xbf16>
    %11 = vector.shape_cast %10 : vector<1x16x18x128xbf16> to vector<16x18x128xbf16>
    %12 = vector.extract_strided_slice %11 {offsets = [0, 0, 0], sizes = [16, 16, 128], strides = [1, 1, 1]} : vector<16x18x128xbf16> to vector<16x16x128xbf16>
    %13 = vector.extract_strided_slice %11 {offsets = [0, 1, 0], sizes = [16, 16, 128], strides = [1, 1, 1]} : vector<16x18x128xbf16> to vector<16x16x128xbf16>
    %14 = vector.extract_strided_slice %11 {offsets = [0, 2, 0], sizes = [16, 16, 128], strides = [1, 1, 1]} : vector<16x18x128xbf16> to vector<16x16x128xbf16>
    %15 = tpu.concatenate %2, %3, %4, %7, %8, %9, %12, %13, %14 in 2 : vector<16x16x128xbf16>, vector<16x16x128xbf16>, vector<16x16x128xbf16>, vector<16x16x128xbf16>, vector<16x16x128xbf16>, vector<16x16x128xbf16>, vector<16x16x128xbf16>, vector<16x16x128xbf16>, vector<16x16x128xbf16> -> vector<16x16x1152xbf16>
    %16 = vector.shape_cast %15 : vector<16x16x1152xbf16> to vector<256x1152xbf16>
    %c0_9 = arith.constant 0 : index
    %c0_10 = arith.constant 0 : index
    %17 = vector.load %arg3[%c0_9, %c0_10] : memref<1152x128xbf16, #tpu.memory_space<vmem>>, vector<1152x128xbf16>
    %cst = arith.constant dense<0.000000e+00> : vector<256x128xf32>
    %18 = tpu.matmul %16, %17, %cst {dimension_numbers = #tpu.dot_dimension_numbers<[1], [0], [0], [1], [0, 0, 1, 1], [], []>} : vector<256x1152xbf16>, vector<1152x128xbf16>, vector<256x128xf32> -> vector<256x128xf32>
    %c0_11 = arith.constant 0 : index
    %c0_12 = arith.constant 0 : index
    %19 = vector.load %arg4[%c0_11, %c0_12] : memref<1x128xf32, #tpu.memory_space<vmem>>, vector<1x128xf32>
    %20 = vector.broadcast %19 : vector<1x128xf32> to vector<256x128xf32>
    %21 = arith.addf %18, %20 : vector<256x128xf32>
    %cst_13 = arith.constant 0.000000e+00 : f32
    %22 = vector.broadcast %cst_13 : f32 to vector<256x128xf32>
    %23 = arith.maximumf %21, %22 : vector<256x128xf32>
    %cst_14 = arith.constant 0.000000e+00 : bf16
    %24 = vector.broadcast %cst_14 : bf16 to vector<18x18x128xbf16>
    %c0_15 = arith.constant 0 : index
    %c0_16 = arith.constant 0 : index
    %c0_17 = arith.constant 0 : index
    %25 = vector.load %arg10[%c0_15, %c0_16, %c0_17] : memref<18x18x128xbf16, #tpu.memory_space<vmem>>, vector<18x18x128xbf16>
    tpu.vector_store %arg10[%c0_15, %c0_16, %c0_17], %24 {strides = array<i32>} : memref<18x18x128xbf16, #tpu.memory_space<vmem>>, vector<18x18x128xbf16>,
    %26 = vector.shape_cast %23 : vector<256x128xf32> to vector<16x16x128xf32>
    %27 = arith.truncf %26 : vector<16x16x128xf32> to vector<16x16x128xbf16>
    %c1_18 = arith.constant 1 : index
    %c1_19 = arith.constant 1 : index
    %c0_20 = arith.constant 0 : index
    %28 = vector.load %arg10[%c1_18, %c1_19, %c0_20] : memref<18x18x128xbf16, #tpu.memory_space<vmem>>, vector<16x16x128xbf16>
    tpu.vector_store %arg10[%c1_18, %c1_19, %c0_20], %27 {strides = array<i32>} : memref<18x18x128xbf16, #tpu.memory_space<vmem>>, vector<16x16x128xbf16>,
    %c0_21 = arith.constant 0 : index
    %c0_22 = arith.constant 0 : index
    %c0_23 = arith.constant 0 : index
    %29 = vector.load %arg10[%c0_21, %c0_22, %c0_23] : memref<18x18x128xbf16, #tpu.memory_space<vmem>>, vector<16x18x128xbf16>
    %30 = vector.extract_strided_slice %29 {offsets = [0, 0, 0], sizes = [16, 16, 128], strides = [1, 1, 1]} : vector<16x18x128xbf16> to vector<16x16x128xbf16>
    %31 = vector.extract_strided_slice %29 {offsets = [0, 1, 0], sizes = [16, 16, 128], strides = [1, 1, 1]} : vector<16x18x128xbf16> to vector<16x16x128xbf16>
    %32 = vector.extract_strided_slice %29 {offsets = [0, 2, 0], sizes = [16, 16, 128], strides = [1, 1, 1]} : vector<16x18x128xbf16> to vector<16x16x128xbf16>
    %c1_24 = arith.constant 1 : index
    %c0_25 = arith.constant 0 : index
    %c0_26 = arith.constant 0 : index
    %33 = vector.load %arg10[%c1_24, %c0_25, %c0_26] : memref<18x18x128xbf16, #tpu.memory_space<vmem>>, vector<16x18x128xbf16>
    %34 = vector.extract_strided_slice %33 {offsets = [0, 0, 0], sizes = [16, 16, 128], strides = [1, 1, 1]} : vector<16x18x128xbf16> to vector<16x16x128xbf16>
    %35 = vector.extract_strided_slice %33 {offsets = [0, 1, 0], sizes = [16, 16, 128], strides = [1, 1, 1]} : vector<16x18x128xbf16> to vector<16x16x128xbf16>
    %36 = vector.extract_strided_slice %33 {offsets = [0, 2, 0], sizes = [16, 16, 128], strides = [1, 1, 1]} : vector<16x18x128xbf16> to vector<16x16x128xbf16>
    %c2_27 = arith.constant 2 : index
    %c0_28 = arith.constant 0 : index
    %c0_29 = arith.constant 0 : index
    %37 = vector.load %arg10[%c2_27, %c0_28, %c0_29] : memref<18x18x128xbf16, #tpu.memory_space<vmem>>, vector<16x18x128xbf16>
    %38 = vector.extract_strided_slice %37 {offsets = [0, 0, 0], sizes = [16, 16, 128], strides = [1, 1, 1]} : vector<16x18x128xbf16> to vector<16x16x128xbf16>
    %39 = vector.extract_strided_slice %37 {offsets = [0, 1, 0], sizes = [16, 16, 128], strides = [1, 1, 1]} : vector<16x18x128xbf16> to vector<16x16x128xbf16>
    %40 = vector.extract_strided_slice %37 {offsets = [0, 2, 0], sizes = [16, 16, 128], strides = [1, 1, 1]} : vector<16x18x128xbf16> to vector<16x16x128xbf16>
    %41 = tpu.concatenate %30, %31, %32, %34, %35, %36, %38, %39, %40 in 2 : vector<16x16x128xbf16>, vector<16x16x128xbf16>, vector<16x16x128xbf16>, vector<16x16x128xbf16>, vector<16x16x128xbf16>, vector<16x16x128xbf16>, vector<16x16x128xbf16>, vector<16x16x128xbf16>, vector<16x16x128xbf16> -> vector<16x16x1152xbf16>
    %42 = vector.shape_cast %41 : vector<16x16x1152xbf16> to vector<256x1152xbf16>
    %c0_30 = arith.constant 0 : index
    %c0_31 = arith.constant 0 : index
    %43 = vector.load %arg5[%c0_30, %c0_31] : memref<1152x128xbf16, #tpu.memory_space<vmem>>, vector<1152x128xbf16>
    %cst_32 = arith.constant dense<0.000000e+00> : vector<256x128xf32>
    %44 = tpu.matmul %42, %43, %cst_32 {dimension_numbers = #tpu.dot_dimension_numbers<[1], [0], [0], [1], [0, 0, 1, 1], [], []>} : vector<256x1152xbf16>, vector<1152x128xbf16>, vector<256x128xf32> -> vector<256x128xf32>
    %c0_33 = arith.constant 0 : index
    %c0_34 = arith.constant 0 : index
    %45 = vector.load %arg6[%c0_33, %c0_34] : memref<1x128xf32, #tpu.memory_space<vmem>>, vector<1x128xf32>
    %46 = vector.broadcast %45 : vector<1x128xf32> to vector<256x128xf32>
    %47 = arith.addf %44, %46 : vector<256x128xf32>
    %c0_35 = arith.constant 0 : index
    %c0_36 = arith.constant 0 : index
    %c0_37 = arith.constant 0 : index
    %c0_38 = arith.constant 0 : index
    %48 = vector.load %arg2[%c0_35, %c0_36, %c0_37, %c0_38] : memref<1x16x16x128xbf16, #tpu.memory_space<vmem>>, vector<1x16x16x128xbf16>
    %49 = vector.shape_cast %48 : vector<1x16x16x128xbf16> to vector<16x16x128xbf16>
    %50 = vector.shape_cast %49 : vector<16x16x128xbf16> to vector<256x128xbf16>
    %c0_39 = arith.constant 0 : index
    %c0_40 = arith.constant 0 : index
    %51 = vector.load %arg7[%c0_39, %c0_40] : memref<128x128xbf16, #tpu.memory_space<vmem>>, vector<128x128xbf16>
    %cst_41 = arith.constant dense<0.000000e+00> : vector<256x128xf32>
    %52 = tpu.matmul %50, %51, %cst_41 {dimension_numbers = #tpu.dot_dimension_numbers<[1], [0], [0], [1], [0, 0, 1, 1], [], []>} : vector<256x128xbf16>, vector<128x128xbf16>, vector<256x128xf32> -> vector<256x128xf32>
    %c0_42 = arith.constant 0 : index
    %c0_43 = arith.constant 0 : index
    %53 = vector.load %arg8[%c0_42, %c0_43] : memref<1x128xf32, #tpu.memory_space<vmem>>, vector<1x128xf32>
    %54 = vector.broadcast %53 : vector<1x128xf32> to vector<256x128xf32>
    %55 = arith.addf %52, %54 : vector<256x128xf32>
    %56 = arith.addf %47, %55 : vector<256x128xf32>
    %cst_44 = arith.constant 0.000000e+00 : f32
    %57 = vector.broadcast %cst_44 : f32 to vector<256x128xf32>
    %58 = arith.maximumf %56, %57 : vector<256x128xf32>
    %59 = vector.shape_cast %58 : vector<256x128xf32> to vector<16x16x128xf32>
    %c0_45 = arith.constant 0 : index
    %c0_46 = arith.constant 0 : index
    %c0_47 = arith.constant 0 : index
    %c0_48 = arith.constant 0 : index
    %60 = vector.load %arg9[%c0_45, %c0_46, %c0_47, %c0_48] : memref<1x16x16x128xf32, #tpu.memory_space<vmem>>, vector<1x16x16x128xf32>
    %61 = vector.shape_cast %60 : vector<1x16x16x128xf32> to vector<16x16x128xf32>
    %62 = vector.shape_cast %59 : vector<16x16x128xf32> to vector<1x16x16x128xf32>
    tpu.vector_store %arg9[%c0_45, %c0_46, %c0_47, %c0_48], %62 {strides = array<i32>} : memref<1x16x16x128xf32, #tpu.memory_space<vmem>>, vector<1x16x16x128xf32>,
    return
  }
  func.func @transform_0(%arg0: i32) -> (i32, i32, i32, i32) {
    %c0_i32 = arith.constant 0 : i32
    %c0_i32_0 = arith.constant 0 : i32
    %c0_i32_1 = arith.constant 0 : i32
    %c0_i32_2 = arith.constant 0 : i32
    return %arg0, %c0_i32, %c0_i32_0, %c0_i32_1 : i32, i32, i32, i32
  }
  func.func @transform_1(%arg0: i32) -> (i32, i32, i32, i32) {
    %c0_i32 = arith.constant 0 : i32
    %c0_i32_0 = arith.constant 0 : i32
    %c0_i32_1 = arith.constant 0 : i32
    %c0_i32_2 = arith.constant 0 : i32
    return %arg0, %c0_i32, %c0_i32_0, %c0_i32_1 : i32, i32, i32, i32
  }
  func.func @transform_2(%arg0: i32) -> (i32, i32) {
    %c0_i32 = arith.constant 0 : i32
    %c0_i32_0 = arith.constant 0 : i32
    %c0_i32_1 = arith.constant 0 : i32
    return %c0_i32, %c0_i32_0 : i32, i32
  }
  func.func @transform_3(%arg0: i32) -> (i32, i32) {
    %c0_i32 = arith.constant 0 : i32
    %c0_i32_0 = arith.constant 0 : i32
    %c0_i32_1 = arith.constant 0 : i32
    return %c0_i32, %c0_i32_0 : i32, i32
  }
  func.func @transform_4(%arg0: i32) -> (i32, i32) {
    %c0_i32 = arith.constant 0 : i32
    %c0_i32_0 = arith.constant 0 : i32
    %c0_i32_1 = arith.constant 0 : i32
    return %c0_i32, %c0_i32_0 : i32, i32
  }
  func.func @transform_5(%arg0: i32) -> (i32, i32) {
    %c0_i32 = arith.constant 0 : i32
    %c0_i32_0 = arith.constant 0 : i32
    %c0_i32_1 = arith.constant 0 : i32
    return %c0_i32, %c0_i32_0 : i32, i32
  }
  func.func @transform_6(%arg0: i32) -> (i32, i32) {
    %c0_i32 = arith.constant 0 : i32
    %c0_i32_0 = arith.constant 0 : i32
    %c0_i32_1 = arith.constant 0 : i32
    return %c0_i32, %c0_i32_0 : i32, i32
  }
  func.func @transform_7(%arg0: i32) -> (i32, i32) {
    %c0_i32 = arith.constant 0 : i32
    %c0_i32_0 = arith.constant 0 : i32
    %c0_i32_1 = arith.constant 0 : i32
    return %c0_i32, %c0_i32_0 : i32, i32
  }
  func.func @transform_8(%arg0: i32) -> (i32, i32, i32, i32) {
    %c0_i32 = arith.constant 0 : i32
    %c0_i32_0 = arith.constant 0 : i32
    %c0_i32_1 = arith.constant 0 : i32
    %c0_i32_2 = arith.constant 0 : i32
    return %arg0, %c0_i32, %c0_i32_0, %c0_i32_1 : i32, i32, i32, i32
  }
}

</mosaic_0001>

<bundles_post_ra>
// kernel: tpu_custom_call.1
= control target key start
LH: loop header
LB: loop body
LE: loop exit
PB: predicated region body
PF: predicated region fallthrough
CT: control target
= control target key end

     0   :  { %13 = vsyncpa [#allocation4], 0  ;;  %s12032_s0 = inlined_call_operand.vmem [shape: bf16[2,18,18,128], index: 0, kind: input, shape index: {}]   ;;  %s12033_s1 = inlined_call_operand.hbm [shape: bf16[2,16,16,128], index: 1, kind: input, shape index: {}]   ;;  %s12034_s2 = inlined_call_operand.vmem [shape: bf16[1152,128], index: 2, kind: input, shape index: {}]   ;;  %s12035_s3 = inlined_call_operand.vmem [shape: f32[1,128], index: 3, kind: input, shape index: {}]   ;;  %s12036_s4 = inlined_call_operand.hbm [shape: bf16[1152,128], index: 4, kind: input, shape index: {}]   ;;  %s12037_s5 = inlined_call_operand.vmem [shape: f32[1,128], index: 5, kind: input, shape index: {}]   ;;  %s12038_s6 = inlined_call_operand.vmem [shape: bf16[128,128], index: 6, kind: input, shape index: {}]   ;;  %s12039_s7 = inlined_call_operand.vmem [shape: f32[1,128], index: 7, kind: input, shape index: {}]   ;;  %s12040_s8 = inlined_call_operand.hbm [shape: f32[2,16,16,128], index: 8, kind: output, shape index: {}]  }
   0x1   :  { %15 = vsyncpa [#allocation4 + $0x1], 0 }
   0x2   :  { %16 = vsyncpa [#allocation7], 0 }
   0x3   :  { %17 = vsyncpa [#allocation5], 0 }
   0x4   :  { %19 = vsyncpa [#allocation5 + $0x1], 0  ;;  %s9513_s27 = smov 0   ;;  %s9515_s28 = smov 0  }
   0x5   :  { %s9517_s29 = smov 0   ;;  %s9519_s30 = smov 0  }
   0x6 LB: > { %s9534_s9 = sadd.s32 4294967295, %s9458_s30   ;;  %s7113_s10 = sadd.s32 4294967294, %s9458_s30   ;;  %s9458_s30 = sphi %s9519_s30, %s12151_s30   ;;  %s9454_s29 = sphi %s9517_s29, %s12154_s29   ;;  %s9450_s28 = sphi %s9515_s28, %s12153_s28   ;;  %s9446_s27 = sphi %s9513_s27, %s12152_s27  }
   0x7   : > { %p71_p0 = scmp.ne.s32.totalorder %s9450_s28, %s9446_s27  ;;  %p12041_p1 = scmp.eq.s32.totalorder %s9534_s9, 0 }
   0x8   : > { %p227_p3 = scmp.eq.s32.totalorder %s7113_s10, 1  ;;  %p7114_p5 = scmp.ge.s32.totalorder %s9458_s30, 1 }
   0x9   : > { %p9543_p4 = por %p12041_p1, %p71_p0  ;;  %p234_p7 = scmp.lt.s32.totalorder %s9458_s30, 3 }
   0xa   : > { %p9548_p6 = por %p227_p3, %p71_p0  ;;  %s9460_s14 = smov [#allocation6]  }
   0xb   : > { %s12057_s11 = scalar_select %p9543_p4, 1, 0 }
   0xc   : > { %s12058_s12 = scalar_select %p9548_p6, 1, 0 }
   0xd   : > { %p9553_p8 = pnand %p7114_p5, %p234_p7  ;;  %s252_s15 = sshll.u32 %s9460_s14, 4  ;;  %s9557_s15 = int_to_ptr.vmem [resolvable:$true] %s252_s15 }
   0xe   : > { %s9569_s17 = sadd.s32 1, %s9458_s30   ;;  %s58_s18 = sadd.s32 1, %s9454_s29 }
   0xf   : > { %s12059_s13 = scalar_select %p9553_p8, 1, 0 }
  0x10   : > { %p8888_p9 = pneg %p9553_p8  ;;  %12061 = sst [smem:[#allocation12_spill]] %s9569_s17 }
  0x11   : > { %s55_s19 = ssub.s32 %s9458_s30, %s9569_s17  ;;  %s9330_s22 = scalar_lea.hbm %s12036_s4, 9216 }
  0x12   : > { %p9564_p11 = pnand %p8888_p9, %p12041_p1  ;;  %p9331_p12 = scmp.ne.s32.totalorder %s12036_s4, %s9330_s22 }
  0x13   : > { %p9337_p5 = scmp.lt.u32.totalorder %s9330_s22, %s12036_s4 }
  0x14   : > { %p9332_p13 = pneg %p9564_p11 }
  0x16   : > { %p9333_p0 = pnand %p9332_p13, %p9331_p12 }
  0x18   : > { %p9334_p3 = pneg %p9333_p0 }
  0x1a   : > { %p9339_p7 = pnand %p9337_p5, %p9334_p3 }
  0x1c   : > { %9342 = shalt.err (!%p9339_p7)
}
  0x1d   : > { %s9343_s10 = scalar_lea.vmem %s9557_s15, 9216  ;;  %p9351_p2 = scmp.lt.s32.totalorder %s9557_s15, %s9557_s15 }
  0x1e   : > { %p9344_p9 = scmp.ne.s32.totalorder %s9557_s15, %s9343_s10  ;;  %p9352_p6 = scmp.lt.s32.totalorder %s9343_s10, %s9343_s10 }
  0x20   : > { %p9346_p10 = pnand %p9344_p9, %p9332_p13  ;;  %p9353_p4 = por %p9352_p6, %p9351_p2 }
  0x22   : > { %p9347_p1 = pneg %p9346_p10 }
  0x24   : > { %p9354_p8 = pnand %p9353_p4, %p9347_p1 }
  0x26   : > { %9357 = shalt.err (!%p9354_p8)
}
  0x27   : > { %s12046_s14 = smov 64   ;;  %s9462_s20 = smov 4  }
  0x28   : > { %8891 = dma.hbm_to_vmem [thread:$0]  (!%p9564_p11), %s12036_s4, 9216, %s9557_s15, [#allocation7], %s12046_s14, %s12046_s14, %s9462_s20  }
  0x29   : > { %p56_p1 = scmp.eq.s32.totalorder %s55_s19, 0  ;;  %p65_p2 = scmp.ne.s32.totalorder %s9454_s29, %s9450_s28 }
  0x2a   : > { %p66_p4 = scmp.eq.s32.totalorder %s9458_s30, 0  ;;  %p8901_p6 = scmp.lt.s32.totalorder %s9458_s30, 2 }
  0x2b   : > { %s9603_s23 = scalar_select %p56_p1, %s9454_s29, %s58_s18  }
  0x2c   : > { %p67_p8 = por %p66_p4, %p65_p2  ;;  %p12062_p10 = scmp.eq.s32.totalorder %s9534_s9, 1 }
  0x2d   : > { %s283_s16 = sand.u32 1, %s9454_s29   ;;  %s7621_s25 = sshll.u32 %s9458_s30, 11 }
  0x2e   : > { %p9607_p12 = por %p12062_p10, %p65_p2  ;;  %s7117_s26 = sshll.u32 %s283_s16, 7 }
  0x2f   : > { %s9616_s21 = scalar_lea.hbm %s12033_s1, %s7621_s25  ;;  %s287_s15 = scalar_lea.vmem [#allocation3], %s7117_s26 }
  0x30   : > { %s294_s18 = sshll.u32 %s287_s15, 4  ;;  %p9618_p11 = pnand %p8901_p6, %p67_p8  ;;  %s9622_s18 = int_to_ptr.vmem [resolvable:$true] %s294_s18 }
  0x31   : > { %s9624_s22 = scalar_lea.sflag [#allocation4], %s283_s16  ;;  %s9358_s14 = scalar_lea.hbm %s9616_s21, 2048 }
  0x32   : > { %p9359_p13 = scmp.ne.s32.totalorder %s9616_s21, %s9358_s14  ;;  %p9360_p0 = pneg %p9618_p11 }
  0x33   : > { %s9363_s26 = scalar_lea.hbm %s12033_s1, 4096  ;;  %p9364_p7 = scmp.lt.u32.totalorder %s9616_s21, %s12033_s1 }
  0x34   : > { %p9361_p3 = pnand %p9360_p0, %p9359_p13  ;;  %p9365_p9 = scmp.lt.u32.totalorder %s9363_s26, %s9358_s14 }
  0x35   : > { %p9367_p2 = scmp.lt.u32.totalorder %s9358_s14, %s9616_s21 }
  0x36   : > { %p9362_p5 = pneg %p9361_p3  ;;  %p9366_p1 = por %p9365_p9, %p9364_p7 }
  0x38   : > { %p9368_p4 = por %p9367_p2, %p9366_p1 }
  0x3a   : > { %p9369_p6 = pnand %p9368_p4, %p9362_p5 }
  0x3c   : > { %9372 = shalt.err (!%p9369_p6)
}
  0x3d   : > { %s9373_s16 = scalar_lea.vmem %s9622_s18, 2048  ;;  %s9463_s17 = smov [#allocation3]  }
  0x3e   : > { %p9374_p8 = scmp.ne.s32.totalorder %s9622_s18, %s9373_s16  ;;  %s9378_s25 = sshll.u32 %s9463_s17, 4  ;;  %s9379_s25 = int_to_ptr.vmem [resolvable:$false] %s9378_s25 }
  0x3f   : > { %s9380_s10 = scalar_lea.vmem %s9379_s25, 4096  ;;  %p9381_p3 = scmp.lt.s32.totalorder %s9622_s18, %s9379_s25 }
  0x40   : > { %p9376_p10 = pnand %p9374_p8, %p9360_p0  ;;  %p9382_p7 = scmp.lt.s32.totalorder %s9380_s10, %s9373_s16 }
  0x42   : > { %p9377_p13 = pneg %p9376_p10  ;;  %p9383_p9 = por %p9382_p7, %p9381_p3 }
  0x44   : > { %p9384_p1 = pnand %p9383_p9, %p9377_p13 }
  0x46   : > { %9387 = shalt.err (!%p9384_p1)
}
  0x47   : > { %s12065_s14 = smov 64   ;;  %p12066_p0 = scmp.ne.s32.totalorder %s12059_s13, 0 }
  0x48   : > { %8895 = dma.hbm_to_vmem [thread:$0]  (!%p9618_p11), %s9616_s21, 2048, %s9622_s18, %s9624_s22, %s12065_s14, %s12065_s14, %s9462_s20  }
  0x49   : > { %306 = sbr.rel (%p12066_p0) target bundleno = 1281 (0x501), region = 52 }
  0x50   : > { %s9658_s26 = sand.u32 1, %s9450_s28   ;;  %p12067_p5 = scmp.ne.s32.totalorder %s12057_s11, 0 }
  0x51   : > { %s7121_s15 = sshll.u32 %s9658_s26, 7  ;;  %s309_s16 = scalar_lea.sflag [#allocation4], %s9658_s26 }
  0x52   : > { %s9662_s17 = scalar_lea.vmem [#allocation3], %s7121_s15 }
  0x53   : > { %9433 = dma.done.wait (%p12067_p5), %s309_s16, 2048  }
  0x54   : > { %9435 = vsyncadd (%p12067_p5), %s309_s16, 4294965248  ;;  %p12068_p11 = scmp.eq.s32.totalorder %s9534_s9, 0 }
  0x56   : > { %9437 = dma.done.wait (%p12068_p11), [#allocation7], 9216   ;;  %p12069_p2 = pmov %p12068_p11 }
  0x57   : > { %v8942_v0 = vld [vmem:[%s12034_s2 + $0x40] sm:$0xff]   ;;  %v8944_v2 = vld [vmem:[%s12034_s2 + $0x48] sm:$0xff]   ;;  %p354_p4 = scmp.lt.s32.totalorder %s9534_s9, 1  ;;  %v8946_v4 = vld [vmem:[%s12034_s2 + $0x50] sm:$0xff]   ;;  %vm650_vm0 = vsmask.f32 7424 }
  0x58   : > { %9439 = vsyncadd (%p12069_p2), [#allocation7], 4294958080  ;;  %v8943_v1 = vld [vmem:[%s12034_s2] sm:$0xff]   ;;  %7655 = vmatprep.subr.bf16.mxu0 %v8942_v0  ;;  %v8945_v3 = vld [vmem:[%s12034_s2 + $0x8] sm:$0xff]   ;;  %vm859_vm1 = vcmask 1046528   ;;  %vm3650_vm2 = vcmask 1043456  }
  0x59   : > { %7656 = vmatpush3.bf16.msra.mxu0 %v8943_v1  ;;  %s355_s15 = scalar_select %p354_p4, %s9534_s9, 1  ;;  %v8947_v5 = vld [vmem:[%s12034_s2 + $0x10] sm:$0xff]   ;;  %v8948_v6 = vld [vmem:[%s12034_s2 + $0x58] sm:$0xff]   ;;  %v8950_v8 = vld [vmem:[%s12034_s2 + $0x60] sm:$0xff]   ;;  %vm3651_vm3 = vsmask.f32 7938 }
  0x5a   : > { %7657 = vmatprep.subr.bf16.mxu0 %v8944_v2  ;;  %v8949_v7 = vld [vmem:[%s12034_s2 + $0x18] sm:$0xff]   ;;  %v8951_v9 = vld [vmem:[%s12034_s2 + $0x20] sm:$0xff]   ;;  %v8952_v10 = vld [vmem:[%s12034_s2 + $0x68] sm:$0xff]   ;;  %vm3326_vm4 = vsmask.f32 256  ;;  %vm3657_vm6 = vcmask 1040384  }
  0x5b   : > { %s8879_s18 = smul.u32 216, %s355_s15  ;;  %v8953_v11 = vld [vmem:[%s12034_s2 + $0x28] sm:$0xff]   ;;  %v8960_v14 = vld [vmem:[%s12034_s2 + $0xc0] sm:$0xff]   ;;  %v8954_v15 = vld [vmem:[%s12034_s2 + $0x70] sm:$0xff]   ;;  %vm3327_vm5 = vsmask.f32 4368 }
  0x5c   : > { %v8961_v20 = vld [vmem:[%s12034_s2 + $0x80] sm:$0xff]   ;;  %8767 = vmatprep.subr.bf16.mxu1 %v8960_v14  ;;  %v8955_v21 = vld [vmem:[%s12034_s2 + $0x30] sm:$0xff]   ;;  %v8962_v24 = vld [vmem:[%s12034_s2 + $0xc8] sm:$0xff]   ;;  %s7123_s19 = sshll.u32 %s9658_s26, 8  ;;  %s7654_s22 = sshll.u32 %s9534_s9, 12 }
  0x5d   : > { %7658 = vmatpush3.bf16.msra.mxu0 %v8945_v3  ;;  %s9707_s20 = scalar_lea.vmem %s12032_s0, %s8879_s18  ;;  %v8956_v26 = vld [vmem:[%s12034_s2 + $0x78] sm:$0xff]   ;;  %8775 = vmatpush3.bf16.msra.mxu1 %v8961_v20  ;;  %v8965_v31 = vld [vmem:[%s12034_s2 + $0x88] sm:$0xff]   ;;  %v8966_v36 = vld [vmem:[%s12034_s2 + $0xd0] sm:$0xff]   ;;  %s11891_s11 = scalar_lea.vmem [#allocation8], %s7123_s19 }
  0x5e   : > { %7659 = vmatprep.subr.bf16.mxu0 %v8946_v4  ;;  %v8958_v12 = vld [vmem:[%s9707_s20] sm:$0xff]   ;;  %v8959_v13 = vld [vmem:[%s9707_s20 + $0x8] ss:$0 sps:$4 sm:$0x11]   ;;  %v9733_v25 = vld [vmem:[%s9707_s20 + $0xc] sm:$0xff]   ;;  %8768 = vmatprep.subr.bf16.mxu1 %v8962_v24  ;;  %s11983_s10 = scalar_lea.hbm %s12040_s8, %s7654_s22  ;;  %s7005_s9 = scalar_lea.sflag [#allocation5], %s9658_s26 }
  0x5f   : > { %v652_v16 = vshrl.u32 %v8958_v12, 16  ;;  %v654_v17 = vshll.u32 %v8958_v12, 16  ;;  %v659_v18 = vshll.u32 %v8959_v13, 16  ;;  %v861_v19 = vrot.slane %v8959_v13, 1  ;;  %v8957_v32 = vld [vmem:[%s12034_s2 + $0x38] sm:$0xff]   ;;  %v8967_v37 = vld [vmem:[%s12034_s2 + $0x90] sm:$0xff]   ;;  %vm10955_vm7 = vmand %vm3650_vm2, %vm3651_vm3 }
  0x60   : > { %v9739_v28 = vld [vmem:[%s9707_s20 + $0x14] ss:$0 sps:$4 sm:$0x11]   ;;  %v664_v29 = vshrl.u32 %v9733_v25, 16  ;;  %v666_v30 = vshll.u32 %v9733_v25, 16  ;;  %v8968_v39 = vld [vmem:[%s12034_s2 + $0xd8] sm:$0xff]   ;;  %vm10962_vm8 = vmand %vm3657_vm6, %vm3326_vm4 }
  0x61   : > { %7660 = vmatpush3.bf16.msra.mxu0 %v8947_v5  ;;  %v656_v22 = vrot.slane %v654_v17, 1  ;;  %v661_v23 = vrot.slane %v659_v18, 1  ;;  %v671_v35 = vshll.u32 %v9739_v28, 16  ;;  %8776 = vmatpush3.bf16.msra.mxu1 %v8965_v31  ;;  %v9761_v41 = vld [vmem:[%s9707_s20 + $0x18] sm:$0xff]   ;;  %v860_v43 = vrot.slane %v8958_v12, 1  ;;  %v8972_v51 = vld [vmem:[%s12034_s2 + $0xe0] sm:$0xff]   ;;  %vm10968_vm9 = vmor %vm3326_vm4, %vm3327_vm5 }
  0x62   : > { %7661 = vmatprep.subr.bf16.mxu0 %v8948_v6  ;;  %v668_v34 = vrot.slane %v666_v30, 1  ;;  %8769 = vmatprep.subr.bf16.mxu1 %v8966_v36  ;;  %v9764_v42 = vld [vmem:[%s9707_s20 + $0x20] ss:$0 sps:$4 sm:$0x11]   ;;  %v676_v44 = vshrl.u32 %v9761_v41, 16  ;;  %v678_v45 = vshll.u32 %v9761_v41, 16 }
  0x63   : > { %v657_v27 = vor.u32 %v656_v22, %v652_v16  ;;  %v673_v38 = vrot.slane %v671_v35, 1  ;;  %v8971_v46 = vld [vmem:[%s12034_s2 + $0x98] sm:$0xff]   ;;  %v9772_v47 = vsel %vm859_vm1, %v860_v43, %v861_v19  ;;  %v683_v50 = vshll.u32 %v9764_v42, 16  ;;  %v8973_v52 = vld [vmem:[%s12034_s2 + $0xa0] sm:$0xff]   ;;  %v8974_v55 = vld [vmem:[%s12034_s2 + $0xe8] sm:$0xff]   ;;  %s9465_s16 = smov [#allocation8]  }
  0x64   : > { %v669_v40 = vor.u32 %v668_v34, %v664_v29  ;;  %v680_v49 = vrot.slane %v678_v45, 1  ;;  %v9783_v53 = vld [vmem:[%s9707_s20 + $0x24] sm:$0xff]   ;;  %v9786_v54 = vld [vmem:[%s9707_s20 + $0x2c] ss:$0 sps:$4 sm:$0x11]   ;;  %v8978_v61 = vld [vmem:[%s12034_s2 + $0xf0] sm:$0xff]  }
  0x65   : > { %7662 = vmatpush3.bf16.msra.mxu0 %v8949_v7  ;;  %v662_v33 = vsel %vm650_vm0, %v657_v27, %v661_v23  ;;  %8777 = vmatpush3.bf16.msra.mxu1 %v8967_v37  ;;  %v685_v57 = vrot.slane %v683_v50, 1  ;;  %v690_v58 = vshll.u32 %v9783_v53, 16  ;;  %v695_v59 = vshll.u32 %v9786_v54, 16  ;;  %v8977_v60 = vld [vmem:[%s12034_s2 + $0xa8] sm:$0xff]   ;;  %v9802_v1 = vld [vmem:[%s9707_s20 + $0x30] sm:$0xff]   ;;  %v9810_v4 = vld [vmem:[%s9707_s20 + $0x3c] sm:$0xff]  }
  0x66   : > { %7663 = vmatprep.subr.bf16.mxu0 %v8950_v8  ;;  %2371 = vmatprep.mubr.bf16.mxu0 %v662_v33  ;;  %v674_v48 = vsel %vm650_vm0, %v669_v40, %v673_v38  ;;  %v681_v56 = vor.u32 %v680_v49, %v676_v44  ;;  %v688_v63 = vshrl.u32 %v9783_v53, 16  ;;  %v8979_v2 = vld [vmem:[%s12034_s2 + $0xb0] sm:$0xff]   ;;  %v8982_v3 = vld [vmem:[%s9707_s20 + $0x38] ss:$0 sps:$4 sm:$0x11]   ;;  %v702_v8 = vshll.u32 %v9802_v1, 16 }
  0x67   : > { %8770 = vmatprep.subr.bf16.mxu1 %v8968_v39  ;;  %v692_v0 = vrot.slane %v690_v58, 1  ;;  %v697_v5 = vrot.slane %v695_v59, 1  ;;  %v8980_v6 = vld [vmem:[%s12034_s2 + $0xf8] sm:$0xff]   ;;  %2564 = vmatprep.mubr.bf16.mxu1 %v9810_v4  ;;  %v864_v13 = vrot.slane %v9739_v28, 1  ;;  %v9850_v50 = vld [vmem:[%s9707_s20 + $0x60] sm:$0xff]   ;;  %s9392_s13 = sshll.u32 %s9465_s16, 4  ;;  %s9393_s13 = int_to_ptr.vmem [resolvable:$false] %s9392_s13 }
  0x68   : > { %v686_v62 = vsel %vm650_vm0, %v681_v56, %v685_v57  ;;  %v704_v17 = vrot.slane %v702_v8, 1  ;;  %v8985_v18 = vld [vmem:[%s9707_s20 + $0x3c] sm:$0xff]   ;;  %v9841_v34 = vld [vmem:[%s9707_s20 + $0x54] sm:$0xff]   ;;  %12070 = vst [vmem:[#allocation13_spill] sm:$0xff] %v9850_v50  ;;  %s9394_s15 = scalar_lea.vmem %s9393_s13, 8192 }
  0x69   : > { %7664 = vmatpush3.bf16.msra.mxu0 %v8951_v9  ;;  %8778 = vmatpush3.bf16.msra.mxu1 %v8971_v46  ;;  %v693_v7 = vor.u32 %v692_v0, %v688_v63  ;;  %v863_v9 = vrot.slane %v9733_v25, 1  ;;  %v712_v29 = vshrl.u32 %v8985_v18, 16  ;;  %v9856_v63 = vld [vmem:[%s9707_s20 + $0x60] sm:$0xff]  }
  0x6a   : > { %7665 = vmatprep.subr.bf16.mxu0 %v8952_v10  ;;  %8771 = vmatprep.subr.bf16.mxu1 %v8972_v51  ;;  %v8983_v10 = vld [vmem:[%s12034_s2 + $0xb8] sm:$0xff]  }
  0x6b   : > { %v698_v16 = vsel %vm650_vm0, %v693_v7, %v697_v5  ;;  %v9827_v19 = vsel %vm859_vm1, %v863_v9, %v864_v13  ;;  %v884_v7 = vrot.slane %v9856_v63, 1  ;;  %v9867_v9 = vld [vmem:[%s9707_s20 + $0x6c] sm:$0xff]  }
  0x6d   : > { %7666 = vmatpush3.bf16.msra.mxu0 %v8953_v11  ;;  %8779 = vmatpush3.bf16.msra.mxu1 %v8973_v52  ;;  %v872_v11 = vrot.slane %v9802_v1, 1 }
  0x6e   : > { %7667 = vmatprep.subr.bf16.mxu0 %v8954_v15  ;;  %8772 = vmatprep.subr.bf16.mxu1 %v8974_v55  ;;  %v707_v15 = vshll.u32 %v8982_v3, 16 }
  0x70   : > { %v709_v22 = vrot.slane %v707_v15, 1 }
  0x71   : > { %7668 = vmatpush3.bf16.msra.mxu0 %v8955_v21  ;;  %8780 = vmatpush3.bf16.msra.mxu1 %v8977_v60  ;;  %v9832_v21 = vld [vmem:[%s9707_s20 + $0x48] sm:$0xff]  }
  0x72   : > { %7669 = vmatprep.subr.bf16.mxu0 %v8956_v26  ;;  %8773 = vmatprep.subr.bf16.mxu1 %v8978_v61  ;;  %v875_v26 = vrot.slane %v8985_v18, 1 }
  0x75   : > { %7670 = vmatpush3.bf16.msra.mxu0 %v8957_v32  ;;  %8781 = vmatpush3.bf16.msra.mxu1 %v8979_v2  ;;  %v8988_v32 = vld [vmem:[%s9707_s20 + $0x48] sm:$0xff]  }
  0x76   : > { %7767 = vmatprep.subr.bf16.mxu0 %v8960_v14  ;;  %8774 = vmatprep.subr.bf16.mxu1 %v8980_v6  ;;  %v700_v14 = vshrl.u32 %v9802_v1, 16  ;;  %v726_v38 = vshll.u32 %v8988_v32, 16  ;;  %v724_v44 = vshrl.u32 %v8988_v32, 16 }
  0x78   : > { %2372 = vmatmul.mubr.bf16.vlgmr.msra.gmra.mrb[0].mxu0 %v8958_v12  ;;  %v873_v12 = vrot.slane %v8982_v3, 1  ;;  %v705_v23 = vor.u32 %v704_v17, %v700_v14  ;;  %v728_v45 = vrot.slane %v726_v38, 1  ;;  %v8998_v14 = vld [vmem:[%s9707_s20 + $0x74] ss:$0 sps:$4 sm:$0x11]   ;;  %v8999_v17 = vld [vmem:[%s9707_s20 + $0x78] sm:$0xff]  }
  0x79   : > { %7768 = vmatpush3.bf16.msra.mxu0 %v8961_v20  ;;  %2379 = vmatprep.mubr.bf16.mxu0 %v674_v48  ;;  %v8991_v48 = vld [vmem:[%s9707_s20 + $0x54] sm:$0xff]   ;;  %v9002_v38 = vld [vmem:[%s9707_s20 + $0x84] sm:$0xff]  }
  0x7a   : > { %7769 = vmatprep.subr.bf16.mxu0 %v8962_v24  ;;  %8782 = vmatpush3.bf16.msra.mxu1 %v8983_v10  ;;  %v874_v20 = vsel %vm859_vm1, %v872_v11, %v873_v12  ;;  %v8986_v24 = vld [vmem:[%s9707_s20 + $0x44] ss:$0 sps:$4 sm:$0x11]   ;;  %v710_v28 = vsel %vm650_vm0, %v705_v23, %v709_v22  ;;  %v738_v56 = vshll.u32 %v8991_v48, 16  ;;  %v881_v57 = vrot.slane %v8991_v48, 1 }
  0x7b   : > { %v876_v27 = vrot.slane %v8986_v24, 1  ;;  %v736_v59 = vshrl.u32 %v8991_v48, 16  ;;  %v760_v22 = vshrl.u32 %v9867_v9, 16  ;;  %v887_v23 = vrot.slane %v9867_v9, 1 }
  0x7d   : > { %7770 = vmatpush3.bf16.msra.mxu0 %v8965_v31  ;;  %2565 = vmatmul.mubr.bf16.vlgmr.msra.gmra.mrb[0].mxu1 %v874_v20  ;;  %v719_v31 = vshll.u32 %v8986_v24, 16  ;;  %v877_v33 = vsel %vm859_vm1, %v875_v26, %v876_v27  ;;  %v767_v24 = vshll.u32 %v8998_v14, 16  ;;  %v888_v27 = vrot.slane %v8998_v14, 1 }
  0x7e   : > { %7771 = vmatprep.subr.bf16.mxu0 %v8966_v36  ;;  %2572 = vmatprep.mubr.bf16.mxu1 %v9832_v21 }
  0x7f   : > { %v721_v36 = vrot.slane %v719_v31, 1 }
  0x80   : > { %2380 = vmatmul.mubr.bf16.gmra.mrb[4].mxu0 %v9733_v25  ;;  %v714_v25 = vshll.u32 %v8985_v18, 16 }
  0x81   : > { %2387 = vmatprep.mubr.bf16.mxu0 %v686_v62  ;;  %7772 = vmatpush3.bf16.msra.mxu0 %v8967_v37  ;;  %v8989_v37 = vld [vmem:[%s9707_s20 + $0x50] ss:$0 sps:$4 sm:$0x11]   ;;  %v740_v62 = vrot.slane %v738_v56, 1 }
  0x82   : > { %7773 = vmatprep.subr.bf16.mxu0 %v8968_v39  ;;  %v716_v30 = vrot.slane %v714_v25, 1  ;;  %v878_v39 = vrot.slane %v8988_v32, 1  ;;  %v879_v40 = vrot.slane %v8989_v37, 1  ;;  %v9019_v25 = vld [vmem:[%s12034_s2 + $0x140] sm:$0xff]   ;;  %v9030_v56 = vld [vmem:[%s12034_s2 + $0x1d0] sm:$0xff]  }
  0x83   : > { %v741_v3 = vor.u32 %v740_v62, %v736_v59 }
  0x84   : > { %v717_v35 = vor.u32 %v716_v30, %v712_v29  ;;  %v880_v49 = vsel %vm859_vm1, %v878_v39, %v879_v40  ;;  %v9021_v29 = vld [vmem:[%s12034_s2 + $0x1c0] sm:$0xff]   ;;  %v866_v30 = vrot.slane %v9761_v41, 1 }
  0x85   : > { %7774 = vmatpush3.bf16.msra.mxu0 %v8971_v46  ;;  %2573 = vmatmul.mubr.bf16.gmra.mrb[4].mxu1 %v877_v33  ;;  %v731_v46 = vshll.u32 %v8989_v37, 16  ;;  %v867_v33 = vrot.slane %v9764_v42, 1  ;;  %v889_v37 = vsel %vm859_vm1, %v887_v23, %v888_v27  ;;  %v9025_v42 = vld [vmem:[%s12034_s2 + $0x1c8] sm:$0xff]  }
  0x86   : > { %7775 = vmatprep.subr.bf16.mxu0 %v8972_v51  ;;  %2580 = vmatprep.mubr.bf16.mxu1 %v9841_v34  ;;  %v722_v43 = vsel %vm650_vm0, %v717_v35, %v721_v36  ;;  %v8992_v51 = vld [vmem:[%s9707_s20 + $0x5c] ss:$0 sps:$4 sm:$0x11]   ;;  %v9001_v35 = vld [vmem:[%s9707_s20 + $0x80] ss:$0 sps:$4 sm:$0x11]  }
  0x87   : > { %v882_v58 = vrot.slane %v8992_v51, 1  ;;  %7991 = vmatprep.subr.bf16.mxu1 %v9021_v29  ;;  %v869_v36 = vrot.slane %v9783_v53, 1  ;;  %v9897_v39 = vsel %vm859_vm1, %v866_v30, %v867_v33 }
  0x88   : > { %2388 = vmatmul.mubr.bf16.gmra.mrb[8].mxu0 %v9761_v41  ;;  %v870_v41 = vrot.slane %v9786_v54, 1  ;;  %v9027_v54 = vld [vmem:[%s12034_s2 + $0x188] sm:$0xff]  }
  0x89   : > { %2395 = vmatprep.mubr.bf16.mxu0 %v698_v16  ;;  %7776 = vmatpush3.bf16.msra.mxu0 %v8973_v52  ;;  %v729_v52 = vor.u32 %v728_v45, %v724_v44  ;;  %v883_v0 = vsel %vm859_vm1, %v881_v57, %v882_v58  ;;  %v762_v16 = vshll.u32 %v9867_v9, 16  ;;  %v9004_v57 = vld [vmem:[%s9707_s20 + $0x8c] ss:$0 sps:$4 sm:$0x11]   ;;  %v9031_v58 = vld [vmem:[%s12034_s2 + $0x190] sm:$0xff]  }
  0x8a   : > { %7777 = vmatprep.subr.bf16.mxu0 %v8974_v55  ;;  %v733_v55 = vrot.slane %v731_v46, 1  ;;  %v9905_v44 = vsel %vm859_vm1, %v869_v36, %v870_v41 }
  0x8b   : > { %v764_v26 = vrot.slane %v762_v16, 1  ;;  %v9040_v16 = vld [vmem:[%s12034_s2 + $0x1a0] sm:$0xff]  }
  0x8d   : > { %7778 = vmatpush3.bf16.msra.mxu0 %v8977_v60  ;;  %2581 = vmatmul.mubr.bf16.gmra.mrb[8].mxu1 %v880_v49  ;;  %v743_v60 = vshll.u32 %v8992_v51, 16  ;;  %v765_v40 = vor.u32 %v764_v26, %v760_v22  ;;  %v779_v49 = vshll.u32 %v9001_v35, 16  ;;  %v9913_v51 = vld [vmem:[%s9707_s20 + $0x84] sm:$0xff]  }
  0x8e   : > { %7779 = vmatprep.subr.bf16.mxu0 %v8978_v61  ;;  %2588 = vmatprep.mubr.bf16.mxu1 %v9850_v50  ;;  %v734_v61 = vsel %vm650_vm0, %v729_v52, %v733_v55  ;;  %v9045_v26 = vld [vmem:[%s12034_s2 + $0x1a8] sm:$0xff]  }
  0x8f   : > { %v745_v5 = vrot.slane %v743_v60, 1  ;;  %v9005_v60 = vld [vmem:[%s9707_s20 + $0x90] sm:$0xff]  }
  0x90   : > { %2396 = vmatmul.mubr.bf16.gmra.mrb[12].mxu0 %v9783_v53 }
  0x91   : > { %2403 = vmatprep.mubr.bf16.mxu0 %v710_v28  ;;  %7780 = vmatpush3.bf16.msra.mxu0 %v8979_v2  ;;  %v8995_v2 = vld [vmem:[%s9707_s20 + $0x68] ss:$0 sps:$4 sm:$0x11]   ;;  %v746_v12 = vsel %vm650_vm0, %v741_v3, %v745_v5  ;;  %v9881_v28 = vld [vmem:[%s9707_s20 + $0x78] sm:$0xff]   ;;  %v893_v3 = vrot.slane %v9913_v51, 1  ;;  %v894_v5 = vrot.slane %v9004_v57, 1 }
  0x92   : > { %7781 = vmatprep.subr.bf16.mxu0 %v8980_v6  ;;  %v750_v6 = vshll.u32 %v9856_v63, 16  ;;  %v885_v8 = vrot.slane %v8995_v2, 1  ;;  %v755_v11 = vshll.u32 %v8995_v2, 16  ;;  %v774_v53 = vshll.u32 %v9881_v28, 16  ;;  %v9034_v2 = vld [vmem:[%s12034_s2 + $0x1d8] sm:$0xff]  }
  0x93   : > { %v772_v45 = vshrl.u32 %v9881_v28, 16  ;;  %v890_v46 = vrot.slane %v9881_v28, 1  ;;  %v895_v14 = vsel %vm859_vm1, %v893_v3, %v894_v5  ;;  %v9999_v5 = vld [vmem:[%s9707_s20 + $0xb4] sm:$0xff]  }
  0x94   : > { %v752_v13 = vrot.slane %v750_v6, 1  ;;  %v886_v15 = vsel %vm859_vm1, %v884_v7, %v885_v8  ;;  %v776_v55 = vrot.slane %v774_v53, 1  ;;  %v9036_v6 = vld [vmem:[%s12034_s2 + $0x198] sm:$0xff]   ;;  %v791_v7 = vshll.u32 %v9004_v57, 16  ;;  %v9936_v8 = vld [vmem:[%s9707_s20 + $0x90] sm:$0xff]  }
  0x95   : > { %7782 = vmatpush3.bf16.msra.mxu0 %v8983_v10  ;;  %2589 = vmatmul.mubr.bf16.gmra.mrb[12].mxu1 %v883_v0  ;;  %v748_v10 = vshrl.u32 %v9856_v63, 16  ;;  %v786_v0 = vshll.u32 %v9913_v51, 16  ;;  %v896_v22 = vrot.slane %v9936_v8, 1 }
  0x96   : > { %7879 = vmatprep.subr.bf16.mxu0 %v9019_v25  ;;  %v777_v62 = vor.u32 %v776_v55, %v772_v45  ;;  %v796_v25 = vshrl.u32 %v9936_v8, 16 }
  0x97   : > { %v753_v20 = vor.u32 %v752_v13, %v748_v10  ;;  %v9039_v13 = vld [vmem:[%s12034_s2 + $0x1e0] sm:$0xff]  }
  0x98   : > { %2404 = vmatmul.mubr.bf16.gmra.mrb[16].mxu0 %v9802_v1  ;;  %v9860_v1 = vld [vmem:[%s9707_s20 + $0x6c] sm:$0xff]  }
  0x99   : > { %2411 = vmatprep.mubr.bf16.mxu0 %v722_v43  ;;  %2596 = vmatprep.mubr.bf16.mxu1 %v9860_v1  ;;  %v769_v43 = vrot.slane %v767_v24, 1  ;;  %v9955_v24 = vld [vmem:[%s9707_s20 + $0x9c] sm:$0xff]  }
  0x9a   : > { %v810_v36 = vshll.u32 %v9955_v24, 16 }
  0x9b   : > { %v770_v52 = vsel %vm650_vm0, %v765_v40, %v769_v43  ;;  %v9052_v43 = vld [vmem:[%s12034_s2 + $0x1f8] sm:$0xff]  }
  0x9c   : > { %v812_v53 = vrot.slane %v810_v36, 1  ;;  %v10020_v36 = vld [vmem:[%s9707_s20 + $0x30] sm:$0xff]  }
  0x9d   : > { %2597 = vmatmul.mubr.bf16.gmra.mrb[16].mxu1 %v886_v15  ;;  %v9007_v15 = vld [vmem:[%s9707_s20 + $0x98] ss:$0 sps:$4 sm:$0x11]  }
  0x9e   : > { %2604 = vmatprep.mubr.bf16.mxu1 %v8999_v17  ;;  %v897_v23 = vrot.slane %v9007_v15, 1  ;;  %v803_v30 = vshll.u32 %v9007_v15, 16 }
  0xa0   : > { %2412 = vmatmul.mubr.bf16.gmra.mrb[20].mxu0 %v8985_v18  ;;  %v757_v18 = vrot.slane %v755_v11, 1  ;;  %v788_v11 = vrot.slane %v786_v0, 1  ;;  %v898_v33 = vsel %vm859_vm1, %v896_v22, %v897_v23  ;;  %v805_v41 = vrot.slane %v803_v30, 1 }
  0xa1   : > { %2419 = vmatprep.mubr.bf16.mxu0 %v734_v61  ;;  %v781_v61 = vrot.slane %v779_v49, 1  ;;  %v9013_v49 = vld [vmem:[%s9707_s20 + $0xb0] ss:$0 sps:$4 sm:$0x11]  }
  0xa2   : > { %v758_v31 = vsel %vm650_vm0, %v753_v20, %v757_v18  ;;  %v793_v18 = vrot.slane %v791_v7, 1  ;;  %v798_v20 = vshll.u32 %v9936_v8, 16 }
  0xa3   : > { %v782_v10 = vsel %vm650_vm0, %v777_v62, %v781_v61  ;;  %v903_v62 = vrot.slane %v9013_v49, 1 }
  0xa4   : > { %v800_v29 = vrot.slane %v798_v20, 1 }
  0xa5   : > { %2605 = vmatmul.mubr.bf16.gmra.mrb[20].mxu1 %v889_v37  ;;  %v9049_v37 = vld [vmem:[%s12034_s2 + $0x1b0] sm:$0xff]  }
  0xa6   : > { %2612 = vmatprep.mubr.bf16.mxu1 %v9002_v38  ;;  %v801_v38 = vor.u32 %v800_v29, %v796_v25 }
  0xa8   : > { %2420 = vmatmul.mubr.bf16.gmra.mrb[24].mxu0 %v8988_v32  ;;  %v9022_v32 = vld [vmem:[%s12034_s2 + $0x180] sm:$0xff]  }
  0xa9   : > { %2427 = vmatprep.mubr.bf16.mxu0 %v746_v12  ;;  %7992 = vmatpush3.bf16.msra.mxu1 %v9022_v32  ;;  %v9008_v12 = vld [vmem:[%s9707_s20 + $0x9c] sm:$0xff]   ;;  %v9011_v32 = vld [vmem:[%s9707_s20 + $0xa8] sm:$0xff]  }
  0xaa   : > { %7993 = vmatprep.subr.bf16.mxu1 %v9025_v42  ;;  %v899_v42 = vrot.slane %v9955_v24, 1 }
  0xad   : > { %7994 = vmatpush3.bf16.msra.mxu1 %v9027_v54  ;;  %v9979_v54 = vld [vmem:[%s9707_s20 + $0xa8] sm:$0xff]  }
  0xae   : > { %7995 = vmatprep.subr.bf16.mxu1 %v9030_v56  ;;  %v9990_v56 = vld [vmem:[%s9707_s20 + $0x18] sm:$0xff]   ;;  %v902_v61 = vrot.slane %v9979_v54, 1 }
  0xaf   : > { %v1487_v0 = vshll.u32 %v9990_v56, 16 }
  0xb0   : > { %2428 = vmatmul.mubr.bf16.gmra.mrb[28].mxu0 %v8991_v48  ;;  %v891_v48 = vrot.slane %v9001_v35, 1  ;;  %v9048_v35 = vld [vmem:[%s12034_s2 + $0x1f0] sm:$0xff]   ;;  %v904_v7 = vsel %vm859_vm1, %v902_v61, %v903_v62 }
  0xb1   : > { %2435 = vmatprep.mubr.bf16.mxu0 %v758_v31  ;;  %7996 = vmatpush3.bf16.msra.mxu1 %v9031_v58  ;;  %v9010_v31 = vld [vmem:[%s9707_s20 + $0xa4] ss:$0 sps:$4 sm:$0x11]  }
  0xb2   : > { %v892_v59 = vsel %vm859_vm1, %v890_v46, %v891_v48  ;;  %7997 = vmatprep.subr.bf16.mxu1 %v9034_v2  ;;  %v900_v40 = vrot.slane %v9010_v31, 1  ;;  %v815_v45 = vshll.u32 %v9010_v31, 16  ;;  %v9054_v46 = vld [vmem:[%s12034_s2 + $0x1b8] sm:$0xff]   ;;  %v806_v48 = vsel %vm650_vm0, %v801_v38, %v805_v41  ;;  %v10023_v41 = vld [vmem:[%s9707_s20 + $0xc] sm:$0xff]  }
  0xb3   : > { %2613 = vmatmul.mubr.bf16.gmra.mrb[24].mxu1 %v892_v59  ;;  %v822_v59 = vshll.u32 %v9979_v54, 16 }
  0xb4   : > { %2620 = vmatprep.mubr.bf16.mxu1 %v9005_v60  ;;  %v901_v55 = vsel %vm859_vm1, %v899_v42, %v900_v40  ;;  %v817_v58 = vrot.slane %v815_v45, 1  ;;  %v827_v60 = vshll.u32 %v9013_v49, 16  ;;  %v9064_v40 = vld [vmem:[%s9707_s20 + $0x38] ss:$0 sps:$4 sm:$0x11]  }
  0xb5   : > { %7998 = vmatpush3.bf16.msra.mxu1 %v9036_v6  ;;  %v824_v3 = vrot.slane %v822_v59, 1  ;;  %v1516_v61 = vshll.u32 %v9064_v40, 16  ;;  %v10101_v40 = vld [vmem:[%s9707_s20 + $0x2c] ss:$0 sps:$4 sm:$0x11]  }
  0xb6   : > { %7999 = vmatprep.subr.bf16.mxu1 %v9039_v13  ;;  %v829_v6 = vrot.slane %v827_v60, 1  ;;  %v10237_v49 = vld [vmem:[%s9707_s20 + $0x80] ss:$0 sps:$4 sm:$0x11]  }
  0xb8   : > { %2436 = vmatmul.mubr.bf16.gmra.mrb[32].mxu0 %v9856_v63  ;;  %v784_v63 = vshrl.u32 %v9913_v51, 16 }
  0xb9   : > { %2443 = vmatprep.mubr.bf16.mxu0 %v770_v52  ;;  %8000 = vmatpush3.bf16.msra.mxu1 %v9040_v16  ;;  %v9014_v52 = vld [vmem:[%s9707_s20 + $0xb4] sm:$0xff]   ;;  %v9016_v16 = vld [vmem:[%s9707_s20 + $0xbc] ss:$0 sps:$4 sm:$0x11]  }
  0xba   : > { %v789_v17 = vor.u32 %v788_v11, %v784_v63  ;;  %v820_v63 = vshrl.u32 %v9979_v54, 16  ;;  %v1485_v11 = vshrl.u32 %v9990_v56, 16  ;;  %v906_v20 = vrot.slane %v9016_v16, 1 }
  0xbb   : > { %2621 = vmatmul.mubr.bf16.gmra.mrb[28].mxu1 %v895_v14  ;;  %v10006_v14 = vld [vmem:[%s9707_s20 + $0x24] sm:$0xff]   ;;  %v839_v29 = vshll.u32 %v9016_v16, 16 }
  0xbc   : > { %2628 = vmatprep.mubr.bf16.mxu1 %v9008_v12  ;;  %v794_v27 = vsel %vm650_vm0, %v789_v17, %v793_v18  ;;  %v1489_v12 = vrot.slane %v1487_v0, 1  ;;  %v825_v15 = vor.u32 %v824_v3, %v820_v63  ;;  %v834_v17 = vshll.u32 %v9999_v5, 16  ;;  %v9060_v18 = vld [vmem:[%s9707_s20 + $0x2c] ss:$0 sps:$4 sm:$0x11]   ;;  %v10055_v3 = vld [vmem:[%s9707_s20 + $0x30] sm:$0xff]  }
  0xbd   : > { %v1499_v23 = vshll.u32 %v10006_v14, 16  ;;  %v1497_v31 = vshrl.u32 %v10006_v14, 16  ;;  %v841_v38 = vrot.slane %v839_v29, 1  ;;  %v10199_v63 = vld [vmem:[%s9707_s20 + $0x6c] sm:$0xff]  }
  0xbe   : > { %v1490_v22 = vor.u32 %v1489_v12, %v1485_v11  ;;  %v830_v25 = vsel %vm650_vm0, %v825_v15, %v829_v6  ;;  %v9067_v6 = vld [vmem:[%s9707_s20 + $0x44] ss:$0 sps:$4 sm:$0x11]  }
  0xbf   : > { %v1528_v29 = vshll.u32 %v9067_v6, 16 }
  0xc0   : > { %2444 = vmatmul.mubr.bf16.gmra.mrb[36].mxu0 %v9867_v9  ;;  %v9043_v9 = vld [vmem:[%s12034_s2 + $0x1e8] sm:$0xff]  }
  0xc1   : > { %2451 = vmatprep.mubr.bf16.mxu0 %v782_v10  ;;  %8001 = vmatprep.subr.bf16.mxu1 %v9043_v9  ;;  %v9017_v10 = vld [vmem:[%s9707_s20 + $0xc0] sm:$0xff]  }
  0xc2   : > { %8002 = vmatpush3.bf16.msra.mxu1 %v9045_v26  ;;  %v832_v26 = vshrl.u32 %v9999_v5, 16 }
  0xc3   : > { %8003 = vmatprep.subr.bf16.mxu1 %v9048_v35  ;;  %2629 = vmatmul.mubr.bf16.gmra.mrb[32].mxu1 %v898_v33  ;;  %v1501_v35 = vrot.slane %v1499_v23, 1  ;;  %v10155_v23 = vld [vmem:[%s9707_s20 + $0x5c] ss:$0 sps:$4 sm:$0x11]  }
  0xc4   : > { %2636 = vmatprep.mubr.bf16.mxu1 %v9011_v32  ;;  %v1504_v32 = vshll.u32 %v9060_v18, 16  ;;  %v10067_v18 = vld [vmem:[%s9707_s20 + $0x14] ss:$0 sps:$4 sm:$0x11]  }
  0xc5   : > { %v1502_v42 = vor.u32 %v1501_v35, %v1497_v31  ;;  %v9020_v35 = vld [vmem:[%s12034_s2 + $0x100] sm:$0xff]  }
  0xc6   : > { %8004 = vmatpush3.bf16.msra.mxu1 %v9049_v37 }
  0xc7   : > { %8005 = vmatprep.subr.bf16.mxu1 %v9052_v43  ;;  %v1511_v43 = vshll.u32 %v10020_v36, 16 }
  0xc8   : > { %2452 = vmatmul.mubr.bf16.gmra.mrb[40].mxu0 %v9881_v28  ;;  %v808_v28 = vshrl.u32 %v9955_v24, 16 }
  0xc9   : > { %2459 = vmatprep.mubr.bf16.mxu0 %v794_v27  ;;  %v836_v27 = vrot.slane %v834_v17, 1  ;;  %v1513_v60 = vrot.slane %v1511_v43, 1  ;;  %v1131_v17 = vshll.u32 %v9832_v21, 16  ;;  %v9071_v43 = vld [vmem:[%s9707_s20 + $0x50] ss:$0 sps:$4 sm:$0x11]  }
  0xca   : > { %8006 = vmatpush3.bf16.msra.mxu1 %v9054_v46  ;;  %v813_v57 = vor.u32 %v812_v53, %v808_v28  ;;  %v1506_v28 = vrot.slane %v1504_v32, 1  ;;  %v1071_v46 = vshll.u32 %v10023_v41, 16 }
  0xcb   : > { %2637 = vmatmul.mubr.bf16.gmra.mrb[36].mxu1 %v901_v55  ;;  %v837_v37 = vor.u32 %v836_v27, %v832_v26  ;;  %v10086_v32 = vrot.slane %v1131_v17, 1  ;;  %v10125_v17 = vld [vmem:[%s9707_s20 + $0x54] sm:$0xff]  }
  0xcc   : > { %2644 = vmatprep.mubr.bf16.mxu1 %v9014_v52  ;;  %v818_v2 = vsel %vm650_vm0, %v813_v57, %v817_v58  ;;  %v1509_v57 = vshrl.u32 %v10020_v36, 16  ;;  %v10042_v58 = vld [vmem:[%s9707_s20 + $0x3c] sm:$0xff]   ;;  %v1507_v59 = vsel %vm650_vm0, %v1502_v42, %v1506_v28  ;;  %v10045_v62 = vrot.slane %v1071_v46, 1  ;;  %v9023_v28 = vld [vmem:[%s12034_s2 + $0x148] sm:$0xff]  }
  0xcd   : > { %v842_v53 = vsel %vm650_vm0, %v837_v37, %v841_v38  ;;  %v1523_v12 = vshll.u32 %v10042_v58, 16  ;;  %v1521_v26 = vshrl.u32 %v10042_v58, 16  ;;  %v1076_v37 = vshll.u32 %v10067_v18, 16 }
  0xce   : > { %v1514_v11 = vor.u32 %v1513_v60, %v1509_v57  ;;  %v1530_v46 = vrot.slane %v1528_v29, 1  ;;  %v10106_v57 = vld [vmem:[%s9707_s20 + $0x38] ss:$0 sps:$4 sm:$0x11]   ;;  %v9029_v29 = vld [vmem:[%s12034_s2 + $0x110] sm:$0xff]  }
  0xcf   : > { %v1525_v27 = vrot.slane %v1523_v12, 1  ;;  %v1540_v12 = vshll.u32 %v9071_v43, 16  ;;  %v10147_v43 = vld [vmem:[%s9707_s20 + $0x5c] ss:$0 sps:$4 sm:$0x11]  }
  0xd0   : > { %2460 = vmatmul.mubr.bf16.gmra.mrb[44].mxu0 %v9913_v51  ;;  %v9057_v51 = vld [vmem:[%s9707_s20 + $0x20] ss:$0 sps:$4 sm:$0x11]  }
  0xd1   : > { %2467 = vmatprep.mubr.bf16.mxu0 %v806_v48  ;;  %v1492_v13 = vshll.u32 %v9057_v51, 16  ;;  %v10034_v48 = vld [vmem:[%s9707_s20 + $0x24] sm:$0xff]   ;;  %v1119_v51 = vshll.u32 %v9810_v4, 16 }
  0xd3   : > { %2645 = vmatmul.mubr.bf16.gmra.mrb[40].mxu1 %v904_v7  ;;  %v1494_v9 = vrot.slane %v1492_v13, 1  ;;  %v10063_v16 = vrot.slane %v1119_v51, 1  ;;  %v10116_v51 = vld [vmem:[%s9707_s20 + $0x50] ss:$0 sps:$4 sm:$0x11]   ;;  %v1552_v7 = vshll.u32 %v10147_v43, 16 }
  0xd4   : > { %2652 = vmatprep.mubr.bf16.mxu1 %v9017_v10  ;;  %v10212_v13 = vld [vmem:[%s9707_s20 + $0x60] sm:$0xff]  }
  0xd5   : > { %v1495_v33 = vsel %vm650_vm0, %v1490_v22, %v1494_v9  ;;  %v10075_v9 = vld [vmem:[%s9707_s20 + $0x20] ss:$0 sps:$4 sm:$0x11]   ;;  %12074 = vst [vmem:[#allocation17_spill] sm:$0xff] %v10212_v13 }
  0xd6   : > { %v1088_v42 = vshll.u32 %v10075_v9, 16  ;;  %v9099_v13 = vld [vmem:[%s9707_s20 + $0xb0] ss:$0 sps:$4 sm:$0x11]  }
  0xd8   : > { %2468 = vmatmul.mubr.bf16.gmra.mrb[48].mxu0 %v9936_v8  ;;  %v905_v8 = vrot.slane %v9999_v5, 1 }
  0xd9   : > { %2475 = vmatprep.mubr.bf16.mxu0 %v818_v2  ;;  %v1095_v2 = vshll.u32 %v10034_v48, 16 }
  0xda   : > { %v907_v30 = vsel %vm859_vm1, %v905_v8, %v906_v20  ;;  %v1107_v20 = vshll.u32 %v10055_v3, 16 }
  0xdb   : > { %2653 = vmatmul.mubr.bf16.gmra.mrb[44].mxu1 %v907_v30  ;;  %v10069_v8 = vrot.slane %v1095_v2, 1  ;;  %v10082_v30 = vld [vmem:[%s9707_s20 + $0x48] sm:$0xff]  }
  0xdc   : > { %2854 = vmatprep.mubr.bf16.mxu1 %v1495_v33  ;;  %v10094_v38 = vrot.slane %v1107_v20, 1  ;;  %v9024_v2 = vld [vmem:[%s12034_s2 + $0x108] sm:$0xff]   ;;  %v10130_v20 = vrot.slane %v1076_v37, 1  ;;  %v9032_v37 = vld [vmem:[%s12034_s2 + $0x158] sm:$0xff]  }
  0xe0   : > { %2476 = vmatmul.mubr.bf16.gmra.mrb[52].mxu0 %v9955_v24  ;;  %v10026_v24 = vld [vmem:[%s9707_s20 + $0x18] sm:$0xff]  }
  0xe1   : > { %2483 = vmatprep.mubr.bf16.mxu0 %v830_v25  ;;  %v1083_v55 = vshll.u32 %v10026_v24, 16 }
  0xe3   : > { %2855 = vmatmul.mubr.bf16.vlgmr.msra.gmra.mrb[48].mxu1 %v9990_v56  ;;  %v1518_v56 = vrot.slane %v1516_v61, 1 }
  0xe4   : > { %2862 = vmatprep.mubr.bf16.mxu1 %v1507_v59  ;;  %v1143_v59 = vshll.u32 %v9841_v34, 16 }
  0xe5   : > { %v1519_v25 = vsel %vm650_vm0, %v1514_v11, %v1518_v56  ;;  %v1533_v11 = vshrl.u32 %v10082_v30, 16 }
  0xe8   : > { %2484 = vmatmul.mubr.bf16.gmra.mrb[56].mxu0 %v9979_v54  ;;  %v10050_v54 = vrot.slane %v1083_v55, 1  ;;  %v1535_v55 = vshll.u32 %v10082_v30, 16 }
  0xe9   : > { %2491 = vmatprep.mubr.bf16.mxu0 %v842_v53  ;;  %v1526_v53 = vor.u32 %v1525_v27, %v1521_v26  ;;  %v10133_v26 = vrot.slane %v1088_v42, 1  ;;  %v1100_v27 = vshll.u32 %v10101_v40, 16  ;;  %v1136_v42 = vshll.u32 %v10116_v51, 16 }
  0xea   : > { %v1537_v56 = vrot.slane %v1535_v55, 1  ;;  %v1547_v55 = vshll.u32 %v10125_v17, 16 }
  0xeb   : > { %2863 = vmatmul.mubr.bf16.gmra.mrb[52].mxu1 %v10006_v14  ;;  %v10109_v14 = vld [vmem:[%s9707_s20 + $0x44] ss:$0 sps:$4 sm:$0x11]   ;;  %v1531_v6 = vsel %vm650_vm0, %v1526_v53, %v1530_v46  ;;  %v1542_v46 = vrot.slane %v1540_v12, 1  ;;  %v10151_v60 = vrot.slane %v1100_v27, 1  ;;  %v1545_v27 = vshrl.u32 %v10125_v17, 16 }
  0xec   : > { %2870 = vmatprep.mubr.bf16.mxu1 %v1519_v25  ;;  %v1538_v53 = vor.u32 %v1537_v56, %v1533_v11  ;;  %v9033_v11 = vld [vmem:[%s12034_s2 + $0x118] sm:$0xff]   ;;  %v9037_v56 = vld [vmem:[%s12034_s2 + $0x160] sm:$0xff]   ;;  %v1148_v12 = vshll.u32 %v10155_v23, 16  ;;  %v1569_v25 = vshrl.u32 %v10199_v63, 16 }
  0xee   : > { %v10207_v31 = vrot.slane %v1148_v12, 1 }
  0xf0   : > { %2492 = vmatmul.mubr.bf16.gmra.mrb[60].mxu0 %v9999_v5  ;;  %v1554_v5 = vrot.slane %v1552_v7, 1  ;;  %12073 = vst [vmem:[#allocation16_spill] sm:$0xff] %v10207_v31 }
  0xf1   : > { %2532 = vmatprep.mubr.bf16.mxu0 %v10023_v41 }
  0xf3   : > { %2871 = vmatmul.mubr.bf16.gmra.mrb[56].mxu1 %v10020_v36  ;;  %v1167_v36 = vshll.u32 %v9860_v1, 16  ;;  %v9047_v1 = vld [vmem:[%s12034_s2 + $0x130] sm:$0xff]  }
  0xf4   : > { %2878 = vmatprep.mubr.bf16.mxu1 %v1531_v6  ;;  %v10202_v6 = vld [vmem:[%s9707_s20 + $0x74] ss:$0 sps:$4 sm:$0x11]  }
  0xf8   : > { %2533 = vmatmul.mubr.bf16.vlgmr.msra.gmra.mrb[64].mxu0 %v9772_v47  ;;  %v9028_v47 = vld [vmem:[%s12034_s2 + $0x150] sm:$0xff]  }
  0xf9   : > { %7880 = vmatpush3.bf16.msra.mxu0 %v9020_v35  ;;  %2540 = vmatprep.mubr.bf16.mxu0 %v10026_v24  ;;  %v1112_v35 = vshll.u32 %v10106_v57, 16 }
  0xfa   : > { %7881 = vmatprep.subr.bf16.mxu0 %v9023_v28  ;;  %v1124_v28 = vshll.u32 %v10109_v14, 16 }
  0xfb   : > { %v10157_v22 = vrot.slane %v1112_v35, 1  ;;  %v10176_v35 = vrot.slane %v1143_v59, 1  ;;  %v9038_v59 = vld [vmem:[%s12034_s2 + $0x120] sm:$0xff]   ;;  %2879 = vmatmul.mubr.bf16.gmra.mrb[60].mxu1 %v10042_v58 }
  0xfc   : > { %v10160_v10 = vrot.slane %v1124_v28, 1  ;;  %v1549_v28 = vrot.slane %v1547_v55, 1  ;;  %v9041_v55 = vld [vmem:[%s12034_s2 + $0x168] sm:$0xff]  }
  0xfd   : > { %7882 = vmatpush3.bf16.msra.mxu0 %v9024_v2  ;;  %v10163_v2 = vld [vmem:[%s9707_s20 + $0x60] sm:$0xff]  }
  0xfe   : > { %7883 = vmatprep.subr.bf16.mxu0 %v9028_v47  ;;  %v10173_v47 = vrot.slane %v1136_v42, 1  ;;  %v10183_v42 = vld [vmem:[%s9707_s20 + $0x68] ss:$0 sps:$4 sm:$0x11]   ;;  %v1550_v58 = vor.u32 %v1549_v28, %v1545_v27  ;;  %v1557_v33 = vshrl.u32 %v10163_v2, 16  ;;  %v1571_v28 = vshll.u32 %v10199_v63, 16 }
  0xff   : > { %v1564_v15 = vshll.u32 %v10183_v42, 16 }
 0x100   : > { %2541 = vmatmul.mubr.bf16.gmra.mrb[68].mxu0 %v9827_v19  ;;  %v1543_v19 = vsel %vm650_vm0, %v1538_v53, %v1542_v46  ;;  %v1559_v53 = vshll.u32 %v10163_v2, 16  ;;  %v10192_v46 = vld [vmem:[%s9707_s20 + $0x68] ss:$0 sps:$4 sm:$0x11]  }
 0x101   : > { %7884 = vmatpush3.bf16.msra.mxu0 %v9029_v29  ;;  %2548 = vmatprep.mubr.bf16.mxu0 %v10034_v48  ;;  %12071 = vst [vmem:[#allocation14_spill] sm:$0xff] %v10192_v46  ;;  %v10205_v29 = vld [vmem:[%s9707_s20 + $0x74] ss:$0 sps:$4 sm:$0x11]   ;;  %v1160_v7 = vshll.u32 %v10192_v46, 16  ;;  %v1566_v52 = vrot.slane %v1564_v15, 1 }
 0x102   : > { %7885 = vmatprep.subr.bf16.mxu0 %v9032_v37  ;;  %v1155_v37 = vshll.u32 %v9850_v50, 16  ;;  %2886 = vmatprep.mubr.bf16.mxu1 %v1543_v19  ;;  %12072 = vst [vmem:[#allocation15_spill] sm:$0xff] %v10205_v29  ;;  %v1561_v12 = vrot.slane %v1559_v53, 1  ;;  %v1576_v19 = vshll.u32 %v10202_v6, 16  ;;  %v1172_v0 = vshll.u32 %v10205_v29, 16  ;;  %v9050_v15 = vld [vmem:[%s12034_s2 + $0x178] sm:$0xff]  }
 0x103   : > { %2887 = vmatmul.mubr.bf16.gmra.mrb[64].mxu1 %v10082_v30  ;;  %v10287_v30 = vld [vmem:[%s9707_s20 + $0x9c] sm:$0xff]   ;;  %v9069_v46 = vld [vmem:[%s12034_s2 + $0x210] sm:$0xff]  }
 0x104   : > { %v10218_v27 = vrot.slane %v1155_v37, 1  ;;  %v1555_v37 = vsel %vm650_vm0, %v1550_v58, %v1554_v5  ;;  %v10243_v5 = vrot.slane %v1160_v7, 1  ;;  %v1573_v58 = vrot.slane %v1571_v28, 1 }
 0x105   : > { %7886 = vmatpush3.bf16.msra.mxu0 %v9033_v11  ;;  %v9042_v11 = vld [vmem:[%s12034_s2 + $0x128] sm:$0xff]   ;;  %2894 = vmatprep.mubr.bf16.mxu1 %v1555_v37  ;;  %v10252_v53 = vrot.slane %v1576_v19, 1  ;;  %v1562_v45 = vor.u32 %v1561_v12, %v1557_v33  ;;  %v10258_v61 = vrot.slane %v1172_v0, 1  ;;  %v12080_v19 = vrot.slane %v10067_v18, 1  ;;  %v10277_v0 = vld [vmem:[%s9707_s20 + $0x90] sm:$0xff]  }
 0x106   : > { %7887 = vmatprep.subr.bf16.mxu0 %v9037_v56  ;;  %12075 = vst [vmem:[#allocation18_spill] sm:$0xff] %v10218_v27  ;;  %v9046_v56 = vld [vmem:[%s12034_s2 + $0x170] sm:$0xff]   ;;  %12076 = vst [vmem:[#allocation19_spill] sm:$0xff] %v10243_v5  ;;  %v10262_v37 = vld [vmem:[%s9707_s20 + $0x8c] ss:$0 sps:$4 sm:$0x11]   ;;  %v1574_v50 = vor.u32 %v1573_v58, %v1569_v25 }
 0x107   : > { %12079 = vst [vmem:[#allocation22_spill] sm:$0xff] %v10258_v61  ;;  %v12081_v28 = vrot.slane %v10023_v41, 1  ;;  %v10271_v33 = vld [vmem:[%s9707_s20 + $0x80] ss:$0 sps:$4 sm:$0x11]   ;;  %v1588_v18 = vshll.u32 %v10237_v49, 16 }
 0x108   : > { %2549 = vmatmul.mubr.bf16.gmra.mrb[72].mxu0 %v9897_v39  ;;  %v10232_v39 = vld [vmem:[%s9707_s20 + $0x78] sm:$0xff]   ;;  %12082 = vst [vmem:[#allocation23_spill] sm:$0xff] %v10271_v33  ;;  %v12085_v27 = vrot.slane %v10075_v9, 1  ;;  %v12086_v61 = vrot.slane %v10026_v24, 1  ;;  %v1605_v31 = vshrl.u32 %v10277_v0, 16  ;;  %v1636_v33 = vshll.u32 %v9099_v13, 16 }
 0x109   : > { %7888 = vmatpush3.bf16.msra.mxu0 %v9038_v59  ;;  %2556 = vmatprep.mubr.bf16.mxu0 %v10055_v3  ;;  %v10246_v59 = vld [vmem:[%s9707_s20 + $0x6c] sm:$0xff]   ;;  %v1583_v5 = vshll.u32 %v10232_v39, 16  ;;  %v1278_v7 = vsel %vm859_vm1, %v12081_v28, %v12080_v19  ;;  %v10280_v12 = vld [vmem:[%s9707_s20 + $0x98] ss:$0 sps:$4 sm:$0x11]   ;;  %v12083_v19 = vshrl.u32 %v10023_v41, 16 }
 0x10a   : > { %7889 = vmatprep.subr.bf16.mxu0 %v9041_v55  ;;  %12077 = vst [vmem:[#allocation20_spill] sm:$0xff] %v10246_v59  ;;  %v10256_v55 = vrot.slane %v1167_v36, 1  ;;  %v10274_v36 = vld [vmem:[%s9707_s20 + $0x84] sm:$0xff]   ;;  %v1567_v59 = vsel %vm650_vm0, %v1562_v45, %v1566_v52  ;;  %v1590_v45 = vrot.slane %v1588_v18, 1  ;;  %v1612_v52 = vshll.u32 %v10280_v12, 16 }
 0x10b   : > { %v1074_v28 = vor.u32 %v10045_v62, %v12083_v19  ;;  %v1585_v29 = vrot.slane %v1583_v5, 1  ;;  %v1595_v62 = vshll.u32 %v10274_v36, 16  ;;  %v1600_v19 = vshll.u32 %v10262_v37, 16  ;;  %2895 = vmatmul.mubr.bf16.gmra.mrb[68].mxu1 %v10125_v17 }
 0x10c   : > { %12078 = vst [vmem:[#allocation21_spill] sm:$0xff] %v10256_v55  ;;  %v10298_v55 = vld [vmem:[%s9707_s20 + $0xa4] ss:$0 sps:$4 sm:$0x11]   ;;  %v1619_v5 = vshll.u32 %v10287_v30, 16  ;;  %v1281_v41 = vsel %vm859_vm1, %v12086_v61, %v12085_v27  ;;  %2902 = vmatprep.mubr.bf16.mxu1 %v1567_v59  ;;  %v10336_v18 = vrot.slane %v1612_v52, 1  ;;  %v1579_v52 = vsel %vm650_vm0, %v1574_v50, %v10252_v53 }
 0x10d   : > { %7890 = vmatpush3.bf16.msra.mxu0 %v9042_v11  ;;  %v10294_v11 = vld [vmem:[%s9707_s20 + $0x78] sm:$0xff]   ;;  %v1624_v9 = vshll.u32 %v10298_v55, 16  ;;  %v1597_v61 = vrot.slane %v1595_v62, 1  ;;  %v1602_v27 = vrot.slane %v1600_v19, 1  ;;  %v12087_v19 = vshrl.u32 %v10026_v24, 16 }
 0x10e   : > { %7891 = vmatprep.subr.bf16.mxu0 %v9046_v56  ;;  %v9051_v56 = vld [vmem:[%s12034_s2 + $0x138] sm:$0xff]   ;;  %12084 = vst [vmem:[#allocation24_spill] sm:$0xff] %v10294_v11  ;;  %v9062_v11 = vld [vmem:[%s12034_s2 + $0x208] sm:$0xff]   ;;  %v10339_v58 = vrot.slane %v1619_v5, 1  ;;  %v12090_v13 = vrot.slane %v10034_v48, 1 }
 0x10f   : > { %v9102_v62 = vld [vmem:[%s9707_s20 + $0xbc] ss:$0 sps:$4 sm:$0x11]   ;;  %v10351_v5 = vrot.slane %v1624_v9, 1 }
 0x110   : > { %2557 = vmatmul.mubr.bf16.gmra.mrb[76].mxu0 %v9905_v44  ;;  %v9055_v44 = vld [vmem:[%s12034_s2 + $0x200] sm:$0xff]   ;;  %v9076_v24 = vld [vmem:[%s12034_s2 + $0x218] sm:$0xff]  }
 0x111   : > { %7892 = vmatpush3.bf16.msra.mxu0 %v9047_v1  ;;  %2693 = vmatprep.mubr.bf16.mxu0 %v1278_v7  ;;  %v1607_v1 = vshll.u32 %v10277_v0, 16  ;;  %v1079_v7 = vsel %vm650_vm0, %v1074_v28, %v10130_v20  ;;  %v1593_v20 = vshrl.u32 %v10274_v36, 16  ;;  %v10331_v28 = vld [vmem:[%s9707_s20 + $0xb4] sm:$0xff]  }
 0x112   : > { %7893 = vmatprep.subr.bf16.mxu0 %v9050_v15  ;;  %v10313_v15 = vld [vmem:[%s9707_s20 + $0xa8] sm:$0xff]   ;;  %v1643_v25 = vshll.u32 %v10331_v28, 16  ;;  %v1641_v50 = vshrl.u32 %v10331_v28, 16 }
 0x113   : > { %v10334_v59 = vrot.slane %v1607_v1, 1  ;;  %v1086_v1 = vor.u32 %v10050_v54, %v12087_v19  ;;  %2903 = vmatmul.mubr.bf16.gmra.mrb[72].mxu1 %v10163_v2  ;;  %v10361_v54 = vrot.slane %v1636_v33, 1  ;;  %v12089_v19 = vrot.slane %v10101_v40, 1  ;;  %v10376_v33 = vld [vmem:[%s9707_s20 + $0xc0] sm:$0xff]  }
 0x114   : > { %2910 = vmatprep.mubr.bf16.mxu1 %v1579_v52  ;;  %v10368_v9 = vrot.slane %v1643_v25, 1  ;;  %v9090_v25 = vld [vmem:[%s12034_s2 + $0x228] sm:$0xff]  }
 0x115   : > { %7894 = vmatpush3.bf16.msra.mxu0 %v9051_v56  ;;  %v1631_v56 = vshll.u32 %v10313_v15, 16  ;;  %v1091_v53 = vsel %vm650_vm0, %v1086_v1, %v10133_v26  ;;  %v1284_v52 = vsel %vm859_vm1, %v12090_v13, %v12089_v19  ;;  %v9083_v26 = vld [vmem:[%s12034_s2 + $0x220] sm:$0xff]   ;;  %v1655_v1 = vshll.u32 %v10376_v33, 16 }
 0x116   : > { %8623 = vmatprep.subr.bf16.mxu0 %v9055_v44  ;;  %v12092_v13 = vrot.slane %v10106_v57, 1  ;;  %v12095_v19 = vrot.slane %v10109_v14, 1 }
 0x118   : > { %2694 = vmatmul.mubr.bf16.vlgmr.msra.gmra.mrb[80].mxu0 %v1079_v7  ;;  %v10356_v7 = vrot.slane %v1631_v56, 1  ;;  %v1648_v56 = vshll.u32 %v9102_v62, 16 }
 0x119   : > { %8624 = vmatpush3.bf16.msra.mxu0 %v9055_v44  ;;  %2701 = vmatprep.mubr.bf16.mxu0 %v1281_v41  ;;  %v12088_v44 = vshrl.u32 %v10232_v39, 16 }
 0x11a   : > { %8625 = vmatprep.subr.bf16.mxu0 %v9062_v11  ;;  %v10389_v62 = vrot.slane %v1648_v56, 1  ;;  %v1714_v56 = vrot.slane %v10202_v6, 1  ;;  %v1716_v6 = vrot.slane %v10232_v39, 1 }
 0x11b   : > { %v1586_v41 = vor.u32 %v1585_v29, %v12088_v44  ;;  %v12091_v29 = vshrl.u32 %v10034_v48, 16  ;;  %2911 = vmatmul.mubr.bf16.gmra.mrb[76].mxu1 %v10199_v63 }
 0x11d   : > { %8626 = vmatpush3.bf16.msra.mxu0 %v9062_v11  ;;  %v1098_v11 = vor.u32 %v10069_v8, %v12091_v29  ;;  %v1591_v40 = vsel %vm650_vm0, %v1586_v41, %v1590_v45  ;;  %v1598_v8 = vor.u32 %v1597_v61, %v1593_v20  ;;  %v1708_v45 = vrot.slane %v10147_v43, 1  ;;  %v9104_v20 = vld [vmem:[%s12034_s2 + $0x238] sm:$0xff]  }
 0x11e   : > { %8627 = vmatprep.subr.bf16.mxu0 %v9069_v46  ;;  %2918 = vmatprep.mubr.bf16.mxu1 %v1591_v40  ;;  %v1710_v61 = vrot.slane %v10163_v2, 1  ;;  %v12098_v29 = vshrl.u32 %v10287_v30, 16  ;;  %v12100_v40 = vrot.slane %v9832_v21, 1 }
 0x11f   : > { %v1103_v48 = vsel %vm650_vm0, %v1098_v11, %v10151_v60  ;;  %v9097_v60 = vld [vmem:[%s12034_s2 + $0x230] sm:$0xff]   ;;  %v1603_v57 = vsel %vm650_vm0, %v1598_v8, %v1602_v27  ;;  %v1713_v27 = vrot.slane %v10199_v63, 1  ;;  %v12099_v11 = vrot.slane %v10116_v51, 1 }
 0x120   : > { %2702 = vmatmul.mubr.bf16.gmra.mrb[84].mxu0 %v1091_v53  ;;  %v12093_v53 = vrot.slane %v10055_v3, 1  ;;  %v12102_v8 = vshrl.u32 %v10313_v15, 16 }
 0x121   : > { %2709 = vmatprep.mubr.bf16.mxu0 %v1284_v52  ;;  %8628 = vmatpush3.bf16.msra.mxu0 %v9069_v46  ;;  %v1707_v46 = vrot.slane %v10125_v17, 1  ;;  %v12094_v17 = vshrl.u32 %v10055_v3, 16  ;;  %v12096_v52 = vrot.slane %v9810_v4, 1 }
 0x122   : > { %8629 = vmatprep.subr.bf16.mxu0 %v9076_v24  ;;  %v1287_v44 = vsel %vm859_vm1, %v12093_v53, %v12092_v13 }
 0x123   : > { %v10402_v41 = vsel %vm859_vm1, %v1707_v46, %v1708_v45  ;;  %v1110_v43 = vor.u32 %v10094_v38, %v12094_v17  ;;  %2919 = vmatmul.mubr.bf16.gmra.mrb[80].mxu1 %v10232_v39  ;;  %v1610_v38 = vor.u32 %v10334_v59, %v1605_v31  ;;  %v1290_v2 = vsel %vm859_vm1, %v12096_v52, %v12095_v19  ;;  %v12106_v17 = vld [vmem:[#allocation16_spill] sm:$0xff] }
 0x124   : > { %2926 = vmatprep.mubr.bf16.mxu1 %v1603_v57  ;;  %v12097_v31 = vshrl.u32 %v9810_v4, 16  ;;  %v1717_v59 = vrot.slane %v10237_v49, 1  ;;  %v1622_v4 = vor.u32 %v10339_v58, %v12098_v29  ;;  %v1293_v39 = vsel %vm859_vm1, %v12100_v40, %v12099_v11  ;;  %v12107_v57 = vld [vmem:[#allocation14_spill] sm:$0xff]  ;;  %v10518_v19 = vld [vmem:[%s9707_s20 + $0xd4] ss:$0 sps:$4 sm:$0x11]  }
 0x125   : > { %8630 = vmatpush3.bf16.msra.mxu0 %v9076_v24  ;;  %v1711_v24 = vrot.slane %v10183_v42, 1  ;;  %v1115_v3 = vsel %vm650_vm0, %v1110_v43, %v10157_v22  ;;  %v10433_v22 = vsel %vm859_vm1, %v1713_v27, %v1714_v56  ;;  %v1615_v14 = vsel %vm650_vm0, %v1610_v38, %v10336_v18  ;;  %v12113_v27 = vld [vmem:[#allocation18_spill] sm:$0xff] }
 0x126   : > { %8631 = vmatprep.subr.bf16.mxu0 %v9083_v26  ;;  %v1122_v63 = vor.u32 %v10063_v16, %v12097_v31  ;;  %v1719_v16 = vrot.slane %v10274_v36, 1  ;;  %v1720_v18 = vrot.slane %v10262_v37, 1  ;;  %v10456_v49 = vsel %vm859_vm1, %v1716_v6, %v1717_v59  ;;  %v12117_v6 = vld [vmem:[#allocation23_spill] sm:$0xff] }
 0x127   : > { %v10430_v42 = vsel %vm859_vm1, %v1710_v61, %v1711_v24  ;;  %v1627_v51 = vsel %vm650_vm0, %v1622_v4, %v10351_v5  ;;  %v1722_v58 = vrot.slane %v10277_v0, 1  ;;  %v1634_v46 = vor.u32 %v10356_v7, %v12102_v8  ;;  %v9305_v29 = vld [vmem:[%s9707_s20 + $0x84] sm:$0xff]  }
 0x128   : > { %2710 = vmatmul.mubr.bf16.gmra.mrb[88].mxu0 %v1103_v48  ;;  %v12103_v5 = vrot.slane %v10155_v23, 1  ;;  %v12104_v45 = vrot.slane %v9841_v34, 1  ;;  %v12118_v59 = vshll.u32 %v12117_v6, 16  ;;  %v1306_v4 = vrot.slane %v9305_v29, 1 }
 0x129   : > { %2717 = vmatprep.mubr.bf16.mxu0 %v1287_v44  ;;  %8632 = vmatpush3.bf16.msra.mxu0 %v9083_v26  ;;  %v1127_v26 = vsel %vm650_vm0, %v1122_v63, %v10160_v10  ;;  %v10459_v10 = vsel %vm859_vm1, %v1719_v16, %v1720_v18  ;;  %v1639_v7 = vsel %vm650_vm0, %v1634_v46, %v10361_v54  ;;  %v1653_v44 = vshrl.u32 %v10376_v33, 16  ;;  %v12116_v63 = vld [vmem:[#allocation19_spill] sm:$0xff] }
 0x12a   : > { %8633 = vmatprep.subr.bf16.mxu0 %v9090_v25  ;;  %v1296_v13 = vsel %vm859_vm1, %v12104_v45, %v12103_v5  ;;  %v1672_v8 = vshll.u32 %v10518_v19, 16 }
 0x12b   : > { %2927 = vmatmul.mubr.bf16.gmra.mrb[84].mxu1 %v10274_v36  ;;  %v12101_v36 = vshrl.u32 %v9832_v21, 16  ;;  %v1725_v21 = vrot.slane %v10287_v30, 1 }
 0x12c   : > { %2934 = vmatprep.mubr.bf16.mxu1 %v1615_v14 }
 0x12d   : > { %8634 = vmatpush3.bf16.msra.mxu0 %v9090_v25  ;;  %v1134_v37 = vor.u32 %v10086_v32, %v12101_v36  ;;  %v1723_v25 = vrot.slane %v10280_v12, 1  ;;  %v1726_v32 = vrot.slane %v10298_v55, 1  ;;  %v12105_v55 = vshrl.u32 %v9841_v34, 16 }
 0x12e   : > { %8635 = vmatprep.subr.bf16.mxu0 %v9097_v60  ;;  %v1646_v34 = vor.u32 %v10368_v9, %v1641_v50 }
 0x12f   : > { %v1139_v48 = vsel %vm650_vm0, %v1134_v37, %v10173_v47  ;;  %v10485_v12 = vsel %vm859_vm1, %v1722_v58, %v1723_v25  ;;  %v10488_v47 = vld [vmem:[%s9707_s20 + $0xcc] sm:$0xff]   ;;  %v10491_v53 = vsel %vm859_vm1, %v1725_v21, %v1726_v32  ;;  %v1146_v23 = vor.u32 %v10176_v35, %v12105_v55  ;;  %v12124_v32 = vld [vmem:[#allocation21_spill] sm:$0xff] }
 0x130   : > { %2718 = vmatmul.mubr.bf16.gmra.mrb[92].mxu0 %v1115_v3  ;;  %v1657_v35 = vrot.slane %v1655_v1, 1  ;;  %v1667_v54 = vshll.u32 %v10488_v47, 16  ;;  %v12111_v3 = vld [vmem:[#allocation17_spill] sm:$0xff]  ;;  %v1651_v50 = vsel %vm650_vm0, %v1646_v34, %v10389_v62  ;;  %v12114_v1 = vld [vmem:[#allocation24_spill] sm:$0xff]  ;;  %v1665_v40 = vshrl.u32 %v10488_v47, 16 }
 0x131   : > { %2725 = vmatprep.mubr.bf16.mxu0 %v1290_v2  ;;  %8636 = vmatpush3.bf16.msra.mxu0 %v9097_v60  ;;  %v1151_v43 = vsel %vm650_vm0, %v1146_v23, %v12106_v17  ;;  %v12112_v38 = vshrl.u32 %v12111_v3, 16  ;;  %v12115_v52 = vshll.u32 %v12114_v1, 16  ;;  %v1191_v55 = vshll.u32 %v9305_v29, 16  ;;  %v12125_v17 = vld [vmem:[#allocation22_spill] sm:$0xff] }
 0x132   : > { %8637 = vmatprep.subr.bf16.mxu0 %v9104_v20  ;;  %v1658_v11 = vor.u32 %v1657_v35, %v1653_v44  ;;  %v1674_v35 = vrot.slane %v1672_v8, 1 }
 0x133   : > { %2935 = vmatmul.mubr.bf16.gmra.mrb[88].mxu1 %v10277_v0  ;;  %v10482_v0 = vld [vmem:[%s9707_s20 + $0xc8] ss:$0 sps:$4 sm:$0x11]   ;;  %v1158_v56 = vor.u32 %v12113_v27, %v12112_v38  ;;  %v1181_v2 = vrot.slane %v12115_v52, 1  ;;  %v1193_v52 = vrot.slane %v1191_v55, 1 }
 0x134   : > { %2942 = vmatprep.mubr.bf16.mxu1 %v1627_v51  ;;  %v1660_v60 = vshll.u32 %v10482_v0, 16  ;;  %v12121_v51 = vld [vmem:[#allocation20_spill] sm:$0xff]  ;;  %v9096_v55 = vld [vmem:[%s9707_s20 + $0xa4] ss:$0 sps:$4 sm:$0x11]  }
 0x135   : > { %8638 = vmatpush3.bf16.msra.mxu0 %v9104_v20  ;;  %v12109_v20 = vld [vmem:[#allocation13_spill] sm:$0xff]  ;;  %v1163_v14 = vsel %vm650_vm0, %v1158_v56, %v12116_v63  ;;  %v12122_v58 = vrot.slane %v12121_v51, 1  ;;  %v12123_v21 = vshrl.u32 %v12121_v51, 16  ;;  %v1189_v56 = vshrl.u32 %v9305_v29, 16  ;;  %v9306_v29 = vld [vmem:[%s9707_s20 + $0x90] sm:$0xff]  }
 0x136   : > { %v12110_v61 = vrot.slane %v12109_v20, 1  ;;  %v1662_v16 = vrot.slane %v1660_v60, 1 }
 0x137   : > { %v1170_v5 = vor.u32 %v12124_v32, %v12123_v21 }
 0x138   : > { %2726 = vmatmul.mubr.bf16.gmra.mrb[96].mxu0 %v1127_v26  ;;  %v1186_v26 = vrot.slane %v12118_v59, 1  ;;  %v1663_v45 = vsel %vm650_vm0, %v1658_v11, %v1662_v16  ;;  %v1309_v11 = vrot.slane %v9306_v29, 1 }
 0x139   : > { %2733 = vmatprep.mubr.bf16.mxu0 %v1293_v39  ;;  %v1669_v39 = vrot.slane %v1667_v54, 1 }
 0x13b   : > { %2943 = vmatmul.mubr.bf16.gmra.mrb[92].mxu1 %v10287_v30  ;;  %v12108_v30 = vrot.slane %v12107_v57, 1  ;;  %v1670_v34 = vor.u32 %v1669_v39, %v1665_v40  ;;  %v12126_v57 = vrot.slane %v12117_v6, 1  ;;  %v1203_v39 = vshll.u32 %v9306_v29, 16 }
 0x13c   : > { %2950 = vmatprep.mubr.bf16.mxu1 %v1639_v7 }
 0x13d   : > { %v1299_v24 = vsel %vm859_vm1, %v12110_v61, %v12108_v30  ;;  %v12127_v30 = vrot.slane %v12114_v1, 1  ;;  %v1675_v38 = vsel %vm650_vm0, %v1670_v34, %v1674_v35  ;;  %v1205_v21 = vrot.slane %v1203_v39, 1 }
 0x13f   : > { %v1305_v20 = vsel %vm859_vm1, %v12127_v30, %v12126_v57 }
 0x140   : > { %2734 = vmatmul.mubr.bf16.gmra.mrb[100].mxu0 %v1139_v48  ;;  %v9089_v48 = vld [vmem:[%s9707_s20 + $0x8c] ss:$0 sps:$4 sm:$0x11]  }
 0x141   : > { %2741 = vmatprep.mubr.bf16.mxu0 %v1296_v13  ;;  %v1307_v7 = vrot.slane %v9089_v48, 1 }
 0x143   : > { %2951 = vmatmul.mubr.bf16.gmra.mrb[96].mxu1 %v10313_v15  ;;  %v12119_v15 = vld [vmem:[#allocation15_spill] sm:$0xff] }
 0x144   : > { %2958 = vmatprep.mubr.bf16.mxu1 %v1651_v50  ;;  %v12120_v37 = vrot.slane %v12119_v15, 1  ;;  %v9093_v50 = vld [vmem:[%s9707_s20 + $0x98] ss:$0 sps:$4 sm:$0x11]  }
 0x145   : > { %v1310_v15 = vrot.slane %v9093_v50, 1  ;;  %v1208_v32 = vshll.u32 %v9093_v50, 16 }
 0x146   : > { %v1302_v25 = vsel %vm859_vm1, %v12122_v58, %v12120_v37  ;;  %v1201_v58 = vshrl.u32 %v9306_v29, 16 }
 0x147   : > { %v1210_v34 = vrot.slane %v1208_v32, 1 }
 0x148   : > { %2742 = vmatmul.mubr.bf16.gmra.mrb[104].mxu0 %v1151_v43  ;;  %v1175_v43 = vsel %vm650_vm0, %v1170_v5, %v12125_v17 }
 0x149   : > { %2749 = vmatprep.mubr.bf16.mxu0 %v1299_v24  ;;  %v12128_v24 = vshrl.u32 %v12114_v1, 16  ;;  %v1308_v1 = vsel %vm859_vm1, %v1306_v4, %v1307_v7 }
 0x14b   : > { %v7671_v9 = vpop.f32.mrb[0].mxu0  ;;  %2959 = vmatmul.mubr.bf16.gmra.mrb[100].mxu1 %v10331_v28  ;;  %v1196_v28 = vshll.u32 %v9089_v48, 16  ;;  %v1182_v3 = vor.u32 %v1181_v2, %v12128_v24 }
 0x14c   : > { %v7672_v31 = vpop.f32.mrb[1].mxu0  ;;  %2966 = vmatprep.mubr.bf16.mxu1 %v1663_v45  ;;  %v1311_v45 = vsel %vm859_vm1, %v1309_v11, %v1310_v15 }
 0x14d   : > { %v10530_v18 = vadd.f32 %v7672_v31, %v7671_v9  ;;  %v7674_v62 = vpop.f32.mrb[2].mxu0  ;;  %v1198_v6 = vrot.slane %v1196_v28, 1 }
 0x14e   : > { %v7675_v36 = vpop.f32.mrb[3].mxu0 }
 0x14f   : > { %v10540_v46 = vadd.f32 %v7675_v36, %v7674_v62  ;;  %v1194_v36 = vor.u32 %v1193_v52, %v1189_v56 }
 0x150   : > { %2750 = vmatmul.mubr.bf16.gmra.mrb[108].mxu0 %v1163_v14  ;;  %v1187_v14 = vsel %vm650_vm0, %v1182_v3, %v1186_v26  ;;  %v7807_v2 = vpop.f32.mrb[0].mxu1 }
 0x151   : > { %2757 = vmatprep.mubr.bf16.mxu0 %v1302_v25  ;;  %v7808_v62 = vpop.f32.mrb[1].mxu1  ;;  %v1199_v8 = vsel %vm650_vm0, %v1194_v36, %v1198_v6 }
 0x152   : > { %v7810_v40 = vpop.f32.mrb[2].mxu1 }
 0x153   : > { %v7677_v13 = vpop.f32.mrb[4].mxu0  ;;  %2967 = vmatmul.mubr.bf16.gmra.mrb[104].mxu1 %v10376_v33  ;;  %v7809_v33 = vadd.f32 %v7808_v62, %v7807_v2  ;;  %v7811_v37 = vpop.f32.mrb[3].mxu1 }
 0x154   : > { %v7678_v23 = vpop.f32.mrb[5].mxu0  ;;  %2974 = vmatprep.mubr.bf16.mxu1 %v1675_v38  ;;  %v7812_v26 = vadd.f32 %v7811_v37, %v7810_v40  ;;  %v1220_v38 = vshll.u32 %v9096_v55, 16 }
 0x155   : > { %v10547_v44 = vadd.f32 %v7678_v23, %v7677_v13  ;;  %v7680_v60 = vpop.f32.mrb[6].mxu0 }
 0x156   : > { %v7681_v54 = vpop.f32.mrb[7].mxu0  ;;  %v1222_v11 = vrot.slane %v1220_v38, 1 }
 0x157   : > { %v10556_v61 = vadd.f32 %v7681_v54, %v7680_v60  ;;  %v9307_v54 = vld [vmem:[%s9707_s20 + $0x9c] sm:$0xff]  }
 0x158   : > { %2758 = vmatmul.mubr.bf16.gmra.mrb[112].mxu0 %v1175_v43  ;;  %v7813_v13 = vpop.f32.mrb[4].mxu1  ;;  %v1206_v43 = vor.u32 %v1205_v21, %v1201_v58  ;;  %v1215_v57 = vshll.u32 %v9307_v54, 16  ;;  %v1312_v30 = vrot.slane %v9307_v54, 1  ;;  %v1213_v52 = vshrl.u32 %v9307_v54, 16 }
 0x159   : > { %2765 = vmatprep.mubr.bf16.mxu0 %v1305_v20  ;;  %v7814_v7 = vpop.f32.mrb[5].mxu1  ;;  %v1313_v20 = vrot.slane %v9096_v55, 1 }
 0x15a   : > { %v10578_v60 = vadd.f32 %v7814_v7, %v7813_v13  ;;  %v7816_v17 = vpop.f32.mrb[6].mxu1 }
 0x15b   : > { %v7683_v27 = vpop.f32.mrb[8].mxu0  ;;  %2975 = vmatmul.mubr.bf16.gmra.mrb[108].mxu1 %v10488_v47  ;;  %v7817_v35 = vpop.f32.mrb[7].mxu1  ;;  %v1314_v6 = vsel %vm859_vm1, %v1312_v30, %v1313_v20 }
 0x15c   : > { %v7684_v9 = vpop.f32.mrb[9].mxu0  ;;  %v7818_v28 = vadd.f32 %v7817_v35, %v7816_v17 }
 0x15d   : > { %v10563_v31 = vadd.f32 %v7684_v9, %v7683_v27  ;;  %v7686_v63 = vpop.f32.mrb[10].mxu0  ;;  %v10584_v27 = vld [vmem:[%s12035_s3] ss:$0 sm:$0xff]  ;;  %v1211_v9 = vsel %vm650_vm0, %v1206_v43, %v1210_v34 }
 0x15e   : > { %v7687_v59 = vpop.f32.mrb[11].mxu0 }
 0x15f   : > { %v10567_v16 = vadd.f32 %v7687_v59, %v7686_v63  ;;  %v1217_v63 = vrot.slane %v1215_v57, 1  ;;  %v9103_v57 = vld [vmem:[%s9707_s20 + $0xbc] ss:$0 sps:$4 sm:$0x11]  }
 0x160   : > { %2766 = vmatmul.mubr.bf16.gmra.mrb[116].mxu0 %v1187_v14  ;;  %v7819_v59 = vpop.f32.mrb[8].mxu1 }
 0x161   : > { %2773 = vmatprep.mubr.bf16.mxu0 %v1308_v1  ;;  %v9100_v1 = vld [vmem:[%s9707_s20 + $0xb0] ss:$0 sps:$4 sm:$0x11]   ;;  %v7820_v29 = vpop.f32.mrb[9].mxu1  ;;  %v1218_v15 = vor.u32 %v1217_v63, %v1213_v52  ;;  %v9309_v52 = vld [vmem:[%s9707_s20 + $0xb4] sm:$0xff]  }
 0x162   : > { %v10590_v40 = vadd.f32 %v7820_v29, %v7819_v59  ;;  %v7822_v39 = vpop.f32.mrb[10].mxu1  ;;  %v1232_v13 = vshll.u32 %v9100_v1, 16  ;;  %v1239_v63 = vshll.u32 %v9309_v52, 16  ;;  %v1319_v59 = vrot.slane %v9103_v57, 1 }
 0x163   : > { %v7689_v51 = vpop.f32.mrb[12].mxu0  ;;  %v7823_v37 = vpop.f32.mrb[11].mxu1  ;;  %v1223_v17 = vsel %vm650_vm0, %v1218_v15, %v1222_v11  ;;  %v1244_v11 = vshll.u32 %v9103_v57, 16 }
 0x164   : > { %v7690_v4 = vpop.f32.mrb[13].mxu0  ;;  %v7824_v21 = vadd.f32 %v7823_v37, %v7822_v39  ;;  %v1237_v37 = vshrl.u32 %v9309_v52, 16 }
 0x165   : > { %v10571_v25 = vadd.f32 %v7690_v4, %v7689_v51  ;;  %v7692_v48 = vpop.f32.mrb[14].mxu0  ;;  %v9308_v51 = vld [vmem:[%s9707_s20 + $0xa8] sm:$0xff]  }
 0x166   : > { %v7693_v5 = vpop.f32.mrb[15].mxu0  ;;  %v1227_v4 = vshll.u32 %v9308_v51, 16  ;;  %v1225_v43 = vshrl.u32 %v9308_v51, 16 }
 0x167   : > { %v10576_v23 = vadd.f32 %v7693_v5, %v7692_v48  ;;  %v1315_v48 = vrot.slane %v9308_v51, 1  ;;  %v1241_v51 = vrot.slane %v1239_v63, 1 }
 0x168   : > { %2774 = vmatmul.mubr.bf16.gmra.mrb[120].mxu0 %v1199_v8  ;;  %v1316_v8 = vrot.slane %v9100_v1, 1  ;;  %v1229_v34 = vrot.slane %v1227_v4, 1  ;;  %v7825_v54 = vpop.f32.mrb[12].mxu1 }
 0x169   : > { %2781 = vmatprep.mubr.bf16.mxu0 %v1311_v45 }
 0x16b   : > { %v7695_v24 = vpop.f32.mrb[16].mxu0 }
 0x16c   : > { %v7696_v3 = vpop.f32.mrb[17].mxu0 }
 0x16d   : > { %v7697_v56 = vadd.f32 %v7696_v3, %v7695_v24  ;;  %v7698_v50 = vpop.f32.mrb[18].mxu0  ;;  %v7826_v24 = vpop.f32.mrb[13].mxu1 }
 0x16e   : > { %v7699_v14 = vpop.f32.mrb[19].mxu0  ;;  %v10602_v3 = vadd.f32 %v7826_v24, %v7825_v54  ;;  %v7828_v38 = vpop.f32.mrb[14].mxu1 }
 0x16f   : > { %v2406_v2 = vadd.f32 %v7697_v56, %v10584_v27  ;;  %v7700_v62 = vadd.f32 %v7699_v14, %v7698_v50  ;;  %v1230_v50 = vor.u32 %v1229_v34, %v1225_v43  ;;  %v1242_v43 = vor.u32 %v1241_v51, %v1237_v37 }
 0x170   : > { %2782 = vmatmul.mubr.bf16.gmra.mrb[124].mxu0 %v1211_v9  ;;  %v7829_v9 = vpop.f32.mrb[15].mxu1 }
 0x171   : > { %v2409_v36 = vadd.f32 %v7700_v62, %v10584_v27  ;;  %2789 = vmatprep.mubr.bf16.mxu0 %v1314_v6  ;;  %v10594_v58 = vadd.f32 %v7809_v33, %v2406_v2  ;;  %v1317_v33 = vsel %vm859_vm1, %v1315_v48, %v1316_v8  ;;  %v1318_v6 = vrot.slane %v9309_v52, 1  ;;  %v7831_v48 = vpop.f32.mrb[16].mxu1  ;;  %v9107_v8 = vld [vmem:[%s9707_s20 + $0xc8] ss:$0 sps:$4 sm:$0x11]  }
 0x172   : > { %v10609_v1 = vadd.f32 %v7829_v9, %v7828_v38 }
 0x173   : > { %v7701_v32 = vpop.f32.mrb[20].mxu0  ;;  %v10596_v5 = vadd.f32 %v7812_v26, %v2409_v36  ;;  %v1234_v26 = vrot.slane %v1232_v13, 1  ;;  %v7832_v13 = vpop.f32.mrb[17].mxu1 }
 0x174   : > { %v7702_v45 = vpop.f32.mrb[21].mxu0 }
 0x175   : > { %v7703_v55 = vadd.f32 %v7702_v45, %v7701_v32  ;;  %v7704_v7 = vpop.f32.mrb[22].mxu0  ;;  %v1235_v15 = vsel %vm650_vm0, %v1230_v50, %v1234_v26 }
 0x176   : > { %v7705_v35 = vpop.f32.mrb[23].mxu0 }
 0x177   : > { %v2414_v30 = vadd.f32 %v7703_v55, %v10584_v27  ;;  %v7706_v20 = vadd.f32 %v7705_v35, %v7704_v7  ;;  %v7833_v55 = vadd.f32 %v7832_v13, %v7831_v48  ;;  %v7834_v7 = vpop.f32.mrb[18].mxu1  ;;  %v9310_v35 = vld [vmem:[%s9707_s20 + $0xc0] sm:$0xff]   ;;  %v9111_v48 = vld [vmem:[#allocation6] sm:$0xff]  }
 0x178   : > { %2790 = vmatmul.mubr.bf16.gmra.mrb[128].mxu0 %v1223_v17  ;;  %v7835_v34 = vpop.f32.mrb[19].mxu1  ;;  %v1321_v57 = vrot.slane %v9310_v35, 1  ;;  %v9312_v13 = vld [vmem:[%s9707_s20 + $0x20] ss:$0 sps:$4 sm:$0x11]  }
 0x179   : > { %v2417_v56 = vadd.f32 %v7706_v20, %v10584_v27  ;;  %2797 = vmatprep.mubr.bf16.mxu0 %v1317_v33  ;;  %v10607_v14 = vadd.f32 %v10578_v60, %v2414_v30  ;;  %v1320_v60 = vsel %vm859_vm1, %v1318_v6, %v1319_v59  ;;  %v1251_v33 = vshll.u32 %v9310_v35, 16 }
 0x17a   : > { %v1322_v30 = vrot.slane %v9107_v8, 1  ;;  %v7836_v20 = vadd.f32 %v7835_v34, %v7834_v7  ;;  %v1256_v6 = vshll.u32 %v9107_v8, 16 }
 0x17b   : > { %v7707_v2 = vpop.f32.mrb[24].mxu0  ;;  %v10611_v62 = vadd.f32 %v7818_v28, %v2417_v56  ;;  %v1246_v28 = vrot.slane %v1244_v11, 1  ;;  %v1249_v56 = vshrl.u32 %v9310_v35, 16  ;;  %v1253_v63 = vrot.slane %v1251_v33, 1 }
 0x17c   : > { %v7708_v29 = vpop.f32.mrb[25].mxu0  ;;  %v1258_v51 = vrot.slane %v1256_v6, 1  ;;  %v9313_v6 = vld [vmem:[%s9707_s20 + $0x24] sm:$0xff]  }
 0x17d   : > { %v7709_v39 = vadd.f32 %v7708_v29, %v7707_v2  ;;  %v7710_v36 = vpop.f32.mrb[26].mxu0  ;;  %v1247_v52 = vsel %vm650_vm0, %v1242_v43, %v1246_v28  ;;  %v1323_v2 = vsel %vm859_vm1, %v1321_v57, %v1322_v30  ;;  %v1254_v37 = vor.u32 %v1253_v63, %v1249_v56 }
 0x17e   : > { %v7711_v4 = vpop.f32.mrb[27].mxu0  ;;  %v1693_v28 = vrot.slane %v9312_v13, 1 }
 0x17f   : > { %v2422_v32 = vadd.f32 %v7709_v39, %v10584_v27  ;;  %v7712_v45 = vadd.f32 %v7711_v4, %v7710_v36  ;;  %v1259_v57 = vsel %vm650_vm0, %v1254_v37, %v1258_v51 }
 0x180   : > { %2798 = vmatmul.mubr.bf16.gmra.mrb[132].mxu0 %v1235_v15 }
 0x181   : > { %v2425_v17 = vadd.f32 %v7712_v45, %v10584_v27  ;;  %2805 = vmatprep.mubr.bf16.mxu0 %v1320_v60  ;;  %v10620_v54 = vadd.f32 %v10590_v40, %v2422_v32  ;;  %v7837_v40 = vpop.f32.mrb[20].mxu1  ;;  %v9110_v60 = vld [vmem:[#allocation6 + $0x40] sm:$0xff]  }
 0x182   : > { %v7838_v39 = vpop.f32.mrb[21].mxu1  ;;  %v9311_v32 = vld [vmem:[%s9707_s20 + $0x18] sm:$0xff]   ;;  %8127 = vmatprep.subr.bf16.mxu1 %v9110_v60 }
 0x183   : > { %v7713_v24 = vpop.f32.mrb[28].mxu0  ;;  %v10622_v26 = vadd.f32 %v7824_v21, %v2425_v17  ;;  %v7839_v21 = vadd.f32 %v7838_v39, %v7837_v40  ;;  %v7840_v36 = vpop.f32.mrb[22].mxu1  ;;  %v1692_v45 = vrot.slane %v9311_v32, 1  ;;  %8128 = vmatpush3.bf16.msra.mxu1 %v9111_v48 }
 0x184   : > { %v7714_v38 = vpop.f32.mrb[29].mxu0  ;;  %v7841_v4 = vpop.f32.mrb[23].mxu1 }
 0x185   : > { %v7715_v50 = vadd.f32 %v7714_v38, %v7713_v24  ;;  %v7716_v9 = vpop.f32.mrb[30].mxu0  ;;  %v7842_v7 = vadd.f32 %v7841_v4, %v7840_v36  ;;  %v1694_v30 = vsel %vm859_vm1, %v1692_v45, %v1693_v28  ;;  %v9316_v36 = vld [vmem:[%s9707_s20 + $0x38] ss:$0 sps:$4 sm:$0x11]  }
 0x186   : > { %v7717_v59 = vpop.f32.mrb[31].mxu0  ;;  %v7843_v24 = vpop.f32.mrb[24].mxu1 }
 0x187   : > { %v2430_v29 = vadd.f32 %v7715_v50, %v10584_v27  ;;  %v7718_v11 = vadd.f32 %v7717_v59, %v7716_v9  ;;  %v7844_v50 = vpop.f32.mrb[25].mxu1  ;;  %v1695_v59 = vrot.slane %v9313_v6, 1  ;;  %v9319_v6 = vld [vmem:[%s9707_s20 + $0x48] sm:$0xff]  }
 0x188   : > { %2806 = vmatmul.mubr.bf16.gmra.mrb[136].mxu0 %v1247_v52  ;;  %v7846_v9 = vpop.f32.mrb[26].mxu1 }
 0x189   : > { %v2433_v15 = vadd.f32 %v7718_v11, %v10584_v27  ;;  %2813 = vmatprep.mubr.bf16.mxu0 %v1323_v2  ;;  %v10629_v8 = vadd.f32 %v10602_v3, %v2430_v29  ;;  %v9314_v2 = vld [vmem:[%s9707_s20 + $0x2c] ss:$0 sps:$4 sm:$0x11]   ;;  %v7847_v29 = vpop.f32.mrb[27].mxu1  ;;  %v9315_v11 = vld [vmem:[%s9707_s20 + $0x30] sm:$0xff]  }
 0x18a   : > { %v1696_v40 = vrot.slane %v9314_v2, 1  ;;  %v1698_v39 = vrot.slane %v9315_v11, 1  ;;  %v7848_v37 = vadd.f32 %v7847_v29, %v7846_v9  ;;  %v9112_v9 = vld [vmem:[#allocation6 + $0x48] sm:$0xff]   ;;  %v9320_v2 = vld [vmem:[%s9707_s20 + $0x50] ss:$0 sps:$4 sm:$0x11]  }
 0x18b   : > { %v7719_v17 = vpop.f32.mrb[32].mxu0  ;;  %v10634_v43 = vadd.f32 %v10609_v1, %v2433_v15  ;;  %v7845_v1 = vadd.f32 %v7844_v50, %v7843_v24  ;;  %v1699_v15 = vrot.slane %v9316_v36, 1  ;;  %8129 = vmatprep.subr.bf16.mxu1 %v9112_v9 }
 0x18c   : > { %v7720_v34 = vpop.f32.mrb[33].mxu0  ;;  %v1697_v32 = vsel %vm859_vm1, %v1695_v59, %v1696_v40  ;;  %v1704_v59 = vrot.slane %v9319_v6, 1  ;;  %v1705_v40 = vrot.slane %v9320_v2, 1 }
 0x18d   : > { %v7721_v35 = vadd.f32 %v7720_v34, %v7719_v17  ;;  %v7722_v33 = vpop.f32.mrb[34].mxu0  ;;  %v1700_v13 = vsel %vm859_vm1, %v1698_v39, %v1699_v15 }
 0x18e   : > { %v7723_v3 = vpop.f32.mrb[35].mxu0  ;;  %v7849_v28 = vpop.f32.mrb[28].mxu1 }
 0x18f   : > { %v7724_v38 = vadd.f32 %v7723_v3, %v7722_v33  ;;  %v2438_v56 = vadd.f32 %v7721_v35, %v10584_v27  ;;  %v7850_v35 = vpop.f32.mrb[29].mxu1 }
 0x190   : > { %2814 = vmatmul.mubr.bf16.gmra.mrb[140].mxu0 %v1259_v57  ;;  %v7852_v33 = vpop.f32.mrb[30].mxu1 }
 0x191   : > { %v10639_v52 = vadd.f32 %v7833_v55, %v2438_v56  ;;  %v2441_v63 = vadd.f32 %v7724_v38, %v10584_v27  ;;  %8639 = vmatprep.mubr.bf16.mxu0 %v1694_v30  ;;  %v9317_v30 = vld [vmem:[%s9707_s20 + $0x3c] sm:$0xff]   ;;  %v9318_v38 = vld [vmem:[%s9707_s20 + $0x44] ss:$0 sps:$4 sm:$0x11]   ;;  %v7853_v50 = vpop.f32.mrb[31].mxu1 }
 0x192   : > { %v1701_v24 = vrot.slane %v9317_v30, 1  ;;  %v1702_v56 = vrot.slane %v9318_v38, 1  ;;  %v7854_v29 = vadd.f32 %v7853_v50, %v7852_v33 }
 0x193   : > { %v10646_v51 = vadd.f32 %v7836_v20, %v2441_v63  ;;  %v7725_v4 = vpop.f32.mrb[36].mxu0  ;;  %v7851_v20 = vadd.f32 %v7850_v35, %v7849_v28  ;;  %v9113_v63 = vld [vmem:[#allocation6 + $0x8] sm:$0xff]  }
 0x194   : > { %v7726_v60 = vpop.f32.mrb[37].mxu0  ;;  %8130 = vmatpush3.bf16.msra.mxu1 %v9113_v63 }
 0x195   : > { %v7727_v55 = vadd.f32 %v7726_v60, %v7725_v4  ;;  %v7728_v48 = vpop.f32.mrb[38].mxu0  ;;  %v1703_v4 = vsel %vm859_vm1, %v1701_v24, %v1702_v56 }
 0x196   : > { %v7729_v45 = vpop.f32.mrb[39].mxu0 }
 0x197   : > { %v7730_v17 = vadd.f32 %v7729_v45, %v7728_v48  ;;  %v2446_v34 = vadd.f32 %v7727_v55, %v10584_v27  ;;  %v1706_v55 = vsel %vm859_vm1, %v1704_v59, %v1705_v40  ;;  %v7855_v48 = vpop.f32.mrb[32].mxu1 }
 0x198   : > { %8640 = vmatmul.mubr.bf16.vlgmr.msra.gmra.mrb[144].mxu0 %v1697_v32 }
 0x199   : > { %v10651_v57 = vadd.f32 %v7839_v21, %v2446_v34  ;;  %v2449_v3 = vadd.f32 %v7730_v17, %v10584_v27  ;;  %8643 = vmatprep.mubr.bf16.mxu0 %v1700_v13  ;;  %v7856_v13 = vpop.f32.mrb[33].mxu1 }
 0x19a   : > { %v7857_v28 = vadd.f32 %v7856_v13, %v7855_v48 }
 0x19b   : > { %v10658_v11 = vadd.f32 %v7842_v7, %v2449_v3  ;;  %v7731_v39 = vpop.f32.mrb[40].mxu0  ;;  %v7858_v7 = vpop.f32.mrb[34].mxu1 }
 0x19c   : > { %v7732_v21 = vpop.f32.mrb[41].mxu0  ;;  %v7859_v35 = vpop.f32.mrb[35].mxu1 }
 0x19d   : > { %v7733_v36 = vadd.f32 %v7732_v21, %v7731_v39  ;;  %v7734_v15 = vpop.f32.mrb[42].mxu0  ;;  %v7860_v33 = vadd.f32 %v7859_v35, %v7858_v7  ;;  %v9114_v21 = vld [vmem:[#allocation6 + $0x50] sm:$0xff]  }
 0x19e   : > { %v7735_v60 = vpop.f32.mrb[43].mxu0  ;;  %v7861_v9 = vpop.f32.mrb[36].mxu1  ;;  %8131 = vmatprep.subr.bf16.mxu1 %v9114_v21 }
 0x19f   : > { %v7736_v32 = vadd.f32 %v7735_v60, %v7734_v15  ;;  %v2454_v45 = vadd.f32 %v7733_v36, %v10584_v27  ;;  %v7862_v59 = vpop.f32.mrb[37].mxu1  ;;  %v9115_v36 = vld [vmem:[#allocation6 + $0x10] sm:$0xff]  }
 0x1a0   : > { %8644 = vmatmul.mubr.bf16.gmra.mrb[148].mxu0 %v1703_v4  ;;  %v7864_v2 = vpop.f32.mrb[38].mxu1  ;;  %8132 = vmatpush3.bf16.msra.mxu1 %v9115_v36  ;;  %v9116_v36 = vld [vmem:[#allocation6 + $0x58] sm:$0xff]  }
 0x1a1   : > { %v10663_v17 = vadd.f32 %v7845_v1, %v2454_v45  ;;  %v2457_v34 = vadd.f32 %v7736_v32, %v10584_v27  ;;  %8647 = vmatprep.mubr.bf16.mxu0 %v1706_v55  ;;  %v7863_v1 = vadd.f32 %v7862_v59, %v7861_v9  ;;  %8133 = vmatprep.subr.bf16.mxu1 %v9116_v36  ;;  %v1735_v36 = vrot.slane %v10482_v0, 1 }
 0x1a3   : > { %v10666_v3 = vadd.f32 %v7848_v37, %v2457_v34  ;;  %v7737_v30 = vpop.f32.mrb[44].mxu0  ;;  %v7865_v37 = vpop.f32.mrb[39].mxu1 }
 0x1a4   : > { %v7738_v24 = vpop.f32.mrb[45].mxu0  ;;  %v7866_v15 = vadd.f32 %v7865_v37, %v7864_v2 }
 0x1a5   : > { %v7739_v38 = vadd.f32 %v7738_v24, %v7737_v30  ;;  %v7740_v56 = vpop.f32.mrb[46].mxu0 }
 0x1a6   : > { %v7741_v50 = vpop.f32.mrb[47].mxu0  ;;  %v7867_v45 = vpop.f32.mrb[40].mxu1 }
 0x1a7   : > { %v7742_v63 = vadd.f32 %v7741_v50, %v7740_v56  ;;  %v2462_v6 = vadd.f32 %v7739_v38, %v10584_v27  ;;  %v7868_v7 = vpop.f32.mrb[41].mxu1 }
 0x1a8   : > { %8648 = vmatmul.mubr.bf16.gmra.mrb[152].mxu0 %v10402_v41  ;;  %v7870_v34 = vpop.f32.mrb[42].mxu1 }
 0x1a9   : > { %v10670_v40 = vadd.f32 %v7851_v20, %v2462_v6  ;;  %v2465_v39 = vadd.f32 %v7742_v63, %v10584_v27  ;;  %8651 = vmatprep.mubr.bf16.mxu0 %v10430_v42  ;;  %v7869_v42 = vadd.f32 %v7868_v7, %v7867_v45  ;;  %v7871_v30 = vpop.f32.mrb[43].mxu1 }
 0x1aa   : > { %v7872_v24 = vadd.f32 %v7871_v30, %v7870_v34 }
 0x1ab   : > { %v10674_v4 = vadd.f32 %v7854_v29, %v2465_v39  ;;  %v7743_v60 = vpop.f32.mrb[48].mxu0 }
 0x1ac   : > { %v7744_v55 = vpop.f32.mrb[49].mxu0 }
 0x1ad   : > { %v7745_v48 = vadd.f32 %v7744_v55, %v7743_v60  ;;  %v7746_v41 = vpop.f32.mrb[50].mxu0  ;;  %v9117_v60 = vld [vmem:[#allocation6 + $0x18] sm:$0xff]   ;;  %v9321_v55 = vld [vmem:[%s9707_s20 + $0xa8] sm:$0xff]  }
 0x1ae   : > { %v7747_v32 = vpop.f32.mrb[51].mxu0  ;;  %8134 = vmatpush3.bf16.msra.mxu1 %v9117_v60 }
 0x1af   : > { %v2470_v20 = vadd.f32 %v7745_v48, %v10584_v27  ;;  %v7748_v13 = vadd.f32 %v7747_v32, %v7746_v41  ;;  %v1728_v48 = vrot.slane %v9321_v55, 1  ;;  %v9322_v41 = vld [vmem:[%s9707_s20 + $0xb0] ss:$0 sps:$4 sm:$0x11]  }
 0x1b0   : > { %8652 = vmatmul.mubr.bf16.gmra.mrb[156].mxu0 %v10433_v22  ;;  %v7873_v22 = vpop.f32.mrb[44].mxu1  ;;  %v1729_v32 = vrot.slane %v9322_v41, 1 }
 0x1b1   : > { %v2473_v35 = vadd.f32 %v7748_v13, %v10584_v27  ;;  %v10679_v29 = vadd.f32 %v7857_v28, %v2470_v20  ;;  %8655 = vmatprep.mubr.bf16.mxu0 %v10456_v49  ;;  %v7874_v39 = vpop.f32.mrb[45].mxu1 }
 0x1b2   : > { %v7875_v28 = vadd.f32 %v7874_v39, %v7873_v22  ;;  %v7876_v49 = vpop.f32.mrb[46].mxu1  ;;  %v9323_v22 = vld [vmem:[%s9707_s20 + $0xb4] sm:$0xff]  }
 0x1b3   : > { %v10682_v38 = vadd.f32 %v7860_v33, %v2473_v35  ;;  %v7749_v56 = vpop.f32.mrb[52].mxu0  ;;  %v7877_v21 = vpop.f32.mrb[47].mxu1 }
 0x1b4   : > { %v7750_v50 = vpop.f32.mrb[53].mxu0  ;;  %v7878_v45 = vadd.f32 %v7877_v21, %v7876_v49 }
 0x1b5   : > { %v7751_v9 = vadd.f32 %v7750_v50, %v7749_v56  ;;  %v7752_v63 = vpop.f32.mrb[54].mxu0 }
 0x1b6   : > { %v7753_v6 = vpop.f32.mrb[55].mxu0  ;;  %v8007_v35 = vpop.f32.mrb[48].mxu1 }
 0x1b7   : > { %v2478_v59 = vadd.f32 %v7751_v9, %v10584_v27  ;;  %v7754_v2 = vadd.f32 %v7753_v6, %v7752_v63  ;;  %v8008_v50 = vpop.f32.mrb[49].mxu1 }
 0x1b8   : > { %8656 = vmatmul.mubr.bf16.gmra.mrb[160].mxu0 %v10459_v10  ;;  %v8010_v9 = vpop.f32.mrb[50].mxu1 }
 0x1b9   : > { %v2481_v37 = vadd.f32 %v7754_v2, %v10584_v27  ;;  %v10687_v33 = vadd.f32 %v7863_v1, %v2478_v59  ;;  %8659 = vmatprep.mubr.bf16.mxu0 %v10485_v12  ;;  %v1730_v12 = vsel %vm859_vm1, %v1728_v48, %v1729_v32  ;;  %v1731_v59 = vrot.slane %v9323_v22, 1  ;;  %v9324_v2 = vld [vmem:[%s9707_s20 + $0xbc] ss:$0 sps:$4 sm:$0x11]   ;;  %v8011_v49 = vpop.f32.mrb[51].mxu1 }
 0x1ba   : > { %v1732_v39 = vrot.slane %v9324_v2, 1  ;;  %v10706_v60 = vadd.f32 %v8011_v49, %v8010_v9  ;;  %v9119_v22 = vld [vmem:[#allocation6 + $0x20] sm:$0xff]  }
 0x1bb   : > { %v10692_v20 = vadd.f32 %v7866_v15, %v2481_v37  ;;  %v7755_v13 = vpop.f32.mrb[56].mxu0  ;;  %v10697_v15 = vadd.f32 %v8008_v50, %v8007_v35  ;;  %v9325_v37 = vld [vmem:[%s9707_s20 + $0xc0] sm:$0xff]   ;;  %v1738_v50 = vrot.slane %v10518_v19, 1  ;;  %s7018_s20 = sshll.u32 %s11891_s11, 4  ;;  %s11985_s20 = int_to_ptr.vmem [resolvable:$true] %s7018_s20 }
 0x1bc   : > { %v7756_v10 = vpop.f32.mrb[57].mxu0  ;;  %v1734_v21 = vrot.slane %v9325_v37, 1  ;;  %s9388_s14 = scalar_lea.vmem %s11985_s20, 4096  ;;  %p9395_p13 = scmp.lt.s32.totalorder %s11985_s20, %s9393_s13 }
 0x1bd   : > { %v7757_v7 = vadd.f32 %v7756_v10, %v7755_v13  ;;  %v7758_v1 = vpop.f32.mrb[58].mxu0  ;;  %p9389_p6 = scmp.ne.s32.totalorder %s11985_s20, %s9388_s14  ;;  %p9396_p3 = scmp.lt.s32.totalorder %s9394_s15, %s9388_s14 }
 0x1be   : > { %v7759_v34 = vpop.f32.mrb[59].mxu0  ;;  %v1736_v10 = vsel %vm859_vm1, %v1734_v21, %v1735_v36 }
 0x1bf   : > { %v2486_v30 = vadd.f32 %v7757_v7, %v10584_v27  ;;  %v7760_v56 = vadd.f32 %v7759_v34, %v7758_v1  ;;  %v8013_v7 = vpop.f32.mrb[52].mxu1  ;;  %p9390_p8 = pnand %p9389_p6, %p9607_p12  ;;  %p9397_p7 = por %p9396_p3, %p9395_p13 }
 0x1c0   : > { %8660 = vmatmul.mubr.bf16.gmra.mrb[164].mxu0 %v10491_v53 }
 0x1c1   : > { %v2489_v63 = vadd.f32 %v7760_v56, %v10584_v27  ;;  %v10700_v6 = vadd.f32 %v7869_v42, %v2486_v30  ;;  %8663 = vmatprep.mubr.bf16.mxu0 %v1730_v12  ;;  %v1733_v42 = vsel %vm859_vm1, %v1731_v59, %v1732_v39  ;;  %v8014_v12 = vpop.f32.mrb[53].mxu1  ;;  %v1737_v56 = vrot.slane %v10488_v47, 1  ;;  %p9391_p10 = pneg %p9390_p8 }
 0x1c2   : > { %v10713_v0 = vadd.f32 %v8014_v12, %v8013_v7  ;;  %v8016_v35 = vpop.f32.mrb[54].mxu1 }
 0x1c3   : > { %v10708_v53 = vadd.f32 %v7872_v24, %v2489_v63  ;;  %v7761_v55 = vpop.f32.mrb[60].mxu0  ;;  %v8017_v9 = vpop.f32.mrb[55].mxu1  ;;  %v9118_v63 = vld [vmem:[#allocation6 + $0x60] sm:$0xff]   ;;  %v1739_v47 = vsel %vm859_vm1, %v1737_v56, %v1738_v50  ;;  %v2385_v50 = vadd.f32 %v10556_v61, %v10584_v27  ;;  %p9398_p9 = pnand %p9397_p7, %p9391_p10 }
 0x1c4   : > { %v7762_v48 = vpop.f32.mrb[61].mxu0  ;;  %v10720_v59 = vadd.f32 %v8017_v9, %v8016_v35  ;;  %8135 = vmatprep.subr.bf16.mxu1 %v9118_v63 }
 0x1c5   : > { %v7763_v41 = vadd.f32 %v7762_v48, %v7761_v55  ;;  %v7764_v32 = vpop.f32.mrb[62].mxu0  ;;  %8136 = vmatpush3.bf16.msra.mxu1 %v9119_v22  ;;  %v2377_v48 = vadd.f32 %v10540_v46, %v10584_v27 }
 0x1c6   : > { %v7765_v13 = vpop.f32.mrb[63].mxu0  ;;  %v8019_v19 = vpop.f32.mrb[56].mxu1 }
 0x1c7   : > { %v2494_v1 = vadd.f32 %v7763_v41, %v10584_v27  ;;  %v7766_v34 = vadd.f32 %v7765_v13, %v7764_v32  ;;  %v8020_v41 = vpop.f32.mrb[57].mxu1 }
 0x1c8   : > { %8664 = vmatmul.mubr.bf16.gmra.mrb[168].mxu0 %v1733_v42  ;;  %v10731_v32 = vadd.f32 %v8020_v41, %v8019_v19  ;;  %v8022_v42 = vpop.f32.mrb[58].mxu1  ;;  %v2390_v19 = vadd.f32 %v10563_v31, %v10584_v27 }
 0x1c9   : > { %v2497_v24 = vadd.f32 %v7766_v34, %v10584_v27  ;;  %v10716_v30 = vadd.f32 %v7875_v28, %v2494_v1  ;;  %8667 = vmatprep.mubr.bf16.mxu0 %v1736_v10  ;;  %v2374_v28 = vadd.f32 %v10530_v18, %v10584_v27  ;;  %v8023_v18 = vpop.f32.mrb[59].mxu1  ;;  %v2382_v34 = vadd.f32 %v10547_v44, %v10584_v27 }
 0x1ca   : > { %v10735_v10 = vadd.f32 %v8023_v18, %v8022_v42  ;;  %v2393_v18 = vadd.f32 %v10567_v16, %v10584_v27 }
 0x1cb   : > { %v10722_v2 = vadd.f32 %v7878_v45, %v2497_v24  ;;  %v7783_v39 = vpop.f32.mrb[64].mxu0 }
 0x1cc   : > { %v7784_v49 = vpop.f32.mrb[65].mxu0 }
 0x1cd   : > { %v7785_v37 = vadd.f32 %v7784_v49, %v7783_v39  ;;  %v7786_v21 = vpop.f32.mrb[66].mxu0 }
 0x1ce   : > { %v7787_v36 = vpop.f32.mrb[67].mxu0  ;;  %v8025_v46 = vpop.f32.mrb[60].mxu1 }
 0x1cf   : > { %v10727_v55 = vadd.f32 %v7785_v37, %v2374_v28  ;;  %v7788_v45 = vadd.f32 %v7787_v36, %v7786_v21  ;;  %v8026_v63 = vpop.f32.mrb[61].mxu1  ;;  %v9120_v37 = vld [vmem:[#allocation6 + $0x68] sm:$0xff]  }
 0x1d0   : > { %8668 = vmatmul.mubr.bf16.gmra.mrb[172].mxu0 %v1739_v47  ;;  %v10743_v22 = vadd.f32 %v8026_v63, %v8025_v46  ;;  %v8028_v39 = vpop.f32.mrb[62].mxu1  ;;  %v9121_v21 = vld [vmem:[#allocation6 + $0x28] sm:$0xff]   ;;  %8137 = vmatprep.subr.bf16.mxu1 %v9120_v37  ;;  %v2398_v63 = vadd.f32 %v10571_v25, %v10584_v27  ;;  %v9125_v37 = vld [vmem:[#allocation6 + $0x80] sm:$0xff]  }
 0x1d1   : > { %v10733_v13 = vadd.f32 %v7788_v45, %v2377_v48  ;;  %v8029_v28 = vpop.f32.mrb[63].mxu1  ;;  %8138 = vmatpush3.bf16.msra.mxu1 %v9121_v21 }
 0x1d2   : > { %v10747_v44 = vadd.f32 %v8029_v28, %v8028_v39 }
 0x1d3   : > { %v7789_v7 = vpop.f32.mrb[68].mxu0 }
 0x1d4   : > { %v7790_v1 = vpop.f32.mrb[69].mxu0 }
 0x1d5   : > { %v7791_v12 = vadd.f32 %v7790_v1, %v7789_v7  ;;  %v7792_v35 = vpop.f32.mrb[70].mxu0 }
 0x1d6   : > { %v7793_v24 = vpop.f32.mrb[71].mxu0  ;;  %v8031_v41 = vpop.f32.mrb[64].mxu1 }
 0x1d7   : > { %v10739_v56 = vadd.f32 %v7791_v12, %v2382_v34  ;;  %v7794_v9 = vadd.f32 %v7793_v24, %v7792_v35  ;;  %v8032_v1 = vpop.f32.mrb[65].mxu1 }
 0x1d8   : > { %v10755_v34 = vadd.f32 %v8032_v1, %v8031_v41  ;;  %v8034_v12 = vpop.f32.mrb[66].mxu1  ;;  %v9126_v41 = vld [vmem:[#allocation6 + $0xc8] sm:$0xff]   ;;  %v9123_v1 = vld [vmem:[#allocation6 + $0x30] sm:$0xff]  }
 0x1d9   : > { %v10745_v49 = vadd.f32 %v7794_v9, %v2385_v50  ;;  %v8035_v24 = vpop.f32.mrb[67].mxu1  ;;  %v9124_v9 = vld [vmem:[#allocation6 + $0xc0] sm:$0xff]  }
 0x1da   : > { %v10759_v46 = vadd.f32 %v8035_v24, %v8034_v12  ;;  %8239 = vmatprep.subr.bf16.mxu0 %v9124_v9  ;;  %v9127_v12 = vld [vmem:[#allocation6 + $0x88] sm:$0xff]  }
 0x1db   : > { %v7795_v47 = vpop.f32.mrb[72].mxu0  ;;  %8240 = vmatpush3.bf16.msra.mxu0 %v9125_v37 }
 0x1dc   : > { %v7796_v36 = vpop.f32.mrb[73].mxu0  ;;  %8241 = vmatprep.subr.bf16.mxu0 %v9126_v41 }
 0x1dd   : > { %v7797_v61 = vadd.f32 %v7796_v36, %v7795_v47  ;;  %v7798_v48 = vpop.f32.mrb[74].mxu0  ;;  %v2401_v36 = vadd.f32 %v10576_v23, %v10584_v27  ;;  %v9128_v27 = vld [vmem:[#allocation6 + $0xd0] sm:$0xff]  }
 0x1de   : > { %v7799_v45 = vpop.f32.mrb[75].mxu0  ;;  %v8037_v21 = vpop.f32.mrb[68].mxu1 }
 0x1df   : > { %v10751_v42 = vadd.f32 %v7797_v61, %v2390_v19  ;;  %v7800_v7 = vadd.f32 %v7799_v45, %v7798_v48  ;;  %v8038_v61 = vpop.f32.mrb[69].mxu1  ;;  %8242 = vmatpush3.bf16.msra.mxu0 %v9127_v12 }
 0x1e0   : > { %v10767_v48 = vadd.f32 %v8038_v61, %v8037_v21  ;;  %v8040_v45 = vpop.f32.mrb[70].mxu1  ;;  %8243 = vmatprep.subr.bf16.mxu0 %v9128_v27  ;;  %v9130_v61 = vld [vmem:[#allocation6 + $0xd8] sm:$0xff]  }
 0x1e1   : > { %v10757_v35 = vadd.f32 %v7800_v7, %v2393_v18  ;;  %v8041_v25 = vpop.f32.mrb[71].mxu1  ;;  %v9122_v7 = vld [vmem:[#allocation6 + $0x70] sm:$0xff]  }
 0x1e2   : > { %v10771_v24 = vadd.f32 %v8041_v25, %v8040_v45  ;;  %8139 = vmatprep.subr.bf16.mxu1 %v9122_v7  ;;  %v9131_v7 = vld [vmem:[#allocation6 + $0x98] sm:$0xff]  }
 0x1e3   : > { %v7801_v31 = vpop.f32.mrb[76].mxu0  ;;  %8140 = vmatpush3.bf16.msra.mxu1 %v9123_v1 }
 0x1e4   : > { %v7802_v50 = vpop.f32.mrb[77].mxu0 }
 0x1e5   : > { %v7803_v39 = vadd.f32 %v7802_v50, %v7801_v31  ;;  %v7804_v28 = vpop.f32.mrb[78].mxu0 }
 0x1e6   : > { %v7805_v16 = vpop.f32.mrb[79].mxu0 }
 0x1e7   : > { %v10763_v47 = vadd.f32 %v7803_v39, %v2398_v63  ;;  %v7806_v19 = vadd.f32 %v7805_v16, %v7804_v28  ;;  %v9129_v63 = vld [vmem:[#allocation6 + $0x90] sm:$0xff]   ;;  %v8043_v28 = vpop.f32.mrb[72].mxu1 }
 0x1e8   : > { %v8044_v21 = vpop.f32.mrb[73].mxu1  ;;  %8244 = vmatpush3.bf16.msra.mxu0 %v9129_v63 }
 0x1e9   : > { %v10769_v18 = vadd.f32 %v7806_v19, %v2401_v36  ;;  %v9464_v36 = vmov 0   ;;  %v8046_v19 = vpop.f32.mrb[74].mxu1  ;;  %8245 = vmatprep.subr.bf16.mxu0 %v9130_v61 }
 0x1ea   : > { %3182 = vst [vmem:[#allocation2 + $0x18] sm:$0xf] %v9464_v36  ;;  %3176 = vst [vmem:[#allocation2] sm:$0xf] %v9464_v36  ;;  %v8047_v41 = vpop.f32.mrb[75].mxu1 }
 0x1eb   : > { %v7895_v31 = vpop.f32.mrb[80].mxu0  ;;  %3177 = vst [vmem:[#allocation2 + $0x4] sm:$0xf] %v9464_v36  ;;  %3178 = vst [vmem:[#allocation2 + $0x8] sm:$0x1] %v9464_v36  ;;  %v10783_v1 = vadd.f32 %v8047_v41, %v8046_v19  ;;  %v9134_v19 = vld [vmem:[#allocation6 + $0xe0] sm:$0xff]  }
 0x1ec   : > { %v7896_v23 = vpop.f32.mrb[81].mxu0  ;;  %3179 = vst [vmem:[#allocation2 + $0xc] sm:$0xf] %v9464_v36  ;;  %3180 = vst [vmem:[#allocation2 + $0x10] sm:$0xf] %v9464_v36  ;;  %8246 = vmatpush3.bf16.msra.mxu0 %v9131_v7  ;;  %v9135_v41 = vld [vmem:[#allocation6 + $0xa0] sm:$0xff]  }
 0x1ed   : > { %v7897_v50 = vadd.f32 %v7896_v23, %v7895_v31  ;;  %v7898_v9 = vpop.f32.mrb[82].mxu0  ;;  %3181 = vst [vmem:[#allocation2 + $0x14] sm:$0x1] %v9464_v36  ;;  %3183 = vst [vmem:[#allocation2 + $0x1c] sm:$0xf] %v9464_v36  ;;  %8247 = vmatprep.subr.bf16.mxu0 %v9134_v19 }
 0x1ee   : > { %v7899_v39 = vpop.f32.mrb[83].mxu0  ;;  %3184 = vst [vmem:[#allocation2 + $0x20] sm:$0x1] %v9464_v36  ;;  %3185 = vst [vmem:[#allocation2 + $0x24] sm:$0xf] %v9464_v36  ;;  %v8049_v63 = vpop.f32.mrb[76].mxu1 }
 0x1ef   : > { %v10774_v37 = vadd.f32 %v7897_v50, %v10727_v55  ;;  %v7900_v16 = vadd.f32 %v7899_v39, %v7898_v9  ;;  %3186 = vst [vmem:[#allocation2 + $0x28] sm:$0xf] %v9464_v36  ;;  %3187 = vst [vmem:[#allocation2 + $0x2c] sm:$0x1] %v9464_v36  ;;  %v10776_v55 = vadd.f32 %v8044_v21, %v8043_v28  ;;  %v8050_v28 = vpop.f32.mrb[77].mxu1 }
 0x1f0   : > { %3188 = vst [vmem:[#allocation2 + $0x30] sm:$0xf] %v9464_v36  ;;  %3189 = vst [vmem:[#allocation2 + $0x34] sm:$0xf] %v9464_v36  ;;  %8248 = vmatpush3.bf16.msra.mxu0 %v9135_v41 }
 0x1f1   : > { %3190 = vst [vmem:[#allocation2 + $0x38] sm:$0x1] %v9464_v36  ;;  %3191 = vst [vmem:[#allocation2 + $0x3c] sm:$0xf] %v9464_v36  ;;  %v2699_v45 = vadd.f32 %v7900_v16, %v10733_v13  ;;  %v10781_v25 = vadd.f32 %v10697_v15, %v10774_v37  ;;  %v10789_v15 = vadd.f32 %v8050_v28, %v8049_v63  ;;  %v8052_v37 = vpop.f32.mrb[78].mxu1  ;;  %v9137_v63 = vld [vmem:[#allocation6 + $0xa8] sm:$0xff]  }
 0x1f2   : > { %3192 = vst [vmem:[#allocation2 + $0x40] sm:$0xf] %v9464_v36  ;;  %3193 = vst [vmem:[#allocation2 + $0x44] sm:$0x1] %v9464_v36  ;;  %v8053_v21 = vpop.f32.mrb[79].mxu1 }
 0x1f3   : > { %3194 = vst [vmem:[#allocation2 + $0x48] sm:$0xf] %v9464_v36  ;;  %3195 = vst [vmem:[#allocation2 + $0x4c] sm:$0xf] %v9464_v36  ;;  %v7901_v12 = vpop.f32.mrb[84].mxu0  ;;  %v10786_v31 = vadd.f32 %v10706_v60, %v2699_v45  ;;  %v10795_v60 = vadd.f32 %v8053_v21, %v8052_v37 }
 0x1f4   : > { %3196 = vst [vmem:[#allocation2 + $0x50] sm:$0x1] %v9464_v36  ;;  %3197 = vst [vmem:[#allocation2 + $0x54] sm:$0xf] %v9464_v36  ;;  %v7902_v23 = vpop.f32.mrb[85].mxu0 }
 0x1f5   : > { %3198 = vst [vmem:[#allocation2 + $0x58] sm:$0xf] %v9464_v36  ;;  %3199 = vst [vmem:[#allocation2 + $0x5c] sm:$0x1] %v9464_v36  ;;  %v7903_v27 = vadd.f32 %v7902_v23, %v7901_v12  ;;  %v7904_v50 = vpop.f32.mrb[86].mxu0 }
 0x1f6   : > { %3200 = vst [vmem:[#allocation2 + $0x60] sm:$0xf] %v9464_v36  ;;  %3201 = vst [vmem:[#allocation2 + $0x64] sm:$0xf] %v9464_v36  ;;  %v7905_v9 = vpop.f32.mrb[87].mxu0 }
 0x1f7   : > { %3202 = vst [vmem:[#allocation2 + $0x68] sm:$0x1] %v9464_v36  ;;  %3203 = vst [vmem:[#allocation2 + $0x6c] sm:$0xf] %v9464_v36  ;;  %v2704_v13 = vadd.f32 %v7903_v27, %v10739_v56  ;;  %v7906_v39 = vadd.f32 %v7905_v9, %v7904_v50  ;;  %v8055_v27 = vpop.f32.mrb[80].mxu1 }
 0x1f8   : > { %3204 = vst [vmem:[#allocation2 + $0x70] sm:$0xf] %v9464_v36  ;;  %3205 = vst [vmem:[#allocation2 + $0x74] sm:$0x1] %v9464_v36  ;;  %v8056_v9 = vpop.f32.mrb[81].mxu1 }
 0x1f9   : > { %3206 = vst [vmem:[#allocation2 + $0x78] sm:$0xf] %v9464_v36  ;;  %3207 = vst [vmem:[#allocation2 + $0x7c] sm:$0xf] %v9464_v36  ;;  %v2707_v16 = vadd.f32 %v7906_v39, %v10745_v49  ;;  %v9136_v49 = vld [vmem:[#allocation6 + $0xe8] sm:$0xff]   ;;  %v10801_v39 = vadd.f32 %v8056_v9, %v8055_v27  ;;  %v8058_v28 = vpop.f32.mrb[82].mxu1 }
 0x1fa   : > { %3208 = vst [vmem:[#allocation2 + $0x80] sm:$0x1] %v9464_v36  ;;  %3209 = vst [vmem:[#allocation2 + $0x84] sm:$0xf] %v9464_v36  ;;  %8249 = vmatprep.subr.bf16.mxu0 %v9136_v49  ;;  %v8059_v37 = vpop.f32.mrb[83].mxu1 }
 0x1fb   : > { %3210 = vst [vmem:[#allocation2 + $0x88] sm:$0xf] %v9464_v36  ;;  %3211 = vst [vmem:[#allocation2 + $0x8c] sm:$0x1] %v9464_v36  ;;  %v7907_v61 = vpop.f32.mrb[88].mxu0  ;;  %v10798_v45 = vadd.f32 %v10720_v59, %v2707_v16  ;;  %8250 = vmatpush3.bf16.msra.mxu0 %v9137_v63 }
 0x1fc   : > { %3212 = vst [vmem:[#allocation2 + $0x90] sm:$0xf] %v9464_v36  ;;  %3213 = vst [vmem:[#allocation2 + $0x94] sm:$0xf] %v9464_v36  ;;  %v7908_v56 = vpop.f32.mrb[89].mxu0 }
 0x1fd   : > { %3214 = vst [vmem:[#allocation2 + $0x98] sm:$0x1] %v9464_v36  ;;  %3215 = vst [vmem:[#allocation2 + $0x9c] sm:$0xf] %v9464_v36  ;;  %v7909_v7 = vadd.f32 %v7908_v56, %v7907_v61  ;;  %v7910_v12 = vpop.f32.mrb[90].mxu0  ;;  %v10807_v61 = vadd.f32 %v8059_v37, %v8058_v28 }
 0x1fe   : > { %3216 = vst [vmem:[#allocation2 + $0xa0] sm:$0xf] %v9464_v36  ;;  %3217 = vst [vmem:[#allocation2 + $0xa4] sm:$0x1] %v9464_v36  ;;  %v7911_v23 = vpop.f32.mrb[91].mxu0  ;;  %v8061_v37 = vpop.f32.mrb[84].mxu1 }
 0x1ff   : > { %3218 = vst [vmem:[#allocation2 + $0xa8] sm:$0xf] %v9464_v36  ;;  %3219 = vst [vmem:[#allocation2 + $0xac] sm:$0xf] %v9464_v36  ;;  %v2712_v50 = vadd.f32 %v7909_v7, %v10751_v42  ;;  %v9132_v42 = vld [vmem:[#allocation6 + $0x78] sm:$0xff]  }
 0x200   : > { %3220 = vst [vmem:[#allocation2 + $0xb0] sm:$0x1] %v9464_v36  ;;  %3221 = vst [vmem:[#allocation2 + $0xb4] sm:$0xf] %v9464_v36  ;;  %v9133_v7 = vld [vmem:[#allocation6 + $0x38] sm:$0xff]   ;;  %8141 = vmatprep.subr.bf16.mxu1 %v9132_v42 }
 0x201   : > { %3222 = vst [vmem:[#allocation2 + $0xb8] sm:$0xf] %v9464_v36  ;;  %3223 = vst [vmem:[#allocation2 + $0xbc] sm:$0x1] %v9464_v36  ;;  %v10805_v16 = vadd.f32 %v10731_v32, %v2712_v50  ;;  %8142 = vmatpush3.bf16.msra.mxu1 %v9133_v7 }
 0x202   : > { %3224 = vst [vmem:[#allocation2 + $0xc0] sm:$0xf] %v9464_v36  ;;  %3225 = vst [vmem:[#allocation2 + $0xc4] sm:$0xf] %v9464_v36 }
 0x203   : > { %3226 = vst [vmem:[#allocation2 + $0xc8] sm:$0x1] %v9464_v36  ;;  %3227 = vst [vmem:[#allocation2 + $0xcc] sm:$0xf] %v9464_v36  ;;  %v7913_v41 = vpop.f32.mrb[92].mxu0 }
 0x204   : > { %3228 = vst [vmem:[#allocation2 + $0xd0] sm:$0xf] %v9464_v36  ;;  %3229 = vst [vmem:[#allocation2 + $0xd4] sm:$0x1] %v9464_v36  ;;  %v10793_v36 = vadd.f32 %v10713_v0, %v2704_v13  ;;  %v7912_v0 = vadd.f32 %v7911_v23, %v7910_v12  ;;  %v9140_v13 = vld [vmem:[#allocation2] sm:$0xff]   ;;  %v9138_v12 = vld [vmem:[#allocation6 + $0xf0] sm:$0xff]  }
 0x205   : > { %12129 = vst [vmem:[#allocation16_spill] sm:$0xff] %v10786_v31  ;;  %12130 = vst [vmem:[#allocation14_spill] sm:$0xff] %v10805_v16  ;;  %v9141_v21 = vld [vmem:[#allocation2 + $0x8] ss:$0 sps:$4 sm:$0x11]   ;;  %v4059_v19 = vshll.u32 %v9140_v13, 16  ;;  %8251 = vmatprep.subr.bf16.mxu0 %v9138_v12 }
 0x206   : > { %v2715_v59 = vadd.f32 %v7912_v0, %v10757_v35  ;;  %v4057_v23 = vshrl.u32 %v9140_v13, 16  ;;  %v4064_v49 = vshll.u32 %v9141_v21, 16  ;;  %v7914_v35 = vpop.f32.mrb[93].mxu0  ;;  %v9139_v0 = vld [vmem:[#allocation6 + $0xb0] sm:$0xff]  }
 0x207   : > { %v4061_v27 = vrot.slane %v4059_v19, 1  ;;  %v7915_v32 = vadd.f32 %v7914_v35, %v7913_v41  ;;  %v7916_v50 = vpop.f32.mrb[94].mxu0  ;;  %8252 = vmatpush3.bf16.msra.mxu0 %v9139_v0  ;;  %v9142_v19 = vld [vmem:[#allocation6 + $0xf8] sm:$0xff]  }
 0x208   : > { %v10810_v56 = vadd.f32 %v10735_v10, %v2715_v59  ;;  %v4066_v63 = vrot.slane %v4064_v49, 1  ;;  %v7917_v28 = vpop.f32.mrb[95].mxu0  ;;  %v9143_v41 = vld [vmem:[#allocation6 + $0xb8] sm:$0xff]   ;;  %8253 = vmatprep.subr.bf16.mxu0 %v9142_v19  ;;  %v4265_v49 = vrot.slane %v9141_v21, 1 }
 0x209   : > { %v4062_v9 = vor.u32 %v4061_v27, %v4057_v23  ;;  %v2720_v10 = vadd.f32 %v7915_v32, %v10763_v47  ;;  %v7918_v59 = vadd.f32 %v7917_v28, %v7916_v50  ;;  %v4264_v47 = vrot.slane %v9140_v13, 1 }
 0x20a   : > { %12131 = vst [vmem:[#allocation13_spill] sm:$0xff] %v10810_v56  ;;  %v8062_v56 = vpop.f32.mrb[85].mxu1 }
 0x20b   : > { %v4067_v16 = vsel %vm650_vm0, %v4062_v9, %v4066_v63  ;;  %v10814_v31 = vadd.f32 %v8062_v56, %v8061_v37  ;;  %v8064_v42 = vpop.f32.mrb[86].mxu1  ;;  %v2723_v7 = vadd.f32 %v7918_v59, %v10769_v18  ;;  %v10818_v23 = vadd.f32 %v10743_v22, %v2720_v10  ;;  %8254 = vmatpush3.bf16.msra.mxu0 %v9143_v41  ;;  %v7919_v35 = vpop.f32.mrb[96].mxu0 }
 0x20c   : > { %5775 = vmatprep.mubr.bf16.mxu1 %v4067_v16  ;;  %v8065_v12 = vpop.f32.mrb[87].mxu1  ;;  %v7920_v0 = vpop.f32.mrb[97].mxu0  ;;  %v10826_v16 = vsel %vm859_vm1, %v4264_v47, %v4265_v49 }
 0x20d   : > { %5776 = vmatmul.mubr.bf16.vlgmr.msra.gmra.mrb[112].mxu1 %v9140_v13  ;;  %v10820_v27 = vadd.f32 %v8065_v12, %v8064_v42  ;;  %v10823_v56 = vadd.f32 %v10747_v44, %v2723_v7  ;;  %v7921_v18 = vadd.f32 %v7920_v0, %v7919_v35  ;;  %v7922_v32 = vpop.f32.mrb[98].mxu0  ;;  %v8067_v22 = vpop.f32.mrb[88].mxu1 }
 0x20e   : > { %v7923_v50 = vpop.f32.mrb[99].mxu0  ;;  %v8068_v28 = vpop.f32.mrb[89].mxu1 }
 0x20f   : > { %v2728_v9 = vadd.f32 %v7921_v18, %v10594_v58  ;;  %v7924_v63 = vadd.f32 %v7923_v50, %v7922_v32  ;;  %v10829_v37 = vadd.f32 %v8068_v28, %v8067_v22  ;;  %v8070_v13 = vpop.f32.mrb[90].mxu1  ;;  %v9145_v22 = vld [vmem:[#allocation6 + $0x140] sm:$0xff]  }
 0x210   : > { %v8071_v10 = vpop.f32.mrb[91].mxu1  ;;  %8351 = vmatprep.subr.bf16.mxu1 %v9145_v22 }
 0x211   : > { %v2731_v21 = vadd.f32 %v7924_v63, %v10596_v5  ;;  %v10833_v44 = vadd.f32 %v10755_v34, %v2728_v9  ;;  %v10835_v59 = vadd.f32 %v8071_v10, %v8070_v13  ;;  %v8073_v47 = vpop.f32.mrb[92].mxu1  ;;  %v9146_v9 = vld [vmem:[#allocation6 + $0x100] sm:$0xff]  }
 0x212   : > { %v8074_v0 = vpop.f32.mrb[93].mxu1  ;;  %8352 = vmatpush3.bf16.msra.mxu1 %v9146_v9 }
 0x213   : > { %v7925_v19 = vpop.f32.mrb[100].mxu0  ;;  %v10838_v42 = vadd.f32 %v10759_v46, %v2731_v21  ;;  %v10841_v5 = vadd.f32 %v8074_v0, %v8073_v47  ;;  %v8076_v18 = vpop.f32.mrb[94].mxu1 }
 0x214   : > { %v7926_v41 = vpop.f32.mrb[101].mxu0  ;;  %v8077_v32 = vpop.f32.mrb[95].mxu1 }
 0x215   : > { %v7927_v7 = vadd.f32 %v7926_v41, %v7925_v19  ;;  %v7928_v58 = vpop.f32.mrb[102].mxu0  ;;  %v10847_v46 = vadd.f32 %v8077_v32, %v8076_v18 }
 0x216   : > { %v7929_v12 = vpop.f32.mrb[103].mxu0  ;;  %v8079_v19 = vpop.f32.mrb[96].mxu1 }
 0x217   : > { %v2736_v49 = vadd.f32 %v7927_v7, %v10607_v14  ;;  %v7930_v35 = vadd.f32 %v7929_v12, %v7928_v58 }
 0x219   : > { %v2739_v34 = vadd.f32 %v7930_v35, %v10611_v62  ;;  %v10845_v50 = vadd.f32 %v10767_v48, %v2736_v49  ;;  %v8080_v48 = vpop.f32.mrb[97].mxu1 }
 0x21a   : > { %v10853_v7 = vadd.f32 %v8080_v48, %v8079_v19  ;;  %v8082_v58 = vpop.f32.mrb[98].mxu1 }
 0x21b   : > { %v7931_v63 = vpop.f32.mrb[104].mxu0  ;;  %v10850_v28 = vadd.f32 %v10771_v24, %v2739_v34  ;;  %v8083_v47 = vpop.f32.mrb[99].mxu1 }
 0x21c   : > { %v7932_v14 = vpop.f32.mrb[105].mxu0  ;;  %v10859_v49 = vadd.f32 %v8083_v47, %v8082_v58 }
 0x21d   : > { %v7933_v13 = vadd.f32 %v7932_v14, %v7931_v63  ;;  %v7934_v21 = vpop.f32.mrb[106].mxu0 }
 0x21e   : > { %v7935_v10 = vpop.f32.mrb[107].mxu0  ;;  %v8085_v22 = vpop.f32.mrb[100].mxu1 }
 0x21f   : > { %v2744_v62 = vadd.f32 %v7933_v13, %v10620_v54  ;;  %v7936_v41 = vadd.f32 %v7935_v10, %v7934_v21  ;;  %v8086_v14 = vpop.f32.mrb[101].mxu1 }
 0x220   : > { %v8088_v13 = vpop.f32.mrb[102].mxu1 }
 0x221   : > { %v2747_v12 = vadd.f32 %v7936_v41, %v10622_v26  ;;  %v10857_v24 = vadd.f32 %v10776_v55, %v2744_v62  ;;  %v10865_v26 = vadd.f32 %v8086_v14, %v8085_v22  ;;  %v8089_v21 = vpop.f32.mrb[103].mxu1  ;;  %v9153_v22 = vld [vmem:[#allocation6 + $0x148] sm:$0xff]  }
 0x222   : > { %8353 = vmatprep.subr.bf16.mxu1 %v9153_v22 }
 0x223   : > { %v7937_v35 = vpop.f32.mrb[108].mxu0  ;;  %v10862_v0 = vadd.f32 %v10783_v1, %v2747_v12  ;;  %v10871_v1 = vadd.f32 %v8089_v21, %v8088_v13 }
 0x224   : > { %v7938_v18 = vpop.f32.mrb[109].mxu0 }
 0x225   : > { %v7939_v34 = vadd.f32 %v7938_v18, %v7937_v35  ;;  %v7940_v54 = vpop.f32.mrb[110].mxu0 }
 0x226   : > { %v7941_v32 = vpop.f32.mrb[111].mxu0  ;;  %v8091_v12 = vpop.f32.mrb[104].mxu1 }
 0x227   : > { %v2752_v9 = vadd.f32 %v7939_v34, %v10629_v8  ;;  %v7942_v63 = vadd.f32 %v7941_v32, %v7940_v54  ;;  %v8092_v18 = vpop.f32.mrb[105].mxu1 }
 0x228   : > { %v8094_v34 = vpop.f32.mrb[106].mxu1 }
 0x229   : > { %v2755_v55 = vadd.f32 %v7942_v63, %v10634_v43  ;;  %v10869_v10 = vadd.f32 %v10789_v15, %v2752_v9  ;;  %v10877_v43 = vadd.f32 %v8092_v18, %v8091_v12  ;;  %v8095_v54 = vpop.f32.mrb[107].mxu1  ;;  %v9156_v9 = vld [vmem:[#allocation6 + $0x108] sm:$0xff]  }
 0x22a   : > { %8354 = vmatpush3.bf16.msra.mxu1 %v9156_v9 }
 0x22b   : > { %v7943_v19 = vpop.f32.mrb[112].mxu0  ;;  %v10874_v62 = vadd.f32 %v10795_v60, %v2755_v55  ;;  %v10883_v60 = vadd.f32 %v8095_v54, %v8094_v34 }
 0x22c   : > { %v7944_v41 = vpop.f32.mrb[113].mxu0 }
 0x22d   : > { %v7945_v48 = vadd.f32 %v7944_v41, %v7943_v19  ;;  %v7946_v8 = vpop.f32.mrb[114].mxu0 }
 0x22e   : > { %v7947_v58 = vpop.f32.mrb[115].mxu0  ;;  %v8097_v19 = vpop.f32.mrb[108].mxu1 }
 0x22f   : > { %v2760_v47 = vadd.f32 %v7945_v48, %v10639_v52  ;;  %v7948_v35 = vadd.f32 %v7947_v58, %v7946_v8 }
 0x231   : > { %v2763_v15 = vadd.f32 %v7948_v35, %v10646_v51  ;;  %v10881_v32 = vadd.f32 %v10801_v39, %v2760_v47  ;;  %v8098_v39 = vpop.f32.mrb[109].mxu1 }
 0x232   : > { %v10889_v48 = vadd.f32 %v8098_v39, %v8097_v19  ;;  %v8100_v8 = vpop.f32.mrb[110].mxu1  ;;  %v9164_v39 = vld [vmem:[#allocation6 + $0x110] sm:$0xff]  }
 0x233   : > { %v7949_v63 = vpop.f32.mrb[116].mxu0  ;;  %v10886_v14 = vadd.f32 %v10807_v61, %v2763_v15  ;;  %v8101_v12 = vpop.f32.mrb[111].mxu1 }
 0x234   : > { %v7950_v52 = vpop.f32.mrb[117].mxu0  ;;  %v10895_v47 = vadd.f32 %v8101_v12, %v8100_v8 }
 0x235   : > { %v7951_v13 = vadd.f32 %v7950_v52, %v7949_v63  ;;  %v7952_v55 = vpop.f32.mrb[118].mxu0 }
 0x236   : > { %v7953_v21 = vpop.f32.mrb[119].mxu0 }
 0x237   : > { %v2768_v51 = vadd.f32 %v7951_v13, %v10651_v57  ;;  %v7954_v41 = vadd.f32 %v7953_v21, %v7952_v55 }
 0x239   : > { %v2771_v58 = vadd.f32 %v7954_v41, %v10658_v11  ;;  %v10893_v61 = vadd.f32 %v10814_v31, %v2768_v51 }
 0x23b   : > { %v7955_v35 = vpop.f32.mrb[120].mxu0  ;;  %v10898_v18 = vadd.f32 %v10820_v27, %v2771_v58 }
 0x23c   : > { %v7956_v34 = vpop.f32.mrb[121].mxu0 }
 0x23d   : > { %v7957_v15 = vadd.f32 %v7956_v34, %v7955_v35  ;;  %v7958_v57 = vpop.f32.mrb[122].mxu0  ;;  %v9169_v34 = vld [vmem:[#allocation6 + $0x158] sm:$0xff]  }
 0x23e   : > { %v7959_v54 = vpop.f32.mrb[123].mxu0 }
 0x23f   : > { %v2776_v22 = vadd.f32 %v7957_v15, %v10663_v17  ;;  %v7960_v9 = vadd.f32 %v7959_v54, %v7958_v57 }
 0x241   : > { %v2779_v63 = vadd.f32 %v7960_v9, %v10666_v3  ;;  %v10903_v11 = vadd.f32 %v10829_v37, %v2776_v22  ;;  %v9161_v3 = vld [vmem:[#allocation6 + $0x150] sm:$0xff]  }
 0x242   : > { %8355 = vmatprep.subr.bf16.mxu1 %v9161_v3 }
 0x243   : > { %v7961_v31 = vpop.f32.mrb[124].mxu0  ;;  %v10906_v52 = vadd.f32 %v10835_v59, %v2779_v63  ;;  %8356 = vmatpush3.bf16.msra.mxu1 %v9164_v39  ;;  %v9172_v63 = vld [vmem:[#allocation6 + $0x118] sm:$0xff]  }
 0x244   : > { %v7962_v13 = vpop.f32.mrb[125].mxu0  ;;  %8357 = vmatprep.subr.bf16.mxu1 %v9169_v34 }
 0x245   : > { %v7963_v55 = vadd.f32 %v7962_v13, %v7961_v31  ;;  %v7964_v27 = vpop.f32.mrb[126].mxu0 }
 0x246   : > { %v7965_v21 = vpop.f32.mrb[127].mxu0 }
 0x247   : > { %v2784_v19 = vadd.f32 %v7963_v55, %v10670_v40  ;;  %v7966_v51 = vadd.f32 %v7965_v21, %v7964_v27  ;;  %8358 = vmatpush3.bf16.msra.mxu1 %v9172_v63  ;;  %v9185_v63 = vld [vmem:[#allocation6 + $0x168] sm:$0xff]  }
 0x249   : > { %v2787_v41 = vadd.f32 %v7966_v51, %v10674_v4  ;;  %v10911_v17 = vadd.f32 %v10841_v5, %v2784_v19 }
 0x24b   : > { %v7967_v37 = vpop.f32.mrb[128].mxu0  ;;  %v10914_v8 = vadd.f32 %v10847_v46, %v2787_v41  ;;  %v9177_v41 = vld [vmem:[#allocation6 + $0x160] sm:$0xff]  }
 0x24c   : > { %v7968_v59 = vpop.f32.mrb[129].mxu0  ;;  %8359 = vmatprep.subr.bf16.mxu1 %v9177_v41  ;;  %v3662_v41 = vld [vmem:[#allocation2 + $0x18] sm:$0xf] }
 0x24d   : > { %v7969_v58 = vadd.f32 %v7968_v59, %v7967_v37  ;;  %v7970_v12 = vpop.f32.mrb[130].mxu0 }
 0x24e   : > { %v7971_v35 = vpop.f32.mrb[131].mxu0 }
 0x24f   : > { %v2792_v40 = vadd.f32 %v7969_v58, %v10679_v29  ;;  %v7972_v15 = vadd.f32 %v7971_v35, %v7970_v12  ;;  %v9180_v12 = vld [vmem:[#allocation6 + $0x120] sm:$0xff]  }
 0x250   : > { %8360 = vmatpush3.bf16.msra.mxu1 %v9180_v12 }
 0x251   : > { %v2795_v4 = vadd.f32 %v7972_v15, %v10682_v38  ;;  %v10919_v5 = vadd.f32 %v10853_v7, %v2792_v40  ;;  %8361 = vmatprep.subr.bf16.mxu1 %v9185_v63 }
 0x253   : > { %v7973_v57 = vpop.f32.mrb[132].mxu0  ;;  %v10922_v46 = vadd.f32 %v10859_v49, %v2795_v4 }
 0x254   : > { %v7974_v54 = vpop.f32.mrb[133].mxu0 }
 0x255   : > { %v7975_v22 = vadd.f32 %v7974_v54, %v7973_v57  ;;  %v7976_v9 = vpop.f32.mrb[134].mxu0 }
 0x256   : > { %v7977_v31 = vpop.f32.mrb[135].mxu0 }
 0x257   : > { %v2800_v13 = vadd.f32 %v7975_v22, %v10687_v33  ;;  %v7978_v55 = vadd.f32 %v7977_v31, %v7976_v9 }
 0x259   : > { %v2803_v29 = vadd.f32 %v7978_v55, %v10692_v20  ;;  %v10927_v38 = vadd.f32 %v10865_v26, %v2800_v13 }
 0x25b   : > { %v7979_v7 = vpop.f32.mrb[136].mxu0  ;;  %v10930_v27 = vadd.f32 %v10871_v1, %v2803_v29 }
 0x25c   : > { %v7980_v49 = vpop.f32.mrb[137].mxu0 }
 0x25d   : > { %v7981_v21 = vadd.f32 %v7980_v49, %v7979_v7  ;;  %v7982_v19 = vpop.f32.mrb[138].mxu0 }
 0x25e   : > { %v7983_v51 = vpop.f32.mrb[139].mxu0 }
 0x25f   : > { %v2808_v3 = vadd.f32 %v7981_v21, %v10700_v6  ;;  %v7984_v39 = vadd.f32 %v7983_v51, %v7982_v19 }
 0x261   : > { %v2811_v33 = vadd.f32 %v7984_v39, %v10708_v53  ;;  %v10935_v20 = vadd.f32 %v10877_v43, %v2808_v3 }
 0x263   : > { %v7985_v26 = vpop.f32.mrb[140].mxu0  ;;  %v10938_v37 = vadd.f32 %v10883_v60, %v2811_v33 }
 0x264   : > { %v7986_v1 = vpop.f32.mrb[141].mxu0 }
 0x265   : > { %v7987_v59 = vadd.f32 %v7986_v1, %v7985_v26  ;;  %v7988_v58 = vpop.f32.mrb[142].mxu0 }
 0x266   : > { %v7989_v35 = vpop.f32.mrb[143].mxu0 }
 0x267   : > { %v2816_v34 = vadd.f32 %v7987_v59, %v10716_v30  ;;  %v7990_v40 = vadd.f32 %v7989_v35, %v7988_v58  ;;  %v12135_v35 = vld [vmem:[#allocation14_spill] sm:$0xff] }
 0x269   : > { %v2819_v6 = vadd.f32 %v7990_v40, %v10722_v2  ;;  %v10943_v53 = vadd.f32 %v10889_v48, %v2816_v34  ;;  %v12132_v2 = vld [vmem:[#allocation16_spill] sm:$0xff] }
 0x26b   : > { %v8641_v43 = vpop.f32.mrb[144].mxu0  ;;  %v10946_v15 = vadd.f32 %v10895_v47, %v2819_v6  ;;  %v9188_v6 = vld [vmem:[#allocation6 + $0x128] sm:$0xff]  }
 0x26c   : > { %v3026_v60 = vadd.f32 %v8641_v43, %v10793_v36  ;;  %v3017_v4 = vpop.f32.mrb[145].mxu0  ;;  %8362 = vmatpush3.bf16.msra.mxu1 %v9188_v6 }
 0x26d   : > { %v3018_v57 = vadd.f32 %v3017_v4, %v10781_v25  ;;  %v8642_v54 = vpop.f32.mrb[146].mxu0  ;;  %v3653_v4 = vld [vmem:[#allocation2 + $0xc] sm:$0xf] }
 0x26e   : > { %v3146_v22 = vmax.f32 %v3026_v60, 0.0  ;;  %v3029_v30 = vadd.f32 %v8642_v54, %v10798_v45  ;;  %v3020_v9 = vpop.f32.mrb[147].mxu0 }
 0x26f   : > { %v3144_v31 = vmax.f32 %v3018_v57, 0.0  ;;  %v3021_v13 = vadd.f32 %v3020_v9, %v12132_v2 }
 0x270   : > { %v7624_v48 = vpack.c.bf16 %v3146_v22, %v3146_v22  ;;  %v3147_v55 = vmax.f32 %v3029_v30, 0.0 }
 0x271   : > { %v7622_v47 = vpack.c.bf16 %v3144_v31, %v3144_v31  ;;  %v3145_v36 = vmax.f32 %v3021_v13, 0.0  ;;  %v3666_v31 = vld [vmem:[#allocation2 + $0x20] sm:$0x1] }
 0x272   : > { %v3347_v29 = vshrl.u32 %v7624_v48, 16  ;;  %v7625_v7 = vpack.c.bf16 %v3147_v55, %v3147_v55  ;;  %v3350_v25 = vshll.u32 %v7624_v48, 16 }
 0x273   : > { %v3330_v49 = vshrl.u32 %v7622_v47, 16  ;;  %v3333_v45 = vshll.u32 %v7622_v47, 16  ;;  %v7623_v21 = vpack.c.bf16 %v3145_v36, %v3145_v36  ;;  %v8645_v19 = vpop.f32.mrb[148].mxu0  ;;  %v3659_v36 = vld [vmem:[#allocation2 + $0x14] sm:$0x1] }
 0x274   : > { %v3349_v51 = vrot.slane %v3347_v29, 7  ;;  %v3355_v3 = vshrl.u32 %v7625_v7, 16  ;;  %v3358_v39 = vshll.u32 %v7625_v7, 16  ;;  %v3042_v33 = vadd.f32 %v8645_v19, %v10818_v23  ;;  %v3033_v26 = vpop.f32.mrb[149].mxu0 }
 0x275   : > { %v3332_v59 = vrot.slane %v3330_v49, 7  ;;  %v3338_v58 = vshrl.u32 %v7623_v21, 16  ;;  %v3341_v12 = vshll.u32 %v7623_v21, 16  ;;  %v3034_v34 = vadd.f32 %v3033_v26, %v12135_v35  ;;  %v8646_v40 = vpop.f32.mrb[150].mxu0  ;;  %v12140_v35 = vld [vmem:[#allocation13_spill] sm:$0xff] }
 0x276   : > { %v3352_v43 = vor.u32 %v3350_v25, %v3349_v51  ;;  %v3353_v60 = vrot.slane %v3349_v51, 4  ;;  %v3357_v57 = vrot.slane %v3355_v3, 7  ;;  %v3150_v54 = vmax.f32 %v3042_v33, 0.0  ;;  %v3036_v22 = vpop.f32.mrb[151].mxu0 }
 0x277   : > { %v3335_v30 = vor.u32 %v3333_v45, %v3332_v59  ;;  %v3336_v9 = vrot.slane %v3332_v59, 4  ;;  %v3340_v2 = vrot.slane %v3338_v58, 7  ;;  %v3148_v13 = vmax.f32 %v3034_v34, 0.0  ;;  %v3676_v58 = vld [vmem:[#allocation2 + $0x30] sm:$0xf] }
 0x278   : > { %v3663_v48 = vsel %vm10955_vm7, %v3352_v43, %v3662_v41  ;;  %v3360_v55 = vor.u32 %v3358_v39, %v3357_v57  ;;  %v3362_v47 = vrot.slane %v3357_v57, 4  ;;  %v7628_v29 = vpack.c.bf16 %v3150_v54, %v3150_v54  ;;  %v3669_v57 = vld [vmem:[#allocation2 + $0x24] sm:$0xf] }
 0x279   : > { %3664 = vst [vmem:[#allocation2 + $0x18] sm:$0xf] %v3663_v48  ;;  %v3654_v7 = vsel %vm10955_vm7, %v3335_v30, %v3653_v4  ;;  %v3343_v25 = vor.u32 %v3341_v12, %v3340_v2  ;;  %v3345_v49 = vrot.slane %v3340_v2, 4  ;;  %v7626_v45 = vpack.c.bf16 %v3148_v13, %v3148_v13 }
 0x27a   : > { %3655 = vst [vmem:[#allocation2 + $0xc] sm:$0xf] %v3654_v7  ;;  %v3361_v21 = vsel %vm10968_vm9, %v3353_v60, %v3360_v55  ;;  %v3667_v19 = vsel %vm10962_vm8, %v3362_v47, %v3666_v31  ;;  %v3381_v51 = vshrl.u32 %v7628_v29, 16  ;;  %v3384_v39 = vshll.u32 %v7628_v29, 16 }
 0x27b   : > { %3665 = vst [vmem:[#allocation2 + $0x1c] sm:$0xf] %v3361_v21  ;;  %3668 = vst [vmem:[#allocation2 + $0x20] sm:$0x1] %v3667_v19  ;;  %v3344_v41 = vsel %vm10968_vm9, %v3336_v9, %v3343_v25  ;;  %v3660_v3 = vsel %vm10962_vm8, %v3345_v49, %v3659_v36  ;;  %v3364_v33 = vshrl.u32 %v7626_v45, 16  ;;  %v8649_v26 = vpop.f32.mrb[152].mxu0  ;;  %v3045_v12 = vadd.f32 %v8646_v40, %v10823_v56 }
 0x27c   : > { %3656 = vst [vmem:[#allocation2 + $0x10] sm:$0xf] %v3344_v41  ;;  %3661 = vst [vmem:[#allocation2 + $0x14] sm:$0x1] %v3660_v3  ;;  %v10984_v59 = vrot.slane %v3381_v51, 7  ;;  %v3037_v34 = vadd.f32 %v3036_v22, %v12140_v35  ;;  %v3058_v6 = vadd.f32 %v8649_v26, %v10845_v50  ;;  %v3049_v43 = vpop.f32.mrb[153].mxu0 }
 0x27d   : > { %v10989_v60 = vrot.slane %v3364_v33, 7  ;;  %v3367_v4 = vshll.u32 %v7626_v45, 16  ;;  %v3050_v54 = vadd.f32 %v3049_v43, %v10833_v44  ;;  %v8650_v30 = vpop.f32.mrb[154].mxu0  ;;  %v3151_v2 = vmax.f32 %v3045_v12, 0.0  ;;  %v9193_v56 = vld [vmem:[#allocation6 + $0x170] sm:$0xff]  }
 0x27e   : > { %v3386_v9 = vor.u32 %v3384_v39, %v10984_v59  ;;  %v3387_v31 = vrot.slane %v10984_v59, 4  ;;  %v3149_v13 = vmax.f32 %v3037_v34, 0.0  ;;  %v3052_v48 = vpop.f32.mrb[155].mxu0  ;;  %v3154_v22 = vmax.f32 %v3058_v6, 0.0  ;;  %8363 = vmatprep.subr.bf16.mxu1 %v9193_v56  ;;  %v3680_v3 = vld [vmem:[#allocation2 + $0x38] sm:$0x1] }
 0x27f   : > { %v3369_v40 = vor.u32 %v3367_v4, %v10989_v60  ;;  %v3370_v50 = vrot.slane %v10989_v60, 4  ;;  %v3152_v55 = vmax.f32 %v3050_v54, 0.0  ;;  %v7629_v36 = vpack.c.bf16 %v3151_v2, %v3151_v2  ;;  %v3673_v39 = vld [vmem:[#allocation2 + $0x2c] sm:$0x1]  ;;  %v3690_v6 = vld [vmem:[#allocation2 + $0x48] sm:$0xf] }
 0x280   : > { %v3677_v47 = vsel %vm10955_vm7, %v3386_v9, %v3676_v58  ;;  %v7627_v44 = vpack.c.bf16 %v3149_v13, %v3149_v13  ;;  %v3061_v29 = vadd.f32 %v8650_v30, %v10850_v28  ;;  %v7632_v25 = vpack.c.bf16 %v3154_v22, %v3154_v22  ;;  %v3683_v43 = vld [vmem:[#allocation2 + $0x3c] sm:$0xf] }
 0x281   : > { %3678 = vst [vmem:[#allocation2 + $0x30] sm:$0xf] %v3677_v47  ;;  %v3670_v7 = vsel %vm10955_vm7, %v3369_v40, %v3669_v57  ;;  %v7630_v49 = vpack.c.bf16 %v3152_v55, %v3152_v55  ;;  %v3053_v45 = vadd.f32 %v3052_v48, %v10838_v42  ;;  %v3389_v21 = vshrl.u32 %v7629_v36, 16 }
 0x282   : > { %3671 = vst [vmem:[#allocation2 + $0x24] sm:$0xf] %v3670_v7  ;;  %v3392_v19 = vshll.u32 %v7629_v36, 16  ;;  %v3372_v51 = vshrl.u32 %v7627_v44, 16  ;;  %v3375_v41 = vshll.u32 %v7627_v44, 16  ;;  %v3415_v33 = vshrl.u32 %v7632_v25, 16 }
 0x283   : > { %v3418_v26 = vshll.u32 %v7632_v25, 16  ;;  %v3398_v59 = vshrl.u32 %v7630_v49, 16  ;;  %v3401_v28 = vshll.u32 %v7630_v49, 16  ;;  %v8653_v58 = vpop.f32.mrb[156].mxu0  ;;  %v9144_v12 = vld [vmem:[#allocation2 + $0xc] sm:$0xff]   ;;  %v3391_v35 = vrot.slane %v3389_v21, 7 }
 0x284   : > { %v3374_v34 = vrot.slane %v3372_v51, 7  ;;  %v3155_v60 = vmax.f32 %v3061_v29, 0.0  ;;  %v3153_v4 = vmax.f32 %v3053_v45, 0.0  ;;  %v3065_v42 = vpop.f32.mrb[157].mxu0  ;;  %v11002_v57 = vrot.slane %v3415_v33, 7  ;;  %5936 = vmatprep.mubr.bf16.mxu0 %v9144_v12  ;;  %v9147_v13 = vld [vmem:[#allocation2 + $0x18] sm:$0xff]  }
 0x285   : > { %v11004_v54 = vrot.slane %v3398_v59, 7  ;;  %v3074_v30 = vadd.f32 %v8653_v58, %v10869_v10  ;;  %v3066_v9 = vadd.f32 %v3065_v42, %v10857_v24  ;;  %v8654_v2 = vpop.f32.mrb[158].mxu0  ;;  %v3394_v48 = vor.u32 %v3392_v19, %v3391_v35  ;;  %5937 = vmatmul.mubr.bf16.vlgmr.msra.gmra.mrb[176].mxu0 %v10826_v16  ;;  %v9196_v25 = vld [vmem:[#allocation6 + $0x130] sm:$0xff]   ;;  %v9197_v19 = vld [vmem:[#allocation6 + $0x1c0] sm:$0xff]   ;;  %v3694_v12 = vld [vmem:[#allocation2 + $0x50] sm:$0x1] }
 0x286   : > { %v3396_v56 = vrot.slane %v3391_v35, 4  ;;  %v3377_v40 = vor.u32 %v3375_v41, %v3374_v34  ;;  %v3379_v22 = vrot.slane %v3374_v34, 4  ;;  %v3068_v55 = vpop.f32.mrb[159].mxu0  ;;  %v3420_v47 = vor.u32 %v3418_v26, %v11002_v57  ;;  %5944 = vmatprep.mubr.bf16.mxu0 %v9147_v13  ;;  %8364 = vmatpush3.bf16.msra.mxu1 %v9196_v25  ;;  %v9199_v58 = vld [vmem:[#allocation6 + $0x180] sm:$0xff]   ;;  %v9201_v13 = vld [vmem:[#allocation6 + $0x188] sm:$0xff]   ;;  %v9209_v25 = vld [vmem:[#allocation6 + $0x178] sm:$0xff]  }
 0x287   : > { %v3421_v36 = vrot.slane %v11002_v57, 4  ;;  %v3403_v44 = vor.u32 %v3401_v28, %v11004_v54  ;;  %v3404_v10 = vrot.slane %v11004_v54, 4  ;;  %v3395_v24 = vsel %vm10968_vm9, %v3387_v31, %v3394_v48  ;;  %8463 = vmatprep.subr.bf16.mxu0 %v9197_v19  ;;  %v9206_v19 = vld [vmem:[#allocation6 + $0x190] sm:$0xff]   ;;  %v9207_v54 = vld [vmem:[#allocation6 + $0x1d8] sm:$0xff]   ;;  %8365 = vmatprep.subr.bf16.mxu1 %v9209_v25 }
 0x288   : > { %v3681_v29 = vsel %vm10962_vm8, %v3396_v56, %v3680_v3  ;;  %v3378_v7 = vsel %vm10968_vm9, %v3370_v50, %v3377_v40  ;;  %v3674_v16 = vsel %vm10962_vm8, %v3379_v22, %v3673_v39  ;;  %3679 = vst [vmem:[#allocation2 + $0x34] sm:$0xf] %v3395_v24  ;;  %v3691_v49 = vsel %vm10955_vm7, %v3420_v47, %v3690_v6  ;;  %v9204_v47 = vld [vmem:[#allocation6 + $0x1d0] sm:$0xff]  }
 0x289   : > { %3682 = vst [vmem:[#allocation2 + $0x38] sm:$0x1] %v3681_v29  ;;  %3672 = vst [vmem:[#allocation2 + $0x28] sm:$0xf] %v3378_v7  ;;  %v3684_v31 = vsel %vm10955_vm7, %v3403_v44, %v3683_v43  ;;  %v7633_v45 = vpack.c.bf16 %v3155_v60, %v3155_v60  ;;  %v7631_v21 = vpack.c.bf16 %v3153_v4, %v3153_v4  ;;  %v3158_v50 = vmax.f32 %v3074_v30, 0.0  ;;  %v9200_v4 = vld [vmem:[#allocation6 + $0x1c8] sm:$0xff]  }
 0x28a   : > { %3675 = vst [vmem:[#allocation2 + $0x2c] sm:$0x1] %v3674_v16  ;;  %3692 = vst [vmem:[#allocation2 + $0x48] sm:$0xf] %v3691_v49  ;;  %v3156_v51 = vmax.f32 %v3066_v9, 0.0  ;;  %v3077_v41 = vadd.f32 %v8654_v2, %v10874_v62  ;;  %v3069_v3 = vadd.f32 %v3068_v55, %v10862_v0  ;;  %8464 = vmatpush3.bf16.msra.mxu0 %v9199_v58 }
 0x28b   : > { %3685 = vst [vmem:[#allocation2 + $0x3c] sm:$0xf] %v3684_v31  ;;  %v3423_v39 = vshrl.u32 %v7633_v45, 16  ;;  %v3426_v33 = vshll.u32 %v7633_v45, 16  ;;  %v3406_v26 = vshrl.u32 %v7631_v21, 16  ;;  %v3409_v59 = vshll.u32 %v7631_v21, 16  ;;  %8465 = vmatprep.subr.bf16.mxu0 %v9200_v4 }
 0x28c   : > { %v8657_v28 = vpop.f32.mrb[160].mxu0  ;;  %v7636_v35 = vpack.c.bf16 %v3158_v50, %v3158_v50  ;;  %v7634_v34 = vpack.c.bf16 %v3156_v51, %v3156_v51  ;;  %v3159_v6 = vmax.f32 %v3077_v41, 0.0  ;;  %v3157_v43 = vmax.f32 %v3069_v3, 0.0  ;;  %v3687_v62 = vld [vmem:[#allocation2 + $0x44] sm:$0x1]  ;;  %v11037_v21 = vld [vmem:[#allocation2 + $0xc] sm:$0xff]  }
 0x28d   : > { %v3081_v60 = vpop.f32.mrb[161].mxu0  ;;  %v3425_v42 = vrot.slane %v3423_v39, 7  ;;  %v3408_v30 = vrot.slane %v3406_v26, 7  ;;  %v11028_v0 = vadd.f32 %v8657_v28, %v10893_v61  ;;  %v3704_v61 = vld [vmem:[#allocation2 + $0x60] sm:$0xf] }
 0x28e   : > { %v11031_v9 = vadd.f32 %v3081_v60, %v10881_v32  ;;  %v8658_v2 = vpop.f32.mrb[162].mxu0  ;;  %v3449_v48 = vshrl.u32 %v7636_v35, 16  ;;  %v3452_v56 = vshll.u32 %v7636_v35, 16  ;;  %v3432_v40 = vshrl.u32 %v7634_v34, 16  ;;  %v3697_v16 = vld [vmem:[#allocation2 + $0x54] sm:$0xf]  ;;  %8466 = vmatpush3.bf16.msra.mxu0 %v9201_v13 }
 0x28f   : > { %v3435_v22 = vshll.u32 %v7634_v34, 16  ;;  %v11033_v55 = vpop.f32.mrb[163].mxu0  ;;  %v3428_v44 = vor.u32 %v3426_v33, %v3425_v42  ;;  %v3430_v24 = vrot.slane %v3425_v42, 4  ;;  %v3411_v29 = vor.u32 %v3409_v59, %v3408_v30  ;;  %v11053_v26 = vld [vmem:[#allocation2 + $0x14] ss:$0 sps:$4 sm:$0x11]   ;;  %8467 = vmatprep.subr.bf16.mxu0 %v9204_v47 }
 0x290   : > { %v3413_v7 = vrot.slane %v3408_v30, 4  ;;  %v3451_v32 = vrot.slane %v3449_v48, 7  ;;  %v11035_v49 = vrot.slane %v3432_v40, 7  ;;  %v7637_v31 = vpack.c.bf16 %v3159_v6, %v3159_v6  ;;  %v3708_v6 = vld [vmem:[#allocation2 + $0x68] sm:$0x1]  ;;  %v9208_v42 = vld [vmem:[#allocation6 + $0x198] sm:$0xff]  }
 0x291   : > { %v7635_v45 = vpack.c.bf16 %v3157_v43, %v3157_v43  ;;  %v3429_v50 = vsel %vm10968_vm9, %v3421_v36, %v3428_v44  ;;  %v3695_v51 = vsel %vm10962_vm8, %v3430_v24, %v3694_v12  ;;  %v3412_v41 = vsel %vm10968_vm9, %v3404_v10, %v3411_v29  ;;  %v3701_v40 = vld [vmem:[#allocation2 + $0x5c] sm:$0x1] }
 0x292   : > { %v3688_v3 = vsel %vm10962_vm8, %v3413_v7, %v3687_v62  ;;  %3693 = vst [vmem:[#allocation2 + $0x4c] sm:$0xf] %v3429_v50  ;;  %3696 = vst [vmem:[#allocation2 + $0x50] sm:$0x1] %v3695_v51  ;;  %v3454_v57 = vor.u32 %v3452_v56, %v3451_v32  ;;  %v3455_v39 = vrot.slane %v3451_v32, 4  ;;  %v3437_v36 = vor.u32 %v3435_v22, %v11035_v49  ;;  %v11071_v44 = vld [vmem:[#allocation2 + $0x18] sm:$0xff]  }
 0x293   : > { %3686 = vst [vmem:[#allocation2 + $0x40] sm:$0xf] %v3412_v41  ;;  %3689 = vst [vmem:[#allocation2 + $0x44] sm:$0x1] %v3688_v3  ;;  %v3438_v33 = vrot.slane %v11035_v49, 4  ;;  %v3457_v10 = vshrl.u32 %v7637_v31, 16  ;;  %v3093_v13 = vadd.f32 %v8658_v2, %v10898_v18  ;;  %8468 = vmatpush3.bf16.msra.mxu0 %v9206_v19 }
 0x294   : > { %v3460_v59 = vshll.u32 %v7637_v31, 16  ;;  %v3440_v28 = vshrl.u32 %v7635_v45, 16  ;;  %v3443_v58 = vshll.u32 %v7635_v45, 16  ;;  %v11055_v12 = vpop.f32.mrb[164].mxu0  ;;  %v3705_v35 = vsel %vm10955_vm7, %v3454_v57, %v3704_v61  ;;  %8469 = vmatprep.subr.bf16.mxu0 %v9207_v54  ;;  %v3718_v51 = vld [vmem:[#allocation2 + $0x78] sm:$0xf] }
 0x295   : > { %v3698_v34 = vsel %vm10955_vm7, %v3437_v36, %v3697_v16  ;;  %v3162_v43 = vmax.f32 %v11028_v0, 0.0  ;;  %v3160_v60 = vmax.f32 %v11031_v9, 0.0  ;;  %v11063_v4 = vpop.f32.mrb[165].mxu0  ;;  %3706 = vst [vmem:[#allocation2 + $0x60] sm:$0xf] %v3705_v35  ;;  %v3459_v30 = vrot.slane %v3457_v10, 7 }
 0x296   : > { %3699 = vst [vmem:[#allocation2 + $0x54] sm:$0xf] %v3698_v34  ;;  %v3442_v62 = vrot.slane %v3440_v28, 7  ;;  %v4069_v48 = vshrl.u32 %v11037_v21, 16  ;;  %v11067_v56 = vpop.f32.mrb[166].mxu0  ;;  %v4071_v0 = vshll.u32 %v11037_v21, 16 }
 0x297   : > { %v7640_v22 = vpack.c.bf16 %v3162_v43, %v3162_v43  ;;  %v7638_v47 = vpack.c.bf16 %v3160_v60, %v3160_v60  ;;  %v4076_v9 = vshll.u32 %v11053_v26, 16  ;;  %v11073_v24 = vpop.f32.mrb[167].mxu0  ;;  %v3462_v29 = vor.u32 %v3460_v59, %v3459_v30  ;;  %v11075_v49 = vld [vmem:[#allocation2 + $0x20] ss:$0 sps:$4 sm:$0x11]   ;;  %8470 = vmatpush3.bf16.msra.mxu0 %v9208_v42 }
 0x298   : > { %v3464_v7 = vrot.slane %v3459_v30, 4  ;;  %v3445_v18 = vor.u32 %v3443_v58, %v3442_v62  ;;  %v3447_v2 = vrot.slane %v3442_v62, 4  ;;  %v3163_v57 = vmax.f32 %v3093_v13, 0.0  ;;  %v3711_v36 = vld [vmem:[#allocation2 + $0x6c] sm:$0xf] }
 0x299   : > { %v3483_v61 = vshrl.u32 %v7640_v22, 16  ;;  %v3486_v16 = vshll.u32 %v7640_v22, 16  ;;  %v3466_v25 = vshrl.u32 %v7638_v47, 16  ;;  %v3469_v32 = vshll.u32 %v7638_v47, 16 }
 0x29a   : > { %v3463_v31 = vsel %vm10968_vm9, %v3455_v39, %v3462_v29  ;;  %v3709_v45 = vsel %vm10962_vm8, %v3464_v7, %v3708_v6  ;;  %v3446_v19 = vsel %vm10968_vm9, %v3438_v33, %v3445_v18  ;;  %v3702_v50 = vsel %vm10962_vm8, %v3447_v2, %v3701_v40  ;;  %v3722_v18 = vld [vmem:[#allocation2 + $0x80] sm:$0x1] }
 0x29b   : > { %3707 = vst [vmem:[#allocation2 + $0x64] sm:$0xf] %v3463_v31  ;;  %3710 = vst [vmem:[#allocation2 + $0x68] sm:$0x1] %v3709_v45  ;;  %v11085_v41 = vrot.slane %v3483_v61, 7  ;;  %v11087_v3 = vrot.slane %v3466_v25, 7  ;;  %v3085_v33 = vadd.f32 %v11033_v55, %v10886_v14  ;;  %v7641_v60 = vpack.c.bf16 %v3163_v57, %v3163_v57 }
 0x29c   : > { %3700 = vst [vmem:[#allocation2 + $0x58] sm:$0xf] %v3446_v19  ;;  %3703 = vst [vmem:[#allocation2 + $0x5c] sm:$0x1] %v3702_v50  ;;  %v4073_v39 = vrot.slane %v4071_v0, 1  ;;  %v4078_v54 = vrot.slane %v4076_v9, 1  ;;  %v3106_v25 = vadd.f32 %v11055_v12, %v10911_v17  ;;  %v3109_v17 = vadd.f32 %v11067_v56, %v10914_v8 }
 0x29d   : > { %v4081_v10 = vshrl.u32 %v11071_v44, 16  ;;  %v4083_v59 = vshll.u32 %v11071_v44, 16  ;;  %v11093_v28 = vpop.f32.mrb[168].mxu0  ;;  %v3488_v58 = vor.u32 %v3486_v16, %v11085_v41  ;;  %v3489_v35 = vrot.slane %v11085_v41, 4  ;;  %v9212_v0 = vld [vmem:[#allocation6 + $0x138] sm:$0xff]   ;;  %v9213_v31 = vld [vmem:[#allocation6 + $0x1e0] sm:$0xff]  }
 0x29e   : > { %v3471_v34 = vor.u32 %v3469_v32, %v11087_v3  ;;  %v3472_v6 = vrot.slane %v11087_v3, 4  ;;  %v11099_v43 = vpop.f32.mrb[169].mxu0  ;;  %v4074_v42 = vor.u32 %v4073_v39, %v4069_v48  ;;  %v3161_v30 = vmax.f32 %v3085_v33, 0.0  ;;  %v11115_v32 = vld [vmem:[#allocation2 + $0x24] sm:$0xff]   ;;  %8366 = vmatpush3.bf16.msra.mxu1 %v9212_v0  ;;  %v3715_v41 = vld [vmem:[#allocation2 + $0x74] sm:$0x1]  ;;  %8471 = vmatprep.subr.bf16.mxu0 %v9213_v31 }
 0x29f   : > { %v4085_v14 = vrot.slane %v4083_v59, 1  ;;  %v11101_v55 = vpop.f32.mrb[170].mxu0  ;;  %v3719_v62 = vsel %vm10955_vm7, %v3488_v58, %v3718_v51  ;;  %v4088_v40 = vshll.u32 %v11075_v49, 16  ;;  %v4267_v22 = vrot.slane %v11037_v21, 1  ;;  %v9152_v39 = vld [vmem:[#allocation2 + $0x24] sm:$0xff]  }
 0x2a0   : > { %v3712_v13 = vsel %vm10955_vm7, %v3471_v34, %v3711_v36  ;;  %v11109_v47 = vpop.f32.mrb[171].mxu0  ;;  %3720 = vst [vmem:[#allocation2 + $0x78] sm:$0xf] %v3719_v62  ;;  %v3491_v48 = vshrl.u32 %v7641_v60, 16  ;;  %v3494_v9 = vshll.u32 %v7641_v60, 16  ;;  %v4079_v29 = vsel %vm650_vm0, %v4074_v42, %v4078_v54 }
 0x2a1   : > { %3713 = vst [vmem:[#allocation2 + $0x6c] sm:$0xf] %v3712_v13  ;;  %v7639_v7 = vpack.c.bf16 %v3161_v30, %v3161_v30  ;;  %5783 = vmatprep.mubr.bf16.mxu1 %v4079_v29  ;;  %v4086_v2 = vor.u32 %v4085_v14, %v4081_v10  ;;  %v4090_v61 = vrot.slane %v4088_v40, 1  ;;  %v4268_v16 = vrot.slane %v11053_v26, 1 }
 0x2a2   : > { %v3493_v45 = vrot.slane %v3491_v48, 7  ;;  %5784 = vmatmul.mubr.bf16.gmra.mrb[116].mxu1 %v11037_v21  ;;  %v3098_v51 = vadd.f32 %v11063_v4, %v10903_v11  ;;  %v3166_v36 = vmax.f32 %v3106_v25, 0.0  ;;  %v3167_v4 = vmax.f32 %v3109_v17, 0.0  ;;  %v11135_v30 = vld [vmem:[#allocation2 + $0x2c] ss:$0 sps:$4 sm:$0x11]  }
 0x2a3   : > { %v3474_v19 = vshrl.u32 %v7639_v7, 16  ;;  %v3477_v50 = vshll.u32 %v7639_v7, 16  ;;  %v4091_v57 = vsel %vm650_vm0, %v4086_v2, %v4090_v61  ;;  %v4269_v26 = vsel %vm859_vm1, %v4267_v22, %v4268_v16  ;;  %v11124_v10 = vpop.f32.mrb[172].mxu0  ;;  %v9215_v22 = vld [vmem:[#allocation6 + $0x1a0] sm:$0xff]   ;;  %v3732_v48 = vld [vmem:[#allocation2 + $0x90] sm:$0xf] }
 0x2a4   : > { %v3496_v12 = vor.u32 %v3494_v9, %v3493_v45  ;;  %v3498_v54 = vrot.slane %v3493_v45, 4  ;;  %5791 = vmatprep.mubr.bf16.mxu1 %v4091_v57  ;;  %5945 = vmatmul.mubr.bf16.gmra.mrb[180].mxu0 %v4269_v26  ;;  %v3164_v21 = vmax.f32 %v3098_v51, 0.0  ;;  %v7644_v11 = vpack.c.bf16 %v3166_v36, %v3166_v36  ;;  %v11129_v34 = vpop.f32.mrb[173].mxu0  ;;  %v3725_v16 = vld [vmem:[#allocation2 + $0x84] sm:$0xf] }
 0x2a5   : > { %v3476_v33 = vrot.slane %v3474_v19, 7  ;;  %5952 = vmatprep.mubr.bf16.mxu0 %v9152_v39  ;;  %v3101_v59 = vadd.f32 %v11073_v24, %v10906_v52  ;;  %v4093_v58 = vshrl.u32 %v11115_v32, 16  ;;  %v11137_v14 = vpop.f32.mrb[174].mxu0  ;;  %v7645_v13 = vpack.c.bf16 %v3167_v4, %v3167_v4  ;;  %8472 = vmatpush3.bf16.msra.mxu0 %v9215_v22  ;;  %v9216_v45 = vld [vmem:[#allocation6 + $0x1e8] sm:$0xff]   ;;  %v3736_v57 = vld [vmem:[#allocation2 + $0x98] sm:$0x1] }
 0x2a6   : > { %v3497_v8 = vsel %vm10968_vm9, %v3489_v35, %v3496_v12  ;;  %v3723_v56 = vsel %vm10962_vm8, %v3498_v54, %v3722_v18  ;;  %v3517_v62 = vshrl.u32 %v7644_v11, 16  ;;  %v3520_v52 = vshll.u32 %v7644_v11, 16  ;;  %v11139_v40 = vpop.f32.mrb[175].mxu0  ;;  %8473 = vmatprep.subr.bf16.mxu0 %v9216_v45  ;;  %v9217_v12 = vld [vmem:[#allocation6 + $0x1a8] sm:$0xff]   ;;  %v3729_v4 = vld [vmem:[#allocation2 + $0x8c] sm:$0x1] }
 0x2a7   : > { %v3479_v60 = vor.u32 %v3477_v50, %v3476_v33  ;;  %v3481_v42 = vrot.slane %v3476_v33, 4  ;;  %3721 = vst [vmem:[#allocation2 + $0x7c] sm:$0xf] %v3497_v8  ;;  %3724 = vst [vmem:[#allocation2 + $0x80] sm:$0x1] %v3723_v56  ;;  %v7642_v24 = vpack.c.bf16 %v3164_v21, %v3164_v21  ;;  %v3165_v9 = vmax.f32 %v3101_v59, 0.0 }
 0x2a8   : > { %v4095_v29 = vshll.u32 %v11115_v32, 16  ;;  %v3519_v7 = vrot.slane %v3517_v62, 7  ;;  %v3525_v61 = vshrl.u32 %v7645_v13, 16  ;;  %v3528_v25 = vshll.u32 %v7645_v13, 16  ;;  %v9219_v59 = vld [vmem:[#allocation6 + $0x1f0] sm:$0xff]   ;;  %v11154_v62 = vld [vmem:[#allocation2 + $0x30] sm:$0xff]  }
 0x2a9   : > { %v3480_v35 = vsel %vm10968_vm9, %v3472_v6, %v3479_v60  ;;  %v3716_v0 = vsel %vm10962_vm8, %v3481_v42, %v3715_v41  ;;  %v3500_v18 = vshrl.u32 %v7642_v24, 16  ;;  %v3503_v2 = vshll.u32 %v7642_v24, 16  ;;  %8474 = vmatpush3.bf16.msra.mxu0 %v9217_v12 }
 0x2aa   : > { %3714 = vst [vmem:[#allocation2 + $0x70] sm:$0xf] %v3480_v35  ;;  %3717 = vst [vmem:[#allocation2 + $0x74] sm:$0x1] %v3716_v0  ;;  %v7643_v3 = vpack.c.bf16 %v3165_v9, %v3165_v9  ;;  %5792 = vmatmul.mubr.bf16.gmra.mrb[120].mxu1 %v11071_v44  ;;  %v4097_v6 = vrot.slane %v4095_v29, 1  ;;  %v4100_v31 = vshll.u32 %v11135_v30, 16  ;;  %v3522_v19 = vor.u32 %v3520_v52, %v3519_v7 }
 0x2ab   : > { %v3523_v50 = vrot.slane %v3519_v7, 4  ;;  %v3502_v51 = vrot.slane %v3500_v18, 7  ;;  %v3527_v41 = vrot.slane %v3525_v61, 7  ;;  %v4270_v42 = vrot.slane %v11071_v44, 1  ;;  %8475 = vmatprep.subr.bf16.mxu0 %v9219_v59  ;;  %v11170_v29 = vld [vmem:[#allocation2 + $0x30] sm:$0xff]  }
 0x2ac   : > { %v3508_v26 = vshrl.u32 %v7643_v3, 16  ;;  %v3511_v39 = vshll.u32 %v7643_v3, 16  ;;  %v4098_v36 = vor.u32 %v4097_v6, %v4093_v58  ;;  %v4102_v17 = vrot.slane %v4100_v31, 1  ;;  %v11156_v58 = vld [vmem:[#allocation2 + $0x38] ss:$0 sps:$4 sm:$0x11]  }
 0x2ad   : > { %v3733_v54 = vsel %vm10955_vm7, %v3522_v19, %v3732_v48  ;;  %v3505_v33 = vor.u32 %v3503_v2, %v3502_v51  ;;  %v3506_v21 = vrot.slane %v3502_v51, 4  ;;  %v3530_v11 = vor.u32 %v3528_v25, %v3527_v41  ;;  %v9220_v2 = vld [vmem:[#allocation6 + $0x1b0] sm:$0xff]   ;;  %v9223_v6 = vld [vmem:[#allocation6 + $0x1f8] sm:$0xff]  }
 0x2ae   : > { %3734 = vst [vmem:[#allocation2 + $0x90] sm:$0xf] %v3733_v54  ;;  %v3532_v8 = vrot.slane %v3527_v41, 4  ;;  %v3510_v56 = vrot.slane %v3508_v26, 7  ;;  %v4103_v60 = vsel %vm650_vm0, %v4098_v36, %v4102_v17  ;;  %v4271_v13 = vrot.slane %v11075_v49, 1  ;;  %8476 = vmatpush3.bf16.msra.mxu0 %v9220_v2 }
 0x2af   : > { %v3726_v52 = vsel %vm10955_vm7, %v3505_v33, %v3725_v16  ;;  %v3531_v24 = vsel %vm10968_vm9, %v3523_v50, %v3530_v11  ;;  %5799 = vmatprep.mubr.bf16.mxu1 %v4103_v60  ;;  %v3122_v22 = vadd.f32 %v11093_v28, %v10927_v38  ;;  %v3114_v48 = vadd.f32 %v11099_v43, %v10919_v5  ;;  %v3746_v51 = vld [vmem:[#allocation2 + $0xa8] sm:$0xf]  ;;  %v3739_v17 = vld [vmem:[#allocation2 + $0x9c] sm:$0xf] }
 0x2b0   : > { %3727 = vst [vmem:[#allocation2 + $0x84] sm:$0xf] %v3726_v52  ;;  %3735 = vst [vmem:[#allocation2 + $0x94] sm:$0xf] %v3531_v24  ;;  %v3737_v44 = vsel %vm10962_vm8, %v3532_v8, %v3736_v57  ;;  %v3513_v35 = vor.u32 %v3511_v39, %v3510_v56  ;;  %v3515_v0 = vrot.slane %v3510_v56, 4  ;;  %v4272_v9 = vsel %vm859_vm1, %v4270_v42, %v4271_v13  ;;  %v11188_v52 = vld [vmem:[#allocation2 + $0x3c] sm:$0xff]  }
 0x2b1   : > { %3738 = vst [vmem:[#allocation2 + $0x98] sm:$0x1] %v3737_v44  ;;  %v3170_v49 = vmax.f32 %v3122_v22, 0.0  ;;  %v3125_v38 = vadd.f32 %v11101_v55, %v10930_v27  ;;  %v3117_v28 = vadd.f32 %v11109_v47, %v10922_v46  ;;  %5953 = vmatmul.mubr.bf16.gmra.mrb[184].mxu0 %v4272_v9  ;;  %v3168_v5 = vmax.f32 %v3114_v48, 0.0  ;;  %8477 = vmatprep.subr.bf16.mxu0 %v9223_v6  ;;  %v3743_v42 = vld [vmem:[#allocation2 + $0xa4] sm:$0x1] }
 0x2b2   : > { %v3514_v7 = vsel %vm10968_vm9, %v3506_v21, %v3513_v35  ;;  %v3730_v18 = vsel %vm10962_vm8, %v3515_v0, %v3729_v4  ;;  %5800 = vmatmul.mubr.bf16.gmra.mrb[124].mxu1 %v11115_v32  ;;  %v4105_v43 = vshrl.u32 %v11154_v62, 16  ;;  %5960 = vmatprep.mubr.bf16.mxu0 %v11170_v29  ;;  %v4107_v47 = vshll.u32 %v11154_v62, 16  ;;  %v3750_v21 = vld [vmem:[#allocation2 + $0xb0] sm:$0x1] }
 0x2b3   : > { %3728 = vst [vmem:[#allocation2 + $0x88] sm:$0xf] %v3514_v7  ;;  %3731 = vst [vmem:[#allocation2 + $0x8c] sm:$0x1] %v3730_v18  ;;  %v7648_v27 = vpack.c.bf16 %v3170_v49, %v3170_v49  ;;  %v3171_v55 = vmax.f32 %v3125_v38, 0.0  ;;  %v3169_v46 = vmax.f32 %v3117_v28, 0.0  ;;  %v7646_v61 = vpack.c.bf16 %v3168_v5, %v3168_v5 }
 0x2b4   : > { %v4112_v16 = vshll.u32 %v11156_v58, 16  ;;  %v4273_v25 = vrot.slane %v11115_v32, 1  ;;  %v4274_v3 = vrot.slane %v11135_v30, 1  ;;  %v4109_v26 = vrot.slane %v4107_v47, 1  ;;  %v11198_v38 = vld [vmem:[#allocation2 + $0x3c] sm:$0xff]  }
 0x2b5   : > { %v3551_v31 = vshrl.u32 %v7648_v27, 16  ;;  %v3554_v45 = vshll.u32 %v7648_v27, 16  ;;  %v7649_v19 = vpack.c.bf16 %v3171_v55, %v3171_v55  ;;  %v7647_v50 = vpack.c.bf16 %v3169_v46, %v3169_v46  ;;  %v11190_v24 = vld [vmem:[#allocation2 + $0x44] ss:$0 sps:$4 sm:$0x11]  }
 0x2b6   : > { %v3534_v41 = vshrl.u32 %v7646_v61, 16  ;;  %v3537_v57 = vshll.u32 %v7646_v61, 16  ;;  %v4114_v39 = vrot.slane %v4112_v16, 1  ;;  %v4110_v11 = vor.u32 %v4109_v26, %v4105_v43 }
 0x2b7   : > { %v3553_v36 = vrot.slane %v3551_v31, 7  ;;  %v3559_v12 = vshrl.u32 %v7649_v19, 16  ;;  %v3562_v54 = vshll.u32 %v7649_v19, 16  ;;  %v3542_v33 = vshrl.u32 %v7647_v50, 16 }
 0x2b8   : > { %v3536_v32 = vrot.slane %v3534_v41, 7  ;;  %v3545_v30 = vshll.u32 %v7647_v50, 16  ;;  %v4275_v4 = vsel %vm859_vm1, %v4273_v25, %v4274_v3  ;;  %v4115_v44 = vsel %vm650_vm0, %v4110_v11, %v4114_v39  ;;  %v11224_v39 = vld [vmem:[#allocation2 + $0x50] ss:$0 sps:$4 sm:$0x11]  }
 0x2b9   : > { %v3556_v59 = vor.u32 %v3554_v45, %v3553_v36  ;;  %v3557_v8 = vrot.slane %v3553_v36, 4  ;;  %v3561_v56 = vrot.slane %v3559_v12, 7  ;;  %v3544_v60 = vrot.slane %v3542_v33, 7  ;;  %5961 = vmatmul.mubr.bf16.gmra.mrb[188].mxu0 %v4275_v4  ;;  %5807 = vmatprep.mubr.bf16.mxu1 %v4115_v44  ;;  %v3760_v45 = vld [vmem:[#allocation2 + $0xc0] sm:$0xf] }
 0x2ba   : > { %v3539_v13 = vor.u32 %v3537_v57, %v3536_v32  ;;  %v3540_v22 = vrot.slane %v3536_v32, 4  ;;  %v3138_v35 = vadd.f32 %v11124_v10, %v10943_v53  ;;  %5968 = vmatprep.mubr.bf16.mxu0 %v11188_v52  ;;  %v3130_v53 = vadd.f32 %v11129_v34, %v10935_v20  ;;  %5808 = vmatmul.mubr.bf16.gmra.mrb[128].mxu1 %v11154_v62  ;;  %v3753_v36 = vld [vmem:[#allocation2 + $0xb4] sm:$0xf]  ;;  %v11227_v32 = vld [vmem:[#allocation2 + $0x48] sm:$0xff]  }
 0x2bb   : > { %v3747_v0 = vsel %vm10955_vm7, %v3556_v59, %v3746_v51  ;;  %v3564_v48 = vor.u32 %v3562_v54, %v3561_v56  ;;  %v3566_v9 = vrot.slane %v3561_v56, 4  ;;  %v3547_v49 = vor.u32 %v3545_v30, %v3544_v60  ;;  %v3764_v11 = vld [vmem:[#allocation2 + $0xc8] sm:$0x1]  ;;  %v3757_v56 = vld [vmem:[#allocation2 + $0xbc] sm:$0x1] }
 0x2bc   : > { %3748 = vst [vmem:[#allocation2 + $0xa8] sm:$0xf] %v3747_v0  ;;  %v3740_v28 = vsel %vm10955_vm7, %v3539_v13, %v3739_v17  ;;  %v3549_v7 = vrot.slane %v3544_v60, 4  ;;  %v3174_v18 = vmax.f32 %v3138_v35, 0.0  ;;  %v3141_v2 = vadd.f32 %v11137_v14, %v10946_v15  ;;  %v9224_v15 = vld [vmem:[#allocation6 + $0x1b8] sm:$0xff]   ;;  %v11220_v14 = vld [vmem:[#allocation6 + $0x200] sm:$0xff]  }
 0x2bd   : > { %3741 = vst [vmem:[#allocation2 + $0x9c] sm:$0xf] %v3740_v28  ;;  %v3565_v10 = vsel %vm10968_vm9, %v3557_v8, %v3564_v48  ;;  %v3751_v5 = vsel %vm10962_vm8, %v3566_v9, %v3750_v21  ;;  %v3548_v43 = vsel %vm10968_vm9, %v3540_v22, %v3547_v49  ;;  %v3172_v27 = vmax.f32 %v3130_v53, 0.0  ;;  %8478 = vmatpush3.bf16.msra.mxu0 %v9224_v15  ;;  %v11231_v13 = vld [vmem:[#allocation2 + $0x48] sm:$0xff]  }
 0x2be   : > { %3749 = vst [vmem:[#allocation2 + $0xac] sm:$0xf] %v3565_v10  ;;  %3752 = vst [vmem:[#allocation2 + $0xb0] sm:$0x1] %v3751_v5  ;;  %v3744_v20 = vsel %vm10962_vm8, %v3549_v7, %v3743_v42  ;;  %v7652_v34 = vpack.c.bf16 %v3174_v18, %v3174_v18  ;;  %v3133_v55 = vadd.f32 %v11139_v40, %v10938_v37  ;;  %v3175_v46 = vmax.f32 %v3141_v2, 0.0  ;;  %v11241_v7 = vld [vmem:[#allocation2 + $0x54] sm:$0xff]  }
 0x2bf   : > { %3742 = vst [vmem:[#allocation2 + $0xa0] sm:$0xf] %v3548_v43  ;;  %3745 = vst [vmem:[#allocation2 + $0xa4] sm:$0x1] %v3744_v20  ;;  %v4117_v47 = vshrl.u32 %v11198_v38, 16  ;;  %v4119_v61 = vshll.u32 %v11198_v38, 16  ;;  %v7650_v6 = vpack.c.bf16 %v3172_v27, %v3172_v27  ;;  %8671 = vmatprep.subr.bf16.mxu1 %v11220_v14 }
 0x2c0   : > { %v4124_v16 = vshll.u32 %v11190_v24, 16  ;;  %v3585_v25 = vshrl.u32 %v7652_v34, 16  ;;  %v3588_v3 = vshll.u32 %v7652_v34, 16  ;;  %v3173_v31 = vmax.f32 %v3133_v55, 0.0  ;;  %v11246_v43 = vld [vmem:[#allocation2 + $0x60] sm:$0xff]  }
 0x2c1   : > { %v7653_v19 = vpack.c.bf16 %v3175_v46, %v3175_v46  ;;  %v4121_v50 = vrot.slane %v4119_v61, 1  ;;  %v4276_v37 = vrot.slane %v11154_v62, 1  ;;  %v3568_v41 = vshrl.u32 %v7650_v6, 16  ;;  %v11233_v22 = vld [vmem:[#allocation2 + $0x5c] ss:$0 sps:$4 sm:$0x11]  }
 0x2c2   : > { %v4126_v51 = vrot.slane %v4124_v16, 1  ;;  %v3587_v40 = vrot.slane %v3585_v25, 7  ;;  %v3571_v57 = vshll.u32 %v7650_v6, 16  ;;  %v7651_v26 = vpack.c.bf16 %v3173_v31, %v3173_v31  ;;  %v9175_v25 = vld [vmem:[#allocation2 + $0x68] ss:$0 sps:$4 sm:$0x11]  }
 0x2c3   : > { %v3593_v17 = vshrl.u32 %v7653_v19, 16  ;;  %v3596_v12 = vshll.u32 %v7653_v19, 16  ;;  %v4122_v54 = vor.u32 %v4121_v50, %v4117_v47  ;;  %v4277_v33 = vrot.slane %v11156_v58, 1  ;;  %v11263_v6 = vld [vmem:[#allocation2 + $0x54] sm:$0xff]   ;;  %v9178_v50 = vld [vmem:[#allocation2 + $0x6c] sm:$0xff]  }
 0x2c4   : > { %v3590_v21 = vor.u32 %v3588_v3, %v3587_v40  ;;  %v3591_v30 = vrot.slane %v3587_v40, 4  ;;  %v3570_v62 = vrot.slane %v3568_v41, 7  ;;  %v3576_v4 = vshrl.u32 %v7651_v26, 16 }
 0x2c5   : > { %v3595_v59 = vrot.slane %v3593_v17, 7  ;;  %v3579_v8 = vshll.u32 %v7651_v26, 16  ;;  %v4127_v60 = vsel %vm650_vm0, %v4122_v54, %v4126_v51  ;;  %v4278_v42 = vsel %vm859_vm1, %v4276_v37, %v4277_v33  ;;  %v9179_v33 = vld [vmem:[#allocation2 + $0x74] ss:$0 sps:$4 sm:$0x11]  }
 0x2c6   : > { %v3761_v58 = vsel %vm10955_vm7, %v3590_v21, %v3760_v45  ;;  %v3573_v44 = vor.u32 %v3571_v57, %v3570_v62  ;;  %v3574_v35 = vrot.slane %v3570_v62, 4  ;;  %v3578_v0 = vrot.slane %v3576_v4, 7  ;;  %5815 = vmatprep.mubr.bf16.mxu1 %v4127_v60  ;;  %5969 = vmatmul.mubr.bf16.gmra.mrb[192].mxu0 %v4278_v42  ;;  %v11278_v21 = vld [vmem:[#allocation2 + $0x78] sm:$0xff]   ;;  %v11284_v60 = vld [vmem:[#allocation2 + $0x6c] sm:$0xff]  }
 0x2c7   : > { %3762 = vst [vmem:[#allocation2 + $0xc0] sm:$0xf] %v3761_v58  ;;  %v3598_v48 = vor.u32 %v3596_v12, %v3595_v59  ;;  %v3600_v9 = vrot.slane %v3595_v59, 4  ;;  %5976 = vmatprep.mubr.bf16.mxu0 %v11231_v13  ;;  %5816 = vmatmul.mubr.bf16.gmra.mrb[132].mxu1 %v11198_v38  ;;  %v4129_v49 = vshrl.u32 %v11227_v32, 16  ;;  %v4131_v28 = vshll.u32 %v11227_v32, 16  ;;  %v11273_v12 = vld [vmem:[#allocation2 + $0x60] sm:$0xff]  }
 0x2c8   : > { %v3754_v18 = vsel %vm10955_vm7, %v3573_v44, %v3753_v36  ;;  %v3581_v53 = vor.u32 %v3579_v8, %v3578_v0  ;;  %v3583_v10 = vrot.slane %v3578_v0, 4  ;;  %v4136_v5 = vshll.u32 %v11224_v39, 16  ;;  %v9183_v58 = vld [vmem:[#allocation2 + $0x80] ss:$0 sps:$4 sm:$0x11]  }
 0x2c9   : > { %3755 = vst [vmem:[#allocation2 + $0xb4] sm:$0xf] %v3754_v18  ;;  %v3599_v2 = vsel %vm10968_vm9, %v3591_v30, %v3598_v48  ;;  %v3765_v20 = vsel %vm10962_vm8, %v3600_v9, %v3764_v11  ;;  %v4133_v34 = vrot.slane %v4131_v28, 1  ;;  %v4279_v27 = vrot.slane %v11198_v38, 1 }
 0x2ca   : > { %3763 = vst [vmem:[#allocation2 + $0xc4] sm:$0xf] %v3599_v2  ;;  %3766 = vst [vmem:[#allocation2 + $0xc8] sm:$0x1] %v3765_v20  ;;  %v3582_v1 = vsel %vm10968_vm9, %v3574_v35, %v3581_v53  ;;  %v3758_v55 = vsel %vm10962_vm8, %v3583_v10, %v3757_v56  ;;  %v4280_v46 = vrot.slane %v11190_v24, 1  ;;  %v4138_v61 = vrot.slane %v4136_v5, 1 }
 0x2cb   : > { %3756 = vst [vmem:[#allocation2 + $0xb8] sm:$0xf] %v3582_v1  ;;  %3759 = vst [vmem:[#allocation2 + $0xbc] sm:$0x1] %v3758_v55  ;;  %v4134_v47 = vor.u32 %v4133_v34, %v4129_v49  ;;  %v4143_v16 = vshll.u32 %v11241_v7, 16  ;;  %v4148_v15 = vshll.u32 %v11233_v22, 16 }
 0x2cc   : > { %v4141_v38 = vshrl.u32 %v11241_v7, 16  ;;  %v4281_v63 = vsel %vm859_vm1, %v4279_v27, %v4280_v46  ;;  %v4155_v24 = vshll.u32 %v11246_v43, 16  ;;  %v4282_v51 = vrot.slane %v11227_v32, 1  ;;  %v11295_v53 = vld [vmem:[#allocation2 + $0x78] sm:$0xff]   ;;  %v11299_v20 = vld [vmem:[#allocation2 + $0x90] sm:$0xff]  }
 0x2cd   : > { %v4139_v3 = vsel %vm650_vm0, %v4134_v47, %v4138_v61  ;;  %v4145_v23 = vrot.slane %v4143_v16, 1  ;;  %v4150_v45 = vrot.slane %v4148_v15, 1  ;;  %v4283_v37 = vrot.slane %v11224_v39, 1  ;;  %v9187_v5 = vld [vmem:[#allocation2 + $0x8c] ss:$0 sps:$4 sm:$0x11]  }
 0x2ce   : > { %5823 = vmatprep.mubr.bf16.mxu1 %v4139_v3  ;;  %5977 = vmatmul.mubr.bf16.gmra.mrb[196].mxu0 %v4281_v63  ;;  %v4157_v19 = vrot.slane %v4155_v24, 1  ;;  %v4153_v41 = vshrl.u32 %v11246_v43, 16  ;;  %v4160_v57 = vshll.u32 %v9175_v25, 16  ;;  %v4167_v36 = vshll.u32 %v9178_v50, 16  ;;  %v11304_v16 = vld [vmem:[#allocation2 + $0x84] sm:$0xff]   ;;  %v11309_v63 = vld [vmem:[#allocation2 + $0x9c] sm:$0xff]  }
 0x2cf   : > { %5984 = vmatprep.mubr.bf16.mxu0 %v11263_v6  ;;  %5824 = vmatmul.mubr.bf16.gmra.mrb[136].mxu1 %v11227_v32  ;;  %v4146_v31 = vor.u32 %v4145_v23, %v4141_v38  ;;  %v4284_v17 = vsel %vm859_vm1, %v4282_v51, %v4283_v37  ;;  %v4285_v30 = vrot.slane %v11241_v7, 1  ;;  %v4286_v62 = vrot.slane %v11233_v22, 1  ;;  %v11289_v22 = vld [vmem:[#allocation2 + $0x84] sm:$0xff]   ;;  %v9191_v38 = vld [vmem:[#allocation2 + $0x98] ss:$0 sps:$4 sm:$0x11]  }
 0x2d0   : > { %v4158_v26 = vor.u32 %v4157_v19, %v4153_v41  ;;  %v4162_v54 = vrot.slane %v4160_v57, 1  ;;  %v4169_v32 = vrot.slane %v4167_v36, 1  ;;  %v4165_v11 = vshrl.u32 %v9178_v50, 16  ;;  %v9195_v37 = vld [vmem:[#allocation2 + $0xa4] ss:$0 sps:$4 sm:$0x11]  }
 0x2d1   : > { %v4151_v40 = vsel %vm650_vm0, %v4146_v31, %v4150_v45  ;;  %v4172_v4 = vshll.u32 %v9179_v33, 16  ;;  %v4179_v8 = vshll.u32 %v11278_v21, 16  ;;  %v4287_v56 = vsel %vm859_vm1, %v4285_v30, %v4286_v62  ;;  %v11317_v41 = vld [vmem:[#allocation2 + $0x90] sm:$0xff]  }
 0x2d2   : > { %5831 = vmatprep.mubr.bf16.mxu1 %v4151_v40  ;;  %v4163_v39 = vsel %vm650_vm0, %v4158_v26, %v4162_v54  ;;  %v4170_v59 = vor.u32 %v4169_v32, %v4165_v11  ;;  %v4288_v0 = vrot.slane %v11246_v43, 1  ;;  %v4289_v48 = vrot.slane %v9175_v25, 1 }
 0x2d3   : > { %v4174_v42 = vrot.slane %v4172_v4, 1  ;;  %v4181_v35 = vrot.slane %v4179_v8, 1  ;;  %v4177_v9 = vshrl.u32 %v11278_v21, 16  ;;  %v4184_v49 = vshll.u32 %v9183_v58, 16  ;;  %v11328_v8 = vld [vmem:[#allocation2 + $0x9c] sm:$0xff]  }
 0x2d4   : > { %v4290_v18 = vsel %vm859_vm1, %v4288_v0, %v4289_v48  ;;  %v4291_v34 = vrot.slane %v9178_v50, 1  ;;  %v4292_v27 = vrot.slane %v9179_v33, 1  ;;  %v4189_v1 = vshrl.u32 %v11289_v22, 16  ;;  %v9203_v4 = vld [vmem:[#allocation2 + $0xb0] ss:$0 sps:$4 sm:$0x11]  }
 0x2d5   : > { %v4175_v44 = vsel %vm650_vm0, %v4170_v59, %v4174_v42  ;;  %v4182_v28 = vor.u32 %v4181_v35, %v4177_v9  ;;  %v4186_v10 = vrot.slane %v4184_v49, 1  ;;  %v4196_v55 = vshll.u32 %v9187_v5, 16 }
 0x2d6   : > { %5985 = vmatmul.mubr.bf16.gmra.mrb[200].mxu0 %v4284_v17  ;;  %v4203_v47 = vshll.u32 %v11299_v20, 16  ;;  %v4293_v61 = vsel %vm859_vm1, %v4291_v34, %v4292_v27  ;;  %v4294_v23 = vrot.slane %v11278_v21, 1  ;;  %v4295_v24 = vrot.slane %v9183_v58, 1  ;;  %v11322_v17 = vld [vmem:[#allocation2 + $0xa8] sm:$0xff]  }
 0x2d7   : > { %5992 = vmatprep.mubr.bf16.mxu0 %v11273_v12  ;;  %5832 = vmatmul.mubr.bf16.gmra.mrb[140].mxu1 %v11241_v7  ;;  %v4191_v7 = vshll.u32 %v11289_v22, 16  ;;  %v4187_v2 = vsel %vm650_vm0, %v4182_v28, %v4186_v10  ;;  %v4198_v15 = vrot.slane %v4196_v55, 1  ;;  %v4201_v31 = vshrl.u32 %v11299_v20, 16 }
 0x2d8   : > { %5839 = vmatprep.mubr.bf16.mxu1 %v4163_v39  ;;  %v4205_v3 = vrot.slane %v4203_v47, 1  ;;  %v4208_v45 = vshll.u32 %v9191_v38, 16  ;;  %v4296_v40 = vsel %vm859_vm1, %v4294_v23, %v4295_v24  ;;  %v4297_v54 = vrot.slane %v11289_v22, 1  ;;  %v11347_v47 = vld [vmem:[#allocation2 + $0xb4] sm:$0xff]  }
 0x2d9   : > { %v4298_v33 = vrot.slane %v9187_v5, 1  ;;  %v4213_v39 = vshrl.u32 %v11309_v63, 16  ;;  %v4220_v32 = vshll.u32 %v9195_v37, 16  ;;  %v4227_v62 = vshll.u32 %v11322_v17, 16 }
 0x2da   : > { %v4206_v19 = vor.u32 %v4205_v3, %v4201_v31  ;;  %v4210_v57 = vrot.slane %v4208_v45, 1  ;;  %v4301_v0 = vrot.slane %v9191_v38, 1  ;;  %v4225_v48 = vshrl.u32 %v11322_v17, 16  ;;  %v9211_v5 = vld [vmem:[#allocation2 + $0xbc] ss:$0 sps:$4 sm:$0x11]  }
 0x2db   : > { %v4299_v59 = vsel %vm859_vm1, %v4297_v54, %v4298_v33  ;;  %v4229_v58 = vrot.slane %v4227_v62, 1  ;;  %v4232_v9 = vshll.u32 %v9203_v4, 16  ;;  %v4304_v34 = vrot.slane %v9195_v37, 1  ;;  %v9326_v31 = vld [vmem:[#allocation2 + $0xc] sm:$0xff]   ;;  %v11366_v54 = vld [vmem:[#allocation2 + $0x24] sm:$0xff]  }
 0x2dc   : > { %v4211_v26 = vsel %vm650_vm0, %v4206_v19, %v4210_v57  ;;  %v4306_v3 = vrot.slane %v11322_v17, 1  ;;  %v4475_v45 = vshll.u32 %v9326_v31, 16  ;;  %v4680_v19 = vrot.slane %v9326_v31, 1  ;;  %v11359_v37 = vld [vmem:[#allocation2 + $0x20] ss:$0 sps:$4 sm:$0x11]  }
 0x2dd   : > { %v4230_v49 = vor.u32 %v4229_v58, %v4225_v48  ;;  %v4234_v10 = vrot.slane %v4232_v9, 1  ;;  %v9226_v33 = vld [vmem:[#allocation2 + $0x20] ss:$0 sps:$4 sm:$0x11]  }
 0x2de   : > { %5993 = vmatmul.mubr.bf16.gmra.mrb[204].mxu0 %v4287_v56  ;;  %v4222_v56 = vrot.slane %v4220_v32, 1  ;;  %v11375_v9 = vld [vmem:[#allocation2 + $0x2c] ss:$0 sps:$4 sm:$0x11]  }
 0x2df   : > { %6000 = vmatprep.mubr.bf16.mxu0 %v11284_v60  ;;  %5840 = vmatmul.mubr.bf16.gmra.mrb[144].mxu1 %v11246_v43  ;;  %v4193_v43 = vrot.slane %v4191_v7, 1  ;;  %v11338_v7 = vld [vmem:[#allocation2 + $0xa8] sm:$0xff]  }
 0x2e0   : > { %5847 = vmatprep.mubr.bf16.mxu1 %v4175_v44  ;;  %v11314_v51 = vpop.f32.mrb[112].mxu1  ;;  %v11333_v44 = vld [vmem:[#allocation2 + $0xb4] sm:$0xff]  }
 0x2e1   : > { %v4194_v46 = vor.u32 %v4193_v43, %v4189_v1  ;;  %v4239_v28 = vshll.u32 %v11333_v44, 16  ;;  %v4237_v27 = vshrl.u32 %v11333_v44, 16  ;;  %v4244_v1 = vshll.u32 %v9211_v5, 16 }
 0x2e2   : > { %v4309_v62 = vrot.slane %v11333_v44, 1 }
 0x2e3   : > { %v4199_v25 = vsel %vm650_vm0, %v4194_v46, %v4198_v15  ;;  %v4241_v43 = vrot.slane %v4239_v28, 1  ;;  %v11349_v15 = vld [vmem:[#allocation2 + $0x18] sm:$0xff]   ;;  %v9232_v28 = vld [vmem:[#allocation6 + $0x208] sm:$0xff]  }
 0x2e4   : > { %v4891_v24 = vshll.u32 %v11349_v15, 16  ;;  %v4889_v32 = vshrl.u32 %v11349_v15, 16 }
 0x2e5   : > { %v4242_v55 = vor.u32 %v4241_v43, %v4237_v27  ;;  %v4908_v27 = vshll.u32 %v11375_v9, 16 }
 0x2e6   : > { %6001 = vmatmul.mubr.bf16.gmra.mrb[208].mxu0 %v4290_v18 }
 0x2e7   : > { %6008 = vmatprep.mubr.bf16.mxu0 %v11295_v53  ;;  %5848 = vmatmul.mubr.bf16.gmra.mrb[148].mxu1 %v9178_v50  ;;  %v4215_v50 = vshll.u32 %v11309_v63, 16 }
 0x2e8   : > { %5855 = vmatprep.mubr.bf16.mxu1 %v4187_v2  ;;  %v4235_v2 = vsel %vm650_vm0, %v4230_v49, %v4234_v10 }
 0x2e9   : > { %v4217_v36 = vrot.slane %v4215_v50, 1 }
 0x2eb   : > { %v4218_v30 = vor.u32 %v4217_v36, %v4213_v39  ;;  %v4893_v36 = vrot.slane %v4891_v24, 1 }
 0x2ed   : > { %v4223_v42 = vsel %vm650_vm0, %v4218_v30, %v4222_v56  ;;  %v4473_v30 = vshrl.u32 %v9326_v31, 16  ;;  %v4903_v56 = vshll.u32 %v11366_v54, 16 }
 0x2ee   : > { %6009 = vmatmul.mubr.bf16.gmra.mrb[212].mxu0 %v4293_v61  ;;  %v4246_v61 = vrot.slane %v4244_v1, 1 }
 0x2ef   : > { %6016 = vmatprep.mubr.bf16.mxu0 %v11304_v16  ;;  %5856 = vmatmul.mubr.bf16.gmra.mrb[152].mxu1 %v11278_v21  ;;  %v8144_v21 = vpop.f32.mrb[113].mxu1  ;;  %v4905_v10 = vrot.slane %v4903_v56, 1 }
 0x2f0   : > { %5863 = vmatprep.mubr.bf16.mxu1 %v4199_v25  ;;  %v8146_v11 = vpop.f32.mrb[114].mxu1  ;;  %v4247_v38 = vsel %vm650_vm0, %v4242_v55, %v4246_v61  ;;  %v9218_v25 = vld [vmem:[#allocation2 + $0x14] ss:$0 sps:$4 sm:$0x11]   ;;  %v11356_v23 = vadd.f32 %v8144_v21, %v11314_v51  ;;  %v4896_v21 = vshll.u32 %v11359_v37, 16  ;;  %v4492_v55 = vshll.u32 %v9226_v33, 16 }
 0x2f1   : > { %v8147_v35 = vpop.f32.mrb[115].mxu1  ;;  %v4681_v50 = vrot.slane %v9218_v25, 1  ;;  %v4480_v39 = vshll.u32 %v9218_v25, 16 }
 0x2f3   : > { %v4682_v51 = vsel %vm859_vm1, %v4680_v19, %v4681_v50  ;;  %v4482_v48 = vrot.slane %v4480_v39, 1  ;;  %v4494_v19 = vrot.slane %v4492_v55, 1  ;;  %v11387_v50 = vld [vmem:[#allocation2 + $0x38] ss:$0 sps:$4 sm:$0x11]   ;;  %v4509_v55 = vshrl.u32 %v11170_v29, 16 }
 0x2f6   : > { %6017 = vmatmul.mubr.bf16.gmra.mrb[216].mxu0 %v4296_v40  ;;  %v11361_v40 = vadd.f32 %v8147_v35, %v8146_v11  ;;  %v4310_v11 = vrot.slane %v9211_v5, 1 }
 0x2f7   : > { %6024 = vmatprep.mubr.bf16.mxu0 %v11317_v41  ;;  %5864 = vmatmul.mubr.bf16.gmra.mrb[156].mxu1 %v11289_v22  ;;  %v4300_v22 = vrot.slane %v11299_v20, 1 }
 0x2f8   : > { %5871 = vmatprep.mubr.bf16.mxu1 %v4211_v26  ;;  %v11364_v26 = vld [vmem:[#allocation2 + $0xc0] sm:$0xff]   ;;  %v4311_v49 = vsel %vm859_vm1, %v4309_v62, %v4310_v11 }
 0x2f9   : > { %v4302_v18 = vsel %vm859_vm1, %v4300_v22, %v4301_v0  ;;  %v4684_v22 = vrot.slane %v9226_v33, 1  ;;  %v4898_v0 = vrot.slane %v4896_v21, 1  ;;  %v11392_v33 = vld [vmem:[#allocation2 + $0x3c] sm:$0xff]  }
 0x2fe   : > { %6025 = vmatmul.mubr.bf16.gmra.mrb[220].mxu0 %v4299_v59 }
 0x2ff   : > { %6032 = vmatprep.mubr.bf16.mxu0 %v11328_v8  ;;  %5872 = vmatmul.mubr.bf16.gmra.mrb[160].mxu1 %v11299_v20  ;;  %v4303_v20 = vrot.slane %v11309_v63, 1 }
 0x300   : > { %5879 = vmatprep.mubr.bf16.mxu1 %v4223_v42  ;;  %v9327_v42 = vld [vmem:[#allocation2 + $0x18] sm:$0xff]  }
 0x301   : > { %v4305_v46 = vsel %vm859_vm1, %v4303_v20, %v4304_v34  ;;  %v4487_v58 = vshll.u32 %v9327_v42, 16  ;;  %v4683_v35 = vrot.slane %v9327_v42, 1  ;;  %v9229_v20 = vld [vmem:[#allocation2 + $0x2c] ss:$0 sps:$4 sm:$0x11]   ;;  %v4901_v34 = vshrl.u32 %v11366_v54, 16 }
 0x302   : > { %v4485_v1 = vshrl.u32 %v9327_v42, 16  ;;  %v4687_v31 = vrot.slane %v9229_v20, 1  ;;  %v4504_v11 = vshll.u32 %v9229_v20, 16  ;;  %v4927_v42 = vshll.u32 %v11392_v33, 16 }
 0x303   : > { %v4489_v5 = vrot.slane %v4487_v58, 1  ;;  %v4685_v43 = vsel %vm859_vm1, %v4683_v35, %v4684_v22  ;;  %v4906_v61 = vor.u32 %v4905_v10, %v4901_v34  ;;  %v4511_v58 = vshll.u32 %v11170_v29, 16  ;;  %v9236_v34 = vld [vmem:[#allocation2 + $0x44] ss:$0 sps:$4 sm:$0x11]  }
 0x304   : > { %v4689_v35 = vrot.slane %v11170_v29, 1  ;;  %v4929_v10 = vrot.slane %v4927_v42, 1  ;;  %v9274_v29 = vld [vmem:[#allocation6 + $0x238] sm:$0xff]  }
 0x306   : > { %6033 = vmatmul.mubr.bf16.gmra.mrb[224].mxu0 %v4302_v18 }
 0x307   : > { %6040 = vmatprep.mubr.bf16.mxu0 %v11338_v7  ;;  %5880 = vmatmul.mubr.bf16.gmra.mrb[164].mxu1 %v11309_v63  ;;  %v4307_v63 = vrot.slane %v9203_v4, 1  ;;  %v4894_v4 = vor.u32 %v4893_v36, %v4889_v32  ;;  %v9233_v32 = vld [vmem:[#allocation2 + $0x38] ss:$0 sps:$4 sm:$0x11]  }
 0x308   : > { %5887 = vmatprep.mubr.bf16.mxu1 %v4235_v2  ;;  %v11380_v2 = vld [vmem:[#allocation2 + $0x30] sm:$0xff]   ;;  %v4690_v22 = vrot.slane %v9233_v32, 1 }
 0x309   : > { %v4308_v57 = vsel %vm859_vm1, %v4306_v3, %v4307_v63  ;;  %v4899_v18 = vsel %vm650_vm0, %v4894_v4, %v4898_v0  ;;  %v4915_v25 = vshll.u32 %v11380_v2, 16  ;;  %v9328_v3 = vld [vmem:[#allocation2 + $0x24] sm:$0xff]   ;;  %v4913_v21 = vshrl.u32 %v11380_v2, 16  ;;  %v9253_v4 = vld [vmem:[#allocation6 + $0x220] sm:$0xff]  }
 0x30a   : > { %v4499_v63 = vshll.u32 %v9328_v3, 16  ;;  %v4686_v24 = vrot.slane %v9328_v3, 1  ;;  %v4497_v62 = vshrl.u32 %v9328_v3, 16  ;;  %v4691_v20 = vsel %vm859_vm1, %v4689_v35, %v4690_v22 }
 0x30b   : > { %v4535_v35 = vshll.u32 %v11231_v13, 16  ;;  %v4695_v22 = vrot.slane %v11231_v13, 1 }
 0x30c   : > { %v4688_v39 = vsel %vm859_vm1, %v4686_v24, %v4687_v31  ;;  %v4692_v24 = vrot.slane %v11188_v52, 1  ;;  %v4693_v31 = vrot.slane %v9236_v34, 1 }
 0x30e   : > { %6041 = vmatmul.mubr.bf16.gmra.mrb[228].mxu0 %v4305_v46  ;;  %v9239_v46 = vld [vmem:[#allocation6 + $0x210] sm:$0xff]  }
 0x30f   : > { %6048 = vmatprep.mubr.bf16.mxu0 %v11347_v47  ;;  %5888 = vmatmul.mubr.bf16.gmra.mrb[168].mxu1 %v11322_v17  ;;  %v4477_v17 = vrot.slane %v4475_v45, 1  ;;  %v4910_v45 = vrot.slane %v4908_v27, 1  ;;  %v4925_v27 = vshrl.u32 %v11392_v33, 16 }
 0x310   : > { %5895 = vmatprep.mubr.bf16.mxu1 %v4247_v38  ;;  %v4490_v38 = vor.u32 %v4489_v5, %v4485_v1  ;;  %v4513_v5 = vrot.slane %v4511_v58, 1 }
 0x311   : > { %v4478_v59 = vor.u32 %v4477_v17, %v4473_v30  ;;  %v4917_v17 = vrot.slane %v4915_v25, 1  ;;  %v4920_v30 = vshll.u32 %v11387_v50, 16 }
 0x312   : > { %v4495_v36 = vsel %vm650_vm0, %v4490_v38, %v4494_v19  ;;  %v4930_v38 = vor.u32 %v4929_v10, %v4925_v27  ;;  %v4514_v25 = vor.u32 %v4513_v5, %v4509_v55  ;;  %v4537_v5 = vrot.slane %v4535_v35, 1  ;;  %v9243_v27 = vld [vmem:[#allocation2 + $0x5c] ss:$0 sps:$4 sm:$0x11]  }
 0x313   : > { %v4922_v0 = vrot.slane %v4920_v30, 1  ;;  %v4559_v35 = vshll.u32 %v11273_v12, 16 }
 0x316   : > { %6049 = vmatmul.mubr.bf16.gmra.mrb[232].mxu0 %v4308_v57  ;;  %v4911_v57 = vsel %vm650_vm0, %v4906_v61, %v4910_v45  ;;  %v9267_v61 = vld [vmem:[#allocation6 + $0x230] sm:$0xff]  }
 0x317   : > { %6056 = vmatprep.mubr.bf16.mxu0 %v11364_v26  ;;  %5896 = vmatmul.mubr.bf16.gmra.mrb[172].mxu1 %v11333_v44  ;;  %v4483_v44 = vsel %vm650_vm0, %v4478_v59, %v4482_v48  ;;  %v4918_v59 = vor.u32 %v4917_v17, %v4913_v21  ;;  %v4506_v48 = vrot.slane %v4504_v11, 1  ;;  %v9240_v21 = vld [vmem:[#allocation2 + $0x50] ss:$0 sps:$4 sm:$0x11]   ;;  %v4521_v11 = vshrl.u32 %v11188_v52, 16 }
 0x318   : > { %6097 = vmatprep.mubr.bf16.mxu1 %v4682_v51  ;;  %v4501_v51 = vrot.slane %v4499_v63, 1  ;;  %v4523_v63 = vshll.u32 %v11188_v52, 16  ;;  %v11433_v52 = vld [vmem:[#allocation2 + $0x5c] ss:$0 sps:$4 sm:$0x11]  }
 0x319   : > { %v4956_v55 = vshll.u32 %v11433_v52, 16 }
 0x31a   : > { %v4502_v56 = vor.u32 %v4501_v51, %v4497_v62  ;;  %v4525_v51 = vrot.slane %v4523_v63, 1  ;;  %v4547_v63 = vshll.u32 %v11263_v6, 16 }
 0x31c   : > { %v4526_v42 = vor.u32 %v4525_v51, %v4521_v11  ;;  %v11453_v51 = vld [vmem:[#allocation2 + $0x6c] sm:$0xff]   ;;  %v4545_v11 = vshrl.u32 %v11263_v6, 16 }
 0x31e   : > { %6057 = vmatmul.mubr.bf16.gmra.mrb[236].mxu0 %v4311_v49  ;;  %v11400_v49 = vld [vmem:[#allocation2 + $0x44] ss:$0 sps:$4 sm:$0x11]  }
 0x31f   : > { %6258 = vmatprep.mubr.bf16.mxu0 %v4899_v18  ;;  %6098 = vmatmul.mubr.bf16.vlgmr.msra.gmra.mrb[176].mxu1 %v4483_v44  ;;  %v4923_v18 = vsel %vm650_vm0, %v4918_v59, %v4922_v0  ;;  %v4507_v44 = vsel %vm650_vm0, %v4502_v56, %v4506_v48  ;;  %v4932_v1 = vshll.u32 %v11400_v49, 16  ;;  %v11428_v59 = vld [vmem:[%s12038_s6] sm:$0xff]   ;;  %v4696_v0 = vrot.slane %v9240_v21, 1 }
 0x320   : > { %6105 = vmatprep.mubr.bf16.mxu1 %v4685_v43  ;;  %8672 = vmatpush3.bf16.msra.mxu1 %v11220_v14  ;;  %v9246_v14 = vld [vmem:[#allocation6 + $0x218] sm:$0xff]   ;;  %v11405_v43 = vld [vmem:[#allocation2 + $0x48] sm:$0xff]  }
 0x321   : > { %8673 = vmatprep.subr.bf16.mxu1 %v9232_v28  ;;  %v4939_v3 = vshll.u32 %v11405_v43, 16  ;;  %v4934_v45 = vrot.slane %v4932_v1, 1  ;;  %v4937_v30 = vshrl.u32 %v11405_v43, 16 }
 0x323   : > { %v4941_v17 = vrot.slane %v4939_v3, 1 }
 0x324   : > { %8674 = vmatpush3.bf16.msra.mxu1 %v9232_v28  ;;  %v9260_v28 = vld [vmem:[#allocation6 + $0x228] sm:$0xff]  }
 0x325   : > { %8675 = vmatprep.subr.bf16.mxu1 %v9239_v46  ;;  %v4942_v56 = vor.u32 %v4941_v17, %v4937_v30  ;;  %v4549_v17 = vrot.slane %v4547_v63, 1 }
 0x326   : > { %6259 = vmatmul.mubr.bf16.vlgmr.msra.gmra.mrb[240].mxu0 %v11349_v15 }
 0x327   : > { %6266 = vmatprep.mubr.bf16.mxu0 %v4911_v57  ;;  %6106 = vmatmul.mubr.bf16.gmra.mrb[180].mxu1 %v4495_v36  ;;  %v4935_v57 = vsel %vm650_vm0, %v4930_v38, %v4934_v45  ;;  %v4958_v45 = vrot.slane %v4956_v55, 1  ;;  %v4973_v55 = vshrl.u32 %v11453_v51, 16 }
 0x328   : > { %6113 = vmatprep.mubr.bf16.mxu1 %v4688_v39  ;;  %8676 = vmatpush3.bf16.msra.mxu1 %v9239_v46  ;;  %v4516_v46 = vshll.u32 %v9233_v32, 16  ;;  %v11419_v39 = vld [vmem:[#allocation2 + $0x54] sm:$0xff]   ;;  %v4694_v32 = vsel %vm859_vm1, %v4692_v24, %v4693_v31  ;;  %v4698_v24 = vrot.slane %v11263_v6, 1  ;;  %v4699_v31 = vrot.slane %v9243_v27, 1 }
 0x329   : > { %8677 = vmatprep.subr.bf16.mxu1 %v9246_v14  ;;  %v4951_v58 = vshll.u32 %v11419_v39, 16  ;;  %v4949_v1 = vshrl.u32 %v11419_v39, 16 }
 0x32a   : > { %v4518_v19 = vrot.slane %v4516_v46, 1  ;;  %v4533_v46 = vshrl.u32 %v11231_v13, 16 }
 0x32b   : > { %v4953_v10 = vrot.slane %v4951_v58, 1  ;;  %v4975_v58 = vshll.u32 %v11453_v51, 16 }
 0x32c   : > { %8678 = vmatpush3.bf16.msra.mxu1 %v9246_v14  ;;  %v11414_v14 = vld [vmem:[#allocation2 + $0x50] ss:$0 sps:$4 sm:$0x11]   ;;  %v4519_v36 = vsel %vm650_vm0, %v4514_v25, %v4518_v19  ;;  %v4538_v25 = vor.u32 %v4537_v5, %v4533_v46 }
 0x32d   : > { %8679 = vmatprep.subr.bf16.mxu1 %v9253_v4  ;;  %v4944_v62 = vshll.u32 %v11414_v14, 16  ;;  %v4954_v38 = vor.u32 %v4953_v10, %v4949_v1  ;;  %v4977_v5 = vrot.slane %v4975_v58, 1  ;;  %v9250_v1 = vld [vmem:[#allocation2 + $0x74] ss:$0 sps:$4 sm:$0x11]  }
 0x32e   : > { %6267 = vmatmul.mubr.bf16.gmra.mrb[244].mxu0 %v11366_v54  ;;  %v11490_v58 = vld [vmem:[%s12037_s5] ss:$0 sm:$0xff] }
 0x32f   : > { %6274 = vmatprep.mubr.bf16.mxu0 %v4923_v18  ;;  %6114 = vmatmul.mubr.bf16.gmra.mrb[184].mxu1 %v4507_v44  ;;  %v4946_v48 = vrot.slane %v4944_v62, 1  ;;  %v4978_v63 = vor.u32 %v4977_v5, %v4973_v55 }
 0x330   : > { %6121 = vmatprep.mubr.bf16.mxu1 %v4691_v20  ;;  %8680 = vmatpush3.bf16.msra.mxu1 %v9253_v4  ;;  %v4528_v4 = vshll.u32 %v9236_v34, 16  ;;  %v11439_v20 = vld [vmem:[#allocation2 + $0x60] sm:$0xff]   ;;  %v4697_v34 = vsel %vm859_vm1, %v4695_v22, %v4696_v0  ;;  %v4701_v22 = vrot.slane %v11273_v12, 1 }
 0x331   : > { %8681 = vmatprep.subr.bf16.mxu1 %v9260_v28  ;;  %v4947_v18 = vsel %vm650_vm0, %v4942_v56, %v4946_v48  ;;  %v4963_v3 = vshll.u32 %v11439_v20, 16  ;;  %v4961_v30 = vshrl.u32 %v11439_v20, 16 }
 0x334   : > { %8682 = vmatpush3.bf16.msra.mxu1 %v9260_v28  ;;  %v4530_v28 = vrot.slane %v4528_v4, 1  ;;  %v4552_v4 = vshll.u32 %v9243_v27, 16 }
 0x335   : > { %8683 = vmatprep.subr.bf16.mxu1 %v9267_v61 }
 0x336   : > { %6275 = vmatmul.mubr.bf16.gmra.mrb[248].mxu0 %v11380_v2  ;;  %v4531_v44 = vsel %vm650_vm0, %v4526_v42, %v4530_v28  ;;  %v4550_v42 = vor.u32 %v4549_v17, %v4545_v11  ;;  %v4554_v28 = vrot.slane %v4552_v4, 1 }
 0x337   : > { %6282 = vmatprep.mubr.bf16.mxu0 %v4935_v57  ;;  %6122 = vmatmul.mubr.bf16.gmra.mrb[188].mxu1 %v4519_v36  ;;  %v4959_v57 = vsel %vm650_vm0, %v4954_v38, %v4958_v45  ;;  %v4965_v36 = vrot.slane %v4963_v3, 1  ;;  %v4571_v3 = vshll.u32 %v11284_v60, 16  ;;  %v4705_v45 = vrot.slane %v9250_v1, 1 }
 0x338   : > { %6129 = vmatprep.mubr.bf16.mxu1 %v4694_v32  ;;  %8684 = vmatpush3.bf16.msra.mxu1 %v9267_v61  ;;  %v4540_v61 = vshll.u32 %v9240_v21, 16  ;;  %v4700_v32 = vsel %vm859_vm1, %v4698_v24, %v4699_v31  ;;  %v9247_v21 = vld [vmem:[#allocation2 + $0x68] ss:$0 sps:$4 sm:$0x11]   ;;  %v4555_v10 = vsel %vm650_vm0, %v4550_v42, %v4554_v28  ;;  %v4704_v31 = vrot.slane %v11284_v60, 1 }
 0x339   : > { %8685 = vmatprep.subr.bf16.mxu1 %v9274_v29  ;;  %v4966_v56 = vor.u32 %v4965_v36, %v4961_v30  ;;  %v4702_v0 = vrot.slane %v9247_v21, 1  ;;  %v4564_v38 = vshll.u32 %v9247_v21, 16  ;;  %v4573_v17 = vrot.slane %v4571_v3, 1 }
 0x33a   : > { %v4542_v19 = vrot.slane %v4540_v61, 1  ;;  %v4557_v61 = vshrl.u32 %v11273_v12, 16  ;;  %v4706_v11 = vsel %vm859_vm1, %v4704_v31, %v4705_v45  ;;  %v4576_v42 = vshll.u32 %v9250_v1, 16  ;;  %v11497_v1 = vld [vmem:[#allocation2 + $0x8c] ss:$0 sps:$4 sm:$0x11]  }
 0x33b   : > { %v4703_v27 = vsel %vm859_vm1, %v4701_v22, %v4702_v0  ;;  %v5778_v28 = vadd.f32 %v11356_v23, %v11490_v58 }
 0x33c   : > { %8686 = vmatpush3.bf16.msra.mxu1 %v9274_v29  ;;  %v11448_v29 = vld [vmem:[#allocation2 + $0x68] ss:$0 sps:$4 sm:$0x11]   ;;  %v4543_v13 = vsel %vm650_vm0, %v4538_v25, %v4542_v19  ;;  %v11476_v19 = vld [vmem:[#allocation2 + $0x80] ss:$0 sps:$4 sm:$0x11]  }
 0x33d   : > { %8719 = vmatprep.subr.bf16.mxu1 %v11428_v59  ;;  %v4968_v62 = vshll.u32 %v11448_v29, 16  ;;  %v4992_v4 = vshll.u32 %v11476_v19, 16  ;;  %v4578_v5 = vrot.slane %v4576_v42, 1  ;;  %v4710_v42 = vrot.slane %v11304_v16, 1 }
 0x33e   : > { %6283 = vmatmul.mubr.bf16.gmra.mrb[252].mxu0 %v11392_v33 }
 0x33f   : > { %6290 = vmatprep.mubr.bf16.mxu0 %v4947_v18  ;;  %6130 = vmatmul.mubr.bf16.gmra.mrb[192].mxu1 %v4531_v44  ;;  %v4970_v48 = vrot.slane %v4968_v62, 1  ;;  %v11462_v18 = vld [vmem:[#allocation2 + $0x74] ss:$0 sps:$4 sm:$0x11]   ;;  %v11464_v44 = vld [vmem:[#allocation2 + $0x78] sm:$0xff]  }
 0x340   : > { %6137 = vmatprep.mubr.bf16.mxu1 %v4697_v34  ;;  %v4561_v34 = vrot.slane %v4559_v35, 1  ;;  %v4980_v46 = vshll.u32 %v11462_v18, 16  ;;  %v4987_v25 = vshll.u32 %v11464_v44, 16  ;;  %v4985_v30 = vshrl.u32 %v11464_v44, 16 }
 0x341   : > { %v4971_v6 = vsel %vm650_vm0, %v4966_v56, %v4970_v48  ;;  %v9254_v62 = vld [vmem:[#allocation2 + $0x80] ss:$0 sps:$4 sm:$0x11]   ;;  %v4569_v56 = vshrl.u32 %v11284_v60, 16  ;;  %v4583_v48 = vshll.u32 %v11295_v53, 16  ;;  %v4707_v60 = vrot.slane %v11295_v53, 1 }
 0x342   : > { %v4562_v24 = vor.u32 %v4561_v34, %v4557_v61  ;;  %v4989_v36 = vrot.slane %v4987_v25, 1  ;;  %v4708_v34 = vrot.slane %v9254_v62, 1 }
 0x343   : > { %v4574_v22 = vor.u32 %v4573_v17, %v4569_v56  ;;  %v4585_v23 = vrot.slane %v4583_v48, 1  ;;  %v5004_v17 = vshll.u32 %v11497_v1, 16  ;;  %v4595_v56 = vshll.u32 %v11304_v16, 16  ;;  %v11517_v48 = vld [vmem:[#allocation2 + $0x98] ss:$0 sps:$4 sm:$0x11]  }
 0x344   : > { %v4990_v35 = vor.u32 %v4989_v36, %v4985_v30  ;;  %v9257_v36 = vld [vmem:[#allocation2 + $0x8c] ss:$0 sps:$4 sm:$0x11]  }
 0x346   : > { %6291 = vmatmul.mubr.bf16.gmra.mrb[0].mxu0 %v11405_v43 }
 0x347   : > { %6298 = vmatprep.mubr.bf16.mxu0 %v4959_v57  ;;  %6138 = vmatmul.mubr.bf16.gmra.mrb[196].mxu1 %v4543_v13  ;;  %v4982_v57 = vrot.slane %v4980_v46, 1  ;;  %v4566_v13 = vrot.slane %v4564_v38, 1  ;;  %v4579_v38 = vsel %vm650_vm0, %v4574_v22, %v4578_v5  ;;  %v5006_v22 = vrot.slane %v5004_v17, 1 }
 0x348   : > { %6145 = vmatprep.mubr.bf16.mxu1 %v4700_v32  ;;  %v11478_v32 = vld [vmem:[#allocation2 + $0x84] sm:$0xff]  }
 0x349   : > { %v4983_v12 = vsel %vm650_vm0, %v4978_v63, %v4982_v57  ;;  %v4567_v21 = vsel %vm650_vm0, %v4562_v24, %v4566_v13  ;;  %v4999_v0 = vshll.u32 %v11478_v32, 16  ;;  %v11502_v63 = vld [vmem:[#allocation2 + $0x90] sm:$0xff]   ;;  %v5781_v24 = vadd.f32 %v11361_v40, %v11490_v58 }
 0x34a   : > { %v4709_v57 = vsel %vm859_vm1, %v4707_v60, %v4708_v34  ;;  %v4997_v13 = vshrl.u32 %v11478_v32, 16  ;;  %v9261_v60 = vld [vmem:[#allocation2 + $0x98] ss:$0 sps:$4 sm:$0x11]   ;;  %v5009_v34 = vshrl.u32 %v11502_v63, 16 }
 0x34b   : > { %v5001_v25 = vrot.slane %v4999_v0, 1 }
 0x34e   : > { %6299 = vmatmul.mubr.bf16.gmra.mrb[4].mxu0 %v11419_v39 }
 0x34f   : > { %6306 = vmatprep.mubr.bf16.mxu0 %v4971_v6  ;;  %6146 = vmatmul.mubr.bf16.gmra.mrb[200].mxu1 %v4555_v10  ;;  %v4994_v10 = vrot.slane %v4992_v4, 1  ;;  %v5011_v4 = vshll.u32 %v11502_v63, 16 }
 0x350   : > { %6153 = vmatprep.mubr.bf16.mxu1 %v4703_v27 }
 0x351   : > { %v4995_v61 = vsel %vm650_vm0, %v4990_v35, %v4994_v10  ;;  %v4711_v35 = vrot.slane %v9257_v36, 1  ;;  %v11522_v10 = vld [vmem:[#allocation2 + $0x9c] sm:$0xff]  }
 0x353   : > { %v4712_v5 = vsel %vm859_vm1, %v4710_v42, %v4711_v35  ;;  %v4605_v42 = vshrl.u32 %v11317_v41, 16  ;;  %v4612_v35 = vshll.u32 %v9261_v60, 16 }
 0x356   : > { %6307 = vmatmul.mubr.bf16.gmra.mrb[8].mxu0 %v11439_v20 }
 0x357   : > { %6314 = vmatprep.mubr.bf16.mxu0 %v4983_v12  ;;  %6154 = vmatmul.mubr.bf16.gmra.mrb[204].mxu1 %v4567_v21  ;;  %v4581_v12 = vshrl.u32 %v11295_v53, 16  ;;  %v4588_v21 = vshll.u32 %v9254_v62, 16 }
 0x358   : > { %6161 = vmatprep.mubr.bf16.mxu1 %v4706_v11  ;;  %v8255_v6 = vpop.f32.mrb[176].mxu0  ;;  %v5002_v11 = vor.u32 %v5001_v25, %v4997_v13  ;;  %v5023_v25 = vshll.u32 %v11522_v10, 16  ;;  %v11531_v13 = vld [vmem:[#allocation2 + $0xa4] ss:$0 sps:$4 sm:$0x11]  }
 0x359   : > { %v8256_v27 = vpop.f32.mrb[177].mxu0  ;;  %v4586_v40 = vor.u32 %v4585_v23, %v4581_v12  ;;  %v4590_v0 = vrot.slane %v4588_v21, 1  ;;  %v4713_v23 = vrot.slane %v11317_v41, 1  ;;  %v11536_v21 = vld [vmem:[#allocation2 + $0xa8] sm:$0xff]  }
 0x35a   : > { %v8257_v55 = vadd.f32 %v8256_v27, %v8255_v6  ;;  %v8258_v46 = vpop.f32.mrb[178].mxu0  ;;  %v5007_v53 = vsel %vm650_vm0, %v5002_v11, %v5006_v22  ;;  %v4597_v6 = vrot.slane %v4595_v56, 1  ;;  %v5016_v27 = vshll.u32 %v11517_v48, 16 }
 0x35b   : > { %v8259_v3 = vpop.f32.mrb[179].mxu0  ;;  %v4591_v62 = vsel %vm650_vm0, %v4586_v40, %v4590_v0  ;;  %v9264_v40 = vld [vmem:[#allocation2 + $0xa4] ss:$0 sps:$4 sm:$0x11]   ;;  %v5028_v56 = vshll.u32 %v11531_v13, 16 }
 0x35c   : > { %v11506_v31 = vadd.f32 %v8257_v55, %v5778_v28  ;;  %v8260_v45 = vadd.f32 %v8259_v3, %v8258_v46  ;;  %v5013_v28 = vrot.slane %v5011_v4, 1  ;;  %v4593_v55 = vshrl.u32 %v11304_v16, 16 }
 0x35d   : > { %v4600_v46 = vshll.u32 %v9257_v36, 16  ;;  %v4607_v3 = vshll.u32 %v11317_v41, 16  ;;  %v5025_v36 = vrot.slane %v5023_v25, 1  ;;  %v5021_v4 = vshrl.u32 %v11522_v10, 16 }
 0x35e   : > { %6315 = vmatmul.mubr.bf16.gmra.mrb[12].mxu0 %v11453_v51  ;;  %12141 = vst [vmem:[#allocation17_spill] sm:$0xff] %v11506_v31  ;;  %v11512_v30 = vadd.f32 %v8260_v45, %v5781_v24  ;;  %v4714_v24 = vrot.slane %v9261_v60, 1  ;;  %v5018_v45 = vrot.slane %v5016_v27, 1  ;;  %v11545_v27 = vld [vmem:[#allocation2 + $0xb0] ss:$0 sps:$4 sm:$0x11]  }
 0x35f   : > { %6322 = vmatprep.mubr.bf16.mxu0 %v4995_v61  ;;  %6162 = vmatmul.mubr.bf16.gmra.mrb[208].mxu1 %v4579_v38  ;;  %v5014_v61 = vor.u32 %v5013_v28, %v5009_v34  ;;  %v4598_v38 = vor.u32 %v4597_v6, %v4593_v55  ;;  %v4609_v12 = vrot.slane %v4607_v3, 1  ;;  %v5026_v22 = vor.u32 %v5025_v36, %v5021_v4 }
 0x360   : > { %6169 = vmatprep.mubr.bf16.mxu1 %v4709_v57  ;;  %12142 = vst [vmem:[#allocation18_spill] sm:$0xff] %v11512_v30  ;;  %v4602_v57 = vrot.slane %v4600_v46, 1  ;;  %v4715_v11 = vsel %vm859_vm1, %v4713_v23, %v4714_v24  ;;  %v4716_v28 = vrot.slane %v11328_v8, 1  ;;  %v4717_v6 = vrot.slane %v9264_v40, 1  ;;  %v11547_v46 = vld [vmem:[#allocation2 + $0xb4] sm:$0xff]  }
 0x361   : > { %v5019_v17 = vsel %vm650_vm0, %v5014_v61, %v5018_v45  ;;  %v4610_v0 = vor.u32 %v4609_v12, %v4605_v42  ;;  %v4614_v34 = vrot.slane %v4612_v35, 1  ;;  %v4624_v4 = vshll.u32 %v9264_v40, 16 }
 0x362   : > { %v4603_v16 = vsel %vm650_vm0, %v4598_v38, %v4602_v57  ;;  %v4718_v3 = vsel %vm859_vm1, %v4716_v28, %v4717_v6  ;;  %v9268_v57 = vld [vmem:[#allocation2 + $0xb0] ss:$0 sps:$4 sm:$0x11]   ;;  %v4719_v6 = vrot.slane %v11338_v7, 1 }
 0x363   : > { %v4615_v60 = vsel %vm650_vm0, %v4610_v0, %v4614_v34  ;;  %v5047_v0 = vshll.u32 %v11547_v46, 16  ;;  %v4720_v40 = vrot.slane %v9268_v57, 1 }
 0x366   : > { %6323 = vmatmul.mubr.bf16.gmra.mrb[16].mxu0 %v11464_v44 }
 0x367   : > { %6330 = vmatprep.mubr.bf16.mxu0 %v5007_v53  ;;  %6170 = vmatmul.mubr.bf16.gmra.mrb[212].mxu1 %v4591_v62  ;;  %v5035_v53 = vshll.u32 %v11536_v21, 16  ;;  %v4619_v62 = vshll.u32 %v11328_v8, 16 }
 0x368   : > { %6177 = vmatprep.mubr.bf16.mxu1 %v4712_v5  ;;  %v5030_v5 = vrot.slane %v5028_v56, 1 }
 0x369   : > { %v5037_v61 = vrot.slane %v5035_v53, 1  ;;  %v4621_v25 = vrot.slane %v4619_v62, 1 }
 0x36a   : > { %v5031_v41 = vsel %vm650_vm0, %v5026_v22, %v5030_v5  ;;  %v4631_v5 = vshll.u32 %v11338_v7, 16 }
 0x36e   : > { %6331 = vmatmul.mubr.bf16.gmra.mrb[20].mxu0 %v11478_v32 }
 0x36f   : > { %6338 = vmatprep.mubr.bf16.mxu0 %v5019_v17  ;;  %6178 = vmatmul.mubr.bf16.gmra.mrb[216].mxu1 %v4603_v16  ;;  %v5033_v17 = vshrl.u32 %v11536_v21, 16  ;;  %v5040_v16 = vshll.u32 %v11545_v27, 16 }
 0x370   : > { %6185 = vmatprep.mubr.bf16.mxu1 %v4715_v11  ;;  %v4617_v11 = vshrl.u32 %v11328_v8, 16 }
 0x371   : > { %v5038_v53 = vor.u32 %v5037_v61, %v5033_v17  ;;  %v4633_v17 = vrot.slane %v4631_v5, 1 }
 0x372   : > { %v4622_v28 = vor.u32 %v4621_v25, %v4617_v11  ;;  %v5045_v11 = vshrl.u32 %v11547_v46, 16 }
 0x375   : > { %v8149_v55 = vpop.f32.mrb[116].mxu1 }
 0x376   : > { %6339 = vmatmul.mubr.bf16.gmra.mrb[24].mxu0 %v11502_v63  ;;  %v8150_v38 = vpop.f32.mrb[117].mxu1 }
 0x377   : > { %6346 = vmatprep.mubr.bf16.mxu0 %v5031_v41  ;;  %6186 = vmatmul.mubr.bf16.gmra.mrb[220].mxu1 %v4615_v60  ;;  %v8151_v23 = vadd.f32 %v8150_v38, %v8149_v55  ;;  %v8261_v24 = vpop.f32.mrb[180].mxu0  ;;  %v8152_v45 = vpop.f32.mrb[118].mxu1  ;;  %v11563_v41 = vld [vmem:[#allocation2 + $0xbc] ss:$0 sps:$4 sm:$0x11]   ;;  %v5042_v60 = vrot.slane %v5040_v16, 1  ;;  %v4721_v16 = vsel %vm859_vm1, %v4719_v6, %v4720_v40 }
 0x378   : > { %6193 = vmatprep.mubr.bf16.mxu1 %v4718_v3  ;;  %v8262_v36 = vpop.f32.mrb[181].mxu0  ;;  %v8153_v12 = vpop.f32.mrb[119].mxu1  ;;  %v4626_v38 = vrot.slane %v4624_v4, 1  ;;  %v5052_v4 = vshll.u32 %v11563_v41, 16  ;;  %v4643_v6 = vshll.u32 %v11347_v47, 16 }
 0x379   : > { %v5786_v56 = vadd.f32 %v8151_v23, %v11490_v58  ;;  %v8263_v42 = vadd.f32 %v8262_v36, %v8261_v24  ;;  %v8154_v35 = vadd.f32 %v8153_v12, %v8152_v45  ;;  %v8264_v22 = vpop.f32.mrb[182].mxu0  ;;  %v5049_v23 = vrot.slane %v5047_v0, 1  ;;  %v9271_v36 = vld [vmem:[#allocation2 + $0xbc] ss:$0 sps:$4 sm:$0x11]   ;;  %v11570_v12 = vld [vmem:[#allocation2 + $0xc0] sm:$0xff]  }
 0x37a   : > { %v8265_v62 = vpop.f32.mrb[183].mxu0  ;;  %v5043_v25 = vsel %vm650_vm0, %v5038_v53, %v5042_v60  ;;  %v4627_v24 = vsel %vm650_vm0, %v4622_v28, %v4626_v38  ;;  %v4636_v0 = vshll.u32 %v9268_v57, 16  ;;  %v4722_v28 = vrot.slane %v11347_v47, 1  ;;  %v11579_v60 = vld [vmem:[#allocation2 + $0xc8] ss:$0 sps:$4 sm:$0x11]  }
 0x37b   : > { %v11560_v34 = vadd.f32 %v8263_v42, %v5786_v56  ;;  %v5789_v55 = vadd.f32 %v8154_v35, %v11490_v58  ;;  %v8266_v8 = vadd.f32 %v8265_v62, %v8264_v22  ;;  %v4629_v22 = vshrl.u32 %v11338_v7, 16 }
 0x37c   : > { %v5050_v53 = vor.u32 %v5049_v23, %v5045_v11  ;;  %v5054_v40 = vrot.slane %v5052_v4, 1  ;;  %v4638_v38 = vrot.slane %v4636_v0, 1 }
 0x37d   : > { %12143 = vst [vmem:[#allocation24_spill] sm:$0xff] %v11560_v34  ;;  %v11565_v3 = vadd.f32 %v8266_v8, %v5789_v55  ;;  %v8155_v61 = vpop.f32.mrb[120].mxu1  ;;  %v4634_v5 = vor.u32 %v4633_v17, %v4629_v22  ;;  %v4723_v55 = vrot.slane %v9271_v36, 1  ;;  %v5059_v8 = vshll.u32 %v11570_v12, 16 }
 0x37e   : > { %6347 = vmatmul.mubr.bf16.gmra.mrb[28].mxu0 %v11522_v10  ;;  %v8156_v45 = vpop.f32.mrb[121].mxu1 }
 0x37f   : > { %12144 = vst [vmem:[#allocation19_spill] sm:$0xff] %v11565_v3  ;;  %6354 = vmatprep.mubr.bf16.mxu0 %v5043_v25  ;;  %6194 = vmatmul.mubr.bf16.gmra.mrb[224].mxu1 %v4627_v24  ;;  %v8157_v56 = vadd.f32 %v8156_v45, %v8155_v61  ;;  %v8158_v42 = vpop.f32.mrb[122].mxu1  ;;  %v11581_v61 = vld [vmem:[#allocation2 + $0xcc] sm:$0xff]   ;;  %v5055_v25 = vsel %vm650_vm0, %v5050_v53, %v5054_v40  ;;  %v11585_v24 = vld [vmem:[#allocation2 + $0xc8] ss:$0 sps:$4 sm:$0x11]  }
 0x380   : > { %6201 = vmatprep.mubr.bf16.mxu1 %v4721_v16  ;;  %v8159_v35 = vpop.f32.mrb[123].mxu1  ;;  %v4639_v17 = vsel %vm650_vm0, %v4634_v5, %v4638_v38  ;;  %v4724_v16 = vsel %vm859_vm1, %v4722_v28, %v4723_v55  ;;  %v5061_v11 = vrot.slane %v5059_v8, 1  ;;  %v11592_v3 = vld [vmem:[#allocation2 + $0xd4] ss:$0 sps:$4 sm:$0x11]   ;;  %v5057_v5 = vshrl.u32 %v11570_v12, 16 }
 0x381   : > { %v8160_v62 = vadd.f32 %v8159_v35, %v8158_v42  ;;  %v5794_v7 = vadd.f32 %v8157_v56, %v11490_v58  ;;  %v4645_v42 = vrot.slane %v4643_v6, 1  ;;  %v5064_v56 = vshll.u32 %v11579_v60, 16 }
 0x382   : > { %v4641_v55 = vshrl.u32 %v11347_v47, 16  ;;  %v4648_v8 = vshll.u32 %v9271_v36, 16  ;;  %v5071_v6 = vshll.u32 %v11581_v61, 16  ;;  %v4726_v30 = vrot.slane %v11585_v24, 1 }
 0x383   : > { %v5797_v22 = vadd.f32 %v8160_v62, %v11490_v58  ;;  %v5069_v47 = vshrl.u32 %v11581_v61, 16 }
 0x384   : > { %v8267_v57 = vpop.f32.mrb[184].mxu0  ;;  %v4650_v31 = vrot.slane %v4648_v8, 1  ;;  %v5073_v36 = vrot.slane %v5071_v6, 1  ;;  %v4653_v6 = vshrl.u32 %v11364_v26, 16 }
 0x385   : > { %v8161_v23 = vpop.f32.mrb[124].mxu1  ;;  %v8268_v45 = vpop.f32.mrb[185].mxu0 }
 0x386   : > { %6355 = vmatmul.mubr.bf16.gmra.mrb[32].mxu0 %v11536_v21  ;;  %v8162_v4 = vpop.f32.mrb[125].mxu1  ;;  %v8269_v35 = vadd.f32 %v8268_v45, %v8267_v57  ;;  %v8270_v0 = vpop.f32.mrb[186].mxu0  ;;  %v5062_v57 = vor.u32 %v5061_v11, %v5057_v5  ;;  %v4646_v45 = vor.u32 %v4645_v42, %v4641_v55 }
 0x387   : > { %6362 = vmatprep.mubr.bf16.mxu0 %v5055_v25  ;;  %6202 = vmatmul.mubr.bf16.gmra.mrb[228].mxu1 %v4639_v17  ;;  %v8163_v53 = vadd.f32 %v8162_v4, %v8161_v23  ;;  %v8164_v40 = vpop.f32.mrb[126].mxu1  ;;  %v8271_v34 = vpop.f32.mrb[187].mxu0  ;;  %v4655_v23 = vshll.u32 %v11364_v26, 16  ;;  %v5066_v4 = vrot.slane %v5064_v56, 1 }
 0x388   : > { %6209 = vmatprep.mubr.bf16.mxu1 %v4724_v16  ;;  %v8165_v28 = vpop.f32.mrb[127].mxu1  ;;  %v11597_v38 = vadd.f32 %v8269_v35, %v5794_v7  ;;  %v8272_v62 = vadd.f32 %v8271_v34, %v8270_v0  ;;  %v4725_v16 = vrot.slane %v11364_v26, 1  ;;  %v5076_v7 = vshll.u32 %v11592_v3, 16 }
 0x389   : > { %v8166_v25 = vadd.f32 %v8165_v28, %v8164_v40  ;;  %v5802_v34 = vadd.f32 %v8163_v53, %v11490_v58  ;;  %v5067_v11 = vsel %vm650_vm0, %v5062_v57, %v5066_v4  ;;  %v4657_v0 = vrot.slane %v4655_v23, 1 }
 0x38a   : > { %v11600_v17 = vadd.f32 %v8272_v62, %v5797_v22  ;;  %v4651_v22 = vsel %vm650_vm0, %v4646_v45, %v4650_v31  ;;  %v4727_v28 = vsel %vm859_vm1, %v4725_v16, %v4726_v30  ;;  %v4660_v62 = vshll.u32 %v11585_v24, 16 }
 0x38b   : > { %v5805_v40 = vadd.f32 %v8166_v25, %v11490_v58  ;;  %v5074_v57 = vor.u32 %v5073_v36, %v5069_v47  ;;  %v5078_v4 = vrot.slane %v5076_v7, 1  ;;  %v5096_v16 = vrot.slane %v11349_v15, 1 }
 0x38c   : > { %v8273_v35 = vpop.f32.mrb[188].mxu0  ;;  %v5099_v15 = vrot.slane %v11366_v54, 1  ;;  %v9279_v54 = vld [vmem:[%s12038_s6 + $0x8] sm:$0xff]  }
 0x38d   : > { %v8274_v42 = vpop.f32.mrb[189].mxu0  ;;  %v8167_v55 = vpop.f32.mrb[128].mxu1  ;;  %v5079_v26 = vsel %vm650_vm0, %v5074_v57, %v5078_v4 }
 0x38e   : > { %6363 = vmatmul.mubr.bf16.gmra.mrb[36].mxu0 %v11547_v46  ;;  %v8275_v56 = vadd.f32 %v8274_v42, %v8273_v35  ;;  %v8276_v5 = vpop.f32.mrb[190].mxu0  ;;  %v8168_v53 = vpop.f32.mrb[129].mxu1 }
 0x38f   : > { %6370 = vmatprep.mubr.bf16.mxu0 %v5067_v11  ;;  %6210 = vmatmul.mubr.bf16.gmra.mrb[232].mxu1 %v4651_v22  ;;  %v8277_v8 = vpop.f32.mrb[191].mxu0  ;;  %v8169_v23 = vadd.f32 %v8168_v53, %v8167_v55  ;;  %v8170_v35 = vpop.f32.mrb[130].mxu1  ;;  %v4658_v11 = vor.u32 %v4657_v0, %v4653_v6  ;;  %v5097_v22 = vrot.slane %v11359_v37, 1  ;;  %v5100_v37 = vrot.slane %v11375_v9, 1 }
 0x390   : > { %6217 = vmatprep.mubr.bf16.mxu1 %v4727_v28  ;;  %v11614_v31 = vadd.f32 %v8275_v56, %v5802_v34  ;;  %v8278_v45 = vadd.f32 %v8277_v8, %v8276_v5  ;;  %v8171_v25 = vpop.f32.mrb[131].mxu1  ;;  %v4662_v28 = vrot.slane %v4660_v62, 1  ;;  %v5102_v8 = vrot.slane %v11380_v2, 1 }
 0x391   : > { %v8172_v30 = vadd.f32 %v8171_v25, %v8170_v35  ;;  %v5098_v47 = vsel %vm859_vm1, %v5096_v16, %v5097_v22  ;;  %v5810_v36 = vadd.f32 %v8169_v23, %v11490_v58  ;;  %v5103_v53 = vrot.slane %v11387_v50, 1 }
 0x392   : > { %v11616_v42 = vadd.f32 %v8278_v45, %v5805_v40  ;;  %v4663_v24 = vsel %vm650_vm0, %v4658_v11, %v4662_v28  ;;  %v5101_v35 = vsel %vm859_vm1, %v5099_v15, %v5100_v37  ;;  %v5105_v28 = vrot.slane %v11392_v33, 1  ;;  %v9281_v33 = vld [vmem:[%s12038_s6 + $0x18] sm:$0xff]  }
 0x393   : > { %v5813_v40 = vadd.f32 %v8172_v30, %v11490_v58  ;;  %v5104_v2 = vsel %vm859_vm1, %v5102_v8, %v5103_v53  ;;  %v9280_v30 = vld [vmem:[%s12038_s6 + $0x10] sm:$0xff]  }
 0x396   : > { %6371 = vmatmul.mubr.bf16.gmra.mrb[40].mxu0 %v11570_v12 }
 0x397   : > { %6218 = vmatmul.mubr.bf16.gmra.mrb[236].mxu1 %v4663_v24  ;;  %6378 = vmatprep.mubr.bf16.mxu0 %v5079_v26  ;;  %v5106_v26 = vrot.slane %v11400_v49, 1 }
 0x398   : > { %8687 = vmatprep.mubr.bf16.mxu1 %v5098_v47 }
 0x399   : > { %v8279_v7 = vpop.f32.mrb[192].mxu0 }
 0x39a   : > { %v8280_v34 = vpop.f32.mrb[193].mxu0  ;;  %v8173_v0 = vpop.f32.mrb[132].mxu1 }
 0x39b   : > { %v8281_v56 = vadd.f32 %v8280_v34, %v8279_v7  ;;  %v8282_v5 = vpop.f32.mrb[194].mxu0  ;;  %v8174_v55 = vpop.f32.mrb[133].mxu1  ;;  %v5109_v34 = vrot.slane %v11414_v14, 1 }
 0x39c   : > { %v8283_v6 = vpop.f32.mrb[195].mxu0  ;;  %v8175_v62 = vadd.f32 %v8174_v55, %v8173_v0  ;;  %v8176_v57 = vpop.f32.mrb[134].mxu1  ;;  %v5107_v55 = vsel %vm859_vm1, %v5105_v28, %v5106_v26 }
 0x39d   : > { %v11630_v4 = vadd.f32 %v8281_v56, %v5810_v36  ;;  %v8284_v45 = vadd.f32 %v8283_v6, %v8282_v5  ;;  %v8177_v23 = vpop.f32.mrb[135].mxu1  ;;  %v9282_v6 = vld [vmem:[%s12038_s6 + $0x20] sm:$0xff]  }
 0x39e   : > { %6379 = vmatmul.mubr.bf16.gmra.mrb[44].mxu0 %v11581_v61  ;;  %v8178_v9 = vadd.f32 %v8177_v23, %v8176_v57  ;;  %v5818_v50 = vadd.f32 %v8175_v62, %v11490_v58  ;;  %v5112_v23 = vrot.slane %v11433_v52, 1 }
 0x39f   : > { %v11637_v25 = vadd.f32 %v8284_v45, %v5813_v40  ;;  %8688 = vmatmul.mubr.bf16.vlgmr.msra.gmra.mrb[240].mxu1 %v5101_v35  ;;  %v5111_v45 = vrot.slane %v11419_v39, 1  ;;  %v9283_v39 = vld [vmem:[%s12038_s6 + $0x28] sm:$0xff]  }
 0x3a0   : > { %8691 = vmatprep.mubr.bf16.mxu1 %v5104_v2  ;;  %8720 = vmatpush3.bf16.msra.mxu1 %v11428_v59  ;;  %v5821_v47 = vadd.f32 %v8178_v9, %v11490_v58  ;;  %v5108_v59 = vrot.slane %v11405_v43, 1 }
 0x3a1   : > { %v8285_v11 = vpop.f32.mrb[196].mxu0  ;;  %8721 = vmatprep.subr.bf16.mxu1 %v9279_v54 }
 0x3a2   : > { %v8286_v16 = vpop.f32.mrb[197].mxu0  ;;  %v8179_v22 = vpop.f32.mrb[136].mxu1  ;;  %v5110_v43 = vsel %vm859_vm1, %v5108_v59, %v5109_v34  ;;  %v9284_v59 = vld [vmem:[%s12038_s6 + $0x30] sm:$0xff]  }
 0x3a3   : > { %v8287_v24 = vadd.f32 %v8286_v16, %v8285_v11  ;;  %v8288_v36 = vpop.f32.mrb[198].mxu0  ;;  %v8180_v7 = vpop.f32.mrb[137].mxu1  ;;  %v5115_v11 = vrot.slane %v11448_v29, 1 }
 0x3a4   : > { %v8289_v0 = vpop.f32.mrb[199].mxu0  ;;  %v8181_v15 = vadd.f32 %v8180_v7, %v8179_v22  ;;  %v8182_v37 = vpop.f32.mrb[138].mxu1  ;;  %8722 = vmatpush3.bf16.msra.mxu1 %v9279_v54 }
 0x3a5   : > { %v11650_v56 = vadd.f32 %v8287_v24, %v5818_v50  ;;  %v8290_v40 = vadd.f32 %v8289_v0, %v8288_v36  ;;  %v8183_v5 = vpop.f32.mrb[139].mxu1  ;;  %8723 = vmatprep.subr.bf16.mxu1 %v9280_v30  ;;  %v5114_v50 = vrot.slane %v11439_v20, 1 }
 0x3a6   : > { %v8184_v49 = vadd.f32 %v8183_v5, %v8182_v37  ;;  %v5826_v14 = vadd.f32 %v8181_v15, %v11490_v58  ;;  %v5117_v15 = vrot.slane %v11453_v51, 1  ;;  %v5118_v37 = vrot.slane %v11462_v18, 1  ;;  %v9285_v51 = vld [vmem:[%s12038_s6 + $0x38] sm:$0xff]  }
 0x3a7   : > { %v11656_v8 = vadd.f32 %v8290_v40, %v5821_v47  ;;  %8692 = vmatmul.mubr.bf16.gmra.mrb[244].mxu1 %v5107_v55  ;;  %v5113_v47 = vsel %vm859_vm1, %v5111_v45, %v5112_v23  ;;  %v5116_v20 = vsel %vm859_vm1, %v5114_v50, %v5115_v11  ;;  %v5120_v55 = vrot.slane %v11464_v44, 1 }
 0x3a8   : > { %8695 = vmatprep.mubr.bf16.mxu1 %v5110_v43  ;;  %8724 = vmatpush3.bf16.msra.mxu1 %v9280_v30  ;;  %v5829_v9 = vadd.f32 %v8184_v49, %v11490_v58  ;;  %v5121_v43 = vrot.slane %v11476_v19, 1  ;;  %v5119_v23 = vsel %vm859_vm1, %v5117_v15, %v5118_v37  ;;  %v5123_v11 = vrot.slane %v11478_v32, 1 }
 0x3a9   : > { %v8291_v53 = vpop.f32.mrb[200].mxu0  ;;  %8725 = vmatprep.subr.bf16.mxu1 %v9281_v33  ;;  %v5130_v15 = vrot.slane %v11531_v13, 1 }
 0x3aa   : > { %v8292_v62 = vpop.f32.mrb[201].mxu0  ;;  %v8185_v57 = vpop.f32.mrb[140].mxu1  ;;  %v5122_v44 = vsel %vm859_vm1, %v5120_v55, %v5121_v43 }
 0x3ab   : > { %v8293_v54 = vadd.f32 %v8292_v62, %v8291_v53  ;;  %v8294_v35 = vpop.f32.mrb[202].mxu0  ;;  %v8186_v2 = vpop.f32.mrb[141].mxu1 }
 0x3ac   : > { %v8295_v30 = vpop.f32.mrb[203].mxu0  ;;  %v8187_v16 = vadd.f32 %v8186_v2, %v8185_v57  ;;  %v8188_v22 = vpop.f32.mrb[142].mxu1  ;;  %8726 = vmatpush3.bf16.msra.mxu1 %v9281_v33 }
 0x3ad   : > { %v11668_v28 = vadd.f32 %v8293_v54, %v5826_v14  ;;  %v8296_v26 = vadd.f32 %v8295_v30, %v8294_v35  ;;  %v8189_v24 = vpop.f32.mrb[143].mxu1  ;;  %8727 = vmatprep.subr.bf16.mxu1 %v9282_v6  ;;  %v5124_v35 = vrot.slane %v11497_v1, 1 }
 0x3ae   : > { %v8190_v52 = vadd.f32 %v8189_v24, %v8188_v22  ;;  %v5834_v29 = vadd.f32 %v8187_v16, %v11490_v58  ;;  %v5126_v24 = vrot.slane %v11502_v63, 1 }
 0x3af   : > { %v11674_v36 = vadd.f32 %v8296_v26, %v5829_v9  ;;  %8696 = vmatmul.mubr.bf16.gmra.mrb[248].mxu1 %v5113_v47  ;;  %v5125_v32 = vsel %vm859_vm1, %v5123_v11, %v5124_v35 }
 0x3b0   : > { %8699 = vmatprep.mubr.bf16.mxu1 %v5116_v20  ;;  %8728 = vmatpush3.bf16.msra.mxu1 %v9282_v6  ;;  %v5837_v5 = vadd.f32 %v8190_v52, %v11490_v58 }
 0x3b1   : > { %v8297_v7 = vpop.f32.mrb[204].mxu0  ;;  %8729 = vmatprep.subr.bf16.mxu1 %v9283_v39 }
 0x3b2   : > { %v8298_v34 = vpop.f32.mrb[205].mxu0  ;;  %v8191_v0 = vpop.f32.mrb[144].mxu1 }
 0x3b3   : > { %v8299_v40 = vadd.f32 %v8298_v34, %v8297_v7  ;;  %v8300_v33 = vpop.f32.mrb[206].mxu0  ;;  %v8192_v49 = vpop.f32.mrb[145].mxu1 }
 0x3b4   : > { %v8301_v14 = vpop.f32.mrb[207].mxu0  ;;  %v8193_v53 = vadd.f32 %v8192_v49, %v8191_v0  ;;  %v8194_v6 = vpop.f32.mrb[146].mxu1  ;;  %8730 = vmatpush3.bf16.msra.mxu1 %v9283_v39  ;;  %v5127_v39 = vrot.slane %v11517_v48, 1 }
 0x3b5   : > { %v11686_v62 = vadd.f32 %v8299_v40, %v5834_v29  ;;  %v8302_v57 = vadd.f32 %v8301_v14, %v8300_v33  ;;  %v8195_v45 = vpop.f32.mrb[147].mxu1  ;;  %8731 = vmatprep.subr.bf16.mxu1 %v9284_v59  ;;  %v5132_v14 = vrot.slane %v11536_v21, 1 }
 0x3b6   : > { %v8196_v18 = vadd.f32 %v8195_v45, %v8194_v6  ;;  %v5842_v19 = vadd.f32 %v8193_v53, %v11490_v58  ;;  %v5128_v0 = vsel %vm859_vm1, %v5126_v24, %v5127_v39  ;;  %v5133_v53 = vrot.slane %v11545_v27, 1 }
 0x3b7   : > { %v11692_v54 = vadd.f32 %v8302_v57, %v5837_v5  ;;  %8700 = vmatmul.mubr.bf16.gmra.mrb[252].mxu1 %v5119_v23  ;;  %v5129_v5 = vrot.slane %v11522_v10, 1  ;;  %v5136_v27 = vrot.slane %v11563_v41, 1  ;;  %v5139_v24 = vrot.slane %v11579_v60, 1 }
 0x3b8   : > { %8703 = vmatprep.mubr.bf16.mxu1 %v5122_v44  ;;  %8732 = vmatpush3.bf16.msra.mxu1 %v9284_v59  ;;  %v5845_v16 = vadd.f32 %v8196_v18, %v11490_v58  ;;  %v5141_v60 = vrot.slane %v11581_v61, 1 }
 0x3b9   : > { %v8303_v9 = vpop.f32.mrb[208].mxu0  ;;  %8733 = vmatprep.subr.bf16.mxu1 %v9285_v51  ;;  %v5131_v44 = vsel %vm859_vm1, %v5129_v5, %v5130_v15 }
 0x3ba   : > { %v8304_v2 = vpop.f32.mrb[209].mxu0  ;;  %v8197_v50 = vpop.f32.mrb[148].mxu1 }
 0x3bb   : > { %v8305_v30 = vadd.f32 %v8304_v2, %v8303_v9  ;;  %v8306_v22 = vpop.f32.mrb[210].mxu0  ;;  %v8198_v26 = vpop.f32.mrb[149].mxu1 }
 0x3bc   : > { %v8307_v52 = vpop.f32.mrb[211].mxu0  ;;  %v8199_v47 = vadd.f32 %v8198_v26, %v8197_v50  ;;  %v8200_v20 = vpop.f32.mrb[150].mxu1  ;;  %8734 = vmatpush3.bf16.msra.mxu1 %v9285_v51  ;;  %v5135_v50 = vrot.slane %v11547_v46, 1  ;;  %v5138_v26 = vrot.slane %v11570_v12, 1  ;;  %v5142_v12 = vrot.slane %v11592_v3, 1 }
 0x3bd   : > { %v11701_v29 = vadd.f32 %v8305_v30, %v5842_v19  ;;  %v8308_v1 = vadd.f32 %v8307_v52, %v8306_v22  ;;  %v8201_v7 = vpop.f32.mrb[151].mxu1  ;;  %v5134_v19 = vsel %vm859_vm1, %v5132_v14, %v5133_v53  ;;  %v9286_v53 = vld [vmem:[%s9662_s17] sm:$0xff]  }
 0x3be   : > { %v8202_v59 = vadd.f32 %v8201_v7, %v8200_v20  ;;  %v5850_v63 = vadd.f32 %v8199_v47, %v11490_v58  ;;  %v5143_v14 = vsel %vm859_vm1, %v5141_v60, %v5142_v12  ;;  %v9289_v60 = vld [vmem:[%s9662_s17 + $0x18] sm:$0xff]  }
 0x3bf   : > { %v11704_v34 = vadd.f32 %v8308_v1, %v5845_v16  ;;  %8704 = vmatmul.mubr.bf16.gmra.mrb[0].mxu1 %v5125_v32  ;;  %v5140_v32 = vsel %vm859_vm1, %v5138_v26, %v5139_v24 }
 0x3c0   : > { %8707 = vmatprep.mubr.bf16.mxu1 %v5128_v0  ;;  %v5853_v49 = vadd.f32 %v8202_v59, %v11490_v58  ;;  %v5137_v59 = vsel %vm859_vm1, %v5135_v50, %v5136_v27 }
 0x3c1   : > { %v8309_v48 = vpop.f32.mrb[212].mxu0 }
 0x3c2   : > { %v8310_v37 = vpop.f32.mrb[213].mxu0  ;;  %v8203_v40 = vpop.f32.mrb[152].mxu1 }
 0x3c3   : > { %v8311_v33 = vadd.f32 %v8310_v37, %v8309_v48  ;;  %v8312_v55 = vpop.f32.mrb[214].mxu0  ;;  %v8204_v43 = vpop.f32.mrb[153].mxu1 }
 0x3c4   : > { %v8313_v6 = vpop.f32.mrb[215].mxu0  ;;  %v8205_v57 = vadd.f32 %v8204_v43, %v8203_v40  ;;  %v8206_v45 = vpop.f32.mrb[154].mxu1 }
 0x3c5   : > { %v11713_v51 = vadd.f32 %v8311_v33, %v5850_v63  ;;  %v8314_v18 = vadd.f32 %v8313_v6, %v8312_v55  ;;  %v8207_v13 = vpop.f32.mrb[155].mxu1 }
 0x3c6   : > { %v8208_v23 = vadd.f32 %v8207_v13, %v8206_v45  ;;  %v5858_v21 = vadd.f32 %v8205_v57, %v11490_v58 }
 0x3c7   : > { %v11716_v10 = vadd.f32 %v8314_v18, %v5853_v49  ;;  %8708 = vmatmul.mubr.bf16.gmra.mrb[4].mxu1 %v5131_v44 }
 0x3c8   : > { %8711 = vmatprep.mubr.bf16.mxu1 %v5134_v19  ;;  %v5861_v30 = vadd.f32 %v8208_v23, %v11490_v58 }
 0x3c9   : > { %v8315_v9 = vpop.f32.mrb[216].mxu0 }
 0x3ca   : > { %v8316_v35 = vpop.f32.mrb[217].mxu0  ;;  %v8209_v2 = vpop.f32.mrb[156].mxu1 }
 0x3cb   : > { %v8317_v11 = vadd.f32 %v8316_v35, %v8315_v9  ;;  %v8318_v16 = vpop.f32.mrb[218].mxu0  ;;  %v8210_v22 = vpop.f32.mrb[157].mxu1  ;;  %v9287_v35 = vld [vmem:[%s9662_s17 + $0x8] sm:$0xff]  }
 0x3cc   : > { %v8319_v39 = vpop.f32.mrb[219].mxu0  ;;  %v8211_v52 = vadd.f32 %v8210_v22, %v8209_v2  ;;  %v8212_v47 = vpop.f32.mrb[158].mxu1 }
 0x3cd   : > { %v11725_v20 = vadd.f32 %v8317_v11, %v5858_v21  ;;  %v8320_v1 = vadd.f32 %v8319_v39, %v8318_v16  ;;  %v8213_v41 = vpop.f32.mrb[159].mxu1 }
 0x3ce   : > { %v8214_v7 = vadd.f32 %v8213_v41, %v8212_v47  ;;  %v5866_v0 = vadd.f32 %v8211_v52, %v11490_v58 }
 0x3cf   : > { %v11728_v46 = vadd.f32 %v8320_v1, %v5861_v30  ;;  %8712 = vmatmul.mubr.bf16.gmra.mrb[8].mxu1 %v5137_v59  ;;  %v9288_v30 = vld [vmem:[%s9662_s17 + $0x10] sm:$0xff]  }
 0x3d0   : > { %8715 = vmatprep.mubr.bf16.mxu1 %v5140_v32  ;;  %v5869_v40 = vadd.f32 %v8214_v7, %v11490_v58 }
 0x3d1   : > { %v8321_v63 = vpop.f32.mrb[220].mxu0 }
 0x3d2   : > { %v8322_v48 = vpop.f32.mrb[221].mxu0  ;;  %v8215_v15 = vpop.f32.mrb[160].mxu1 }
 0x3d3   : > { %v8323_v37 = vadd.f32 %v8322_v48, %v8321_v63  ;;  %v8324_v5 = vpop.f32.mrb[222].mxu0  ;;  %v8216_v33 = vpop.f32.mrb[161].mxu1 }
 0x3d4   : > { %v8325_v49 = vpop.f32.mrb[223].mxu0  ;;  %v8217_v55 = vadd.f32 %v8216_v33, %v8215_v15  ;;  %v8218_v43 = vpop.f32.mrb[162].mxu1  ;;  %v9290_v15 = vld [vmem:[%s9662_s17 + $0x20] sm:$0xff]  }
 0x3d5   : > { %v11737_v3 = vadd.f32 %v8323_v37, %v5866_v0  ;;  %v8326_v61 = vadd.f32 %v8325_v49, %v8324_v5  ;;  %v8219_v6 = vpop.f32.mrb[163].mxu1 }
 0x3d6   : > { %v8220_v57 = vadd.f32 %v8219_v6, %v8218_v43  ;;  %v5874_v18 = vadd.f32 %v8217_v55, %v11490_v58 }
 0x3d7   : > { %v11739_v45 = vadd.f32 %v8326_v61, %v5869_v40  ;;  %8716 = vmatmul.mubr.bf16.gmra.mrb[12].mxu1 %v5143_v14 }
 0x3d8   : > { %8735 = vmatprep.mubr.bf16.mxu1 %v9286_v53  ;;  %v5877_v21 = vadd.f32 %v8220_v57, %v11490_v58 }
 0x3d9   : > { %v8327_v13 = vpop.f32.mrb[224].mxu0 }
 0x3da   : > { %v8328_v23 = vpop.f32.mrb[225].mxu0  ;;  %v8221_v44 = vpop.f32.mrb[164].mxu1 }
 0x3db   : > { %v8329_v19 = vadd.f32 %v8328_v23, %v8327_v13  ;;  %v8330_v9 = vpop.f32.mrb[226].mxu0  ;;  %v8222_v27 = vpop.f32.mrb[165].mxu1  ;;  %v9291_v13 = vld [vmem:[%s9662_s17 + $0x28] sm:$0xff]  }
 0x3dc   : > { %v8331_v2 = vpop.f32.mrb[227].mxu0  ;;  %v8223_v50 = vadd.f32 %v8222_v27, %v8221_v44  ;;  %v8224_v11 = vpop.f32.mrb[166].mxu1 }
 0x3dd   : > { %v11745_v16 = vadd.f32 %v8329_v19, %v5874_v18  ;;  %v8332_v22 = vadd.f32 %v8331_v2, %v8330_v9  ;;  %v8225_v26 = vpop.f32.mrb[167].mxu1 }
 0x3de   : > { %v8226_v24 = vadd.f32 %v8225_v26, %v8224_v11  ;;  %v5882_v52 = vadd.f32 %v8223_v50, %v11490_v58 }
 0x3df   : > { %v11747_v39 = vadd.f32 %v8332_v22, %v5877_v21  ;;  %8736 = vmatmul.mubr.bf16.vlgmr.msra.gmra.mrb[240].mxu1 %v9287_v35  ;;  %v9292_v21 = vld [vmem:[%s9662_s17 + $0x30] sm:$0xff]  }
 0x3e0   : > { %8739 = vmatprep.mubr.bf16.mxu1 %v9288_v30  ;;  %v5885_v59 = vadd.f32 %v8226_v24, %v11490_v58 }
 0x3e1   : > { %v8333_v47 = vpop.f32.mrb[228].mxu0 }
 0x3e2   : > { %v8334_v1 = vpop.f32.mrb[229].mxu0  ;;  %v8227_v41 = vpop.f32.mrb[168].mxu1 }
 0x3e3   : > { %v8335_v7 = vadd.f32 %v8334_v1, %v8333_v47  ;;  %v8336_v32 = vpop.f32.mrb[230].mxu0  ;;  %v8228_v12 = vpop.f32.mrb[169].mxu1 }
 0x3e4   : > { %v8337_v0 = vpop.f32.mrb[231].mxu0  ;;  %v8229_v63 = vadd.f32 %v8228_v12, %v8227_v41  ;;  %v8230_v48 = vpop.f32.mrb[170].mxu1  ;;  %v9293_v41 = vld [vmem:[%s9662_s17 + $0x38] sm:$0xff]   ;;  %v9294_v12 = vld [vmem:[%s9662_s17 + $0x40] sm:$0xff]  }
 0x3e5   : > { %v11753_v37 = vadd.f32 %v8335_v7, %v5882_v52  ;;  %v8338_v40 = vadd.f32 %v8337_v0, %v8336_v32  ;;  %v8231_v5 = vpop.f32.mrb[171].mxu1 }
 0x3e6   : > { %v8232_v33 = vadd.f32 %v8231_v5, %v8230_v48  ;;  %v5890_v55 = vadd.f32 %v8229_v63, %v11490_v58  ;;  %v12145_v48 = vld [vmem:[#allocation17_spill] sm:$0xff] }
 0x3e7   : > { %v11755_v49 = vadd.f32 %v8338_v40, %v5885_v59  ;;  %8740 = vmatmul.mubr.bf16.gmra.mrb[244].mxu1 %v9289_v60 }
 0x3e8   : > { %8743 = vmatprep.mubr.bf16.mxu1 %v9290_v15  ;;  %v5893_v6 = vadd.f32 %v8232_v33, %v11490_v58  ;;  %v9329_v58 = vld [vmem:[%s12037_s5] ss:$0 sm:$0xff] }
 0x3e9   : > { %v8339_v43 = vpop.f32.mrb[232].mxu0  ;;  %v12146_v33 = vld [vmem:[#allocation18_spill] sm:$0xff] }
 0x3ea   : > { %v8340_v14 = vpop.f32.mrb[233].mxu0  ;;  %v8233_v53 = vpop.f32.mrb[172].mxu1 }
 0x3eb   : > { %v8341_v61 = vadd.f32 %v8340_v14, %v8339_v43  ;;  %v8342_v57 = vpop.f32.mrb[234].mxu0  ;;  %v8234_v18 = vpop.f32.mrb[173].mxu1 }
 0x3ec   : > { %v8343_v23 = vpop.f32.mrb[235].mxu0  ;;  %v8235_v44 = vadd.f32 %v8234_v18, %v8233_v53  ;;  %v8236_v19 = vpop.f32.mrb[174].mxu1  ;;  %v9295_v18 = vld [vmem:[%s9662_s17 + $0x48] sm:$0xff]  }
 0x3ed   : > { %v11761_v9 = vadd.f32 %v8341_v61, %v5890_v55  ;;  %v8344_v27 = vadd.f32 %v8343_v23, %v8342_v57  ;;  %v8237_v35 = vpop.f32.mrb[175].mxu1 }
 0x3ee   : > { %v8238_v2 = vadd.f32 %v8237_v35, %v8236_v19  ;;  %v5898_v11 = vadd.f32 %v9329_v58, %v8235_v44  ;;  %v9296_v19 = vld [vmem:[%s9662_s17 + $0x50] sm:$0xff]   ;;  %v12147_v35 = vld [vmem:[#allocation24_spill] sm:$0xff] }
 0x3ef   : > { %v11763_v50 = vadd.f32 %v8344_v27, %v5893_v6  ;;  %8744 = vmatmul.mubr.bf16.gmra.mrb[248].mxu1 %v9291_v13 }
 0x3f0   : > { %8747 = vmatprep.mubr.bf16.mxu1 %v9292_v21  ;;  %v5901_v52 = vadd.f32 %v9329_v58, %v8238_v2 }
 0x3f1   : > { %v8345_v30 = vpop.f32.mrb[236].mxu0 }
 0x3f2   : > { %v8346_v22 = vpop.f32.mrb[237].mxu0  ;;  %v8367_v26 = vpop.f32.mrb[176].mxu1 }
 0x3f3   : > { %v8347_v24 = vadd.f32 %v8346_v22, %v8345_v30  ;;  %v8348_v47 = vpop.f32.mrb[238].mxu0  ;;  %v8368_v1 = vpop.f32.mrb[177].mxu1  ;;  %v12148_v30 = vld [vmem:[#allocation19_spill] sm:$0xff] }
 0x3f4   : > { %v8349_v7 = vpop.f32.mrb[239].mxu0  ;;  %v8369_v59 = vadd.f32 %v8368_v1, %v8367_v26  ;;  %v8370_v32 = vpop.f32.mrb[178].mxu1 }
 0x3f5   : > { %v11770_v60 = vadd.f32 %v8347_v24, %v5898_v11  ;;  %v8350_v0 = vadd.f32 %v8349_v7, %v8348_v47  ;;  %v8371_v63 = vpop.f32.mrb[179].mxu1 }
 0x3f6   : > { %v6100_v15 = vadd.f32 %v8369_v59, %v12145_v48  ;;  %v8372_v40 = vadd.f32 %v8371_v63, %v8370_v32  ;;  %v9297_v59 = vld [vmem:[%s9662_s17 + $0x58] sm:$0xff]   ;;  %v9298_v63 = vld [vmem:[%s9662_s17 + $0x60] sm:$0xff]  }
 0x3f7   : > { %v11773_v5 = vadd.f32 %v8350_v0, %v5901_v52  ;;  %8748 = vmatmul.mubr.bf16.gmra.mrb[252].mxu1 %v9293_v41 }
 0x3f8   : > { %v6103_v55 = vadd.f32 %v8372_v40, %v12146_v33  ;;  %8751 = vmatprep.mubr.bf16.mxu1 %v9294_v12 }
 0x3f9   : > { %v8479_v43 = vpop.f32.mrb[240].mxu0 }
 0x3fa   : > { %v8480_v14 = vpop.f32.mrb[241].mxu0  ;;  %v8373_v53 = vpop.f32.mrb[180].mxu1 }
 0x3fb   : > { %v8481_v61 = vadd.f32 %v8480_v14, %v8479_v43  ;;  %v8482_v6 = vpop.f32.mrb[242].mxu0  ;;  %v8374_v57 = vpop.f32.mrb[181].mxu1 }
 0x3fc   : > { %v8483_v13 = vpop.f32.mrb[243].mxu0  ;;  %v8375_v23 = vadd.f32 %v8374_v57, %v8373_v53  ;;  %v8376_v44 = vpop.f32.mrb[182].mxu1 }
 0x3fd   : > { %v8484_v21 = vadd.f32 %v8483_v13, %v8482_v6  ;;  %v8377_v27 = vpop.f32.mrb[183].mxu1  ;;  %v11782_v47 = vadd.f32 %v8481_v61, %v6100_v15 }
 0x3fe   : > { %v6108_v2 = vadd.f32 %v8375_v23, %v12147_v35  ;;  %v8378_v58 = vadd.f32 %v8377_v27, %v8376_v44  ;;  %v9299_v23 = vld [vmem:[%s9662_s17 + $0x68] sm:$0xff]   ;;  %v9300_v27 = vld [vmem:[%s9662_s17 + $0x70] sm:$0xff]  }
 0x3ff   : > { %v11779_v11 = vadd.f32 %v8484_v21, %v6103_v55  ;;  %8752 = vmatmul.mubr.bf16.gmra.mrb[0].mxu1 %v9295_v18 }
 0x400   : > { %v6111_v22 = vadd.f32 %v8378_v58, %v12148_v30  ;;  %8755 = vmatprep.mubr.bf16.mxu1 %v9296_v19 }
 0x401   : > { %v8485_v26 = vpop.f32.mrb[244].mxu0 }
 0x402   : > { %v8486_v24 = vpop.f32.mrb[245].mxu0  ;;  %v8379_v52 = vpop.f32.mrb[184].mxu1 }
 0x403   : > { %v8487_v1 = vadd.f32 %v8486_v24, %v8485_v26  ;;  %v8488_v41 = vpop.f32.mrb[246].mxu0  ;;  %v8380_v7 = vpop.f32.mrb[185].mxu1 }
 0x404   : > { %v8489_v32 = vpop.f32.mrb[247].mxu0  ;;  %v8381_v12 = vadd.f32 %v8380_v7, %v8379_v52  ;;  %v8382_v0 = vpop.f32.mrb[186].mxu1 }
 0x405   : > { %v8490_v48 = vadd.f32 %v8489_v32, %v8488_v41  ;;  %v8383_v40 = vpop.f32.mrb[187].mxu1  ;;  %v11786_v33 = vadd.f32 %v8487_v1, %v6108_v2 }
 0x406   : > { %v6116_v55 = vadd.f32 %v8381_v12, %v11597_v38  ;;  %v8384_v43 = vadd.f32 %v8383_v40, %v8382_v0 }
 0x407   : > { %v11789_v14 = vadd.f32 %v8490_v48, %v6111_v22  ;;  %8756 = vmatmul.mubr.bf16.gmra.mrb[4].mxu1 %v9297_v59  ;;  %v9301_v59 = vld [vmem:[%s9662_s17 + $0x78] sm:$0xff]  }
 0x408   : > { %v6119_v15 = vadd.f32 %v8384_v43, %v11600_v17  ;;  %8759 = vmatprep.mubr.bf16.mxu1 %v9298_v63 }
 0x409   : > { %v8491_v53 = vpop.f32.mrb[248].mxu0 }
 0x40a   : > { %v8492_v61 = vpop.f32.mrb[249].mxu0  ;;  %v8385_v6 = vpop.f32.mrb[188].mxu1 }
 0x40b   : > { %v8493_v57 = vadd.f32 %v8492_v61, %v8491_v53  ;;  %v8494_v18 = vpop.f32.mrb[250].mxu0  ;;  %v8386_v13 = vpop.f32.mrb[189].mxu1 }
 0x40c   : > { %v8495_v44 = vpop.f32.mrb[251].mxu0  ;;  %v8387_v19 = vadd.f32 %v8386_v13, %v8385_v6  ;;  %v8388_v21 = vpop.f32.mrb[190].mxu1 }
 0x40d   : > { %v11794_v38 = vadd.f32 %v8493_v57, %v6116_v55  ;;  %v8496_v35 = vadd.f32 %v8495_v44, %v8494_v18  ;;  %v8389_v2 = vpop.f32.mrb[191].mxu1 }
 0x40e   : > { %v6124_v58 = vadd.f32 %v8387_v19, %v11614_v31  ;;  %v8390_v17 = vadd.f32 %v8389_v2, %v8388_v21 }
 0x40f   : > { %v11797_v30 = vadd.f32 %v8496_v35, %v6119_v15  ;;  %8760 = vmatmul.mubr.bf16.gmra.mrb[8].mxu1 %v9299_v23 }
 0x410   : > { %v6127_v22 = vadd.f32 %v8390_v17, %v11616_v42  ;;  %8763 = vmatprep.mubr.bf16.mxu1 %v9300_v27 }
 0x411   : > { %v8497_v26 = vpop.f32.mrb[252].mxu0 }
 0x412   : > { %v8498_v24 = vpop.f32.mrb[253].mxu0  ;;  %v8391_v52 = vpop.f32.mrb[192].mxu1 }
 0x413   : > { %v8499_v1 = vadd.f32 %v8498_v24, %v8497_v26  ;;  %v8500_v41 = vpop.f32.mrb[254].mxu0  ;;  %v8392_v7 = vpop.f32.mrb[193].mxu1 }
 0x414   : > { %v8501_v32 = vpop.f32.mrb[255].mxu0  ;;  %v8393_v12 = vadd.f32 %v8392_v7, %v8391_v52  ;;  %v8394_v0 = vpop.f32.mrb[194].mxu1 }
 0x415   : > { %v11801_v63 = vadd.f32 %v8499_v1, %v6124_v58  ;;  %v8502_v31 = vadd.f32 %v8501_v32, %v8500_v41  ;;  %v8395_v48 = vpop.f32.mrb[195].mxu1 }
 0x416   : > { %v6132_v40 = vadd.f32 %v8393_v12, %v11630_v4  ;;  %v8396_v55 = vadd.f32 %v8395_v48, %v8394_v0 }
 0x417   : > { %v11804_v43 = vadd.f32 %v8502_v31, %v6127_v22  ;;  %8764 = vmatmul.mubr.bf16.gmra.mrb[12].mxu1 %v9301_v59 }
 0x418   : > { %v6135_v42 = vadd.f32 %v8396_v55, %v11637_v25 }
 0x419   : > { %v8503_v15 = vpop.f32.mrb[0].mxu0 }
 0x41a   : > { %v8504_v53 = vpop.f32.mrb[1].mxu0  ;;  %v8397_v61 = vpop.f32.mrb[196].mxu1 }
 0x41b   : > { %v8505_v6 = vadd.f32 %v8504_v53, %v8503_v15  ;;  %v8506_v57 = vpop.f32.mrb[2].mxu0  ;;  %v8398_v18 = vpop.f32.mrb[197].mxu1 }
 0x41c   : > { %v8507_v13 = vpop.f32.mrb[3].mxu0  ;;  %v8399_v23 = vadd.f32 %v8398_v18, %v8397_v61  ;;  %v8400_v44 = vpop.f32.mrb[198].mxu1 }
 0x41d   : > { %v11807_v19 = vadd.f32 %v8505_v6, %v6132_v40  ;;  %v8508_v21 = vadd.f32 %v8507_v13, %v8506_v57  ;;  %v8401_v27 = vpop.f32.mrb[199].mxu1 }
 0x41e   : > { %v6140_v4 = vadd.f32 %v8399_v23, %v11650_v56  ;;  %v8402_v35 = vadd.f32 %v8401_v27, %v8400_v44 }
 0x41f   : > { %v11810_v2 = vadd.f32 %v8508_v21, %v6135_v42 }
 0x420   : > { %v6143_v25 = vadd.f32 %v8402_v35, %v11656_v8 }
 0x421   : > { %v8509_v58 = vpop.f32.mrb[4].mxu0 }
 0x422   : > { %v8510_v17 = vpop.f32.mrb[5].mxu0  ;;  %v8403_v22 = vpop.f32.mrb[200].mxu1 }
 0x423   : > { %v8511_v26 = vadd.f32 %v8510_v17, %v8509_v58  ;;  %v8512_v24 = vpop.f32.mrb[6].mxu0  ;;  %v8404_v52 = vpop.f32.mrb[201].mxu1 }
 0x424   : > { %v8513_v1 = vpop.f32.mrb[7].mxu0  ;;  %v8405_v41 = vadd.f32 %v8404_v52, %v8403_v22  ;;  %v8406_v7 = vpop.f32.mrb[202].mxu1 }
 0x425   : > { %v11813_v59 = vadd.f32 %v8511_v26, %v6140_v4  ;;  %v8514_v32 = vadd.f32 %v8513_v1, %v8512_v24  ;;  %v8407_v12 = vpop.f32.mrb[203].mxu1 }
 0x426   : > { %v6148_v56 = vadd.f32 %v8405_v41, %v11668_v28  ;;  %v8408_v0 = vadd.f32 %v8407_v12, %v8406_v7 }
 0x427   : > { %v11816_v31 = vadd.f32 %v8514_v32, %v6143_v25 }
 0x428   : > { %v6151_v8 = vadd.f32 %v8408_v0, %v11674_v36 }
 0x429   : > { %v8515_v48 = vpop.f32.mrb[8].mxu0 }
 0x42a   : > { %v8516_v40 = vpop.f32.mrb[9].mxu0  ;;  %v8409_v55 = vpop.f32.mrb[204].mxu1 }
 0x42b   : > { %v8517_v42 = vadd.f32 %v8516_v40, %v8515_v48  ;;  %v8518_v15 = vpop.f32.mrb[10].mxu0  ;;  %v8410_v53 = vpop.f32.mrb[205].mxu1 }
 0x42c   : > { %v8519_v61 = vpop.f32.mrb[11].mxu0  ;;  %v8411_v6 = vadd.f32 %v8410_v53, %v8409_v55  ;;  %v8412_v57 = vpop.f32.mrb[206].mxu1 }
 0x42d   : > { %v11819_v18 = vadd.f32 %v8517_v42, %v6148_v56  ;;  %v8520_v13 = vadd.f32 %v8519_v61, %v8518_v15  ;;  %v8413_v23 = vpop.f32.mrb[207].mxu1 }
 0x42e   : > { %v6156_v28 = vadd.f32 %v8411_v6, %v11686_v62  ;;  %v8414_v44 = vadd.f32 %v8413_v23, %v8412_v57 }
 0x42f   : > { %v11822_v21 = vadd.f32 %v8520_v13, %v6151_v8 }
 0x430   : > { %v6159_v36 = vadd.f32 %v8414_v44, %v11692_v54 }
 0x431   : > { %v8521_v27 = vpop.f32.mrb[12].mxu0 }
 0x432   : > { %v8522_v4 = vpop.f32.mrb[13].mxu0  ;;  %v8415_v35 = vpop.f32.mrb[208].mxu1 }
 0x433   : > { %v8523_v25 = vadd.f32 %v8522_v4, %v8521_v27  ;;  %v8524_v58 = vpop.f32.mrb[14].mxu0  ;;  %v8416_v17 = vpop.f32.mrb[209].mxu1 }
 0x434   : > { %v8525_v22 = vpop.f32.mrb[15].mxu0  ;;  %v8417_v26 = vadd.f32 %v8416_v17, %v8415_v35  ;;  %v8418_v24 = vpop.f32.mrb[210].mxu1 }
 0x435   : > { %v11825_v52 = vadd.f32 %v8523_v25, %v6156_v28  ;;  %v8526_v1 = vadd.f32 %v8525_v22, %v8524_v58  ;;  %v8419_v41 = vpop.f32.mrb[211].mxu1 }
 0x436   : > { %v6164_v62 = vadd.f32 %v8417_v26, %v11701_v29  ;;  %v8420_v7 = vadd.f32 %v8419_v41, %v8418_v24 }
 0x437   : > { %v11828_v32 = vadd.f32 %v8526_v1, %v6159_v36 }
 0x438   : > { %v6167_v54 = vadd.f32 %v8420_v7, %v11704_v34 }
 0x439   : > { %v8527_v12 = vpop.f32.mrb[16].mxu0 }
 0x43a   : > { %v8528_v56 = vpop.f32.mrb[17].mxu0  ;;  %v8421_v0 = vpop.f32.mrb[212].mxu1 }
 0x43b   : > { %v8529_v8 = vadd.f32 %v8528_v56, %v8527_v12  ;;  %v8530_v48 = vpop.f32.mrb[18].mxu0  ;;  %v8422_v40 = vpop.f32.mrb[213].mxu1 }
 0x43c   : > { %v8531_v55 = vpop.f32.mrb[19].mxu0  ;;  %v8423_v42 = vadd.f32 %v8422_v40, %v8421_v0  ;;  %v8424_v15 = vpop.f32.mrb[214].mxu1 }
 0x43d   : > { %v11831_v53 = vadd.f32 %v8529_v8, %v6164_v62  ;;  %v8532_v61 = vadd.f32 %v8531_v55, %v8530_v48  ;;  %v8425_v6 = vpop.f32.mrb[215].mxu1 }
 0x43e   : > { %v6172_v29 = vadd.f32 %v8423_v42, %v11713_v51  ;;  %v8426_v57 = vadd.f32 %v8425_v6, %v8424_v15 }
 0x43f   : > { %v11834_v13 = vadd.f32 %v8532_v61, %v6167_v54 }
 0x440   : > { %v6175_v34 = vadd.f32 %v8426_v57, %v11716_v10 }
 0x441   : > { %v8533_v23 = vpop.f32.mrb[20].mxu0 }
 0x442   : > { %v8534_v28 = vpop.f32.mrb[21].mxu0  ;;  %v8427_v44 = vpop.f32.mrb[216].mxu1 }
 0x443   : > { %v8535_v36 = vadd.f32 %v8534_v28, %v8533_v23  ;;  %v8536_v27 = vpop.f32.mrb[22].mxu0  ;;  %v8428_v4 = vpop.f32.mrb[217].mxu1 }
 0x444   : > { %v8537_v35 = vpop.f32.mrb[23].mxu0  ;;  %v8429_v25 = vadd.f32 %v8428_v4, %v8427_v44  ;;  %v8430_v58 = vpop.f32.mrb[218].mxu1 }
 0x445   : > { %v11837_v17 = vadd.f32 %v8535_v36, %v6172_v29  ;;  %v8538_v22 = vadd.f32 %v8537_v35, %v8536_v27  ;;  %v8431_v26 = vpop.f32.mrb[219].mxu1 }
 0x446   : > { %v6180_v51 = vadd.f32 %v8429_v25, %v11725_v20  ;;  %v8432_v24 = vadd.f32 %v8431_v26, %v8430_v58 }
 0x447   : > { %v11840_v1 = vadd.f32 %v8538_v22, %v6175_v34 }
 0x448   : > { %v6183_v10 = vadd.f32 %v8432_v24, %v11728_v46 }
 0x449   : > { %v8539_v41 = vpop.f32.mrb[24].mxu0 }
 0x44a   : > { %v8540_v62 = vpop.f32.mrb[25].mxu0  ;;  %v8433_v7 = vpop.f32.mrb[220].mxu1 }
 0x44b   : > { %v8541_v54 = vadd.f32 %v8540_v62, %v8539_v41  ;;  %v8542_v12 = vpop.f32.mrb[26].mxu0  ;;  %v8434_v56 = vpop.f32.mrb[221].mxu1 }
 0x44c   : > { %v8543_v0 = vpop.f32.mrb[27].mxu0  ;;  %v8435_v8 = vadd.f32 %v8434_v56, %v8433_v7  ;;  %v8436_v48 = vpop.f32.mrb[222].mxu1 }
 0x44d   : > { %v11843_v40 = vadd.f32 %v8541_v54, %v6180_v51  ;;  %v8544_v55 = vadd.f32 %v8543_v0, %v8542_v12  ;;  %v8437_v42 = vpop.f32.mrb[223].mxu1 }
 0x44e   : > { %v6188_v20 = vadd.f32 %v8435_v8, %v11737_v3  ;;  %v8438_v15 = vadd.f32 %v8437_v42, %v8436_v48 }
 0x44f   : > { %v11846_v61 = vadd.f32 %v8544_v55, %v6183_v10 }
 0x450   : > { %v6191_v46 = vadd.f32 %v8438_v15, %v11739_v45 }
 0x451   : > { %v8545_v6 = vpop.f32.mrb[28].mxu0 }
 0x452   : > { %v8546_v29 = vpop.f32.mrb[29].mxu0  ;;  %v8439_v57 = vpop.f32.mrb[224].mxu1 }
 0x453   : > { %v8547_v34 = vadd.f32 %v8546_v29, %v8545_v6  ;;  %v8548_v23 = vpop.f32.mrb[30].mxu0  ;;  %v8440_v28 = vpop.f32.mrb[225].mxu1 }
 0x454   : > { %v8549_v44 = vpop.f32.mrb[31].mxu0  ;;  %v8441_v36 = vadd.f32 %v8440_v28, %v8439_v57  ;;  %v8442_v27 = vpop.f32.mrb[226].mxu1 }
 0x455   : > { %v11849_v4 = vadd.f32 %v8547_v34, %v6188_v20  ;;  %v8550_v35 = vadd.f32 %v8549_v44, %v8548_v23  ;;  %v8443_v25 = vpop.f32.mrb[227].mxu1 }
 0x456   : > { %v6196_v3 = vadd.f32 %v8441_v36, %v11745_v16  ;;  %v8444_v58 = vadd.f32 %v8443_v25, %v8442_v27 }
 0x457   : > { %v11852_v22 = vadd.f32 %v8550_v35, %v6191_v46 }
 0x458   : > { %v6199_v45 = vadd.f32 %v8444_v58, %v11747_v39 }
 0x459   : > { %v8551_v26 = vpop.f32.mrb[32].mxu0 }
 0x45a   : > { %v8552_v51 = vpop.f32.mrb[33].mxu0  ;;  %v8445_v24 = vpop.f32.mrb[228].mxu1 }
 0x45b   : > { %v8553_v10 = vadd.f32 %v8552_v51, %v8551_v26  ;;  %v8554_v41 = vpop.f32.mrb[34].mxu0  ;;  %v8446_v62 = vpop.f32.mrb[229].mxu1 }
 0x45c   : > { %v8555_v7 = vpop.f32.mrb[35].mxu0  ;;  %v8447_v54 = vadd.f32 %v8446_v62, %v8445_v24  ;;  %v8448_v12 = vpop.f32.mrb[230].mxu1 }
 0x45d   : > { %v11855_v56 = vadd.f32 %v8553_v10, %v6196_v3  ;;  %v8556_v0 = vadd.f32 %v8555_v7, %v8554_v41  ;;  %v8449_v8 = vpop.f32.mrb[231].mxu1 }
 0x45e   : > { %v6204_v16 = vadd.f32 %v8447_v54, %v11753_v37  ;;  %v8450_v48 = vadd.f32 %v8449_v8, %v8448_v12 }
 0x45f   : > { %v11858_v55 = vadd.f32 %v8556_v0, %v6199_v45 }
 0x460   : > { %v6207_v39 = vadd.f32 %v8450_v48, %v11755_v49 }
 0x461   : > { %v8557_v42 = vpop.f32.mrb[36].mxu0 }
 0x462   : > { %v8558_v20 = vpop.f32.mrb[37].mxu0  ;;  %v8451_v15 = vpop.f32.mrb[232].mxu1 }
 0x463   : > { %v8559_v46 = vadd.f32 %v8558_v20, %v8557_v42  ;;  %v8560_v6 = vpop.f32.mrb[38].mxu0  ;;  %v8452_v29 = vpop.f32.mrb[233].mxu1 }
 0x464   : > { %v8561_v57 = vpop.f32.mrb[39].mxu0  ;;  %v8453_v34 = vadd.f32 %v8452_v29, %v8451_v15  ;;  %v8454_v23 = vpop.f32.mrb[234].mxu1 }
 0x465   : > { %v11861_v28 = vadd.f32 %v8559_v46, %v6204_v16  ;;  %v8562_v44 = vadd.f32 %v8561_v57, %v8560_v6  ;;  %v8455_v36 = vpop.f32.mrb[235].mxu1  ;;  %v11880_v6 = vld [vmem:[%s12039_s7] ss:$0 sm:$0xff] }
 0x466   : > { %v6212_v37 = vadd.f32 %v8453_v34, %v11761_v9  ;;  %v8456_v27 = vadd.f32 %v8455_v36, %v8454_v23  ;;  %v8787_v57 = vadd.f32 %v11880_v6, %v11789_v14  ;;  %v8793_v14 = vadd.f32 %v11880_v6, %v11794_v38 }
 0x467   : > { %v11864_v35 = vadd.f32 %v8562_v44, %v6207_v39  ;;  %v8789_v44 = vadd.f32 %v11880_v6, %v11779_v11  ;;  %v8791_v11 = vadd.f32 %v11880_v6, %v11801_v63  ;;  %v8797_v63 = vadd.f32 %v11880_v6, %v11797_v30 }
 0x468   : > { %v6215_v49 = vadd.f32 %v8456_v27, %v11763_v50  ;;  %v8801_v30 = vadd.f32 %v11880_v6, %v11807_v19 }
 0x469   : > { %v8563_v25 = vpop.f32.mrb[40].mxu0 }
 0x46a   : > { %v8564_v3 = vpop.f32.mrb[41].mxu0  ;;  %v8457_v58 = vpop.f32.mrb[236].mxu1 }
 0x46b   : > { %v8565_v45 = vadd.f32 %v8564_v3, %v8563_v25  ;;  %v8566_v26 = vpop.f32.mrb[42].mxu0  ;;  %v8458_v51 = vpop.f32.mrb[237].mxu1 }
 0x46c   : > { %v8567_v24 = vpop.f32.mrb[43].mxu0  ;;  %v8459_v10 = vadd.f32 %v8458_v51, %v8457_v58  ;;  %v8460_v41 = vpop.f32.mrb[238].mxu1 }
 0x46d   : > { %v11867_v62 = vadd.f32 %v8565_v45, %v6212_v37  ;;  %v8568_v7 = vadd.f32 %v8567_v24, %v8566_v26  ;;  %v8461_v54 = vpop.f32.mrb[239].mxu1  ;;  %v8795_v24 = vadd.f32 %v11880_v6, %v11804_v43 }
 0x46e   : > { %v6220_v9 = vadd.f32 %v8459_v10, %v11770_v60  ;;  %v8462_v12 = vadd.f32 %v8461_v54, %v8460_v41 }
 0x46f   : > { %v11870_v0 = vadd.f32 %v8568_v7, %v6215_v49 }
 0x470   : > { %v6223_v50 = vadd.f32 %v8462_v12, %v11773_v5 }
 0x471   : > { %v8569_v8 = vpop.f32.mrb[44].mxu0 }
 0x472   : > { %v8570_v16 = vpop.f32.mrb[45].mxu0 }
 0x473   : > { %v8571_v48 = vadd.f32 %v8570_v16, %v8569_v8  ;;  %v8572_v39 = vpop.f32.mrb[46].mxu0  ;;  %v8799_v16 = vadd.f32 %v11880_v6, %v11813_v59 }
 0x474   : > { %v8573_v42 = vpop.f32.mrb[47].mxu0 }
 0x475   : > { %v11873_v20 = vadd.f32 %v8571_v48, %v6220_v9  ;;  %v8574_v15 = vadd.f32 %v8573_v42, %v8572_v39  ;;  %v8803_v42 = vadd.f32 %v11880_v6, %v11816_v31 }
 0x477   : > { %v11875_v46 = vadd.f32 %v8574_v15, %v6223_v50 }
 0x4b2   : > { %v8737_v60 = vpop.f32.mrb[240].mxu1 }
 0x4b3   : > { %v8783_v29 = vadd.f32 %v8737_v60, %v11786_v33  ;;  %v6781_v5 = vpop.f32.mrb[241].mxu1 }
 0x4b4   : > { %v8785_v34 = vadd.f32 %v6781_v5, %v11782_v47  ;;  %v8738_v23 = vpop.f32.mrb[242].mxu1 }
 0x4b5   : > { %v8784_v36 = vadd.f32 %v8783_v29, %v11880_v6  ;;  %v8788_v37 = vadd.f32 %v8787_v57, %v8738_v23  ;;  %v6784_v27 = vpop.f32.mrb[243].mxu1  ;;  %v8805_v29 = vadd.f32 %v11880_v6, %v11810_v2  ;;  %v8809_v2 = vadd.f32 %v11880_v6, %v11819_v18 }
 0x4b6   : > { %v8786_v49 = vadd.f32 %v8785_v34, %v11880_v6  ;;  %v8790_v25 = vadd.f32 %v8789_v44, %v6784_v27 }
 0x4b7   : > { %v6942_v3 = vmax.f32 %v8784_v36, 0.0  ;;  %v6943_v58 = vmax.f32 %v8788_v37, 0.0  ;;  %v8807_v36 = vadd.f32 %v11880_v6, %v11825_v52 }
 0x4b8   : > { %v6940_v33 = vmax.f32 %v8786_v49, 0.0  ;;  %v6941_v45 = vmax.f32 %v8790_v25, 0.0  ;;  %v8811_v49 = vadd.f32 %v11880_v6, %v11828_v32 }
 0x4b9   : > { %6974 = vst [vmem:[%s11891_s11 + $0x10] sm:$0xff] %v6942_v3  ;;  %6975 = vst [vmem:[%s11891_s11 + $0x18] sm:$0xff] %v6943_v58  ;;  %v8813_v58 = vadd.f32 %v11880_v6, %v11822_v21  ;;  %v8817_v21 = vadd.f32 %v11880_v6, %v11831_v53 }
 0x4ba   : > { %6972 = vst [vmem:[%s11891_s11] sm:$0xff] %v6940_v33  ;;  %6973 = vst [vmem:[%s11891_s11 + $0x8] sm:$0xff] %v6941_v45  ;;  %v8741_v47 = vpop.f32.mrb[244].mxu1 }
 0x4bb   : > { %v8792_v26 = vadd.f32 %v8791_v11, %v8741_v47  ;;  %v6797_v51 = vpop.f32.mrb[245].mxu1 }
 0x4bc   : > { %v8794_v10 = vadd.f32 %v8793_v14, %v6797_v51  ;;  %v8742_v41 = vpop.f32.mrb[246].mxu1 }
 0x4bd   : > { %v6946_v7 = vmax.f32 %v8792_v26, 0.0  ;;  %v8796_v54 = vadd.f32 %v8795_v24, %v8742_v41  ;;  %v6800_v9 = vpop.f32.mrb[247].mxu1  ;;  %v8815_v26 = vadd.f32 %v11880_v6, %v11837_v17 }
 0x4be   : > { %v6944_v12 = vmax.f32 %v8794_v10, 0.0  ;;  %v8798_v50 = vadd.f32 %v8797_v63, %v6800_v9  ;;  %v8819_v10 = vadd.f32 %v11880_v6, %v11840_v1 }
 0x4bf   : > { %6978 = vst [vmem:[%s11891_s11 + $0x30] sm:$0xff] %v6946_v7  ;;  %v6947_v8 = vmax.f32 %v8796_v54, 0.0  ;;  %v8821_v7 = vadd.f32 %v11880_v6, %v11834_v13  ;;  %v8825_v13 = vadd.f32 %v11880_v6, %v11843_v40 }
 0x4c0   : > { %6976 = vst [vmem:[%s11891_s11 + $0x20] sm:$0xff] %v6944_v12  ;;  %v6945_v38 = vmax.f32 %v8798_v50, 0.0 }
 0x4c1   : > { %6979 = vst [vmem:[%s11891_s11 + $0x38] sm:$0xff] %v6947_v8 }
 0x4c2   : > { %6977 = vst [vmem:[%s11891_s11 + $0x28] sm:$0xff] %v6945_v38  ;;  %v8745_v43 = vpop.f32.mrb[248].mxu1  ;;  %v8823_v38 = vadd.f32 %v11880_v6, %v11849_v4 }
 0x4c3   : > { %v8800_v48 = vadd.f32 %v8799_v16, %v8745_v43  ;;  %v6813_v39 = vpop.f32.mrb[249].mxu1 }
 0x4c4   : > { %v8802_v15 = vadd.f32 %v8801_v30, %v6813_v39  ;;  %v8746_v60 = vpop.f32.mrb[250].mxu1  ;;  %v8827_v30 = vadd.f32 %v11880_v6, %v11852_v22 }
 0x4c5   : > { %v6950_v5 = vmax.f32 %v8800_v48, 0.0  ;;  %v8804_v59 = vadd.f32 %v8803_v42, %v8746_v60  ;;  %v6816_v57 = vpop.f32.mrb[251].mxu1  ;;  %v8829_v42 = vadd.f32 %v11880_v6, %v11846_v61  ;;  %v8833_v61 = vadd.f32 %v11880_v6, %v11855_v56 }
 0x4c6   : > { %v6948_v34 = vmax.f32 %v8802_v15, 0.0  ;;  %v8806_v23 = vadd.f32 %v8805_v29, %v6816_v57  ;;  %v8831_v57 = vadd.f32 %v11880_v6, %v11861_v28 }
 0x4c7   : > { %6982 = vst [vmem:[%s11891_s11 + $0x50] sm:$0xff] %v6950_v5  ;;  %v6951_v44 = vmax.f32 %v8804_v59, 0.0 }
 0x4c8   : > { %6980 = vst [vmem:[%s11891_s11 + $0x40] sm:$0xff] %v6948_v34  ;;  %v6949_v19 = vmax.f32 %v8806_v23, 0.0 }
 0x4c9   : > { %6983 = vst [vmem:[%s11891_s11 + $0x58] sm:$0xff] %v6951_v44  ;;  %v8835_v44 = vadd.f32 %v11880_v6, %v11864_v35  ;;  %v8839_v35 = vadd.f32 %v11880_v6, %v11873_v20 }
 0x4ca   : > { %6981 = vst [vmem:[%s11891_s11 + $0x48] sm:$0xff] %v6949_v19  ;;  %v8749_v31 = vpop.f32.mrb[252].mxu1 }
 0x4cb   : > { %v8808_v37 = vadd.f32 %v8807_v36, %v8749_v31  ;;  %v6829_v27 = vpop.f32.mrb[253].mxu1  ;;  %v8837_v31 = vadd.f32 %v11880_v6, %v11858_v55  ;;  %v8841_v55 = vadd.f32 %v11880_v6, %v11867_v62 }
 0x4cc   : > { %v8810_v25 = vadd.f32 %v8809_v2, %v6829_v27  ;;  %v8750_v3 = vpop.f32.mrb[254].mxu1 }
 0x4cd   : > { %v6954_v33 = vmax.f32 %v8808_v37, 0.0  ;;  %v8812_v52 = vadd.f32 %v8811_v49, %v8750_v3  ;;  %v6832_v45 = vpop.f32.mrb[255].mxu1 }
 0x4ce   : > { %v6952_v11 = vmax.f32 %v8810_v25, 0.0  ;;  %v8814_v47 = vadd.f32 %v8813_v58, %v6832_v45 }
 0x4cf   : > { %6986 = vst [vmem:[%s11891_s11 + $0x70] sm:$0xff] %v6954_v33  ;;  %v6955_v14 = vmax.f32 %v8812_v52, 0.0  ;;  %v8843_v52 = vadd.f32 %v11880_v6, %v11875_v46 }
 0x4d0   : > { %6984 = vst [vmem:[%s11891_s11 + $0x60] sm:$0xff] %v6952_v11  ;;  %v6953_v18 = vmax.f32 %v8814_v47, 0.0  ;;  %v8845_v47 = vadd.f32 %v11880_v6, %v11870_v0 }
 0x4d1   : > { %6987 = vst [vmem:[%s11891_s11 + $0x78] sm:$0xff] %v6955_v14 }
 0x4d2   : > { %6985 = vst [vmem:[%s11891_s11 + $0x68] sm:$0xff] %v6953_v18  ;;  %v8753_v32 = vpop.f32.mrb[0].mxu1 }
 0x4d3   : > { %v8816_v51 = vadd.f32 %v8815_v26, %v8753_v32  ;;  %v6845_v24 = vpop.f32.mrb[1].mxu1 }
 0x4d4   : > { %v8818_v41 = vadd.f32 %v8817_v21, %v6845_v24  ;;  %v8754_v63 = vpop.f32.mrb[2].mxu1 }
 0x4d5   : > { %v6958_v54 = vmax.f32 %v8816_v51, 0.0  ;;  %v8820_v17 = vadd.f32 %v8819_v10, %v8754_v63  ;;  %v6848_v9 = vpop.f32.mrb[3].mxu1 }
 0x4d6   : > { %v6956_v12 = vmax.f32 %v8818_v41, 0.0  ;;  %v8822_v50 = vadd.f32 %v8821_v7, %v6848_v9 }
 0x4d7   : > { %6990 = vst [vmem:[%s11891_s11 + $0x90] sm:$0xff] %v6958_v54  ;;  %v6959_v8 = vmax.f32 %v8820_v17, 0.0 }
 0x4d8   : > { %6988 = vst [vmem:[%s11891_s11 + $0x80] sm:$0xff] %v6956_v12  ;;  %v6957_v53 = vmax.f32 %v8822_v50, 0.0 }
 0x4d9   : > { %6991 = vst [vmem:[%s11891_s11 + $0x98] sm:$0xff] %v6959_v8 }
 0x4da   : > { %6989 = vst [vmem:[%s11891_s11 + $0x88] sm:$0xff] %v6957_v53  ;;  %v8757_v1 = vpop.f32.mrb[4].mxu1 }
 0x4db   : > { %v8824_v16 = vadd.f32 %v8823_v38, %v8757_v1  ;;  %v6861_v43 = vpop.f32.mrb[5].mxu1 }
 0x4dc   : > { %v8826_v48 = vadd.f32 %v8825_v13, %v6861_v43  ;;  %v8758_v39 = vpop.f32.mrb[6].mxu1 }
 0x4dd   : > { %v6962_v15 = vmax.f32 %v8824_v16, 0.0  ;;  %v8828_v4 = vadd.f32 %v8827_v30, %v8758_v39  ;;  %v6864_v60 = vpop.f32.mrb[7].mxu1 }
 0x4de   : > { %v6960_v29 = vmax.f32 %v8826_v48, 0.0  ;;  %v8830_v5 = vadd.f32 %v8829_v42, %v6864_v60 }
 0x4df   : > { %6994 = vst [vmem:[%s11891_s11 + $0xb0] sm:$0xff] %v6962_v15  ;;  %v6963_v59 = vmax.f32 %v8828_v4, 0.0 }
 0x4e0   : > { %6992 = vst [vmem:[%s11891_s11 + $0xa0] sm:$0xff] %v6960_v29  ;;  %v6961_v40 = vmax.f32 %v8830_v5, 0.0 }
 0x4e1   : > { %6995 = vst [vmem:[%s11891_s11 + $0xb8] sm:$0xff] %v6963_v59 }
 0x4e2   : > { %6993 = vst [vmem:[%s11891_s11 + $0xa8] sm:$0xff] %v6961_v40  ;;  %v8761_v22 = vpop.f32.mrb[8].mxu1 }
 0x4e3   : > { %v8832_v34 = vadd.f32 %v8831_v57, %v8761_v22  ;;  %v6877_v23 = vpop.f32.mrb[9].mxu1 }
 0x4e4   : > { %v8834_v19 = vadd.f32 %v8833_v61, %v6877_v23  ;;  %v8762_v36 = vpop.f32.mrb[10].mxu1 }
 0x4e5   : > { %v6966_v2 = vmax.f32 %v8832_v34, 0.0  ;;  %v8836_v28 = vadd.f32 %v8835_v44, %v8762_v36  ;;  %v6880_v37 = vpop.f32.mrb[11].mxu1 }
 0x4e6   : > { %v6964_v27 = vmax.f32 %v8834_v19, 0.0  ;;  %v8838_v49 = vadd.f32 %v8837_v31, %v6880_v37 }
 0x4e7   : > { %6998 = vst [vmem:[%s11891_s11 + $0xd0] sm:$0xff] %v6966_v2  ;;  %v6967_v56 = vmax.f32 %v8836_v28, 0.0 }
 0x4e8   : > { %6996 = vst [vmem:[%s11891_s11 + $0xc0] sm:$0xff] %v6964_v27  ;;  %v6965_v25 = vmax.f32 %v8838_v49, 0.0 }
 0x4e9   : > { %6999 = vst [vmem:[%s11891_s11 + $0xd8] sm:$0xff] %v6967_v56 }
 0x4ea   : > { %6997 = vst [vmem:[%s11891_s11 + $0xc8] sm:$0xff] %v6965_v25  ;;  %v8765_v3 = vpop.f32.mrb[12].mxu1 }
 0x4eb   : > { %v8840_v58 = vadd.f32 %v8839_v35, %v8765_v3  ;;  %v6893_v33 = vpop.f32.mrb[13].mxu1 }
 0x4ec   : > { %v8842_v45 = vadd.f32 %v8841_v55, %v6893_v33  ;;  %v8766_v11 = vpop.f32.mrb[14].mxu1 }
 0x4ed   : > { %v6970_v20 = vmax.f32 %v8840_v58, 0.0  ;;  %v8844_v14 = vadd.f32 %v8843_v52, %v8766_v11  ;;  %v6896_v62 = vpop.f32.mrb[15].mxu1 }
 0x4ee   : > { %v6968_v18 = vmax.f32 %v8842_v45, 0.0  ;;  %v8846_v26 = vadd.f32 %v8845_v47, %v6896_v62 }
 0x4ef   : > { %7002 = vst [vmem:[%s11891_s11 + $0xf0] sm:$0xff] %v6970_v20  ;;  %v6971_v32 = vmax.f32 %v8844_v14, 0.0 }
 0x4f0   : > { %7000 = vst [vmem:[%s11891_s11 + $0xe0] sm:$0xff] %v6968_v18  ;;  %v6969_v0 = vmax.f32 %v8846_v26, 0.0 }
 0x4f1   : > { %7003 = vst [vmem:[%s11891_s11 + $0xf8] sm:$0xff] %v6971_v32 }
 0x4f2   : > { %7001 = vst [vmem:[%s11891_s11 + $0xe8] sm:$0xff] %v6969_v0 }
 0x4f3   : > { %9401 = shalt.err (!%p9398_p9)
}
 0x4f4   : > { %s9402_s17 = scalar_lea.hbm %s11983_s10, 4096  ;;  %s9406_s11 = scalar_lea.hbm %s12040_s8, 8192 }
 0x4f5   : > { %p9403_p1 = scmp.ne.s32.totalorder %s11983_s10, %s9402_s17  ;;  %p9407_p11 = scmp.lt.u32.totalorder %s11983_s10, %s12040_s8 }
 0x4f6   : > { %p9408_p2 = scmp.lt.u32.totalorder %s9406_s11, %s9402_s17  ;;  %p9410_p6 = scmp.lt.u32.totalorder %s9402_s17, %s11983_s10 }
 0x4f7   : > { %p9404_p0 = pnand %p9403_p1, %p9607_p12 }
 0x4f8   : > { %p9409_p4 = por %p9408_p2, %p9407_p11 }
 0x4f9   : > { %p9405_p5 = pneg %p9404_p0 }
 0x4fa   : > { %p9411_p8 = por %p9410_p6, %p9409_p4 }
 0x4fc   : > { %p9412_p10 = pnand %p9411_p8, %p9405_p5 }
 0x4fe   : > { %9415 = shalt.err (!%p9412_p10)
}
 0x4ff   : > { %s9466_s18 = smov 128   ;;  %s9467_s14 = smov 8  }
 0x500   : > { %8886 = dma.vmem_to_hbm [thread:$0]  (%p9607_p12), %s11985_s20, 4096, %s11983_s10, %s7005_s9, %s9466_s18, %s9466_s18, %s9467_s14  }
 0x501 PF: > { %s7033_s16 = sand.u32 1, %s9446_s27   ;;  %p12149_p13 = scmp.ne.s32.totalorder %s12058_s12, 0 }
 0x502   : > { %p12150_p3 = scmp.ge.s32.totalorder %s9458_s30, 2  ;;  %s7034_s13 = scalar_lea.sflag [#allocation5], %s7033_s16 }
 0x504   : > { %p8897_p7 = pnand %p12150_p3, %p12149_p13 }
 0x506   : > { %9441 = dma.done.wait (!%p8897_p7), %s7034_s13, 4096  }
 0x507   : > { %9443 = vsyncadd (!%p8897_p7), %s7034_s13, 4294963200  ;;  %s12151_s30 = sld [smem:[#allocation12_spill]]  ;;  %s12152_s27 = smov %s9450_s28 }
 0x508   : > { %s12153_s28 = smov %s9454_s29  ;;  %s12154_s29 = smov %s9603_s23 }
 0x50d   : > { %p22_p9 = scmp.ge.s32.totalorder %s12151_s30, 4  }
 0x50f   :  { %24 = sbr.rel (!%p22_p9) target bundleno = 6 (0x6), region = 108 }
 0x516   :  { %7039 = vsyncpa [#allocation4], 1 }
 0x517   :  { %7041 = vsyncpa [#allocation4 + $0x1], 1 }
 0x518   :  { %7042 = vsyncpa [#allocation7], 1 }
 0x519   :  { %7043 = vsyncpa [#allocation5], 1 }
 0x51a   :  { %7045 = vsyncpa [#allocation5 + $0x1], 1 }

// kernel: tpu_custom_call.1
= control target key start
LH: loop header
LB: loop body
LE: loop exit
PB: predicated region body
PF: predicated region fallthrough
CT: control target
= control target key end

     0   :  { %13 = vsyncpa [#allocation4], 0  ;;  %s12032_s0 = inlined_call_operand.vmem [shape: bf16[2,18,18,128], index: 0, kind: input, shape index: {}]   ;;  %s12033_s1 = inlined_call_operand.hbm [shape: bf16[2,16,16,128], index: 1, kind: input, shape index: {}]   ;;  %s12034_s2 = inlined_call_operand.vmem [shape: bf16[1152,128], index: 2, kind: input, shape index: {}]   ;;  %s12035_s3 = inlined_call_operand.vmem [shape: f32[1,128], index: 3, kind: input, shape index: {}]   ;;  %s12036_s4 = inlined_call_operand.hbm [shape: bf16[1152,128], index: 4, kind: input, shape index: {}]   ;;  %s12037_s5 = inlined_call_operand.vmem [shape: f32[1,128], index: 5, kind: input, shape index: {}]   ;;  %s12038_s6 = inlined_call_operand.vmem [shape: bf16[128,128], index: 6, kind: input, shape index: {}]   ;;  %s12039_s7 = inlined_call_operand.vmem [shape: f32[1,128], index: 7, kind: input, shape index: {}]   ;;  %s12040_s8 = inlined_call_operand.hbm [shape: f32[2,16,16,128], index: 8, kind: output, shape index: {}]  }
   0x1   :  { %15 = vsyncpa [#allocation4 + $0x1], 0 }
   0x2   :  { %16 = vsyncpa [#allocation7], 0 }
   0x3   :  { %17 = vsyncpa [#allocation5], 0 }
   0x4   :  { %19 = vsyncpa [#allocation5 + $0x1], 0  ;;  %s9513_s27 = smov 0   ;;  %s9515_s28 = smov 0  }
   0x5   :  { %s9517_s29 = smov 0   ;;  %s9519_s30 = smov 0  }
   0x6 LB: > { %s9534_s9 = sadd.s32 4294967295, %s9458_s30   ;;  %s7113_s10 = sadd.s32 4294967294, %s9458_s30   ;;  %s9458_s30 = sphi %s9519_s30, %s12151_s30   ;;  %s9454_s29 = sphi %s9517_s29, %s12154_s29   ;;  %s9450_s28 = sphi %s9515_s28, %s12153_s28   ;;  %s9446_s27 = sphi %s9513_s27, %s12152_s27  }
   0x7   : > { %p71_p0 = scmp.ne.s32.totalorder %s9450_s28, %s9446_s27  ;;  %p12041_p1 = scmp.eq.s32.totalorder %s9534_s9, 0 }
   0x8   : > { %p227_p3 = scmp.eq.s32.totalorder %s7113_s10, 1  ;;  %p7114_p5 = scmp.ge.s32.totalorder %s9458_s30, 1 }
   0x9   : > { %p9543_p4 = por %p12041_p1, %p71_p0  ;;  %p234_p7 = scmp.lt.s32.totalorder %s9458_s30, 3 }
   0xa   : > { %p9548_p6 = por %p227_p3, %p71_p0  ;;  %s9460_s14 = smov [#allocation6]  }
   0xb   : > { %s12057_s11 = scalar_select %p9543_p4, 1, 0 }
   0xc   : > { %s12058_s12 = scalar_select %p9548_p6, 1, 0 }
   0xd   : > { %p9553_p8 = pnand %p7114_p5, %p234_p7  ;;  %s252_s15 = sshll.u32 %s9460_s14, 4  ;;  %s9557_s15 = int_to_ptr.vmem [resolvable:$true] %s252_s15 }
   0xe   : > { %s9569_s17 = sadd.s32 1, %s9458_s30   ;;  %s58_s18 = sadd.s32 1, %s9454_s29 }
   0xf   : > { %s12059_s13 = scalar_select %p9553_p8, 1, 0 }
  0x10   : > { %p8888_p9 = pneg %p9553_p8  ;;  %12061 = sst [smem:[#allocation12_spill]] %s9569_s17 }
  0x11   : > { %s55_s19 = ssub.s32 %s9458_s30, %s9569_s17  ;;  %s9330_s22 = scalar_lea.hbm %s12036_s4, 9216 }
  0x12   : > { %p9564_p11 = pnand %p8888_p9, %p12041_p1  ;;  %p9331_p12 = scmp.ne.s32.totalorder %s12036_s4, %s9330_s22 }
  0x13   : > { %p9337_p5 = scmp.lt.u32.totalorder %s9330_s22, %s12036_s4 }
  0x14   : > { %p9332_p13 = pneg %p9564_p11 }
  0x16   : > { %p9333_p0 = pnand %p9332_p13, %p9331_p12 }
  0x18   : > { %p9334_p3 = pneg %p9333_p0 }
  0x1a   : > { %p9339_p7 = pnand %p9337_p5, %p9334_p3 }
  0x1c   : > { %9342 = shalt.err (!%p9339_p7)
}
  0x1d   : > { %s9343_s10 = scalar_lea.vmem %s9557_s15, 9216  ;;  %p9351_p2 = scmp.lt.s32.totalorder %s9557_s15, %s9557_s15 }
  0x1e   : > { %p9344_p9 = scmp.ne.s32.totalorder %s9557_s15, %s9343_s10  ;;  %p9352_p6 = scmp.lt.s32.totalorder %s9343_s10, %s9343_s10 }
  0x20   : > { %p9346_p10 = pnand %p9344_p9, %p9332_p13  ;;  %p9353_p4 = por %p9352_p6, %p9351_p2 }
  0x22   : > { %p9347_p1 = pneg %p9346_p10 }
  0x24   : > { %p9354_p8 = pnand %p9353_p4, %p9347_p1 }
  0x26   : > { %9357 = shalt.err (!%p9354_p8)
}
  0x27   : > { %s12046_s14 = smov 64   ;;  %s9462_s20 = smov 4  }
  0x28   : > { %8891 = dma.hbm_to_vmem [thread:$0]  (!%p9564_p11), %s12036_s4, 9216, %s9557_s15, [#allocation7], %s12046_s14, %s12046_s14, %s9462_s20  }
  0x29   : > { %p56_p1 = scmp.eq.s32.totalorder %s55_s19, 0  ;;  %p65_p2 = scmp.ne.s32.totalorder %s9454_s29, %s9450_s28 }
  0x2a   : > { %p66_p4 = scmp.eq.s32.totalorder %s9458_s30, 0  ;;  %p8901_p6 = scmp.lt.s32.totalorder %s9458_s30, 2 }
  0x2b   : > { %s9603_s23 = scalar_select %p56_p1, %s9454_s29, %s58_s18  }
  0x2c   : > { %p67_p8 = por %p66_p4, %p65_p2  ;;  %p12062_p10 = scmp.eq.s32.totalorder %s9534_s9, 1 }
  0x2d   : > { %s283_s16 = sand.u32 1, %s9454_s29   ;;  %s7621_s25 = sshll.u32 %s9458_s30, 11 }
  0x2e   : > { %p9607_p12 = por %p12062_p10, %p65_p2  ;;  %s7117_s26 = sshll.u32 %s283_s16, 7 }
  0x2f   : > { %s9616_s21 = scalar_lea.hbm %s12033_s1, %s7621_s25  ;;  %s287_s15 = scalar_lea.vmem [#allocation3], %s7117_s26 }
  0x30   : > { %s294_s18 = sshll.u32 %s287_s15, 4  ;;  %p9618_p11 = pnand %p8901_p6, %p67_p8  ;;  %s9622_s18 = int_to_ptr.vmem [resolvable:$true] %s294_s18 }
  0x31   : > { %s9624_s22 = scalar_lea.sflag [#allocation4], %s283_s16  ;;  %s9358_s14 = scalar_lea.hbm %s9616_s21, 2048 }
  0x32   : > { %p9359_p13 = scmp.ne.s32.totalorder %s9616_s21, %s9358_s14  ;;  %p9360_p0 = pneg %p9618_p11 }
  0x33   : > { %s9363_s26 = scalar_lea.hbm %s12033_s1, 4096  ;;  %p9364_p7 = scmp.lt.u32.totalorder %s9616_s21, %s12033_s1 }
  0x34   : > { %p9361_p3 = pnand %p9360_p0, %p9359_p13  ;;  %p9365_p9 = scmp.lt.u32.totalorder %s9363_s26, %s9358_s14 }
  0x35   : > { %p9367_p2 = scmp.lt.u32.totalorder %s9358_s14, %s9616_s21 }
  0x36   : > { %p9362_p5 = pneg %p9361_p3  ;;  %p9366_p1 = por %p9365_p9, %p9364_p7 }
  0x38   : > { %p9368_p4 = por %p9367_p2, %p9366_p1 }
  0x3a   : > { %p9369_p6 = pnand %p9368_p4, %p9362_p5 }
  0x3c   : > { %9372 = shalt.err (!%p9369_p6)
}
  0x3d   : > { %s9373_s16 = scalar_lea.vmem %s9622_s18, 2048  ;;  %s9463_s17 = smov [#allocation3]  }
  0x3e   : > { %p9374_p8 = scmp.ne.s32.totalorder %s9622_s18, %s9373_s16  ;;  %s9378_s25 = sshll.u32 %s9463_s17, 4  ;;  %s9379_s25 = int_to_ptr.vmem [resolvable:$false] %s9378_s25 }
  0x3f   : > { %s9380_s10 = scalar_lea.vmem %s9379_s25, 4096  ;;  %p9381_p3 = scmp.lt.s32.totalorder %s9622_s18, %s9379_s25 }
  0x40   : > { %p9376_p10 = pnand %p9374_p8, %p9360_p0  ;;  %p9382_p7 = scmp.lt.s32.totalorder %s9380_s10, %s9373_s16 }
  0x42   : > { %p9377_p13 = pneg %p9376_p10  ;;  %p9383_p9 = por %p9382_p7, %p9381_p3 }
  0x44   : > { %p9384_p1 = pnand %p9383_p9, %p9377_p13 }
  0x46   : > { %9387 = shalt.err (!%p9384_p1)
}
  0x47   : > { %s12065_s14 = smov 64   ;;  %p12066_p0 = scmp.ne.s32.totalorder %s12059_s13, 0 }
  0x48   : > { %8895 = dma.hbm_to_vmem [thread:$0]  (!%p9618_p11), %s9616_s21, 2048, %s9622_s18, %s9624_s22, %s12065_s14, %s12065_s14, %s9462_s20  }
  0x49   : > { %306 = sbr.rel (%p12066_p0) target bundleno = 1281 (0x501), region = 52 }
  0x50   : > { %s9658_s26 = sand.u32 1, %s9450_s28   ;;  %p12067_p5 = scmp.ne.s32.totalorder %s12057_s11, 0 }
  0x51   : > { %s7121_s15 = sshll.u32 %s9658_s26, 7  ;;  %s309_s16 = scalar_lea.sflag [#allocation4], %s9658_s26 }
  0x52   : > { %s9662_s17 = scalar_lea.vmem [#allocation3], %s7121_s15 }
  0x53   : > { %9433 = dma.done.wait (%p12067_p5), %s309_s16, 2048  }
  0x54   : > { %9435 = vsyncadd (%p12067_p5), %s309_s16, 4294965248  ;;  %p12068_p11 = scmp.eq.s32.totalorder %s9534_s9, 0 }
  0x56   : > { %9437 = dma.done.wait (%p12068_p11), [#allocation7], 9216   ;;  %p12069_p2 = pmov %p12068_p11 }
  0x57   : > { %v8942_v0 = vld [vmem:[%s12034_s2 + $0x40] sm:$0xff]   ;;  %v8944_v2 = vld [vmem:[%s12034_s2 + $0x48] sm:$0xff]   ;;  %p354_p4 = scmp.lt.s32.totalorder %s9534_s9, 1  ;;  %v8946_v4 = vld [vmem:[%s12034_s2 + $0x50] sm:$0xff]   ;;  %vm650_vm0 = vsmask.f32 7424 }
  0x58   : > { %9439 = vsyncadd (%p12069_p2), [#allocation7], 4294958080  ;;  %v8943_v1 = vld [vmem:[%s12034_s2] sm:$0xff]   ;;  %7655 = vmatprep.subr.bf16.mxu0 %v8942_v0  ;;  %v8945_v3 = vld [vmem:[%s12034_s2 + $0x8] sm:$0xff]   ;;  %vm859_vm1 = vcmask 1046528   ;;  %vm3650_vm2 = vcmask 1043456  }
  0x59   : > { %7656 = vmatpush3.bf16.msra.mxu0 %v8943_v1  ;;  %s355_s15 = scalar_select %p354_p4, %s9534_s9, 1  ;;  %v8947_v5 = vld [vmem:[%s12034_s2 + $0x10] sm:$0xff]   ;;  %v8948_v6 = vld [vmem:[%s12034_s2 + $0x58] sm:$0xff]   ;;  %v8950_v8 = vld [vmem:[%s12034_s2 + $0x60] sm:$0xff]   ;;  %vm3651_vm3 = vsmask.f32 7938 }
  0x5a   : > { %7657 = vmatprep.subr.bf16.mxu0 %v8944_v2  ;;  %v8949_v7 = vld [vmem:[%s12034_s2 + $0x18] sm:$0xff]   ;;  %v8951_v9 = vld [vmem:[%s12034_s2 + $0x20] sm:$0xff]   ;;  %v8952_v10 = vld [vmem:[%s12034_s2 + $0x68] sm:$0xff]   ;;  %vm3326_vm4 = vsmask.f32 256  ;;  %vm3657_vm6 = vcmask 1040384  }
  0x5b   : > { %s8879_s18 = smul.u32 216, %s355_s15  ;;  %v8953_v11 = vld [vmem:[%s12034_s2 + $0x28] sm:$0xff]   ;;  %v8960_v14 = vld [vmem:[%s12034_s2 + $0xc0] sm:$0xff]   ;;  %v8954_v15 = vld [vmem:[%s12034_s2 + $0x70] sm:$0xff]   ;;  %vm3327_vm5 = vsmask.f32 4368 }
  0x5c   : > { %v8961_v20 = vld [vmem:[%s12034_s2 + $0x80] sm:$0xff]   ;;  %8767 = vmatprep.subr.bf16.mxu1 %v8960_v14  ;;  %v8955_v21 = vld [vmem:[%s12034_s2 + $0x30] sm:$0xff]   ;;  %v8962_v24 = vld [vmem:[%s12034_s2 + $0xc8] sm:$0xff]   ;;  %s7123_s19 = sshll.u32 %s9658_s26, 8  ;;  %s7654_s22 = sshll.u32 %s9534_s9, 12 }
  0x5d   : > { %7658 = vmatpush3.bf16.msra.mxu0 %v8945_v3  ;;  %s9707_s20 = scalar_lea.vmem %s12032_s0, %s8879_s18  ;;  %v8956_v26 = vld [vmem:[%s12034_s2 + $0x78] sm:$0xff]   ;;  %8775 = vmatpush3.bf16.msra.mxu1 %v8961_v20  ;;  %v8965_v31 = vld [vmem:[%s12034_s2 + $0x88] sm:$0xff]   ;;  %v8966_v36 = vld [vmem:[%s12034_s2 + $0xd0] sm:$0xff]   ;;  %s11891_s11 = scalar_lea.vmem [#allocation8], %s7123_s19 }
  0x5e   : > { %7659 = vmatprep.subr.bf16.mxu0 %v8946_v4  ;;  %v8958_v12 = vld [vmem:[%s9707_s20] sm:$0xff]   ;;  %v8959_v13 = vld [vmem:[%s9707_s20 + $0x8] ss:$0 sps:$4 sm:$0x11]   ;;  %v9733_v25 = vld [vmem:[%s9707_s20 + $0xc] sm:$0xff]   ;;  %8768 = vmatprep.subr.bf16.mxu1 %v8962_v24  ;;  %s11983_s10 = scalar_lea.hbm %s12040_s8, %s7654_s22  ;;  %s7005_s9 = scalar_lea.sflag [#allocation5], %s9658_s26 }
  0x5f   : > { %v652_v16 = vshrl.u32 %v8958_v12, 16  ;;  %v654_v17 = vshll.u32 %v8958_v12, 16  ;;  %v659_v18 = vshll.u32 %v8959_v13, 16  ;;  %v861_v19 = vrot.slane %v8959_v13, 1  ;;  %v8957_v32 = vld [vmem:[%s12034_s2 + $0x38] sm:$0xff]   ;;  %v8967_v37 = vld [vmem:[%s12034_s2 + $0x90] sm:$0xff]   ;;  %vm10955_vm7 = vmand %vm3650_vm2, %vm3651_vm3 }
  0x60   : > { %v9739_v28 = vld [vmem:[%s9707_s20 + $0x14] ss:$0 sps:$4 sm:$0x11]   ;;  %v664_v29 = vshrl.u32 %v9733_v25, 16  ;;  %v666_v30 = vshll.u32 %v9733_v25, 16  ;;  %v8968_v39 = vld [vmem:[%s12034_s2 + $0xd8] sm:$0xff]   ;;  %vm10962_vm8 = vmand %vm3657_vm6, %vm3326_vm4 }
  0x61   : > { %7660 = vmatpush3.bf16.msra.mxu0 %v8947_v5  ;;  %v656_v22 = vrot.slane %v654_v17, 1  ;;  %v661_v23 = vrot.slane %v659_v18, 1  ;;  %v671_v35 = vshll.u32 %v9739_v28, 16  ;;  %8776 = vmatpush3.bf16.msra.mxu1 %v8965_v31  ;;  %v9761_v41 = vld [vmem:[%s9707_s20 + $0x18] sm:$0xff]   ;;  %v860_v43 = vrot.slane %v8958_v12, 1  ;;  %v8972_v51 = vld [vmem:[%s12034_s2 + $0xe0] sm:$0xff]   ;;  %vm10968_vm9 = vmor %vm3326_vm4, %vm3327_vm5 }
  0x62   : > { %7661 = vmatprep.subr.bf16.mxu0 %v8948_v6  ;;  %v668_v34 = vrot.slane %v666_v30, 1  ;;  %8769 = vmatprep.subr.bf16.mxu1 %v8966_v36  ;;  %v9764_v42 = vld [vmem:[%s9707_s20 + $0x20] ss:$0 sps:$4 sm:$0x11]   ;;  %v676_v44 = vshrl.u32 %v9761_v41, 16  ;;  %v678_v45 = vshll.u32 %v9761_v41, 16 }
  0x63   : > { %v657_v27 = vor.u32 %v656_v22, %v652_v16  ;;  %v673_v38 = vrot.slane %v671_v35, 1  ;;  %v8971_v46 = vld [vmem:[%s12034_s2 + $0x98] sm:$0xff]   ;;  %v9772_v47 = vsel %vm859_vm1, %v860_v43, %v861_v19  ;;  %v683_v50 = vshll.u32 %v9764_v42, 16  ;;  %v8973_v52 = vld [vmem:[%s12034_s2 + $0xa0] sm:$0xff]   ;;  %v8974_v55 = vld [vmem:[%s12034_s2 + $0xe8] sm:$0xff]   ;;  %s9465_s16 = smov [#allocation8]  }
  0x64   : > { %v669_v40 = vor.u32 %v668_v34, %v664_v29  ;;  %v680_v49 = vrot.slane %v678_v45, 1  ;;  %v9783_v53 = vld [vmem:[%s9707_s20 + $0x24] sm:$0xff]   ;;  %v9786_v54 = vld [vmem:[%s9707_s20 + $0x2c] ss:$0 sps:$4 sm:$0x11]   ;;  %v8978_v61 = vld [vmem:[%s12034_s2 + $0xf0] sm:$0xff]  }
  0x65   : > { %7662 = vmatpush3.bf16.msra.mxu0 %v8949_v7  ;;  %v662_v33 = vsel %vm650_vm0, %v657_v27, %v661_v23  ;;  %8777 = vmatpush3.bf16.msra.mxu1 %v8967_v37  ;;  %v685_v57 = vrot.slane %v683_v50, 1  ;;  %v690_v58 = vshll.u32 %v9783_v53, 16  ;;  %v695_v59 = vshll.u32 %v9786_v54, 16  ;;  %v8977_v60 = vld [vmem:[%s12034_s2 + $0xa8] sm:$0xff]   ;;  %v9802_v1 = vld [vmem:[%s9707_s20 + $0x30] sm:$0xff]   ;;  %v9810_v4 = vld [vmem:[%s9707_s20 + $0x3c] sm:$0xff]  }
  0x66   : > { %7663 = vmatprep.subr.bf16.mxu0 %v8950_v8  ;;  %2371 = vmatprep.mubr.bf16.mxu0 %v662_v33  ;;  %v674_v48 = vsel %vm650_vm0, %v669_v40, %v673_v38  ;;  %v681_v56 = vor.u32 %v680_v49, %v676_v44  ;;  %v688_v63 = vshrl.u32 %v9783_v53, 16  ;;  %v8979_v2 = vld [vmem:[%s12034_s2 + $0xb0] sm:$0xff]   ;;  %v8982_v3 = vld [vmem:[%s9707_s20 + $0x38] ss:$0 sps:$4 sm:$0x11]   ;;  %v702_v8 = vshll.u32 %v9802_v1, 16 }
  0x67   : > { %8770 = vmatprep.subr.bf16.mxu1 %v8968_v39  ;;  %v692_v0 = vrot.slane %v690_v58, 1  ;;  %v697_v5 = vrot.slane %v695_v59, 1  ;;  %v8980_v6 = vld [vmem:[%s12034_s2 + $0xf8] sm:$0xff]   ;;  %2564 = vmatprep.mubr.bf16.mxu1 %v9810_v4  ;;  %v864_v13 = vrot.slane %v9739_v28, 1  ;;  %v9850_v50 = vld [vmem:[%s9707_s20 + $0x60] sm:$0xff]   ;;  %s9392_s13 = sshll.u32 %s9465_s16, 4  ;;  %s9393_s13 = int_to_ptr.vmem [resolvable:$false] %s9392_s13 }
  0x68   : > { %v686_v62 = vsel %vm650_vm0, %v681_v56, %v685_v57  ;;  %v704_v17 = vrot.slane %v702_v8, 1  ;;  %v8985_v18 = vld [vmem:[%s9707_s20 + $0x3c] sm:$0xff]   ;;  %v9841_v34 = vld [vmem:[%s9707_s20 + $0x54] sm:$0xff]   ;;  %12070 = vst [vmem:[#allocation13_spill] sm:$0xff] %v9850_v50  ;;  %s9394_s15 = scalar_lea.vmem %s9393_s13, 8192 }
  0x69   : > { %7664 = vmatpush3.bf16.msra.mxu0 %v8951_v9  ;;  %8778 = vmatpush3.bf16.msra.mxu1 %v8971_v46  ;;  %v693_v7 = vor.u32 %v692_v0, %v688_v63  ;;  %v863_v9 = vrot.slane %v9733_v25, 1  ;;  %v712_v29 = vshrl.u32 %v8985_v18, 16  ;;  %v9856_v63 = vld [vmem:[%s9707_s20 + $0x60] sm:$0xff]  }
  0x6a   : > { %7665 = vmatprep.subr.bf16.mxu0 %v8952_v10  ;;  %8771 = vmatprep.subr.bf16.mxu1 %v8972_v51  ;;  %v8983_v10 = vld [vmem:[%s12034_s2 + $0xb8] sm:$0xff]  }
  0x6b   : > { %v698_v16 = vsel %vm650_vm0, %v693_v7, %v697_v5  ;;  %v9827_v19 = vsel %vm859_vm1, %v863_v9, %v864_v13  ;;  %v884_v7 = vrot.slane %v9856_v63, 1  ;;  %v9867_v9 = vld [vmem:[%s9707_s20 + $0x6c] sm:$0xff]  }
  0x6d   : > { %7666 = vmatpush3.bf16.msra.mxu0 %v8953_v11  ;;  %8779 = vmatpush3.bf16.msra.mxu1 %v8973_v52  ;;  %v872_v11 = vrot.slane %v9802_v1, 1 }
  0x6e   : > { %7667 = vmatprep.subr.bf16.mxu0 %v8954_v15  ;;  %8772 = vmatprep.subr.bf16.mxu1 %v8974_v55  ;;  %v707_v15 = vshll.u32 %v8982_v3, 16 }
  0x70   : > { %v709_v22 = vrot.slane %v707_v15, 1 }
  0x71   : > { %7668 = vmatpush3.bf16.msra.mxu0 %v8955_v21  ;;  %8780 = vmatpush3.bf16.msra.mxu1 %v8977_v60  ;;  %v9832_v21 = vld [vmem:[%s9707_s20 + $0x48] sm:$0xff]  }
  0x72   : > { %7669 = vmatprep.subr.bf16.mxu0 %v8956_v26  ;;  %8773 = vmatprep.subr.bf16.mxu1 %v8978_v61  ;;  %v875_v26 = vrot.slane %v8985_v18, 1 }
  0x75   : > { %7670 = vmatpush3.bf16.msra.mxu0 %v8957_v32  ;;  %8781 = vmatpush3.bf16.msra.mxu1 %v8979_v2  ;;  %v8988_v32 = vld [vmem:[%s9707_s20 + $0x48] sm:$0xff]  }
  0x76   : > { %7767 = vmatprep.subr.bf16.mxu0 %v8960_v14  ;;  %8774 = vmatprep.subr.bf16.mxu1 %v8980_v6  ;;  %v700_v14 = vshrl.u32 %v9802_v1, 16  ;;  %v726_v38 = vshll.u32 %v8988_v32, 16  ;;  %v724_v44 = vshrl.u32 %v8988_v32, 16 }
  0x78   : > { %2372 = vmatmul.mubr.bf16.vlgmr.msra.gmra.mrb[0].mxu0 %v8958_v12  ;;  %v873_v12 = vrot.slane %v8982_v3, 1  ;;  %v705_v23 = vor.u32 %v704_v17, %v700_v14  ;;  %v728_v45 = vrot.slane %v726_v38, 1  ;;  %v8998_v14 = vld [vmem:[%s9707_s20 + $0x74] ss:$0 sps:$4 sm:$0x11]   ;;  %v8999_v17 = vld [vmem:[%s9707_s20 + $0x78] sm:$0xff]  }
  0x79   : > { %7768 = vmatpush3.bf16.msra.mxu0 %v8961_v20  ;;  %2379 = vmatprep.mubr.bf16.mxu0 %v674_v48  ;;  %v8991_v48 = vld [vmem:[%s9707_s20 + $0x54] sm:$0xff]   ;;  %v9002_v38 = vld [vmem:[%s9707_s20 + $0x84] sm:$0xff]  }
  0x7a   : > { %7769 = vmatprep.subr.bf16.mxu0 %v8962_v24  ;;  %8782 = vmatpush3.bf16.msra.mxu1 %v8983_v10  ;;  %v874_v20 = vsel %vm859_vm1, %v872_v11, %v873_v12  ;;  %v8986_v24 = vld [vmem:[%s9707_s20 + $0x44] ss:$0 sps:$4 sm:$0x11]   ;;  %v710_v28 = vsel %vm650_vm0, %v705_v23, %v709_v22  ;;  %v738_v56 = vshll.u32 %v8991_v48, 16  ;;  %v881_v57 = vrot.slane %v8991_v48, 1 }
  0x7b   : > { %v876_v27 = vrot.slane %v8986_v24, 1  ;;  %v736_v59 = vshrl.u32 %v8991_v48, 16  ;;  %v760_v22 = vshrl.u32 %v9867_v9, 16  ;;  %v887_v23 = vrot.slane %v9867_v9, 1 }
  0x7d   : > { %7770 = vmatpush3.bf16.msra.mxu0 %v8965_v31  ;;  %2565 = vmatmul.mubr.bf16.vlgmr.msra.gmra.mrb[0].mxu1 %v874_v20  ;;  %v719_v31 = vshll.u32 %v8986_v24, 16  ;;  %v877_v33 = vsel %vm859_vm1, %v875_v26, %v876_v27  ;;  %v767_v24 = vshll.u32 %v8998_v14, 16  ;;  %v888_v27 = vrot.slane %v8998_v14, 1 }
  0x7e   : > { %7771 = vmatprep.subr.bf16.mxu0 %v8966_v36  ;;  %2572 = vmatprep.mubr.bf16.mxu1 %v9832_v21 }
  0x7f   : > { %v721_v36 = vrot.slane %v719_v31, 1 }
  0x80   : > { %2380 = vmatmul.mubr.bf16.gmra.mrb[4].mxu0 %v9733_v25  ;;  %v714_v25 = vshll.u32 %v8985_v18, 16 }
  0x81   : > { %2387 = vmatprep.mubr.bf16.mxu0 %v686_v62  ;;  %7772 = vmatpush3.bf16.msra.mxu0 %v8967_v37  ;;  %v8989_v37 = vld [vmem:[%s9707_s20 + $0x50] ss:$0 sps:$4 sm:$0x11]   ;;  %v740_v62 = vrot.slane %v738_v56, 1 }
  0x82   : > { %7773 = vmatprep.subr.bf16.mxu0 %v8968_v39  ;;  %v716_v30 = vrot.slane %v714_v25, 1  ;;  %v878_v39 = vrot.slane %v8988_v32, 1  ;;  %v879_v40 = vrot.slane %v8989_v37, 1  ;;  %v9019_v25 = vld [vmem:[%s12034_s2 + $0x140] sm:$0xff]   ;;  %v9030_v56 = vld [vmem:[%s12034_s2 + $0x1d0] sm:$0xff]  }
  0x83   : > { %v741_v3 = vor.u32 %v740_v62, %v736_v59 }
  0x84   : > { %v717_v35 = vor.u32 %v716_v30, %v712_v29  ;;  %v880_v49 = vsel %vm859_vm1, %v878_v39, %v879_v40  ;;  %v9021_v29 = vld [vmem:[%s12034_s2 + $0x1c0] sm:$0xff]   ;;  %v866_v30 = vrot.slane %v9761_v41, 1 }
  0x85   : > { %7774 = vmatpush3.bf16.msra.mxu0 %v8971_v46  ;;  %2573 = vmatmul.mubr.bf16.gmra.mrb[4].mxu1 %v877_v33  ;;  %v731_v46 = vshll.u32 %v8989_v37, 16  ;;  %v867_v33 = vrot.slane %v9764_v42, 1  ;;  %v889_v37 = vsel %vm859_vm1, %v887_v23, %v888_v27  ;;  %v9025_v42 = vld [vmem:[%s12034_s2 + $0x1c8] sm:$0xff]  }
  0x86   : > { %7775 = vmatprep.subr.bf16.mxu0 %v8972_v51  ;;  %2580 = vmatprep.mubr.bf16.mxu1 %v9841_v34  ;;  %v722_v43 = vsel %vm650_vm0, %v717_v35, %v721_v36  ;;  %v8992_v51 = vld [vmem:[%s9707_s20 + $0x5c] ss:$0 sps:$4 sm:$0x11]   ;;  %v9001_v35 = vld [vmem:[%s9707_s20 + $0x80] ss:$0 sps:$4 sm:$0x11]  }
  0x87   : > { %v882_v58 = vrot.slane %v8992_v51, 1  ;;  %7991 = vmatprep.subr.bf16.mxu1 %v9021_v29  ;;  %v869_v36 = vrot.slane %v9783_v53, 1  ;;  %v9897_v39 = vsel %vm859_vm1, %v866_v30, %v867_v33 }
  0x88   : > { %2388 = vmatmul.mubr.bf16.gmra.mrb[8].mxu0 %v9761_v41  ;;  %v870_v41 = vrot.slane %v9786_v54, 1  ;;  %v9027_v54 = vld [vmem:[%s12034_s2 + $0x188] sm:$0xff]  }
  0x89   : > { %2395 = vmatprep.mubr.bf16.mxu0 %v698_v16  ;;  %7776 = vmatpush3.bf16.msra.mxu0 %v8973_v52  ;;  %v729_v52 = vor.u32 %v728_v45, %v724_v44  ;;  %v883_v0 = vsel %vm859_vm1, %v881_v57, %v882_v58  ;;  %v762_v16 = vshll.u32 %v9867_v9, 16  ;;  %v9004_v57 = vld [vmem:[%s9707_s20 + $0x8c] ss:$0 sps:$4 sm:$0x11]   ;;  %v9031_v58 = vld [vmem:[%s12034_s2 + $0x190] sm:$0xff]  }
  0x8a   : > { %7777 = vmatprep.subr.bf16.mxu0 %v8974_v55  ;;  %v733_v55 = vrot.slane %v731_v46, 1  ;;  %v9905_v44 = vsel %vm859_vm1, %v869_v36, %v870_v41 }
  0x8b   : > { %v764_v26 = vrot.slane %v762_v16, 1  ;;  %v9040_v16 = vld [vmem:[%s12034_s2 + $0x1a0] sm:$0xff]  }
  0x8d   : > { %7778 = vmatpush3.bf16.msra.mxu0 %v8977_v60  ;;  %2581 = vmatmul.mubr.bf16.gmra.mrb[8].mxu1 %v880_v49  ;;  %v743_v60 = vshll.u32 %v8992_v51, 16  ;;  %v765_v40 = vor.u32 %v764_v26, %v760_v22  ;;  %v779_v49 = vshll.u32 %v9001_v35, 16  ;;  %v9913_v51 = vld [vmem:[%s9707_s20 + $0x84] sm:$0xff]  }
  0x8e   : > { %7779 = vmatprep.subr.bf16.mxu0 %v8978_v61  ;;  %2588 = vmatprep.mubr.bf16.mxu1 %v9850_v50  ;;  %v734_v61 = vsel %vm650_vm0, %v729_v52, %v733_v55  ;;  %v9045_v26 = vld [vmem:[%s12034_s2 + $0x1a8] sm:$0xff]  }
  0x8f   : > { %v745_v5 = vrot.slane %v743_v60, 1  ;;  %v9005_v60 = vld [vmem:[%s9707_s20 + $0x90] sm:$0xff]  }
  0x90   : > { %2396 = vmatmul.mubr.bf16.gmra.mrb[12].mxu0 %v9783_v53 }
  0x91   : > { %2403 = vmatprep.mubr.bf16.mxu0 %v710_v28  ;;  %7780 = vmatpush3.bf16.msra.mxu0 %v8979_v2  ;;  %v8995_v2 = vld [vmem:[%s9707_s20 + $0x68] ss:$0 sps:$4 sm:$0x11]   ;;  %v746_v12 = vsel %vm650_vm0, %v741_v3, %v745_v5  ;;  %v9881_v28 = vld [vmem:[%s9707_s20 + $0x78] sm:$0xff]   ;;  %v893_v3 = vrot.slane %v9913_v51, 1  ;;  %v894_v5 = vrot.slane %v9004_v57, 1 }
  0x92   : > { %7781 = vmatprep.subr.bf16.mxu0 %v8980_v6  ;;  %v750_v6 = vshll.u32 %v9856_v63, 16  ;;  %v885_v8 = vrot.slane %v8995_v2, 1  ;;  %v755_v11 = vshll.u32 %v8995_v2, 16  ;;  %v774_v53 = vshll.u32 %v9881_v28, 16  ;;  %v9034_v2 = vld [vmem:[%s12034_s2 + $0x1d8] sm:$0xff]  }
  0x93   : > { %v772_v45 = vshrl.u32 %v9881_v28, 16  ;;  %v890_v46 = vrot.slane %v9881_v28, 1  ;;  %v895_v14 = vsel %vm859_vm1, %v893_v3, %v894_v5  ;;  %v9999_v5 = vld [vmem:[%s9707_s20 + $0xb4] sm:$0xff]  }
  0x94   : > { %v752_v13 = vrot.slane %v750_v6, 1  ;;  %v886_v15 = vsel %vm859_vm1, %v884_v7, %v885_v8  ;;  %v776_v55 = vrot.slane %v774_v53, 1  ;;  %v9036_v6 = vld [vmem:[%s12034_s2 + $0x198] sm:$0xff]   ;;  %v791_v7 = vshll.u32 %v9004_v57, 16  ;;  %v9936_v8 = vld [vmem:[%s9707_s20 + $0x90] sm:$0xff]  }
  0x95   : > { %7782 = vmatpush3.bf16.msra.mxu0 %v8983_v10  ;;  %2589 = vmatmul.mubr.bf16.gmra.mrb[12].mxu1 %v883_v0  ;;  %v748_v10 = vshrl.u32 %v9856_v63, 16  ;;  %v786_v0 = vshll.u32 %v9913_v51, 16  ;;  %v896_v22 = vrot.slane %v9936_v8, 1 }
  0x96   : > { %7879 = vmatprep.subr.bf16.mxu0 %v9019_v25  ;;  %v777_v62 = vor.u32 %v776_v55, %v772_v45  ;;  %v796_v25 = vshrl.u32 %v9936_v8, 16 }
  0x97   : > { %v753_v20 = vor.u32 %v752_v13, %v748_v10  ;;  %v9039_v13 = vld [vmem:[%s12034_s2 + $0x1e0] sm:$0xff]  }
  0x98   : > { %2404 = vmatmul.mubr.bf16.gmra.mrb[16].mxu0 %v9802_v1  ;;  %v9860_v1 = vld [vmem:[%s9707_s20 + $0x6c] sm:$0xff]  }
  0x99   : > { %2411 = vmatprep.mubr.bf16.mxu0 %v722_v43  ;;  %2596 = vmatprep.mubr.bf16.mxu1 %v9860_v1  ;;  %v769_v43 = vrot.slane %v767_v24, 1  ;;  %v9955_v24 = vld [vmem:[%s9707_s20 + $0x9c] sm:$0xff]  }
  0x9a   : > { %v810_v36 = vshll.u32 %v9955_v24, 16 }
  0x9b   : > { %v770_v52 = vsel %vm650_vm0, %v765_v40, %v769_v43  ;;  %v9052_v43 = vld [vmem:[%s12034_s2 + $0x1f8] sm:$0xff]  }
  0x9c   : > { %v812_v53 = vrot.slane %v810_v36, 1  ;;  %v10020_v36 = vld [vmem:[%s9707_s20 + $0x30] sm:$0xff]  }
  0x9d   : > { %2597 = vmatmul.mubr.bf16.gmra.mrb[16].mxu1 %v886_v15  ;;  %v9007_v15 = vld [vmem:[%s9707_s20 + $0x98] ss:$0 sps:$4 sm:$0x11]  }
  0x9e   : > { %2604 = vmatprep.mubr.bf16.mxu1 %v8999_v17  ;;  %v897_v23 = vrot.slane %v9007_v15, 1  ;;  %v803_v30 = vshll.u32 %v9007_v15, 16 }
  0xa0   : > { %2412 = vmatmul.mubr.bf16.gmra.mrb[20].mxu0 %v8985_v18  ;;  %v757_v18 = vrot.slane %v755_v11, 1  ;;  %v788_v11 = vrot.slane %v786_v0, 1  ;;  %v898_v33 = vsel %vm859_vm1, %v896_v22, %v897_v23  ;;  %v805_v41 = vrot.slane %v803_v30, 1 }
  0xa1   : > { %2419 = vmatprep.mubr.bf16.mxu0 %v734_v61  ;;  %v781_v61 = vrot.slane %v779_v49, 1  ;;  %v9013_v49 = vld [vmem:[%s9707_s20 + $0xb0] ss:$0 sps:$4 sm:$0x11]  }
  0xa2   : > { %v758_v31 = vsel %vm650_vm0, %v753_v20, %v757_v18  ;;  %v793_v18 = vrot.slane %v791_v7, 1  ;;  %v798_v20 = vshll.u32 %v9936_v8, 16 }
  0xa3   : > { %v782_v10 = vsel %vm650_vm0, %v777_v62, %v781_v61  ;;  %v903_v62 = vrot.slane %v9013_v49, 1 }
  0xa4   : > { %v800_v29 = vrot.slane %v798_v20, 1 }
  0xa5   : > { %2605 = vmatmul.mubr.bf16.gmra.mrb[20].mxu1 %v889_v37  ;;  %v9049_v37 = vld [vmem:[%s12034_s2 + $0x1b0] sm:$0xff]  }
  0xa6   : > { %2612 = vmatprep.mubr.bf16.mxu1 %v9002_v38  ;;  %v801_v38 = vor.u32 %v800_v29, %v796_v25 }
  0xa8   : > { %2420 = vmatmul.mubr.bf16.gmra.mrb[24].mxu0 %v8988_v32  ;;  %v9022_v32 = vld [vmem:[%s12034_s2 + $0x180] sm:$0xff]  }
  0xa9   : > { %2427 = vmatprep.mubr.bf16.mxu0 %v746_v12  ;;  %7992 = vmatpush3.bf16.msra.mxu1 %v9022_v32  ;;  %v9008_v12 = vld [vmem:[%s9707_s20 + $0x9c] sm:$0xff]   ;;  %v9011_v32 = vld [vmem:[%s9707_s20 + $0xa8] sm:$0xff]  }
  0xaa   : > { %7993 = vmatprep.subr.bf16.mxu1 %v9025_v42  ;;  %v899_v42 = vrot.slane %v9955_v24, 1 }
  0xad   : > { %7994 = vmatpush3.bf16.msra.mxu1 %v9027_v54  ;;  %v9979_v54 = vld [vmem:[%s9707_s20 + $0xa8] sm:$0xff]  }
  0xae   : > { %7995 = vmatprep.subr.bf16.mxu1 %v9030_v56  ;;  %v9990_v56 = vld [vmem:[%s9707_s20 + $0x18] sm:$0xff]   ;;  %v902_v61 = vrot.slane %v9979_v54, 1 }
  0xaf   : > { %v1487_v0 = vshll.u32 %v9990_v56, 16 }
  0xb0   : > { %2428 = vmatmul.mubr.bf16.gmra.mrb[28].mxu0 %v8991_v48  ;;  %v891_v48 = vrot.slane %v9001_v35, 1  ;;  %v9048_v35 = vld [vmem:[%s12034_s2 + $0x1f0] sm:$0xff]   ;;  %v904_v7 = vsel %vm859_vm1, %v902_v61, %v903_v62 }
  0xb1   : > { %2435 = vmatprep.mubr.bf16.mxu0 %v758_v31  ;;  %7996 = vmatpush3.bf16.msra.mxu1 %v9031_v58  ;;  %v9010_v31 = vld [vmem:[%s9707_s20 + $0xa4] ss:$0 sps:$4 sm:$0x11]  }
  0xb2   : > { %v892_v59 = vsel %vm859_vm1, %v890_v46, %v891_v48  ;;  %7997 = vmatprep.subr.bf16.mxu1 %v9034_v2  ;;  %v900_v40 = vrot.slane %v9010_v31, 1  ;;  %v815_v45 = vshll.u32 %v9010_v31, 16  ;;  %v9054_v46 = vld [vmem:[%s12034_s2 + $0x1b8] sm:$0xff]   ;;  %v806_v48 = vsel %vm650_vm0, %v801_v38, %v805_v41  ;;  %v10023_v41 = vld [vmem:[%s9707_s20 + $0xc] sm:$0xff]  }
  0xb3   : > { %2613 = vmatmul.mubr.bf16.gmra.mrb[24].mxu1 %v892_v59  ;;  %v822_v59 = vshll.u32 %v9979_v54, 16 }
  0xb4   : > { %2620 = vmatprep.mubr.bf16.mxu1 %v9005_v60  ;;  %v901_v55 = vsel %vm859_vm1, %v899_v42, %v900_v40  ;;  %v817_v58 = vrot.slane %v815_v45, 1  ;;  %v827_v60 = vshll.u32 %v9013_v49, 16  ;;  %v9064_v40 = vld [vmem:[%s9707_s20 + $0x38] ss:$0 sps:$4 sm:$0x11]  }
  0xb5   : > { %7998 = vmatpush3.bf16.msra.mxu1 %v9036_v6  ;;  %v824_v3 = vrot.slane %v822_v59, 1  ;;  %v1516_v61 = vshll.u32 %v9064_v40, 16  ;;  %v10101_v40 = vld [vmem:[%s9707_s20 + $0x2c] ss:$0 sps:$4 sm:$0x11]  }
  0xb6   : > { %7999 = vmatprep.subr.bf16.mxu1 %v9039_v13  ;;  %v829_v6 = vrot.slane %v827_v60, 1  ;;  %v10237_v49 = vld [vmem:[%s9707_s20 + $0x80] ss:$0 sps:$4 sm:$0x11]  }
  0xb8   : > { %2436 = vmatmul.mubr.bf16.gmra.mrb[32].mxu0 %v9856_v63  ;;  %v784_v63 = vshrl.u32 %v9913_v51, 16 }
  0xb9   : > { %2443 = vmatprep.mubr.bf16.mxu0 %v770_v52  ;;  %8000 = vmatpush3.bf16.msra.mxu1 %v9040_v16  ;;  %v9014_v52 = vld [vmem:[%s9707_s20 + $0xb4] sm:$0xff]   ;;  %v9016_v16 = vld [vmem:[%s9707_s20 + $0xbc] ss:$0 sps:$4 sm:$0x11]  }
  0xba   : > { %v789_v17 = vor.u32 %v788_v11, %v784_v63  ;;  %v820_v63 = vshrl.u32 %v9979_v54, 16  ;;  %v1485_v11 = vshrl.u32 %v9990_v56, 16  ;;  %v906_v20 = vrot.slane %v9016_v16, 1 }
  0xbb   : > { %2621 = vmatmul.mubr.bf16.gmra.mrb[28].mxu1 %v895_v14  ;;  %v10006_v14 = vld [vmem:[%s9707_s20 + $0x24] sm:$0xff]   ;;  %v839_v29 = vshll.u32 %v9016_v16, 16 }
  0xbc   : > { %2628 = vmatprep.mubr.bf16.mxu1 %v9008_v12  ;;  %v794_v27 = vsel %vm650_vm0, %v789_v17, %v793_v18  ;;  %v1489_v12 = vrot.slane %v1487_v0, 1  ;;  %v825_v15 = vor.u32 %v824_v3, %v820_v63  ;;  %v834_v17 = vshll.u32 %v9999_v5, 16  ;;  %v9060_v18 = vld [vmem:[%s9707_s20 + $0x2c] ss:$0 sps:$4 sm:$0x11]   ;;  %v10055_v3 = vld [vmem:[%s9707_s20 + $0x30] sm:$0xff]  }
  0xbd   : > { %v1499_v23 = vshll.u32 %v10006_v14, 16  ;;  %v1497_v31 = vshrl.u32 %v10006_v14, 16  ;;  %v841_v38 = vrot.slane %v839_v29, 1  ;;  %v10199_v63 = vld [vmem:[%s9707_s20 + $0x6c] sm:$0xff]  }
  0xbe   : > { %v1490_v22 = vor.u32 %v1489_v12, %v1485_v11  ;;  %v830_v25 = vsel %vm650_vm0, %v825_v15, %v829_v6  ;;  %v9067_v6 = vld [vmem:[%s9707_s20 + $0x44] ss:$0 sps:$4 sm:$0x11]  }
  0xbf   : > { %v1528_v29 = vshll.u32 %v9067_v6, 16 }
  0xc0   : > { %2444 = vmatmul.mubr.bf16.gmra.mrb[36].mxu0 %v9867_v9  ;;  %v9043_v9 = vld [vmem:[%s12034_s2 + $0x1e8] sm:$0xff]  }
  0xc1   : > { %2451 = vmatprep.mubr.bf16.mxu0 %v782_v10  ;;  %8001 = vmatprep.subr.bf16.mxu1 %v9043_v9  ;;  %v9017_v10 = vld [vmem:[%s9707_s20 + $0xc0] sm:$0xff]  }
  0xc2   : > { %8002 = vmatpush3.bf16.msra.mxu1 %v9045_v26  ;;  %v832_v26 = vshrl.u32 %v9999_v5, 16 }
  0xc3   : > { %8003 = vmatprep.subr.bf16.mxu1 %v9048_v35  ;;  %2629 = vmatmul.mubr.bf16.gmra.mrb[32].mxu1 %v898_v33  ;;  %v1501_v35 = vrot.slane %v1499_v23, 1  ;;  %v10155_v23 = vld [vmem:[%s9707_s20 + $0x5c] ss:$0 sps:$4 sm:$0x11]  }
  0xc4   : > { %2636 = vmatprep.mubr.bf16.mxu1 %v9011_v32  ;;  %v1504_v32 = vshll.u32 %v9060_v18, 16  ;;  %v10067_v18 = vld [vmem:[%s9707_s20 + $0x14] ss:$0 sps:$4 sm:$0x11]  }
  0xc5   : > { %v1502_v42 = vor.u32 %v1501_v35, %v1497_v31  ;;  %v9020_v35 = vld [vmem:[%s12034_s2 + $0x100] sm:$0xff]  }
  0xc6   : > { %8004 = vmatpush3.bf16.msra.mxu1 %v9049_v37 }
  0xc7   : > { %8005 = vmatprep.subr.bf16.mxu1 %v9052_v43  ;;  %v1511_v43 = vshll.u32 %v10020_v36, 16 }
  0xc8   : > { %2452 = vmatmul.mubr.bf16.gmra.mrb[40].mxu0 %v9881_v28  ;;  %v808_v28 = vshrl.u32 %v9955_v24, 16 }
  0xc9   : > { %2459 = vmatprep.mubr.bf16.mxu0 %v794_v27  ;;  %v836_v27 = vrot.slane %v834_v17, 1  ;;  %v1513_v60 = vrot.slane %v1511_v43, 1  ;;  %v1131_v17 = vshll.u32 %v9832_v21, 16  ;;  %v9071_v43 = vld [vmem:[%s9707_s20 + $0x50] ss:$0 sps:$4 sm:$0x11]  }
  0xca   : > { %8006 = vmatpush3.bf16.msra.mxu1 %v9054_v46  ;;  %v813_v57 = vor.u32 %v812_v53, %v808_v28  ;;  %v1506_v28 = vrot.slane %v1504_v32, 1  ;;  %v1071_v46 = vshll.u32 %v10023_v41, 16 }
  0xcb   : > { %2637 = vmatmul.mubr.bf16.gmra.mrb[36].mxu1 %v901_v55  ;;  %v837_v37 = vor.u32 %v836_v27, %v832_v26  ;;  %v10086_v32 = vrot.slane %v1131_v17, 1  ;;  %v10125_v17 = vld [vmem:[%s9707_s20 + $0x54] sm:$0xff]  }
  0xcc   : > { %2644 = vmatprep.mubr.bf16.mxu1 %v9014_v52  ;;  %v818_v2 = vsel %vm650_vm0, %v813_v57, %v817_v58  ;;  %v1509_v57 = vshrl.u32 %v10020_v36, 16  ;;  %v10042_v58 = vld [vmem:[%s9707_s20 + $0x3c] sm:$0xff]   ;;  %v1507_v59 = vsel %vm650_vm0, %v1502_v42, %v1506_v28  ;;  %v10045_v62 = vrot.slane %v1071_v46, 1  ;;  %v9023_v28 = vld [vmem:[%s12034_s2 + $0x148] sm:$0xff]  }
  0xcd   : > { %v842_v53 = vsel %vm650_vm0, %v837_v37, %v841_v38  ;;  %v1523_v12 = vshll.u32 %v10042_v58, 16  ;;  %v1521_v26 = vshrl.u32 %v10042_v58, 16  ;;  %v1076_v37 = vshll.u32 %v10067_v18, 16 }
  0xce   : > { %v1514_v11 = vor.u32 %v1513_v60, %v1509_v57  ;;  %v1530_v46 = vrot.slane %v1528_v29, 1  ;;  %v10106_v57 = vld [vmem:[%s9707_s20 + $0x38] ss:$0 sps:$4 sm:$0x11]   ;;  %v9029_v29 = vld [vmem:[%s12034_s2 + $0x110] sm:$0xff]  }
  0xcf   : > { %v1525_v27 = vrot.slane %v1523_v12, 1  ;;  %v1540_v12 = vshll.u32 %v9071_v43, 16  ;;  %v10147_v43 = vld [vmem:[%s9707_s20 + $0x5c] ss:$0 sps:$4 sm:$0x11]  }
  0xd0   : > { %2460 = vmatmul.mubr.bf16.gmra.mrb[44].mxu0 %v9913_v51  ;;  %v9057_v51 = vld [vmem:[%s9707_s20 + $0x20] ss:$0 sps:$4 sm:$0x11]  }
  0xd1   : > { %2467 = vmatprep.mubr.bf16.mxu0 %v806_v48  ;;  %v1492_v13 = vshll.u32 %v9057_v51, 16  ;;  %v10034_v48 = vld [vmem:[%s9707_s20 + $0x24] sm:$0xff]   ;;  %v1119_v51 = vshll.u32 %v9810_v4, 16 }
  0xd3   : > { %2645 = vmatmul.mubr.bf16.gmra.mrb[40].mxu1 %v904_v7  ;;  %v1494_v9 = vrot.slane %v1492_v13, 1  ;;  %v10063_v16 = vrot.slane %v1119_v51, 1  ;;  %v10116_v51 = vld [vmem:[%s9707_s20 + $0x50] ss:$0 sps:$4 sm:$0x11]   ;;  %v1552_v7 = vshll.u32 %v10147_v43, 16 }
  0xd4   : > { %2652 = vmatprep.mubr.bf16.mxu1 %v9017_v10  ;;  %v10212_v13 = vld [vmem:[%s9707_s20 + $0x60] sm:$0xff]  }
  0xd5   : > { %v1495_v33 = vsel %vm650_vm0, %v1490_v22, %v1494_v9  ;;  %v10075_v9 = vld [vmem:[%s9707_s20 + $0x20] ss:$0 sps:$4 sm:$0x11]   ;;  %12074 = vst [vmem:[#allocation17_spill] sm:$0xff] %v10212_v13 }
  0xd6   : > { %v1088_v42 = vshll.u32 %v10075_v9, 16  ;;  %v9099_v13 = vld [vmem:[%s9707_s20 + $0xb0] ss:$0 sps:$4 sm:$0x11]  }
  0xd8   : > { %2468 = vmatmul.mubr.bf16.gmra.mrb[48].mxu0 %v9936_v8  ;;  %v905_v8 = vrot.slane %v9999_v5, 1 }
  0xd9   : > { %2475 = vmatprep.mubr.bf16.mxu0 %v818_v2  ;;  %v1095_v2 = vshll.u32 %v10034_v48, 16 }
  0xda   : > { %v907_v30 = vsel %vm859_vm1, %v905_v8, %v906_v20  ;;  %v1107_v20 = vshll.u32 %v10055_v3, 16 }
  0xdb   : > { %2653 = vmatmul.mubr.bf16.gmra.mrb[44].mxu1 %v907_v30  ;;  %v10069_v8 = vrot.slane %v1095_v2, 1  ;;  %v10082_v30 = vld [vmem:[%s9707_s20 + $0x48] sm:$0xff]  }
  0xdc   : > { %2854 = vmatprep.mubr.bf16.mxu1 %v1495_v33  ;;  %v10094_v38 = vrot.slane %v1107_v20, 1  ;;  %v9024_v2 = vld [vmem:[%s12034_s2 + $0x108] sm:$0xff]   ;;  %v10130_v20 = vrot.slane %v1076_v37, 1  ;;  %v9032_v37 = vld [vmem:[%s12034_s2 + $0x158] sm:$0xff]  }
  0xe0   : > { %2476 = vmatmul.mubr.bf16.gmra.mrb[52].mxu0 %v9955_v24  ;;  %v10026_v24 = vld [vmem:[%s9707_s20 + $0x18] sm:$0xff]  }
  0xe1   : > { %2483 = vmatprep.mubr.bf16.mxu0 %v830_v25  ;;  %v1083_v55 = vshll.u32 %v10026_v24, 16 }
  0xe3   : > { %2855 = vmatmul.mubr.bf16.vlgmr.msra.gmra.mrb[48].mxu1 %v9990_v56  ;;  %v1518_v56 = vrot.slane %v1516_v61, 1 }
  0xe4   : > { %2862 = vmatprep.mubr.bf16.mxu1 %v1507_v59  ;;  %v1143_v59 = vshll.u32 %v9841_v34, 16 }
  0xe5   : > { %v1519_v25 = vsel %vm650_vm0, %v1514_v11, %v1518_v56  ;;  %v1533_v11 = vshrl.u32 %v10082_v30, 16 }
  0xe8   : > { %2484 = vmatmul.mubr.bf16.gmra.mrb[56].mxu0 %v9979_v54  ;;  %v10050_v54 = vrot.slane %v1083_v55, 1  ;;  %v1535_v55 = vshll.u32 %v10082_v30, 16 }
  0xe9   : > { %2491 = vmatprep.mubr.bf16.mxu0 %v842_v53  ;;  %v1526_v53 = vor.u32 %v1525_v27, %v1521_v26  ;;  %v10133_v26 = vrot.slane %v1088_v42, 1  ;;  %v1100_v27 = vshll.u32 %v10101_v40, 16  ;;  %v1136_v42 = vshll.u32 %v10116_v51, 16 }
  0xea   : > { %v1537_v56 = vrot.slane %v1535_v55, 1  ;;  %v1547_v55 = vshll.u32 %v10125_v17, 16 }
  0xeb   : > { %2863 = vmatmul.mubr.bf16.gmra.mrb[52].mxu1 %v10006_v14  ;;  %v10109_v14 = vld [vmem:[%s9707_s20 + $0x44] ss:$0 sps:$4 sm:$0x11]   ;;  %v1531_v6 = vsel %vm650_vm0, %v1526_v53, %v1530_v46  ;;  %v1542_v46 = vrot.slane %v1540_v12, 1  ;;  %v10151_v60 = vrot.slane %v1100_v27, 1  ;;  %v1545_v27 = vshrl.u32 %v10125_v17, 16 }
  0xec   : > { %2870 = vmatprep.mubr.bf16.mxu1 %v1519_v25  ;;  %v1538_v53 = vor.u32 %v1537_v56, %v1533_v11  ;;  %v9033_v11 = vld [vmem:[%s12034_s2 + $0x118] sm:$0xff]   ;;  %v9037_v56 = vld [vmem:[%s12034_s2 + $0x160] sm:$0xff]   ;;  %v1148_v12 = vshll.u32 %v10155_v23, 16  ;;  %v1569_v25 = vshrl.u32 %v10199_v63, 16 }
  0xee   : > { %v10207_v31 = vrot.slane %v1148_v12, 1 }
  0xf0   : > { %2492 = vmatmul.mubr.bf16.gmra.mrb[60].mxu0 %v9999_v5  ;;  %v1554_v5 = vrot.slane %v1552_v7, 1  ;;  %12073 = vst [vmem:[#allocation16_spill] sm:$0xff] %v10207_v31 }
  0xf1   : > { %2532 = vmatprep.mubr.bf16.mxu0 %v10023_v41 }
  0xf3   : > { %2871 = vmatmul.mubr.bf16.gmra.mrb[56].mxu1 %v10020_v36  ;;  %v1167_v36 = vshll.u32 %v9860_v1, 16  ;;  %v9047_v1 = vld [vmem:[%s12034_s2 + $0x130] sm:$0xff]  }
  0xf4   : > { %2878 = vmatprep.mubr.bf16.mxu1 %v1531_v6  ;;  %v10202_v6 = vld [vmem:[%s9707_s20 + $0x74] ss:$0 sps:$4 sm:$0x11]  }
  0xf8   : > { %2533 = vmatmul.mubr.bf16.vlgmr.msra.gmra.mrb[64].mxu0 %v9772_v47  ;;  %v9028_v47 = vld [vmem:[%s12034_s2 + $0x150] sm:$0xff]  }
  0xf9   : > { %7880 = vmatpush3.bf16.msra.mxu0 %v9020_v35  ;;  %2540 = vmatprep.mubr.bf16.mxu0 %v10026_v24  ;;  %v1112_v35 = vshll.u32 %v10106_v57, 16 }
  0xfa   : > { %7881 = vmatprep.subr.bf16.mxu0 %v9023_v28  ;;  %v1124_v28 = vshll.u32 %v10109_v14, 16 }
  0xfb   : > { %v10157_v22 = vrot.slane %v1112_v35, 1  ;;  %v10176_v35 = vrot.slane %v1143_v59, 1  ;;  %v9038_v59 = vld [vmem:[%s12034_s2 + $0x120] sm:$0xff]   ;;  %2879 = vmatmul.mubr.bf16.gmra.mrb[60].mxu1 %v10042_v58 }
  0xfc   : > { %v10160_v10 = vrot.slane %v1124_v28, 1  ;;  %v1549_v28 = vrot.slane %v1547_v55, 1  ;;  %v9041_v55 = vld [vmem:[%s12034_s2 + $0x168] sm:$0xff]  }
  0xfd   : > { %7882 = vmatpush3.bf16.msra.mxu0 %v9024_v2  ;;  %v10163_v2 = vld [vmem:[%s9707_s20 + $0x60] sm:$0xff]  }
  0xfe   : > { %7883 = vmatprep.subr.bf16.mxu0 %v9028_v47  ;;  %v10173_v47 = vrot.slane %v1136_v42, 1  ;;  %v10183_v42 = vld [vmem:[%s9707_s20 + $0x68] ss:$0 sps:$4 sm:$0x11]   ;;  %v1550_v58 = vor.u32 %v1549_v28, %v1545_v27  ;;  %v1557_v33 = vshrl.u32 %v10163_v2, 16  ;;  %v1571_v28 = vshll.u32 %v10199_v63, 16 }
  0xff   : > { %v1564_v15 = vshll.u32 %v10183_v42, 16 }
 0x100   : > { %2541 = vmatmul.mubr.bf16.gmra.mrb[68].mxu0 %v9827_v19  ;;  %v1543_v19 = vsel %vm650_vm0, %v1538_v53, %v1542_v46  ;;  %v1559_v53 = vshll.u32 %v10163_v2, 16  ;;  %v10192_v46 = vld [vmem:[%s9707_s20 + $0x68] ss:$0 sps:$4 sm:$0x11]  }
 0x101   : > { %7884 = vmatpush3.bf16.msra.mxu0 %v9029_v29  ;;  %2548 = vmatprep.mubr.bf16.mxu0 %v10034_v48  ;;  %12071 = vst [vmem:[#allocation14_spill] sm:$0xff] %v10192_v46  ;;  %v10205_v29 = vld [vmem:[%s9707_s20 + $0x74] ss:$0 sps:$4 sm:$0x11]   ;;  %v1160_v7 = vshll.u32 %v10192_v46, 16  ;;  %v1566_v52 = vrot.slane %v1564_v15, 1 }
 0x102   : > { %7885 = vmatprep.subr.bf16.mxu0 %v9032_v37  ;;  %v1155_v37 = vshll.u32 %v9850_v50, 16  ;;  %2886 = vmatprep.mubr.bf16.mxu1 %v1543_v19  ;;  %12072 = vst [vmem:[#allocation15_spill] sm:$0xff] %v10205_v29  ;;  %v1561_v12 = vrot.slane %v1559_v53, 1  ;;  %v1576_v19 = vshll.u32 %v10202_v6, 16  ;;  %v1172_v0 = vshll.u32 %v10205_v29, 16  ;;  %v9050_v15 = vld [vmem:[%s12034_s2 + $0x178] sm:$0xff]  }
 0x103   : > { %2887 = vmatmul.mubr.bf16.gmra.mrb[64].mxu1 %v10082_v30  ;;  %v10287_v30 = vld [vmem:[%s9707_s20 + $0x9c] sm:$0xff]   ;;  %v9069_v46 = vld [vmem:[%s12034_s2 + $0x210] sm:$0xff]  }
 0x104   : > { %v10218_v27 = vrot.slane %v1155_v37, 1  ;;  %v1555_v37 = vsel %vm650_vm0, %v1550_v58, %v1554_v5  ;;  %v10243_v5 = vrot.slane %v1160_v7, 1  ;;  %v1573_v58 = vrot.slane %v1571_v28, 1 }
 0x105   : > { %7886 = vmatpush3.bf16.msra.mxu0 %v9033_v11  ;;  %v9042_v11 = vld [vmem:[%s12034_s2 + $0x128] sm:$0xff]   ;;  %2894 = vmatprep.mubr.bf16.mxu1 %v1555_v37  ;;  %v10252_v53 = vrot.slane %v1576_v19, 1  ;;  %v1562_v45 = vor.u32 %v1561_v12, %v1557_v33  ;;  %v10258_v61 = vrot.slane %v1172_v0, 1  ;;  %v12080_v19 = vrot.slane %v10067_v18, 1  ;;  %v10277_v0 = vld [vmem:[%s9707_s20 + $0x90] sm:$0xff]  }
 0x106   : > { %7887 = vmatprep.subr.bf16.mxu0 %v9037_v56  ;;  %12075 = vst [vmem:[#allocation18_spill] sm:$0xff] %v10218_v27  ;;  %v9046_v56 = vld [vmem:[%s12034_s2 + $0x170] sm:$0xff]   ;;  %12076 = vst [vmem:[#allocation19_spill] sm:$0xff] %v10243_v5  ;;  %v10262_v37 = vld [vmem:[%s9707_s20 + $0x8c] ss:$0 sps:$4 sm:$0x11]   ;;  %v1574_v50 = vor.u32 %v1573_v58, %v1569_v25 }
 0x107   : > { %12079 = vst [vmem:[#allocation22_spill] sm:$0xff] %v10258_v61  ;;  %v12081_v28 = vrot.slane %v10023_v41, 1  ;;  %v10271_v33 = vld [vmem:[%s9707_s20 + $0x80] ss:$0 sps:$4 sm:$0x11]   ;;  %v1588_v18 = vshll.u32 %v10237_v49, 16 }
 0x108   : > { %2549 = vmatmul.mubr.bf16.gmra.mrb[72].mxu0 %v9897_v39  ;;  %v10232_v39 = vld [vmem:[%s9707_s20 + $0x78] sm:$0xff]   ;;  %12082 = vst [vmem:[#allocation23_spill] sm:$0xff] %v10271_v33  ;;  %v12085_v27 = vrot.slane %v10075_v9, 1  ;;  %v12086_v61 = vrot.slane %v10026_v24, 1  ;;  %v1605_v31 = vshrl.u32 %v10277_v0, 16  ;;  %v1636_v33 = vshll.u32 %v9099_v13, 16 }
 0x109   : > { %7888 = vmatpush3.bf16.msra.mxu0 %v9038_v59  ;;  %2556 = vmatprep.mubr.bf16.mxu0 %v10055_v3  ;;  %v10246_v59 = vld [vmem:[%s9707_s20 + $0x6c] sm:$0xff]   ;;  %v1583_v5 = vshll.u32 %v10232_v39, 16  ;;  %v1278_v7 = vsel %vm859_vm1, %v12081_v28, %v12080_v19  ;;  %v10280_v12 = vld [vmem:[%s9707_s20 + $0x98] ss:$0 sps:$4 sm:$0x11]   ;;  %v12083_v19 = vshrl.u32 %v10023_v41, 16 }
 0x10a   : > { %7889 = vmatprep.subr.bf16.mxu0 %v9041_v55  ;;  %12077 = vst [vmem:[#allocation20_spill] sm:$0xff] %v10246_v59  ;;  %v10256_v55 = vrot.slane %v1167_v36, 1  ;;  %v10274_v36 = vld [vmem:[%s9707_s20 + $0x84] sm:$0xff]   ;;  %v1567_v59 = vsel %vm650_vm0, %v1562_v45, %v1566_v52  ;;  %v1590_v45 = vrot.slane %v1588_v18, 1  ;;  %v1612_v52 = vshll.u32 %v10280_v12, 16 }
 0x10b   : > { %v1074_v28 = vor.u32 %v10045_v62, %v12083_v19  ;;  %v1585_v29 = vrot.slane %v1583_v5, 1  ;;  %v1595_v62 = vshll.u32 %v10274_v36, 16  ;;  %v1600_v19 = vshll.u32 %v10262_v37, 16  ;;  %2895 = vmatmul.mubr.bf16.gmra.mrb[68].mxu1 %v10125_v17 }
 0x10c   : > { %12078 = vst [vmem:[#allocation21_spill] sm:$0xff] %v10256_v55  ;;  %v10298_v55 = vld [vmem:[%s9707_s20 + $0xa4] ss:$0 sps:$4 sm:$0x11]   ;;  %v1619_v5 = vshll.u32 %v10287_v30, 16  ;;  %v1281_v41 = vsel %vm859_vm1, %v12086_v61, %v12085_v27  ;;  %2902 = vmatprep.mubr.bf16.mxu1 %v1567_v59  ;;  %v10336_v18 = vrot.slane %v1612_v52, 1  ;;  %v1579_v52 = vsel %vm650_vm0, %v1574_v50, %v10252_v53 }
 0x10d   : > { %7890 = vmatpush3.bf16.msra.mxu0 %v9042_v11  ;;  %v10294_v11 = vld [vmem:[%s9707_s20 + $0x78] sm:$0xff]   ;;  %v1624_v9 = vshll.u32 %v10298_v55, 16  ;;  %v1597_v61 = vrot.slane %v1595_v62, 1  ;;  %v1602_v27 = vrot.slane %v1600_v19, 1  ;;  %v12087_v19 = vshrl.u32 %v10026_v24, 16 }
 0x10e   : > { %7891 = vmatprep.subr.bf16.mxu0 %v9046_v56  ;;  %v9051_v56 = vld [vmem:[%s12034_s2 + $0x138] sm:$0xff]   ;;  %12084 = vst [vmem:[#allocation24_spill] sm:$0xff] %v10294_v11  ;;  %v9062_v11 = vld [vmem:[%s12034_s2 + $0x208] sm:$0xff]   ;;  %v10339_v58 = vrot.slane %v1619_v5, 1  ;;  %v12090_v13 = vrot.slane %v10034_v48, 1 }
 0x10f   : > { %v9102_v62 = vld [vmem:[%s9707_s20 + $0xbc] ss:$0 sps:$4 sm:$0x11]   ;;  %v10351_v5 = vrot.slane %v1624_v9, 1 }
 0x110   : > { %2557 = vmatmul.mubr.bf16.gmra.mrb[76].mxu0 %v9905_v44  ;;  %v9055_v44 = vld [vmem:[%s12034_s2 + $0x200] sm:$0xff]   ;;  %v9076_v24 = vld [vmem:[%s12034_s2 + $0x218] sm:$0xff]  }
 0x111   : > { %7892 = vmatpush3.bf16.msra.mxu0 %v9047_v1  ;;  %2693 = vmatprep.mubr.bf16.mxu0 %v1278_v7  ;;  %v1607_v1 = vshll.u32 %v10277_v0, 16  ;;  %v1079_v7 = vsel %vm650_vm0, %v1074_v28, %v10130_v20  ;;  %v1593_v20 = vshrl.u32 %v10274_v36, 16  ;;  %v10331_v28 = vld [vmem:[%s9707_s20 + $0xb4] sm:$0xff]  }
 0x112   : > { %7893 = vmatprep.subr.bf16.mxu0 %v9050_v15  ;;  %v10313_v15 = vld [vmem:[%s9707_s20 + $0xa8] sm:$0xff]   ;;  %v1643_v25 = vshll.u32 %v10331_v28, 16  ;;  %v1641_v50 = vshrl.u32 %v10331_v28, 16 }
 0x113   : > { %v10334_v59 = vrot.slane %v1607_v1, 1  ;;  %v1086_v1 = vor.u32 %v10050_v54, %v12087_v19  ;;  %2903 = vmatmul.mubr.bf16.gmra.mrb[72].mxu1 %v10163_v2  ;;  %v10361_v54 = vrot.slane %v1636_v33, 1  ;;  %v12089_v19 = vrot.slane %v10101_v40, 1  ;;  %v10376_v33 = vld [vmem:[%s9707_s20 + $0xc0] sm:$0xff]  }
 0x114   : > { %2910 = vmatprep.mubr.bf16.mxu1 %v1579_v52  ;;  %v10368_v9 = vrot.slane %v1643_v25, 1  ;;  %v9090_v25 = vld [vmem:[%s12034_s2 + $0x228] sm:$0xff]  }
 0x115   : > { %7894 = vmatpush3.bf16.msra.mxu0 %v9051_v56  ;;  %v1631_v56 = vshll.u32 %v10313_v15, 16  ;;  %v1091_v53 = vsel %vm650_vm0, %v1086_v1, %v10133_v26  ;;  %v1284_v52 = vsel %vm859_vm1, %v12090_v13, %v12089_v19  ;;  %v9083_v26 = vld [vmem:[%s12034_s2 + $0x220] sm:$0xff]   ;;  %v1655_v1 = vshll.u32 %v10376_v33, 16 }
 0x116   : > { %8623 = vmatprep.subr.bf16.mxu0 %v9055_v44  ;;  %v12092_v13 = vrot.slane %v10106_v57, 1  ;;  %v12095_v19 = vrot.slane %v10109_v14, 1 }
 0x118   : > { %2694 = vmatmul.mubr.bf16.vlgmr.msra.gmra.mrb[80].mxu0 %v1079_v7  ;;  %v10356_v7 = vrot.slane %v1631_v56, 1  ;;  %v1648_v56 = vshll.u32 %v9102_v62, 16 }
 0x119   : > { %8624 = vmatpush3.bf16.msra.mxu0 %v9055_v44  ;;  %2701 = vmatprep.mubr.bf16.mxu0 %v1281_v41  ;;  %v12088_v44 = vshrl.u32 %v10232_v39, 16 }
 0x11a   : > { %8625 = vmatprep.subr.bf16.mxu0 %v9062_v11  ;;  %v10389_v62 = vrot.slane %v1648_v56, 1  ;;  %v1714_v56 = vrot.slane %v10202_v6, 1  ;;  %v1716_v6 = vrot.slane %v10232_v39, 1 }
 0x11b   : > { %v1586_v41 = vor.u32 %v1585_v29, %v12088_v44  ;;  %v12091_v29 = vshrl.u32 %v10034_v48, 16  ;;  %2911 = vmatmul.mubr.bf16.gmra.mrb[76].mxu1 %v10199_v63 }
 0x11d   : > { %8626 = vmatpush3.bf16.msra.mxu0 %v9062_v11  ;;  %v1098_v11 = vor.u32 %v10069_v8, %v12091_v29  ;;  %v1591_v40 = vsel %vm650_vm0, %v1586_v41, %v1590_v45  ;;  %v1598_v8 = vor.u32 %v1597_v61, %v1593_v20  ;;  %v1708_v45 = vrot.slane %v10147_v43, 1  ;;  %v9104_v20 = vld [vmem:[%s12034_s2 + $0x238] sm:$0xff]  }
 0x11e   : > { %8627 = vmatprep.subr.bf16.mxu0 %v9069_v46  ;;  %2918 = vmatprep.mubr.bf16.mxu1 %v1591_v40  ;;  %v1710_v61 = vrot.slane %v10163_v2, 1  ;;  %v12098_v29 = vshrl.u32 %v10287_v30, 16  ;;  %v12100_v40 = vrot.slane %v9832_v21, 1 }
 0x11f   : > { %v1103_v48 = vsel %vm650_vm0, %v1098_v11, %v10151_v60  ;;  %v9097_v60 = vld [vmem:[%s12034_s2 + $0x230] sm:$0xff]   ;;  %v1603_v57 = vsel %vm650_vm0, %v1598_v8, %v1602_v27  ;;  %v1713_v27 = vrot.slane %v10199_v63, 1  ;;  %v12099_v11 = vrot.slane %v10116_v51, 1 }
 0x120   : > { %2702 = vmatmul.mubr.bf16.gmra.mrb[84].mxu0 %v1091_v53  ;;  %v12093_v53 = vrot.slane %v10055_v3, 1  ;;  %v12102_v8 = vshrl.u32 %v10313_v15, 16 }
 0x121   : > { %2709 = vmatprep.mubr.bf16.mxu0 %v1284_v52  ;;  %8628 = vmatpush3.bf16.msra.mxu0 %v9069_v46  ;;  %v1707_v46 = vrot.slane %v10125_v17, 1  ;;  %v12094_v17 = vshrl.u32 %v10055_v3, 16  ;;  %v12096_v52 = vrot.slane %v9810_v4, 1 }
 0x122   : > { %8629 = vmatprep.subr.bf16.mxu0 %v9076_v24  ;;  %v1287_v44 = vsel %vm859_vm1, %v12093_v53, %v12092_v13 }
 0x123   : > { %v10402_v41 = vsel %vm859_vm1, %v1707_v46, %v1708_v45  ;;  %v1110_v43 = vor.u32 %v10094_v38, %v12094_v17  ;;  %2919 = vmatmul.mubr.bf16.gmra.mrb[80].mxu1 %v10232_v39  ;;  %v1610_v38 = vor.u32 %v10334_v59, %v1605_v31  ;;  %v1290_v2 = vsel %vm859_vm1, %v12096_v52, %v12095_v19  ;;  %v12106_v17 = vld [vmem:[#allocation16_spill] sm:$0xff] }
 0x124   : > { %2926 = vmatprep.mubr.bf16.mxu1 %v1603_v57  ;;  %v12097_v31 = vshrl.u32 %v9810_v4, 16  ;;  %v1717_v59 = vrot.slane %v10237_v49, 1  ;;  %v1622_v4 = vor.u32 %v10339_v58, %v12098_v29  ;;  %v1293_v39 = vsel %vm859_vm1, %v12100_v40, %v12099_v11  ;;  %v12107_v57 = vld [vmem:[#allocation14_spill] sm:$0xff]  ;;  %v10518_v19 = vld [vmem:[%s9707_s20 + $0xd4] ss:$0 sps:$4 sm:$0x11]  }
 0x125   : > { %8630 = vmatpush3.bf16.msra.mxu0 %v9076_v24  ;;  %v1711_v24 = vrot.slane %v10183_v42, 1  ;;  %v1115_v3 = vsel %vm650_vm0, %v1110_v43, %v10157_v22  ;;  %v10433_v22 = vsel %vm859_vm1, %v1713_v27, %v1714_v56  ;;  %v1615_v14 = vsel %vm650_vm0, %v1610_v38, %v10336_v18  ;;  %v12113_v27 = vld [vmem:[#allocation18_spill] sm:$0xff] }
 0x126   : > { %8631 = vmatprep.subr.bf16.mxu0 %v9083_v26  ;;  %v1122_v63 = vor.u32 %v10063_v16, %v12097_v31  ;;  %v1719_v16 = vrot.slane %v10274_v36, 1  ;;  %v1720_v18 = vrot.slane %v10262_v37, 1  ;;  %v10456_v49 = vsel %vm859_vm1, %v1716_v6, %v1717_v59  ;;  %v12117_v6 = vld [vmem:[#allocation23_spill] sm:$0xff] }
 0x127   : > { %v10430_v42 = vsel %vm859_vm1, %v1710_v61, %v1711_v24  ;;  %v1627_v51 = vsel %vm650_vm0, %v1622_v4, %v10351_v5  ;;  %v1722_v58 = vrot.slane %v10277_v0, 1  ;;  %v1634_v46 = vor.u32 %v10356_v7, %v12102_v8  ;;  %v9305_v29 = vld [vmem:[%s9707_s20 + $0x84] sm:$0xff]  }
 0x128   : > { %2710 = vmatmul.mubr.bf16.gmra.mrb[88].mxu0 %v1103_v48  ;;  %v12103_v5 = vrot.slane %v10155_v23, 1  ;;  %v12104_v45 = vrot.slane %v9841_v34, 1  ;;  %v12118_v59 = vshll.u32 %v12117_v6, 16  ;;  %v1306_v4 = vrot.slane %v9305_v29, 1 }
 0x129   : > { %2717 = vmatprep.mubr.bf16.mxu0 %v1287_v44  ;;  %8632 = vmatpush3.bf16.msra.mxu0 %v9083_v26  ;;  %v1127_v26 = vsel %vm650_vm0, %v1122_v63, %v10160_v10  ;;  %v10459_v10 = vsel %vm859_vm1, %v1719_v16, %v1720_v18  ;;  %v1639_v7 = vsel %vm650_vm0, %v1634_v46, %v10361_v54  ;;  %v1653_v44 = vshrl.u32 %v10376_v33, 16  ;;  %v12116_v63 = vld [vmem:[#allocation19_spill] sm:$0xff] }
 0x12a   : > { %8633 = vmatprep.subr.bf16.mxu0 %v9090_v25  ;;  %v1296_v13 = vsel %vm859_vm1, %v12104_v45, %v12103_v5  ;;  %v1672_v8 = vshll.u32 %v10518_v19, 16 }
 0x12b   : > { %2927 = vmatmul.mubr.bf16.gmra.mrb[84].mxu1 %v10274_v36  ;;  %v12101_v36 = vshrl.u32 %v9832_v21, 16  ;;  %v1725_v21 = vrot.slane %v10287_v30, 1 }
 0x12c   : > { %2934 = vmatprep.mubr.bf16.mxu1 %v1615_v14 }
 0x12d   : > { %8634 = vmatpush3.bf16.msra.mxu0 %v9090_v25  ;;  %v1134_v37 = vor.u32 %v10086_v32, %v12101_v36  ;;  %v1723_v25 = vrot.slane %v10280_v12, 1  ;;  %v1726_v32 = vrot.slane %v10298_v55, 1  ;;  %v12105_v55 = vshrl.u32 %v9841_v34, 16 }
 0x12e   : > { %8635 = vmatprep.subr.bf16.mxu0 %v9097_v60  ;;  %v1646_v34 = vor.u32 %v10368_v9, %v1641_v50 }
 0x12f   : > { %v1139_v48 = vsel %vm650_vm0, %v1134_v37, %v10173_v47  ;;  %v10485_v12 = vsel %vm859_vm1, %v1722_v58, %v1723_v25  ;;  %v10488_v47 = vld [vmem:[%s9707_s20 + $0xcc] sm:$0xff]   ;;  %v10491_v53 = vsel %vm859_vm1, %v1725_v21, %v1726_v32  ;;  %v1146_v23 = vor.u32 %v10176_v35, %v12105_v55  ;;  %v12124_v32 = vld [vmem:[#allocation21_spill] sm:$0xff] }
 0x130   : > { %2718 = vmatmul.mubr.bf16.gmra.mrb[92].mxu0 %v1115_v3  ;;  %v1657_v35 = vrot.slane %v1655_v1, 1  ;;  %v1667_v54 = vshll.u32 %v10488_v47, 16  ;;  %v12111_v3 = vld [vmem:[#allocation17_spill] sm:$0xff]  ;;  %v1651_v50 = vsel %vm650_vm0, %v1646_v34, %v10389_v62  ;;  %v12114_v1 = vld [vmem:[#allocation24_spill] sm:$0xff]  ;;  %v1665_v40 = vshrl.u32 %v10488_v47, 16 }
 0x131   : > { %2725 = vmatprep.mubr.bf16.mxu0 %v1290_v2  ;;  %8636 = vmatpush3.bf16.msra.mxu0 %v9097_v60  ;;  %v1151_v43 = vsel %vm650_vm0, %v1146_v23, %v12106_v17  ;;  %v12112_v38 = vshrl.u32 %v12111_v3, 16  ;;  %v12115_v52 = vshll.u32 %v12114_v1, 16  ;;  %v1191_v55 = vshll.u32 %v9305_v29, 16  ;;  %v12125_v17 = vld [vmem:[#allocation22_spill] sm:$0xff] }
 0x132   : > { %8637 = vmatprep.subr.bf16.mxu0 %v9104_v20  ;;  %v1658_v11 = vor.u32 %v1657_v35, %v1653_v44  ;;  %v1674_v35 = vrot.slane %v1672_v8, 1 }
 0x133   : > { %2935 = vmatmul.mubr.bf16.gmra.mrb[88].mxu1 %v10277_v0  ;;  %v10482_v0 = vld [vmem:[%s9707_s20 + $0xc8] ss:$0 sps:$4 sm:$0x11]   ;;  %v1158_v56 = vor.u32 %v12113_v27, %v12112_v38  ;;  %v1181_v2 = vrot.slane %v12115_v52, 1  ;;  %v1193_v52 = vrot.slane %v1191_v55, 1 }
 0x134   : > { %2942 = vmatprep.mubr.bf16.mxu1 %v1627_v51  ;;  %v1660_v60 = vshll.u32 %v10482_v0, 16  ;;  %v12121_v51 = vld [vmem:[#allocation20_spill] sm:$0xff]  ;;  %v9096_v55 = vld [vmem:[%s9707_s20 + $0xa4] ss:$0 sps:$4 sm:$0x11]  }
 0x135   : > { %8638 = vmatpush3.bf16.msra.mxu0 %v9104_v20  ;;  %v12109_v20 = vld [vmem:[#allocation13_spill] sm:$0xff]  ;;  %v1163_v14 = vsel %vm650_vm0, %v1158_v56, %v12116_v63  ;;  %v12122_v58 = vrot.slane %v12121_v51, 1  ;;  %v12123_v21 = vshrl.u32 %v12121_v51, 16  ;;  %v1189_v56 = vshrl.u32 %v9305_v29, 16  ;;  %v9306_v29 = vld [vmem:[%s9707_s20 + $0x90] sm:$0xff]  }
 0x136   : > { %v12110_v61 = vrot.slane %v12109_v20, 1  ;;  %v1662_v16 = vrot.slane %v1660_v60, 1 }
 0x137   : > { %v1170_v5 = vor.u32 %v12124_v32, %v12123_v21 }
 0x138   : > { %2726 = vmatmul.mubr.bf16.gmra.mrb[96].mxu0 %v1127_v26  ;;  %v1186_v26 = vrot.slane %v12118_v59, 1  ;;  %v1663_v45 = vsel %vm650_vm0, %v1658_v11, %v1662_v16  ;;  %v1309_v11 = vrot.slane %v9306_v29, 1 }
 0x139   : > { %2733 = vmatprep.mubr.bf16.mxu0 %v1293_v39  ;;  %v1669_v39 = vrot.slane %v1667_v54, 1 }
 0x13b   : > { %2943 = vmatmul.mubr.bf16.gmra.mrb[92].mxu1 %v10287_v30  ;;  %v12108_v30 = vrot.slane %v12107_v57, 1  ;;  %v1670_v34 = vor.u32 %v1669_v39, %v1665_v40  ;;  %v12126_v57 = vrot.slane %v12117_v6, 1  ;;  %v1203_v39 = vshll.u32 %v9306_v29, 16 }
 0x13c   : > { %2950 = vmatprep.mubr.bf16.mxu1 %v1639_v7 }
 0x13d   : > { %v1299_v24 = vsel %vm859_vm1, %v12110_v61, %v12108_v30  ;;  %v12127_v30 = vrot.slane %v12114_v1, 1  ;;  %v1675_v38 = vsel %vm650_vm0, %v1670_v34, %v1674_v35  ;;  %v1205_v21 = vrot.slane %v1203_v39, 1 }
 0x13f   : > { %v1305_v20 = vsel %vm859_vm1, %v12127_v30, %v12126_v57 }
 0x140   : > { %2734 = vmatmul.mubr.bf16.gmra.mrb[100].mxu0 %v1139_v48  ;;  %v9089_v48 = vld [vmem:[%s9707_s20 + $0x8c] ss:$0 sps:$4 sm:$0x11]  }
 0x141   : > { %2741 = vmatprep.mubr.bf16.mxu0 %v1296_v13  ;;  %v1307_v7 = vrot.slane %v9089_v48, 1 }
 0x143   : > { %2951 = vmatmul.mubr.bf16.gmra.mrb[96].mxu1 %v10313_v15  ;;  %v12119_v15 = vld [vmem:[#allocation15_spill] sm:$0xff] }
 0x144   : > { %2958 = vmatprep.mubr.bf16.mxu1 %v1651_v50  ;;  %v12120_v37 = vrot.slane %v12119_v15, 1  ;;  %v9093_v50 = vld [vmem:[%s9707_s20 + $0x98] ss:$0 sps:$4 sm:$0x11]  }
 0x145   : > { %v1310_v15 = vrot.slane %v9093_v50, 1  ;;  %v1208_v32 = vshll.u32 %v9093_v50, 16 }
 0x146   : > { %v1302_v25 = vsel %vm859_vm1, %v12122_v58, %v12120_v37  ;;  %v1201_v58 = vshrl.u32 %v9306_v29, 16 }
 0x147   : > { %v1210_v34 = vrot.slane %v1208_v32, 1 }
 0x148   : > { %2742 = vmatmul.mubr.bf16.gmra.mrb[104].mxu0 %v1151_v43  ;;  %v1175_v43 = vsel %vm650_vm0, %v1170_v5, %v12125_v17 }
 0x149   : > { %2749 = vmatprep.mubr.bf16.mxu0 %v1299_v24  ;;  %v12128_v24 = vshrl.u32 %v12114_v1, 16  ;;  %v1308_v1 = vsel %vm859_vm1, %v1306_v4, %v1307_v7 }
 0x14b   : > { %v7671_v9 = vpop.f32.mrb[0].mxu0  ;;  %2959 = vmatmul.mubr.bf16.gmra.mrb[100].mxu1 %v10331_v28  ;;  %v1196_v28 = vshll.u32 %v9089_v48, 16  ;;  %v1182_v3 = vor.u32 %v1181_v2, %v12128_v24 }
 0x14c   : > { %v7672_v31 = vpop.f32.mrb[1].mxu0  ;;  %2966 = vmatprep.mubr.bf16.mxu1 %v1663_v45  ;;  %v1311_v45 = vsel %vm859_vm1, %v1309_v11, %v1310_v15 }
 0x14d   : > { %v10530_v18 = vadd.f32 %v7672_v31, %v7671_v9  ;;  %v7674_v62 = vpop.f32.mrb[2].mxu0  ;;  %v1198_v6 = vrot.slane %v1196_v28, 1 }
 0x14e   : > { %v7675_v36 = vpop.f32.mrb[3].mxu0 }
 0x14f   : > { %v10540_v46 = vadd.f32 %v7675_v36, %v7674_v62  ;;  %v1194_v36 = vor.u32 %v1193_v52, %v1189_v56 }
 0x150   : > { %2750 = vmatmul.mubr.bf16.gmra.mrb[108].mxu0 %v1163_v14  ;;  %v1187_v14 = vsel %vm650_vm0, %v1182_v3, %v1186_v26  ;;  %v7807_v2 = vpop.f32.mrb[0].mxu1 }
 0x151   : > { %2757 = vmatprep.mubr.bf16.mxu0 %v1302_v25  ;;  %v7808_v62 = vpop.f32.mrb[1].mxu1  ;;  %v1199_v8 = vsel %vm650_vm0, %v1194_v36, %v1198_v6 }
 0x152   : > { %v7810_v40 = vpop.f32.mrb[2].mxu1 }
 0x153   : > { %v7677_v13 = vpop.f32.mrb[4].mxu0  ;;  %2967 = vmatmul.mubr.bf16.gmra.mrb[104].mxu1 %v10376_v33  ;;  %v7809_v33 = vadd.f32 %v7808_v62, %v7807_v2  ;;  %v7811_v37 = vpop.f32.mrb[3].mxu1 }
 0x154   : > { %v7678_v23 = vpop.f32.mrb[5].mxu0  ;;  %2974 = vmatprep.mubr.bf16.mxu1 %v1675_v38  ;;  %v7812_v26 = vadd.f32 %v7811_v37, %v7810_v40  ;;  %v1220_v38 = vshll.u32 %v9096_v55, 16 }
 0x155   : > { %v10547_v44 = vadd.f32 %v7678_v23, %v7677_v13  ;;  %v7680_v60 = vpop.f32.mrb[6].mxu0 }
 0x156   : > { %v7681_v54 = vpop.f32.mrb[7].mxu0  ;;  %v1222_v11 = vrot.slane %v1220_v38, 1 }
 0x157   : > { %v10556_v61 = vadd.f32 %v7681_v54, %v7680_v60  ;;  %v9307_v54 = vld [vmem:[%s9707_s20 + $0x9c] sm:$0xff]  }
 0x158   : > { %2758 = vmatmul.mubr.bf16.gmra.mrb[112].mxu0 %v1175_v43  ;;  %v7813_v13 = vpop.f32.mrb[4].mxu1  ;;  %v1206_v43 = vor.u32 %v1205_v21, %v1201_v58  ;;  %v1215_v57 = vshll.u32 %v9307_v54, 16  ;;  %v1312_v30 = vrot.slane %v9307_v54, 1  ;;  %v1213_v52 = vshrl.u32 %v9307_v54, 16 }
 0x159   : > { %2765 = vmatprep.mubr.bf16.mxu0 %v1305_v20  ;;  %v7814_v7 = vpop.f32.mrb[5].mxu1  ;;  %v1313_v20 = vrot.slane %v9096_v55, 1 }
 0x15a   : > { %v10578_v60 = vadd.f32 %v7814_v7, %v7813_v13  ;;  %v7816_v17 = vpop.f32.mrb[6].mxu1 }
 0x15b   : > { %v7683_v27 = vpop.f32.mrb[8].mxu0  ;;  %2975 = vmatmul.mubr.bf16.gmra.mrb[108].mxu1 %v10488_v47  ;;  %v7817_v35 = vpop.f32.mrb[7].mxu1  ;;  %v1314_v6 = vsel %vm859_vm1, %v1312_v30, %v1313_v20 }
 0x15c   : > { %v7684_v9 = vpop.f32.mrb[9].mxu0  ;;  %v7818_v28 = vadd.f32 %v7817_v35, %v7816_v17 }
 0x15d   : > { %v10563_v31 = vadd.f32 %v7684_v9, %v7683_v27  ;;  %v7686_v63 = vpop.f32.mrb[10].mxu0  ;;  %v10584_v27 = vld [vmem:[%s12035_s3] ss:$0 sm:$0xff]  ;;  %v1211_v9 = vsel %vm650_vm0, %v1206_v43, %v1210_v34 }
 0x15e   : > { %v7687_v59 = vpop.f32.mrb[11].mxu0 }
 0x15f   : > { %v10567_v16 = vadd.f32 %v7687_v59, %v7686_v63  ;;  %v1217_v63 = vrot.slane %v1215_v57, 1  ;;  %v9103_v57 = vld [vmem:[%s9707_s20 + $0xbc] ss:$0 sps:$4 sm:$0x11]  }
 0x160   : > { %2766 = vmatmul.mubr.bf16.gmra.mrb[116].mxu0 %v1187_v14  ;;  %v7819_v59 = vpop.f32.mrb[8].mxu1 }
 0x161   : > { %2773 = vmatprep.mubr.bf16.mxu0 %v1308_v1  ;;  %v9100_v1 = vld [vmem:[%s9707_s20 + $0xb0] ss:$0 sps:$4 sm:$0x11]   ;;  %v7820_v29 = vpop.f32.mrb[9].mxu1  ;;  %v1218_v15 = vor.u32 %v1217_v63, %v1213_v52  ;;  %v9309_v52 = vld [vmem:[%s9707_s20 + $0xb4] sm:$0xff]  }
 0x162   : > { %v10590_v40 = vadd.f32 %v7820_v29, %v7819_v59  ;;  %v7822_v39 = vpop.f32.mrb[10].mxu1  ;;  %v1232_v13 = vshll.u32 %v9100_v1, 16  ;;  %v1239_v63 = vshll.u32 %v9309_v52, 16  ;;  %v1319_v59 = vrot.slane %v9103_v57, 1 }
 0x163   : > { %v7689_v51 = vpop.f32.mrb[12].mxu0  ;;  %v7823_v37 = vpop.f32.mrb[11].mxu1  ;;  %v1223_v17 = vsel %vm650_vm0, %v1218_v15, %v1222_v11  ;;  %v1244_v11 = vshll.u32 %v9103_v57, 16 }
 0x164   : > { %v7690_v4 = vpop.f32.mrb[13].mxu0  ;;  %v7824_v21 = vadd.f32 %v7823_v37, %v7822_v39  ;;  %v1237_v37 = vshrl.u32 %v9309_v52, 16 }
 0x165   : > { %v10571_v25 = vadd.f32 %v7690_v4, %v7689_v51  ;;  %v7692_v48 = vpop.f32.mrb[14].mxu0  ;;  %v9308_v51 = vld [vmem:[%s9707_s20 + $0xa8] sm:$0xff]  }
 0x166   : > { %v7693_v5 = vpop.f32.mrb[15].mxu0  ;;  %v1227_v4 = vshll.u32 %v9308_v51, 16  ;;  %v1225_v43 = vshrl.u32 %v9308_v51, 16 }
 0x167   : > { %v10576_v23 = vadd.f32 %v7693_v5, %v7692_v48  ;;  %v1315_v48 = vrot.slane %v9308_v51, 1  ;;  %v1241_v51 = vrot.slane %v1239_v63, 1 }
 0x168   : > { %2774 = vmatmul.mubr.bf16.gmra.mrb[120].mxu0 %v1199_v8  ;;  %v1316_v8 = vrot.slane %v9100_v1, 1  ;;  %v1229_v34 = vrot.slane %v1227_v4, 1  ;;  %v7825_v54 = vpop.f32.mrb[12].mxu1 }
 0x169   : > { %2781 = vmatprep.mubr.bf16.mxu0 %v1311_v45 }
 0x16b   : > { %v7695_v24 = vpop.f32.mrb[16].mxu0 }
 0x16c   : > { %v7696_v3 = vpop.f32.mrb[17].mxu0 }
 0x16d   : > { %v7697_v56 = vadd.f32 %v7696_v3, %v7695_v24  ;;  %v7698_v50 = vpop.f32.mrb[18].mxu0  ;;  %v7826_v24 = vpop.f32.mrb[13].mxu1 }
 0x16e   : > { %v7699_v14 = vpop.f32.mrb[19].mxu0  ;;  %v10602_v3 = vadd.f32 %v7826_v24, %v7825_v54  ;;  %v7828_v38 = vpop.f32.mrb[14].mxu1 }
 0x16f   : > { %v2406_v2 = vadd.f32 %v7697_v56, %v10584_v27  ;;  %v7700_v62 = vadd.f32 %v7699_v14, %v7698_v50  ;;  %v1230_v50 = vor.u32 %v1229_v34, %v1225_v43  ;;  %v1242_v43 = vor.u32 %v1241_v51, %v1237_v37 }
 0x170   : > { %2782 = vmatmul.mubr.bf16.gmra.mrb[124].mxu0 %v1211_v9  ;;  %v7829_v9 = vpop.f32.mrb[15].mxu1 }
 0x171   : > { %v2409_v36 = vadd.f32 %v7700_v62, %v10584_v27  ;;  %2789 = vmatprep.mubr.bf16.mxu0 %v1314_v6  ;;  %v10594_v58 = vadd.f32 %v7809_v33, %v2406_v2  ;;  %v1317_v33 = vsel %vm859_vm1, %v1315_v48, %v1316_v8  ;;  %v1318_v6 = vrot.slane %v9309_v52, 1  ;;  %v7831_v48 = vpop.f32.mrb[16].mxu1  ;;  %v9107_v8 = vld [vmem:[%s9707_s20 + $0xc8] ss:$0 sps:$4 sm:$0x11]  }
 0x172   : > { %v10609_v1 = vadd.f32 %v7829_v9, %v7828_v38 }
 0x173   : > { %v7701_v32 = vpop.f32.mrb[20].mxu0  ;;  %v10596_v5 = vadd.f32 %v7812_v26, %v2409_v36  ;;  %v1234_v26 = vrot.slane %v1232_v13, 1  ;;  %v7832_v13 = vpop.f32.mrb[17].mxu1 }
 0x174   : > { %v7702_v45 = vpop.f32.mrb[21].mxu0 }
 0x175   : > { %v7703_v55 = vadd.f32 %v7702_v45, %v7701_v32  ;;  %v7704_v7 = vpop.f32.mrb[22].mxu0  ;;  %v1235_v15 = vsel %vm650_vm0, %v1230_v50, %v1234_v26 }
 0x176   : > { %v7705_v35 = vpop.f32.mrb[23].mxu0 }
 0x177   : > { %v2414_v30 = vadd.f32 %v7703_v55, %v10584_v27  ;;  %v7706_v20 = vadd.f32 %v7705_v35, %v7704_v7  ;;  %v7833_v55 = vadd.f32 %v7832_v13, %v7831_v48  ;;  %v7834_v7 = vpop.f32.mrb[18].mxu1  ;;  %v9310_v35 = vld [vmem:[%s9707_s20 + $0xc0] sm:$0xff]   ;;  %v9111_v48 = vld [vmem:[#allocation6] sm:$0xff]  }
 0x178   : > { %2790 = vmatmul.mubr.bf16.gmra.mrb[128].mxu0 %v1223_v17  ;;  %v7835_v34 = vpop.f32.mrb[19].mxu1  ;;  %v1321_v57 = vrot.slane %v9310_v35, 1  ;;  %v9312_v13 = vld [vmem:[%s9707_s20 + $0x20] ss:$0 sps:$4 sm:$0x11]  }
 0x179   : > { %v2417_v56 = vadd.f32 %v7706_v20, %v10584_v27  ;;  %2797 = vmatprep.mubr.bf16.mxu0 %v1317_v33  ;;  %v10607_v14 = vadd.f32 %v10578_v60, %v2414_v30  ;;  %v1320_v60 = vsel %vm859_vm1, %v1318_v6, %v1319_v59  ;;  %v1251_v33 = vshll.u32 %v9310_v35, 16 }
 0x17a   : > { %v1322_v30 = vrot.slane %v9107_v8, 1  ;;  %v7836_v20 = vadd.f32 %v7835_v34, %v7834_v7  ;;  %v1256_v6 = vshll.u32 %v9107_v8, 16 }
 0x17b   : > { %v7707_v2 = vpop.f32.mrb[24].mxu0  ;;  %v10611_v62 = vadd.f32 %v7818_v28, %v2417_v56  ;;  %v1246_v28 = vrot.slane %v1244_v11, 1  ;;  %v1249_v56 = vshrl.u32 %v9310_v35, 16  ;;  %v1253_v63 = vrot.slane %v1251_v33, 1 }
 0x17c   : > { %v7708_v29 = vpop.f32.mrb[25].mxu0  ;;  %v1258_v51 = vrot.slane %v1256_v6, 1  ;;  %v9313_v6 = vld [vmem:[%s9707_s20 + $0x24] sm:$0xff]  }
 0x17d   : > { %v7709_v39 = vadd.f32 %v7708_v29, %v7707_v2  ;;  %v7710_v36 = vpop.f32.mrb[26].mxu0  ;;  %v1247_v52 = vsel %vm650_vm0, %v1242_v43, %v1246_v28  ;;  %v1323_v2 = vsel %vm859_vm1, %v1321_v57, %v1322_v30  ;;  %v1254_v37 = vor.u32 %v1253_v63, %v1249_v56 }
 0x17e   : > { %v7711_v4 = vpop.f32.mrb[27].mxu0  ;;  %v1693_v28 = vrot.slane %v9312_v13, 1 }
 0x17f   : > { %v2422_v32 = vadd.f32 %v7709_v39, %v10584_v27  ;;  %v7712_v45 = vadd.f32 %v7711_v4, %v7710_v36  ;;  %v1259_v57 = vsel %vm650_vm0, %v1254_v37, %v1258_v51 }
 0x180   : > { %2798 = vmatmul.mubr.bf16.gmra.mrb[132].mxu0 %v1235_v15 }
 0x181   : > { %v2425_v17 = vadd.f32 %v7712_v45, %v10584_v27  ;;  %2805 = vmatprep.mubr.bf16.mxu0 %v1320_v60  ;;  %v10620_v54 = vadd.f32 %v10590_v40, %v2422_v32  ;;  %v7837_v40 = vpop.f32.mrb[20].mxu1  ;;  %v9110_v60 = vld [vmem:[#allocation6 + $0x40] sm:$0xff]  }
 0x182   : > { %v7838_v39 = vpop.f32.mrb[21].mxu1  ;;  %v9311_v32 = vld [vmem:[%s9707_s20 + $0x18] sm:$0xff]   ;;  %8127 = vmatprep.subr.bf16.mxu1 %v9110_v60 }
 0x183   : > { %v7713_v24 = vpop.f32.mrb[28].mxu0  ;;  %v10622_v26 = vadd.f32 %v7824_v21, %v2425_v17  ;;  %v7839_v21 = vadd.f32 %v7838_v39, %v7837_v40  ;;  %v7840_v36 = vpop.f32.mrb[22].mxu1  ;;  %v1692_v45 = vrot.slane %v9311_v32, 1  ;;  %8128 = vmatpush3.bf16.msra.mxu1 %v9111_v48 }
 0x184   : > { %v7714_v38 = vpop.f32.mrb[29].mxu0  ;;  %v7841_v4 = vpop.f32.mrb[23].mxu1 }
 0x185   : > { %v7715_v50 = vadd.f32 %v7714_v38, %v7713_v24  ;;  %v7716_v9 = vpop.f32.mrb[30].mxu0  ;;  %v7842_v7 = vadd.f32 %v7841_v4, %v7840_v36  ;;  %v1694_v30 = vsel %vm859_vm1, %v1692_v45, %v1693_v28  ;;  %v9316_v36 = vld [vmem:[%s9707_s20 + $0x38] ss:$0 sps:$4 sm:$0x11]  }
 0x186   : > { %v7717_v59 = vpop.f32.mrb[31].mxu0  ;;  %v7843_v24 = vpop.f32.mrb[24].mxu1 }
 0x187   : > { %v2430_v29 = vadd.f32 %v7715_v50, %v10584_v27  ;;  %v7718_v11 = vadd.f32 %v7717_v59, %v7716_v9  ;;  %v7844_v50 = vpop.f32.mrb[25].mxu1  ;;  %v1695_v59 = vrot.slane %v9313_v6, 1  ;;  %v9319_v6 = vld [vmem:[%s9707_s20 + $0x48] sm:$0xff]  }
 0x188   : > { %2806 = vmatmul.mubr.bf16.gmra.mrb[136].mxu0 %v1247_v52  ;;  %v7846_v9 = vpop.f32.mrb[26].mxu1 }
 0x189   : > { %v2433_v15 = vadd.f32 %v7718_v11, %v10584_v27  ;;  %2813 = vmatprep.mubr.bf16.mxu0 %v1323_v2  ;;  %v10629_v8 = vadd.f32 %v10602_v3, %v2430_v29  ;;  %v9314_v2 = vld [vmem:[%s9707_s20 + $0x2c] ss:$0 sps:$4 sm:$0x11]   ;;  %v7847_v29 = vpop.f32.mrb[27].mxu1  ;;  %v9315_v11 = vld [vmem:[%s9707_s20 + $0x30] sm:$0xff]  }
 0x18a   : > { %v1696_v40 = vrot.slane %v9314_v2, 1  ;;  %v1698_v39 = vrot.slane %v9315_v11, 1  ;;  %v7848_v37 = vadd.f32 %v7847_v29, %v7846_v9  ;;  %v9112_v9 = vld [vmem:[#allocation6 + $0x48] sm:$0xff]   ;;  %v9320_v2 = vld [vmem:[%s9707_s20 + $0x50] ss:$0 sps:$4 sm:$0x11]  }
 0x18b   : > { %v7719_v17 = vpop.f32.mrb[32].mxu0  ;;  %v10634_v43 = vadd.f32 %v10609_v1, %v2433_v15  ;;  %v7845_v1 = vadd.f32 %v7844_v50, %v7843_v24  ;;  %v1699_v15 = vrot.slane %v9316_v36, 1  ;;  %8129 = vmatprep.subr.bf16.mxu1 %v9112_v9 }
 0x18c   : > { %v7720_v34 = vpop.f32.mrb[33].mxu0  ;;  %v1697_v32 = vsel %vm859_vm1, %v1695_v59, %v1696_v40  ;;  %v1704_v59 = vrot.slane %v9319_v6, 1  ;;  %v1705_v40 = vrot.slane %v9320_v2, 1 }
 0x18d   : > { %v7721_v35 = vadd.f32 %v7720_v34, %v7719_v17  ;;  %v7722_v33 = vpop.f32.mrb[34].mxu0  ;;  %v1700_v13 = vsel %vm859_vm1, %v1698_v39, %v1699_v15 }
 0x18e   : > { %v7723_v3 = vpop.f32.mrb[35].mxu0  ;;  %v7849_v28 = vpop.f32.mrb[28].mxu1 }
 0x18f   : > { %v7724_v38 = vadd.f32 %v7723_v3, %v7722_v33  ;;  %v2438_v56 = vadd.f32 %v7721_v35, %v10584_v27  ;;  %v7850_v35 = vpop.f32.mrb[29].mxu1 }
 0x190   : > { %2814 = vmatmul.mubr.bf16.gmra.mrb[140].mxu0 %v1259_v57  ;;  %v7852_v33 = vpop.f32.mrb[30].mxu1 }
 0x191   : > { %v10639_v52 = vadd.f32 %v7833_v55, %v2438_v56  ;;  %v2441_v63 = vadd.f32 %v7724_v38, %v10584_v27  ;;  %8639 = vmatprep.mubr.bf16.mxu0 %v1694_v30  ;;  %v9317_v30 = vld [vmem:[%s9707_s20 + $0x3c] sm:$0xff]   ;;  %v9318_v38 = vld [vmem:[%s9707_s20 + $0x44] ss:$0 sps:$4 sm:$0x11]   ;;  %v7853_v50 = vpop.f32.mrb[31].mxu1 }
 0x192   : > { %v1701_v24 = vrot.slane %v9317_v30, 1  ;;  %v1702_v56 = vrot.slane %v9318_v38, 1  ;;  %v7854_v29 = vadd.f32 %v7853_v50, %v7852_v33 }
 0x193   : > { %v10646_v51 = vadd.f32 %v7836_v20, %v2441_v63  ;;  %v7725_v4 = vpop.f32.mrb[36].mxu0  ;;  %v7851_v20 = vadd.f32 %v7850_v35, %v7849_v28  ;;  %v9113_v63 = vld [vmem:[#allocation6 + $0x8] sm:$0xff]  }
 0x194   : > { %v7726_v60 = vpop.f32.mrb[37].mxu0  ;;  %8130 = vmatpush3.bf16.msra.mxu1 %v9113_v63 }
 0x195   : > { %v7727_v55 = vadd.f32 %v7726_v60, %v7725_v4  ;;  %v7728_v48 = vpop.f32.mrb[38].mxu0  ;;  %v1703_v4 = vsel %vm859_vm1, %v1701_v24, %v1702_v56 }
 0x196   : > { %v7729_v45 = vpop.f32.mrb[39].mxu0 }
 0x197   : > { %v7730_v17 = vadd.f32 %v7729_v45, %v7728_v48  ;;  %v2446_v34 = vadd.f32 %v7727_v55, %v10584_v27  ;;  %v1706_v55 = vsel %vm859_vm1, %v1704_v59, %v1705_v40  ;;  %v7855_v48 = vpop.f32.mrb[32].mxu1 }
 0x198   : > { %8640 = vmatmul.mubr.bf16.vlgmr.msra.gmra.mrb[144].mxu0 %v1697_v32 }
 0x199   : > { %v10651_v57 = vadd.f32 %v7839_v21, %v2446_v34  ;;  %v2449_v3 = vadd.f32 %v7730_v17, %v10584_v27  ;;  %8643 = vmatprep.mubr.bf16.mxu0 %v1700_v13  ;;  %v7856_v13 = vpop.f32.mrb[33].mxu1 }
 0x19a   : > { %v7857_v28 = vadd.f32 %v7856_v13, %v7855_v48 }
 0x19b   : > { %v10658_v11 = vadd.f32 %v7842_v7, %v2449_v3  ;;  %v7731_v39 = vpop.f32.mrb[40].mxu0  ;;  %v7858_v7 = vpop.f32.mrb[34].mxu1 }
 0x19c   : > { %v7732_v21 = vpop.f32.mrb[41].mxu0  ;;  %v7859_v35 = vpop.f32.mrb[35].mxu1 }
 0x19d   : > { %v7733_v36 = vadd.f32 %v7732_v21, %v7731_v39  ;;  %v7734_v15 = vpop.f32.mrb[42].mxu0  ;;  %v7860_v33 = vadd.f32 %v7859_v35, %v7858_v7  ;;  %v9114_v21 = vld [vmem:[#allocation6 + $0x50] sm:$0xff]  }
 0x19e   : > { %v7735_v60 = vpop.f32.mrb[43].mxu0  ;;  %v7861_v9 = vpop.f32.mrb[36].mxu1  ;;  %8131 = vmatprep.subr.bf16.mxu1 %v9114_v21 }
 0x19f   : > { %v7736_v32 = vadd.f32 %v7735_v60, %v7734_v15  ;;  %v2454_v45 = vadd.f32 %v7733_v36, %v10584_v27  ;;  %v7862_v59 = vpop.f32.mrb[37].mxu1  ;;  %v9115_v36 = vld [vmem:[#allocation6 + $0x10] sm:$0xff]  }
 0x1a0   : > { %8644 = vmatmul.mubr.bf16.gmra.mrb[148].mxu0 %v1703_v4  ;;  %v7864_v2 = vpop.f32.mrb[38].mxu1  ;;  %8132 = vmatpush3.bf16.msra.mxu1 %v9115_v36  ;;  %v9116_v36 = vld [vmem:[#allocation6 + $0x58] sm:$0xff]  }
 0x1a1   : > { %v10663_v17 = vadd.f32 %v7845_v1, %v2454_v45  ;;  %v2457_v34 = vadd.f32 %v7736_v32, %v10584_v27  ;;  %8647 = vmatprep.mubr.bf16.mxu0 %v1706_v55  ;;  %v7863_v1 = vadd.f32 %v7862_v59, %v7861_v9  ;;  %8133 = vmatprep.subr.bf16.mxu1 %v9116_v36  ;;  %v1735_v36 = vrot.slane %v10482_v0, 1 }
 0x1a3   : > { %v10666_v3 = vadd.f32 %v7848_v37, %v2457_v34  ;;  %v7737_v30 = vpop.f32.mrb[44].mxu0  ;;  %v7865_v37 = vpop.f32.mrb[39].mxu1 }
 0x1a4   : > { %v7738_v24 = vpop.f32.mrb[45].mxu0  ;;  %v7866_v15 = vadd.f32 %v7865_v37, %v7864_v2 }
 0x1a5   : > { %v7739_v38 = vadd.f32 %v7738_v24, %v7737_v30  ;;  %v7740_v56 = vpop.f32.mrb[46].mxu0 }
 0x1a6   : > { %v7741_v50 = vpop.f32.mrb[47].mxu0  ;;  %v7867_v45 = vpop.f32.mrb[40].mxu1 }
 0x1a7   : > { %v7742_v63 = vadd.f32 %v7741_v50, %v7740_v56  ;;  %v2462_v6 = vadd.f32 %v7739_v38, %v10584_v27  ;;  %v7868_v7 = vpop.f32.mrb[41].mxu1 }
 0x1a8   : > { %8648 = vmatmul.mubr.bf16.gmra.mrb[152].mxu0 %v10402_v41  ;;  %v7870_v34 = vpop.f32.mrb[42].mxu1 }
 0x1a9   : > { %v10670_v40 = vadd.f32 %v7851_v20, %v2462_v6  ;;  %v2465_v39 = vadd.f32 %v7742_v63, %v10584_v27  ;;  %8651 = vmatprep.mubr.bf16.mxu0 %v10430_v42  ;;  %v7869_v42 = vadd.f32 %v7868_v7, %v7867_v45  ;;  %v7871_v30 = vpop.f32.mrb[43].mxu1 }
 0x1aa   : > { %v7872_v24 = vadd.f32 %v7871_v30, %v7870_v34 }
 0x1ab   : > { %v10674_v4 = vadd.f32 %v7854_v29, %v2465_v39  ;;  %v7743_v60 = vpop.f32.mrb[48].mxu0 }
 0x1ac   : > { %v7744_v55 = vpop.f32.mrb[49].mxu0 }
 0x1ad   : > { %v7745_v48 = vadd.f32 %v7744_v55, %v7743_v60  ;;  %v7746_v41 = vpop.f32.mrb[50].mxu0  ;;  %v9117_v60 = vld [vmem:[#allocation6 + $0x18] sm:$0xff]   ;;  %v9321_v55 = vld [vmem:[%s9707_s20 + $0xa8] sm:$0xff]  }
 0x1ae   : > { %v7747_v32 = vpop.f32.mrb[51].mxu0  ;;  %8134 = vmatpush3.bf16.msra.mxu1 %v9117_v60 }
 0x1af   : > { %v2470_v20 = vadd.f32 %v7745_v48, %v10584_v27  ;;  %v7748_v13 = vadd.f32 %v7747_v32, %v7746_v41  ;;  %v1728_v48 = vrot.slane %v9321_v55, 1  ;;  %v9322_v41 = vld [vmem:[%s9707_s20 + $0xb0] ss:$0 sps:$4 sm:$0x11]  }
 0x1b0   : > { %8652 = vmatmul.mubr.bf16.gmra.mrb[156].mxu0 %v10433_v22  ;;  %v7873_v22 = vpop.f32.mrb[44].mxu1  ;;  %v1729_v32 = vrot.slane %v9322_v41, 1 }
 0x1b1   : > { %v2473_v35 = vadd.f32 %v7748_v13, %v10584_v27  ;;  %v10679_v29 = vadd.f32 %v7857_v28, %v2470_v20  ;;  %8655 = vmatprep.mubr.bf16.mxu0 %v10456_v49  ;;  %v7874_v39 = vpop.f32.mrb[45].mxu1 }
 0x1b2   : > { %v7875_v28 = vadd.f32 %v7874_v39, %v7873_v22  ;;  %v7876_v49 = vpop.f32.mrb[46].mxu1  ;;  %v9323_v22 = vld [vmem:[%s9707_s20 + $0xb4] sm:$0xff]  }
 0x1b3   : > { %v10682_v38 = vadd.f32 %v7860_v33, %v2473_v35  ;;  %v7749_v56 = vpop.f32.mrb[52].mxu0  ;;  %v7877_v21 = vpop.f32.mrb[47].mxu1 }
 0x1b4   : > { %v7750_v50 = vpop.f32.mrb[53].mxu0  ;;  %v7878_v45 = vadd.f32 %v7877_v21, %v7876_v49 }
 0x1b5   : > { %v7751_v9 = vadd.f32 %v7750_v50, %v7749_v56  ;;  %v7752_v63 = vpop.f32.mrb[54].mxu0 }
 0x1b6   : > { %v7753_v6 = vpop.f32.mrb[55].mxu0  ;;  %v8007_v35 = vpop.f32.mrb[48].mxu1 }
 0x1b7   : > { %v2478_v59 = vadd.f32 %v7751_v9, %v10584_v27  ;;  %v7754_v2 = vadd.f32 %v7753_v6, %v7752_v63  ;;  %v8008_v50 = vpop.f32.mrb[49].mxu1 }
 0x1b8   : > { %8656 = vmatmul.mubr.bf16.gmra.mrb[160].mxu0 %v10459_v10  ;;  %v8010_v9 = vpop.f32.mrb[50].mxu1 }
 0x1b9   : > { %v2481_v37 = vadd.f32 %v7754_v2, %v10584_v27  ;;  %v10687_v33 = vadd.f32 %v7863_v1, %v2478_v59  ;;  %8659 = vmatprep.mubr.bf16.mxu0 %v10485_v12  ;;  %v1730_v12 = vsel %vm859_vm1, %v1728_v48, %v1729_v32  ;;  %v1731_v59 = vrot.slane %v9323_v22, 1  ;;  %v9324_v2 = vld [vmem:[%s9707_s20 + $0xbc] ss:$0 sps:$4 sm:$0x11]   ;;  %v8011_v49 = vpop.f32.mrb[51].mxu1 }
 0x1ba   : > { %v1732_v39 = vrot.slane %v9324_v2, 1  ;;  %v10706_v60 = vadd.f32 %v8011_v49, %v8010_v9  ;;  %v9119_v22 = vld [vmem:[#allocation6 + $0x20] sm:$0xff]  }
 0x1bb   : > { %v10692_v20 = vadd.f32 %v7866_v15, %v2481_v37  ;;  %v7755_v13 = vpop.f32.mrb[56].mxu0  ;;  %v10697_v15 = vadd.f32 %v8008_v50, %v8007_v35  ;;  %v9325_v37 = vld [vmem:[%s9707_s20 + $0xc0] sm:$0xff]   ;;  %v1738_v50 = vrot.slane %v10518_v19, 1  ;;  %s7018_s20 = sshll.u32 %s11891_s11, 4  ;;  %s11985_s20 = int_to_ptr.vmem [resolvable:$true] %s7018_s20 }
 0x1bc   : > { %v7756_v10 = vpop.f32.mrb[57].mxu0  ;;  %v1734_v21 = vrot.slane %v9325_v37, 1  ;;  %s9388_s14 = scalar_lea.vmem %s11985_s20, 4096  ;;  %p9395_p13 = scmp.lt.s32.totalorder %s11985_s20, %s9393_s13 }
 0x1bd   : > { %v7757_v7 = vadd.f32 %v7756_v10, %v7755_v13  ;;  %v7758_v1 = vpop.f32.mrb[58].mxu0  ;;  %p9389_p6 = scmp.ne.s32.totalorder %s11985_s20, %s9388_s14  ;;  %p9396_p3 = scmp.lt.s32.totalorder %s9394_s15, %s9388_s14 }
 0x1be   : > { %v7759_v34 = vpop.f32.mrb[59].mxu0  ;;  %v1736_v10 = vsel %vm859_vm1, %v1734_v21, %v1735_v36 }
 0x1bf   : > { %v2486_v30 = vadd.f32 %v7757_v7, %v10584_v27  ;;  %v7760_v56 = vadd.f32 %v7759_v34, %v7758_v1  ;;  %v8013_v7 = vpop.f32.mrb[52].mxu1  ;;  %p9390_p8 = pnand %p9389_p6, %p9607_p12  ;;  %p9397_p7 = por %p9396_p3, %p9395_p13 }
 0x1c0   : > { %8660 = vmatmul.mubr.bf16.gmra.mrb[164].mxu0 %v10491_v53 }
 0x1c1   : > { %v2489_v63 = vadd.f32 %v7760_v56, %v10584_v27  ;;  %v10700_v6 = vadd.f32 %v7869_v42, %v2486_v30  ;;  %8663 = vmatprep.mubr.bf16.mxu0 %v1730_v12  ;;  %v1733_v42 = vsel %vm859_vm1, %v1731_v59, %v1732_v39  ;;  %v8014_v12 = vpop.f32.mrb[53].mxu1  ;;  %v1737_v56 = vrot.slane %v10488_v47, 1  ;;  %p9391_p10 = pneg %p9390_p8 }
 0x1c2   : > { %v10713_v0 = vadd.f32 %v8014_v12, %v8013_v7  ;;  %v8016_v35 = vpop.f32.mrb[54].mxu1 }
 0x1c3   : > { %v10708_v53 = vadd.f32 %v7872_v24, %v2489_v63  ;;  %v7761_v55 = vpop.f32.mrb[60].mxu0  ;;  %v8017_v9 = vpop.f32.mrb[55].mxu1  ;;  %v9118_v63 = vld [vmem:[#allocation6 + $0x60] sm:$0xff]   ;;  %v1739_v47 = vsel %vm859_vm1, %v1737_v56, %v1738_v50  ;;  %v2385_v50 = vadd.f32 %v10556_v61, %v10584_v27  ;;  %p9398_p9 = pnand %p9397_p7, %p9391_p10 }
 0x1c4   : > { %v7762_v48 = vpop.f32.mrb[61].mxu0  ;;  %v10720_v59 = vadd.f32 %v8017_v9, %v8016_v35  ;;  %8135 = vmatprep.subr.bf16.mxu1 %v9118_v63 }
 0x1c5   : > { %v7763_v41 = vadd.f32 %v7762_v48, %v7761_v55  ;;  %v7764_v32 = vpop.f32.mrb[62].mxu0  ;;  %8136 = vmatpush3.bf16.msra.mxu1 %v9119_v22  ;;  %v2377_v48 = vadd.f32 %v10540_v46, %v10584_v27 }
 0x1c6   : > { %v7765_v13 = vpop.f32.mrb[63].mxu0  ;;  %v8019_v19 = vpop.f32.mrb[56].mxu1 }
 0x1c7   : > { %v2494_v1 = vadd.f32 %v7763_v41, %v10584_v27  ;;  %v7766_v34 = vadd.f32 %v7765_v13, %v7764_v32  ;;  %v8020_v41 = vpop.f32.mrb[57].mxu1 }
 0x1c8   : > { %8664 = vmatmul.mubr.bf16.gmra.mrb[168].mxu0 %v1733_v42  ;;  %v10731_v32 = vadd.f32 %v8020_v41, %v8019_v19  ;;  %v8022_v42 = vpop.f32.mrb[58].mxu1  ;;  %v2390_v19 = vadd.f32 %v10563_v31, %v10584_v27 }
 0x1c9   : > { %v2497_v24 = vadd.f32 %v7766_v34, %v10584_v27  ;;  %v10716_v30 = vadd.f32 %v7875_v28, %v2494_v1  ;;  %8667 = vmatprep.mubr.bf16.mxu0 %v1736_v10  ;;  %v2374_v28 = vadd.f32 %v10530_v18, %v10584_v27  ;;  %v8023_v18 = vpop.f32.mrb[59].mxu1  ;;  %v2382_v34 = vadd.f32 %v10547_v44, %v10584_v27 }
 0x1ca   : > { %v10735_v10 = vadd.f32 %v8023_v18, %v8022_v42  ;;  %v2393_v18 = vadd.f32 %v10567_v16, %v10584_v27 }
 0x1cb   : > { %v10722_v2 = vadd.f32 %v7878_v45, %v2497_v24  ;;  %v7783_v39 = vpop.f32.mrb[64].mxu0 }
 0x1cc   : > { %v7784_v49 = vpop.f32.mrb[65].mxu0 }
 0x1cd   : > { %v7785_v37 = vadd.f32 %v7784_v49, %v7783_v39  ;;  %v7786_v21 = vpop.f32.mrb[66].mxu0 }
 0x1ce   : > { %v7787_v36 = vpop.f32.mrb[67].mxu0  ;;  %v8025_v46 = vpop.f32.mrb[60].mxu1 }
 0x1cf   : > { %v10727_v55 = vadd.f32 %v7785_v37, %v2374_v28  ;;  %v7788_v45 = vadd.f32 %v7787_v36, %v7786_v21  ;;  %v8026_v63 = vpop.f32.mrb[61].mxu1  ;;  %v9120_v37 = vld [vmem:[#allocation6 + $0x68] sm:$0xff]  }
 0x1d0   : > { %8668 = vmatmul.mubr.bf16.gmra.mrb[172].mxu0 %v1739_v47  ;;  %v10743_v22 = vadd.f32 %v8026_v63, %v8025_v46  ;;  %v8028_v39 = vpop.f32.mrb[62].mxu1  ;;  %v9121_v21 = vld [vmem:[#allocation6 + $0x28] sm:$0xff]   ;;  %8137 = vmatprep.subr.bf16.mxu1 %v9120_v37  ;;  %v2398_v63 = vadd.f32 %v10571_v25, %v10584_v27  ;;  %v9125_v37 = vld [vmem:[#allocation6 + $0x80] sm:$0xff]  }
 0x1d1   : > { %v10733_v13 = vadd.f32 %v7788_v45, %v2377_v48  ;;  %v8029_v28 = vpop.f32.mrb[63].mxu1  ;;  %8138 = vmatpush3.bf16.msra.mxu1 %v9121_v21 }
 0x1d2   : > { %v10747_v44 = vadd.f32 %v8029_v28, %v8028_v39 }
 0x1d3   : > { %v7789_v7 = vpop.f32.mrb[68].mxu0 }
 0x1d4   : > { %v7790_v1 = vpop.f32.mrb[69].mxu0 }
 0x1d5   : > { %v7791_v12 = vadd.f32 %v7790_v1, %v7789_v7  ;;  %v7792_v35 = vpop.f32.mrb[70].mxu0 }
 0x1d6   : > { %v7793_v24 = vpop.f32.mrb[71].mxu0  ;;  %v8031_v41 = vpop.f32.mrb[64].mxu1 }
 0x1d7   : > { %v10739_v56 = vadd.f32 %v7791_v12, %v2382_v34  ;;  %v7794_v9 = vadd.f32 %v7793_v24, %v7792_v35  ;;  %v8032_v1 = vpop.f32.mrb[65].mxu1 }
 0x1d8   : > { %v10755_v34 = vadd.f32 %v8032_v1, %v8031_v41  ;;  %v8034_v12 = vpop.f32.mrb[66].mxu1  ;;  %v9126_v41 = vld [vmem:[#allocation6 + $0xc8] sm:$0xff]   ;;  %v9123_v1 = vld [vmem:[#allocation6 + $0x30] sm:$0xff]  }
 0x1d9   : > { %v10745_v49 = vadd.f32 %v7794_v9, %v2385_v50  ;;  %v8035_v24 = vpop.f32.mrb[67].mxu1  ;;  %v9124_v9 = vld [vmem:[#allocation6 + $0xc0] sm:$0xff]  }
 0x1da   : > { %v10759_v46 = vadd.f32 %v8035_v24, %v8034_v12  ;;  %8239 = vmatprep.subr.bf16.mxu0 %v9124_v9  ;;  %v9127_v12 = vld [vmem:[#allocation6 + $0x88] sm:$0xff]  }
 0x1db   : > { %v7795_v47 = vpop.f32.mrb[72].mxu0  ;;  %8240 = vmatpush3.bf16.msra.mxu0 %v9125_v37 }
 0x1dc   : > { %v7796_v36 = vpop.f32.mrb[73].mxu0  ;;  %8241 = vmatprep.subr.bf16.mxu0 %v9126_v41 }
 0x1dd   : > { %v7797_v61 = vadd.f32 %v7796_v36, %v7795_v47  ;;  %v7798_v48 = vpop.f32.mrb[74].mxu0  ;;  %v2401_v36 = vadd.f32 %v10576_v23, %v10584_v27  ;;  %v9128_v27 = vld [vmem:[#allocation6 + $0xd0] sm:$0xff]  }
 0x1de   : > { %v7799_v45 = vpop.f32.mrb[75].mxu0  ;;  %v8037_v21 = vpop.f32.mrb[68].mxu1 }
 0x1df   : > { %v10751_v42 = vadd.f32 %v7797_v61, %v2390_v19  ;;  %v7800_v7 = vadd.f32 %v7799_v45, %v7798_v48  ;;  %v8038_v61 = vpop.f32.mrb[69].mxu1  ;;  %8242 = vmatpush3.bf16.msra.mxu0 %v9127_v12 }
 0x1e0   : > { %v10767_v48 = vadd.f32 %v8038_v61, %v8037_v21  ;;  %v8040_v45 = vpop.f32.mrb[70].mxu1  ;;  %8243 = vmatprep.subr.bf16.mxu0 %v9128_v27  ;;  %v9130_v61 = vld [vmem:[#allocation6 + $0xd8] sm:$0xff]  }
 0x1e1   : > { %v10757_v35 = vadd.f32 %v7800_v7, %v2393_v18  ;;  %v8041_v25 = vpop.f32.mrb[71].mxu1  ;;  %v9122_v7 = vld [vmem:[#allocation6 + $0x70] sm:$0xff]  }
 0x1e2   : > { %v10771_v24 = vadd.f32 %v8041_v25, %v8040_v45  ;;  %8139 = vmatprep.subr.bf16.mxu1 %v9122_v7  ;;  %v9131_v7 = vld [vmem:[#allocation6 + $0x98] sm:$0xff]  }
 0x1e3   : > { %v7801_v31 = vpop.f32.mrb[76].mxu0  ;;  %8140 = vmatpush3.bf16.msra.mxu1 %v9123_v1 }
 0x1e4   : > { %v7802_v50 = vpop.f32.mrb[77].mxu0 }
 0x1e5   : > { %v7803_v39 = vadd.f32 %v7802_v50, %v7801_v31  ;;  %v7804_v28 = vpop.f32.mrb[78].mxu0 }
 0x1e6   : > { %v7805_v16 = vpop.f32.mrb[79].mxu0 }
 0x1e7   : > { %v10763_v47 = vadd.f32 %v7803_v39, %v2398_v63  ;;  %v7806_v19 = vadd.f32 %v7805_v16, %v7804_v28  ;;  %v9129_v63 = vld [vmem:[#allocation6 + $0x90] sm:$0xff]   ;;  %v8043_v28 = vpop.f32.mrb[72].mxu1 }
 0x1e8   : > { %v8044_v21 = vpop.f32.mrb[73].mxu1  ;;  %8244 = vmatpush3.bf16.msra.mxu0 %v9129_v63 }
 0x1e9   : > { %v10769_v18 = vadd.f32 %v7806_v19, %v2401_v36  ;;  %v9464_v36 = vmov 0   ;;  %v8046_v19 = vpop.f32.mrb[74].mxu1  ;;  %8245 = vmatprep.subr.bf16.mxu0 %v9130_v61 }
 0x1ea   : > { %3182 = vst [vmem:[#allocation2 + $0x18] sm:$0xf] %v9464_v36  ;;  %3176 = vst [vmem:[#allocation2] sm:$0xf] %v9464_v36  ;;  %v8047_v41 = vpop.f32.mrb[75].mxu1 }
 0x1eb   : > { %v7895_v31 = vpop.f32.mrb[80].mxu0  ;;  %3177 = vst [vmem:[#allocation2 + $0x4] sm:$0xf] %v9464_v36  ;;  %3178 = vst [vmem:[#allocation2 + $0x8] sm:$0x1] %v9464_v36  ;;  %v10783_v1 = vadd.f32 %v8047_v41, %v8046_v19  ;;  %v9134_v19 = vld [vmem:[#allocation6 + $0xe0] sm:$0xff]  }
 0x1ec   : > { %v7896_v23 = vpop.f32.mrb[81].mxu0  ;;  %3179 = vst [vmem:[#allocation2 + $0xc] sm:$0xf] %v9464_v36  ;;  %3180 = vst [vmem:[#allocation2 + $0x10] sm:$0xf] %v9464_v36  ;;  %8246 = vmatpush3.bf16.msra.mxu0 %v9131_v7  ;;  %v9135_v41 = vld [vmem:[#allocation6 + $0xa0] sm:$0xff]  }
 0x1ed   : > { %v7897_v50 = vadd.f32 %v7896_v23, %v7895_v31  ;;  %v7898_v9 = vpop.f32.mrb[82].mxu0  ;;  %3181 = vst [vmem:[#allocation2 + $0x14] sm:$0x1] %v9464_v36  ;;  %3183 = vst [vmem:[#allocation2 + $0x1c] sm:$0xf] %v9464_v36  ;;  %8247 = vmatprep.subr.bf16.mxu0 %v9134_v19 }
 0x1ee   : > { %v7899_v39 = vpop.f32.mrb[83].mxu0  ;;  %3184 = vst [vmem:[#allocation2 + $0x20] sm:$0x1] %v9464_v36  ;;  %3185 = vst [vmem:[#allocation2 + $0x24] sm:$0xf] %v9464_v36  ;;  %v8049_v63 = vpop.f32.mrb[76].mxu1 }
 0x1ef   : > { %v10774_v37 = vadd.f32 %v7897_v50, %v10727_v55  ;;  %v7900_v16 = vadd.f32 %v7899_v39, %v7898_v9  ;;  %3186 = vst [vmem:[#allocation2 + $0x28] sm:$0xf] %v9464_v36  ;;  %3187 = vst [vmem:[#allocation2 + $0x2c] sm:$0x1] %v9464_v36  ;;  %v10776_v55 = vadd.f32 %v8044_v21, %v8043_v28  ;;  %v8050_v28 = vpop.f32.mrb[77].mxu1 }
 0x1f0   : > { %3188 = vst [vmem:[#allocation2 + $0x30] sm:$0xf] %v9464_v36  ;;  %3189 = vst [vmem:[#allocation2 + $0x34] sm:$0xf] %v9464_v36  ;;  %8248 = vmatpush3.bf16.msra.mxu0 %v9135_v41 }
 0x1f1   : > { %3190 = vst [vmem:[#allocation2 + $0x38] sm:$0x1] %v9464_v36  ;;  %3191 = vst [vmem:[#allocation2 + $0x3c] sm:$0xf] %v9464_v36  ;;  %v2699_v45 = vadd.f32 %v7900_v16, %v10733_v13  ;;  %v10781_v25 = vadd.f32 %v10697_v15, %v10774_v37  ;;  %v10789_v15 = vadd.f32 %v8050_v28, %v8049_v63  ;;  %v8052_v37 = vpop.f32.mrb[78].mxu1  ;;  %v9137_v63 = vld [vmem:[#allocation6 + $0xa8] sm:$0xff]  }
 0x1f2   : > { %3192 = vst [vmem:[#allocation2 + $0x40] sm:$0xf] %v9464_v36  ;;  %3193 = vst [vmem:[#allocation2 + $0x44] sm:$0x1] %v9464_v36  ;;  %v8053_v21 = vpop.f32.mrb[79].mxu1 }
 0x1f3   : > { %3194 = vst [vmem:[#allocation2 + $0x48] sm:$0xf] %v9464_v36  ;;  %3195 = vst [vmem:[#allocation2 + $0x4c] sm:$0xf] %v9464_v36  ;;  %v7901_v12 = vpop.f32.mrb[84].mxu0  ;;  %v10786_v31 = vadd.f32 %v10706_v60, %v2699_v45  ;;  %v10795_v60 = vadd.f32 %v8053_v21, %v8052_v37 }
 0x1f4   : > { %3196 = vst [vmem:[#allocation2 + $0x50] sm:$0x1] %v9464_v36  ;;  %3197 = vst [vmem:[#allocation2 + $0x54] sm:$0xf] %v9464_v36  ;;  %v7902_v23 = vpop.f32.mrb[85].mxu0 }
 0x1f5   : > { %3198 = vst [vmem:[#allocation2 + $0x58] sm:$0xf] %v9464_v36  ;;  %3199 = vst [vmem:[#allocation2 + $0x5c] sm:$0x1] %v9464_v36  ;;  %v7903_v27 = vadd.f32 %v7902_v23, %v7901_v12  ;;  %v7904_v50 = vpop.f32.mrb[86].mxu0 }
 0x1f6   : > { %3200 = vst [vmem:[#allocation2 + $0x60] sm:$0xf] %v9464_v36  ;;  %3201 = vst [vmem:[#allocation2 + $0x64] sm:$0xf] %v9464_v36  ;;  %v7905_v9 = vpop.f32.mrb[87].mxu0 }
 0x1f7   : > { %3202 = vst [vmem:[#allocation2 + $0x68] sm:$0x1] %v9464_v36  ;;  %3203 = vst [vmem:[#allocation2 + $0x6c] sm:$0xf] %v9464_v36  ;;  %v2704_v13 = vadd.f32 %v7903_v27, %v10739_v56  ;;  %v7906_v39 = vadd.f32 %v7905_v9, %v7904_v50  ;;  %v8055_v27 = vpop.f32.mrb[80].mxu1 }
 0x1f8   : > { %3204 = vst [vmem:[#allocation2 + $0x70] sm:$0xf] %v9464_v36  ;;  %3205 = vst [vmem:[#allocation2 + $0x74] sm:$0x1] %v9464_v36  ;;  %v8056_v9 = vpop.f32.mrb[81].mxu1 }
 0x1f9   : > { %3206 = vst [vmem:[#allocation2 + $0x78] sm:$0xf] %v9464_v36  ;;  %3207 = vst [vmem:[#allocation2 + $0x7c] sm:$0xf] %v9464_v36  ;;  %v2707_v16 = vadd.f32 %v7906_v39, %v10745_v49  ;;  %v9136_v49 = vld [vmem:[#allocation6 + $0xe8] sm:$0xff]   ;;  %v10801_v39 = vadd.f32 %v8056_v9, %v8055_v27  ;;  %v8058_v28 = vpop.f32.mrb[82].mxu1 }
 0x1fa   : > { %3208 = vst [vmem:[#allocation2 + $0x80] sm:$0x1] %v9464_v36  ;;  %3209 = vst [vmem:[#allocation2 + $0x84] sm:$0xf] %v9464_v36  ;;  %8249 = vmatprep.subr.bf16.mxu0 %v9136_v49  ;;  %v8059_v37 = vpop.f32.mrb[83].mxu1 }
 0x1fb   : > { %3210 = vst [vmem:[#allocation2 + $0x88] sm:$0xf] %v9464_v36  ;;  %3211 = vst [vmem:[#allocation2 + $0x8c] sm:$0x1] %v9464_v36  ;;  %v7907_v61 = vpop.f32.mrb[88].mxu0  ;;  %v10798_v45 = vadd.f32 %v10720_v59, %v2707_v16  ;;  %8250 = vmatpush3.bf16.msra.mxu0 %v9137_v63 }
 0x1fc   : > { %3212 = vst [vmem:[#allocation2 + $0x90] sm:$0xf] %v9464_v36  ;;  %3213 = vst [vmem:[#allocation2 + $0x94] sm:$0xf] %v9464_v36  ;;  %v7908_v56 = vpop.f32.mrb[89].mxu0 }
 0x1fd   : > { %3214 = vst [vmem:[#allocation2 + $0x98] sm:$0x1] %v9464_v36  ;;  %3215 = vst [vmem:[#allocation2 + $0x9c] sm:$0xf] %v9464_v36  ;;  %v7909_v7 = vadd.f32 %v7908_v56, %v7907_v61  ;;  %v7910_v12 = vpop.f32.mrb[90].mxu0  ;;  %v10807_v61 = vadd.f32 %v8059_v37, %v8058_v28 }
 0x1fe   : > { %3216 = vst [vmem:[#allocation2 + $0xa0] sm:$0xf] %v9464_v36  ;;  %3217 = vst [vmem:[#allocation2 + $0xa4] sm:$0x1] %v9464_v36  ;;  %v7911_v23 = vpop.f32.mrb[91].mxu0  ;;  %v8061_v37 = vpop.f32.mrb[84].mxu1 }
 0x1ff   : > { %3218 = vst [vmem:[#allocation2 + $0xa8] sm:$0xf] %v9464_v36  ;;  %3219 = vst [vmem:[#allocation2 + $0xac] sm:$0xf] %v9464_v36  ;;  %v2712_v50 = vadd.f32 %v7909_v7, %v10751_v42  ;;  %v9132_v42 = vld [vmem:[#allocation6 + $0x78] sm:$0xff]  }
 0x200   : > { %3220 = vst [vmem:[#allocation2 + $0xb0] sm:$0x1] %v9464_v36  ;;  %3221 = vst [vmem:[#allocation2 + $0xb4] sm:$0xf] %v9464_v36  ;;  %v9133_v7 = vld [vmem:[#allocation6 + $0x38] sm:$0xff]   ;;  %8141 = vmatprep.subr.bf16.mxu1 %v9132_v42 }
 0x201   : > { %3222 = vst [vmem:[#allocation2 + $0xb8] sm:$0xf] %v9464_v36  ;;  %3223 = vst [vmem:[#allocation2 + $0xbc] sm:$0x1] %v9464_v36  ;;  %v10805_v16 = vadd.f32 %v10731_v32, %v2712_v50  ;;  %8142 = vmatpush3.bf16.msra.mxu1 %v9133_v7 }
 0x202   : > { %3224 = vst [vmem:[#allocation2 + $0xc0] sm:$0xf] %v9464_v36  ;;  %3225 = vst [vmem:[#allocation2 + $0xc4] sm:$0xf] %v9464_v36 }
 0x203   : > { %3226 = vst [vmem:[#allocation2 + $0xc8] sm:$0x1] %v9464_v36  ;;  %3227 = vst [vmem:[#allocation2 + $0xcc] sm:$0xf] %v9464_v36  ;;  %v7913_v41 = vpop.f32.mrb[92].mxu0 }
 0x204   : > { %3228 = vst [vmem:[#allocation2 + $0xd0] sm:$0xf] %v9464_v36  ;;  %3229 = vst [vmem:[#allocation2 + $0xd4] sm:$0x1] %v9464_v36  ;;  %v10793_v36 = vadd.f32 %v10713_v0, %v2704_v13  ;;  %v7912_v0 = vadd.f32 %v7911_v23, %v7910_v12  ;;  %v9140_v13 = vld [vmem:[#allocation2] sm:$0xff]   ;;  %v9138_v12 = vld [vmem:[#allocation6 + $0xf0] sm:$0xff]  }
 0x205   : > { %12129 = vst [vmem:[#allocation16_spill] sm:$0xff] %v10786_v31  ;;  %12130 = vst [vmem:[#allocation14_spill] sm:$0xff] %v10805_v16  ;;  %v9141_v21 = vld [vmem:[#allocation2 + $0x8] ss:$0 sps:$4 sm:$0x11]   ;;  %v4059_v19 = vshll.u32 %v9140_v13, 16  ;;  %8251 = vmatprep.subr.bf16.mxu0 %v9138_v12 }
 0x206   : > { %v2715_v59 = vadd.f32 %v7912_v0, %v10757_v35  ;;  %v4057_v23 = vshrl.u32 %v9140_v13, 16  ;;  %v4064_v49 = vshll.u32 %v9141_v21, 16  ;;  %v7914_v35 = vpop.f32.mrb[93].mxu0  ;;  %v9139_v0 = vld [vmem:[#allocation6 + $0xb0] sm:$0xff]  }
 0x207   : > { %v4061_v27 = vrot.slane %v4059_v19, 1  ;;  %v7915_v32 = vadd.f32 %v7914_v35, %v7913_v41  ;;  %v7916_v50 = vpop.f32.mrb[94].mxu0  ;;  %8252 = vmatpush3.bf16.msra.mxu0 %v9139_v0  ;;  %v9142_v19 = vld [vmem:[#allocation6 + $0xf8] sm:$0xff]  }
 0x208   : > { %v10810_v56 = vadd.f32 %v10735_v10, %v2715_v59  ;;  %v4066_v63 = vrot.slane %v4064_v49, 1  ;;  %v7917_v28 = vpop.f32.mrb[95].mxu0  ;;  %v9143_v41 = vld [vmem:[#allocation6 + $0xb8] sm:$0xff]   ;;  %8253 = vmatprep.subr.bf16.mxu0 %v9142_v19  ;;  %v4265_v49 = vrot.slane %v9141_v21, 1 }
 0x209   : > { %v4062_v9 = vor.u32 %v4061_v27, %v4057_v23  ;;  %v2720_v10 = vadd.f32 %v7915_v32, %v10763_v47  ;;  %v7918_v59 = vadd.f32 %v7917_v28, %v7916_v50  ;;  %v4264_v47 = vrot.slane %v9140_v13, 1 }
 0x20a   : > { %12131 = vst [vmem:[#allocation13_spill] sm:$0xff] %v10810_v56  ;;  %v8062_v56 = vpop.f32.mrb[85].mxu1 }
 0x20b   : > { %v4067_v16 = vsel %vm650_vm0, %v4062_v9, %v4066_v63  ;;  %v10814_v31 = vadd.f32 %v8062_v56, %v8061_v37  ;;  %v8064_v42 = vpop.f32.mrb[86].mxu1  ;;  %v2723_v7 = vadd.f32 %v7918_v59, %v10769_v18  ;;  %v10818_v23 = vadd.f32 %v10743_v22, %v2720_v10  ;;  %8254 = vmatpush3.bf16.msra.mxu0 %v9143_v41  ;;  %v7919_v35 = vpop.f32.mrb[96].mxu0 }
 0x20c   : > { %5775 = vmatprep.mubr.bf16.mxu1 %v4067_v16  ;;  %v8065_v12 = vpop.f32.mrb[87].mxu1  ;;  %v7920_v0 = vpop.f32.mrb[97].mxu0  ;;  %v10826_v16 = vsel %vm859_vm1, %v4264_v47, %v4265_v49 }
 0x20d   : > { %5776 = vmatmul.mubr.bf16.vlgmr.msra.gmra.mrb[112].mxu1 %v9140_v13  ;;  %v10820_v27 = vadd.f32 %v8065_v12, %v8064_v42  ;;  %v10823_v56 = vadd.f32 %v10747_v44, %v2723_v7  ;;  %v7921_v18 = vadd.f32 %v7920_v0, %v7919_v35  ;;  %v7922_v32 = vpop.f32.mrb[98].mxu0  ;;  %v8067_v22 = vpop.f32.mrb[88].mxu1 }
 0x20e   : > { %v7923_v50 = vpop.f32.mrb[99].mxu0  ;;  %v8068_v28 = vpop.f32.mrb[89].mxu1 }
 0x20f   : > { %v2728_v9 = vadd.f32 %v7921_v18, %v10594_v58  ;;  %v7924_v63 = vadd.f32 %v7923_v50, %v7922_v32  ;;  %v10829_v37 = vadd.f32 %v8068_v28, %v8067_v22  ;;  %v8070_v13 = vpop.f32.mrb[90].mxu1  ;;  %v9145_v22 = vld [vmem:[#allocation6 + $0x140] sm:$0xff]  }
 0x210   : > { %v8071_v10 = vpop.f32.mrb[91].mxu1  ;;  %8351 = vmatprep.subr.bf16.mxu1 %v9145_v22 }
 0x211   : > { %v2731_v21 = vadd.f32 %v7924_v63, %v10596_v5  ;;  %v10833_v44 = vadd.f32 %v10755_v34, %v2728_v9  ;;  %v10835_v59 = vadd.f32 %v8071_v10, %v8070_v13  ;;  %v8073_v47 = vpop.f32.mrb[92].mxu1  ;;  %v9146_v9 = vld [vmem:[#allocation6 + $0x100] sm:$0xff]  }
 0x212   : > { %v8074_v0 = vpop.f32.mrb[93].mxu1  ;;  %8352 = vmatpush3.bf16.msra.mxu1 %v9146_v9 }
 0x213   : > { %v7925_v19 = vpop.f32.mrb[100].mxu0  ;;  %v10838_v42 = vadd.f32 %v10759_v46, %v2731_v21  ;;  %v10841_v5 = vadd.f32 %v8074_v0, %v8073_v47  ;;  %v8076_v18 = vpop.f32.mrb[94].mxu1 }
 0x214   : > { %v7926_v41 = vpop.f32.mrb[101].mxu0  ;;  %v8077_v32 = vpop.f32.mrb[95].mxu1 }
 0x215   : > { %v7927_v7 = vadd.f32 %v7926_v41, %v7925_v19  ;;  %v7928_v58 = vpop.f32.mrb[102].mxu0  ;;  %v10847_v46 = vadd.f32 %v8077_v32, %v8076_v18 }
 0x216   : > { %v7929_v12 = vpop.f32.mrb[103].mxu0  ;;  %v8079_v19 = vpop.f32.mrb[96].mxu1 }
 0x217   : > { %v2736_v49 = vadd.f32 %v7927_v7, %v10607_v14  ;;  %v7930_v35 = vadd.f32 %v7929_v12, %v7928_v58 }
 0x219   : > { %v2739_v34 = vadd.f32 %v7930_v35, %v10611_v62  ;;  %v10845_v50 = vadd.f32 %v10767_v48, %v2736_v49  ;;  %v8080_v48 = vpop.f32.mrb[97].mxu1 }
 0x21a   : > { %v10853_v7 = vadd.f32 %v8080_v48, %v8079_v19  ;;  %v8082_v58 = vpop.f32.mrb[98].mxu1 }
 0x21b   : > { %v7931_v63 = vpop.f32.mrb[104].mxu0  ;;  %v10850_v28 = vadd.f32 %v10771_v24, %v2739_v34  ;;  %v8083_v47 = vpop.f32.mrb[99].mxu1 }
 0x21c   : > { %v7932_v14 = vpop.f32.mrb[105].mxu0  ;;  %v10859_v49 = vadd.f32 %v8083_v47, %v8082_v58 }
 0x21d   : > { %v7933_v13 = vadd.f32 %v7932_v14, %v7931_v63  ;;  %v7934_v21 = vpop.f32.mrb[106].mxu0 }
 0x21e   : > { %v7935_v10 = vpop.f32.mrb[107].mxu0  ;;  %v8085_v22 = vpop.f32.mrb[100].mxu1 }
 0x21f   : > { %v2744_v62 = vadd.f32 %v7933_v13, %v10620_v54  ;;  %v7936_v41 = vadd.f32 %v7935_v10, %v7934_v21  ;;  %v8086_v14 = vpop.f32.mrb[101].mxu1 }
 0x220   : > { %v8088_v13 = vpop.f32.mrb[102].mxu1 }
 0x221   : > { %v2747_v12 = vadd.f32 %v7936_v41, %v10622_v26  ;;  %v10857_v24 = vadd.f32 %v10776_v55, %v2744_v62  ;;  %v10865_v26 = vadd.f32 %v8086_v14, %v8085_v22  ;;  %v8089_v21 = vpop.f32.mrb[103].mxu1  ;;  %v9153_v22 = vld [vmem:[#allocation6 + $0x148] sm:$0xff]  }
 0x222   : > { %8353 = vmatprep.subr.bf16.mxu1 %v9153_v22 }
 0x223   : > { %v7937_v35 = vpop.f32.mrb[108].mxu0  ;;  %v10862_v0 = vadd.f32 %v10783_v1, %v2747_v12  ;;  %v10871_v1 = vadd.f32 %v8089_v21, %v8088_v13 }
 0x224   : > { %v7938_v18 = vpop.f32.mrb[109].mxu0 }
 0x225   : > { %v7939_v34 = vadd.f32 %v7938_v18, %v7937_v35  ;;  %v7940_v54 = vpop.f32.mrb[110].mxu0 }
 0x226   : > { %v7941_v32 = vpop.f32.mrb[111].mxu0  ;;  %v8091_v12 = vpop.f32.mrb[104].mxu1 }
 0x227   : > { %v2752_v9 = vadd.f32 %v7939_v34, %v10629_v8  ;;  %v7942_v63 = vadd.f32 %v7941_v32, %v7940_v54  ;;  %v8092_v18 = vpop.f32.mrb[105].mxu1 }
 0x228   : > { %v8094_v34 = vpop.f32.mrb[106].mxu1 }
 0x229   : > { %v2755_v55 = vadd.f32 %v7942_v63, %v10634_v43  ;;  %v10869_v10 = vadd.f32 %v10789_v15, %v2752_v9  ;;  %v10877_v43 = vadd.f32 %v8092_v18, %v8091_v12  ;;  %v8095_v54 = vpop.f32.mrb[107].mxu1  ;;  %v9156_v9 = vld [vmem:[#allocation6 + $0x108] sm:$0xff]  }
 0x22a   : > { %8354 = vmatpush3.bf16.msra.mxu1 %v9156_v9 }
 0x22b   : > { %v7943_v19 = vpop.f32.mrb[112].mxu0  ;;  %v10874_v62 = vadd.f32 %v10795_v60, %v2755_v55  ;;  %v10883_v60 = vadd.f32 %v8095_v54, %v8094_v34 }
 0x22c   : > { %v7944_v41 = vpop.f32.mrb[113].mxu0 }
 0x22d   : > { %v7945_v48 = vadd.f32 %v7944_v41, %v7943_v19  ;;  %v7946_v8 = vpop.f32.mrb[114].mxu0 }
 0x22e   : > { %v7947_v58 = vpop.f32.mrb[115].mxu0  ;;  %v8097_v19 = vpop.f32.mrb[108].mxu1 }
 0x22f   : > { %v2760_v47 = vadd.f32 %v7945_v48, %v10639_v52  ;;  %v7948_v35 = vadd.f32 %v7947_v58, %v7946_v8 }
 0x231   : > { %v2763_v15 = vadd.f32 %v7948_v35, %v10646_v51  ;;  %v10881_v32 = vadd.f32 %v10801_v39, %v2760_v47  ;;  %v8098_v39 = vpop.f32.mrb[109].mxu1 }
 0x232   : > { %v10889_v48 = vadd.f32 %v8098_v39, %v8097_v19  ;;  %v8100_v8 = vpop.f32.mrb[110].mxu1  ;;  %v9164_v39 = vld [vmem:[#allocation6 + $0x110] sm:$0xff]  }
 0x233   : > { %v7949_v63 = vpop.f32.mrb[116].mxu0  ;;  %v10886_v14 = vadd.f32 %v10807_v61, %v2763_v15  ;;  %v8101_v12 = vpop.f32.mrb[111].mxu1 }
 0x234   : > { %v7950_v52 = vpop.f32.mrb[117].mxu0  ;;  %v10895_v47 = vadd.f32 %v8101_v12, %v8100_v8 }
 0x235   : > { %v7951_v13 = vadd.f32 %v7950_v52, %v7949_v63  ;;  %v7952_v55 = vpop.f32.mrb[118].mxu0 }
 0x236   : > { %v7953_v21 = vpop.f32.mrb[119].mxu0 }
 0x237   : > { %v2768_v51 = vadd.f32 %v7951_v13, %v10651_v57  ;;  %v7954_v41 = vadd.f32 %v7953_v21, %v7952_v55 }
 0x239   : > { %v2771_v58 = vadd.f32 %v7954_v41, %v10658_v11  ;;  %v10893_v61 = vadd.f32 %v10814_v31, %v2768_v51 }
 0x23b   : > { %v7955_v35 = vpop.f32.mrb[120].mxu0  ;;  %v10898_v18 = vadd.f32 %v10820_v27, %v2771_v58 }
 0x23c   : > { %v7956_v34 = vpop.f32.mrb[121].mxu0 }
 0x23d   : > { %v7957_v15 = vadd.f32 %v7956_v34, %v7955_v35  ;;  %v7958_v57 = vpop.f32.mrb[122].mxu0  ;;  %v9169_v34 = vld [vmem:[#allocation6 + $0x158] sm:$0xff]  }
 0x23e   : > { %v7959_v54 = vpop.f32.mrb[123].mxu0 }
 0x23f   : > { %v2776_v22 = vadd.f32 %v7957_v15, %v10663_v17  ;;  %v7960_v9 = vadd.f32 %v7959_v54, %v7958_v57 }
 0x241   : > { %v2779_v63 = vadd.f32 %v7960_v9, %v10666_v3  ;;  %v10903_v11 = vadd.f32 %v10829_v37, %v2776_v22  ;;  %v9161_v3 = vld [vmem:[#allocation6 + $0x150] sm:$0xff]  }
 0x242   : > { %8355 = vmatprep.subr.bf16.mxu1 %v9161_v3 }
 0x243   : > { %v7961_v31 = vpop.f32.mrb[124].mxu0  ;;  %v10906_v52 = vadd.f32 %v10835_v59, %v2779_v63  ;;  %8356 = vmatpush3.bf16.msra.mxu1 %v9164_v39  ;;  %v9172_v63 = vld [vmem:[#allocation6 + $0x118] sm:$0xff]  }
 0x244   : > { %v7962_v13 = vpop.f32.mrb[125].mxu0  ;;  %8357 = vmatprep.subr.bf16.mxu1 %v9169_v34 }
 0x245   : > { %v7963_v55 = vadd.f32 %v7962_v13, %v7961_v31  ;;  %v7964_v27 = vpop.f32.mrb[126].mxu0 }
 0x246   : > { %v7965_v21 = vpop.f32.mrb[127].mxu0 }
 0x247   : > { %v2784_v19 = vadd.f32 %v7963_v55, %v10670_v40  ;;  %v7966_v51 = vadd.f32 %v7965_v21, %v7964_v27  ;;  %8358 = vmatpush3.bf16.msra.mxu1 %v9172_v63  ;;  %v9185_v63 = vld [vmem:[#allocation6 + $0x168] sm:$0xff]  }
 0x249   : > { %v2787_v41 = vadd.f32 %v7966_v51, %v10674_v4  ;;  %v10911_v17 = vadd.f32 %v10841_v5, %v2784_v19 }
 0x24b   : > { %v7967_v37 = vpop.f32.mrb[128].mxu0  ;;  %v10914_v8 = vadd.f32 %v10847_v46, %v2787_v41  ;;  %v9177_v41 = vld [vmem:[#allocation6 + $0x160] sm:$0xff]  }
 0x24c   : > { %v7968_v59 = vpop.f32.mrb[129].mxu0  ;;  %8359 = vmatprep.subr.bf16.mxu1 %v9177_v41  ;;  %v3662_v41 = vld [vmem:[#allocation2 + $0x18] sm:$0xf] }
 0x24d   : > { %v7969_v58 = vadd.f32 %v7968_v59, %v7967_v37  ;;  %v7970_v12 = vpop.f32.mrb[130].mxu0 }
 0x24e   : > { %v7971_v35 = vpop.f32.mrb[131].mxu0 }
 0x24f   : > { %v2792_v40 = vadd.f32 %v7969_v58, %v10679_v29  ;;  %v7972_v15 = vadd.f32 %v7971_v35, %v7970_v12  ;;  %v9180_v12 = vld [vmem:[#allocation6 + $0x120] sm:$0xff]  }
 0x250   : > { %8360 = vmatpush3.bf16.msra.mxu1 %v9180_v12 }
 0x251   : > { %v2795_v4 = vadd.f32 %v7972_v15, %v10682_v38  ;;  %v10919_v5 = vadd.f32 %v10853_v7, %v2792_v40  ;;  %8361 = vmatprep.subr.bf16.mxu1 %v9185_v63 }
 0x253   : > { %v7973_v57 = vpop.f32.mrb[132].mxu0  ;;  %v10922_v46 = vadd.f32 %v10859_v49, %v2795_v4 }
 0x254   : > { %v7974_v54 = vpop.f32.mrb[133].mxu0 }
 0x255   : > { %v7975_v22 = vadd.f32 %v7974_v54, %v7973_v57  ;;  %v7976_v9 = vpop.f32.mrb[134].mxu0 }
 0x256   : > { %v7977_v31 = vpop.f32.mrb[135].mxu0 }
 0x257   : > { %v2800_v13 = vadd.f32 %v7975_v22, %v10687_v33  ;;  %v7978_v55 = vadd.f32 %v7977_v31, %v7976_v9 }
 0x259   : > { %v2803_v29 = vadd.f32 %v7978_v55, %v10692_v20  ;;  %v10927_v38 = vadd.f32 %v10865_v26, %v2800_v13 }
 0x25b   : > { %v7979_v7 = vpop.f32.mrb[136].mxu0  ;;  %v10930_v27 = vadd.f32 %v10871_v1, %v2803_v29 }
 0x25c   : > { %v7980_v49 = vpop.f32.mrb[137].mxu0 }
 0x25d   : > { %v7981_v21 = vadd.f32 %v7980_v49, %v7979_v7  ;;  %v7982_v19 = vpop.f32.mrb[138].mxu0 }
 0x25e   : > { %v7983_v51 = vpop.f32.mrb[139].mxu0 }
 0x25f   : > { %v2808_v3 = vadd.f32 %v7981_v21, %v10700_v6  ;;  %v7984_v39 = vadd.f32 %v7983_v51, %v7982_v19 }
 0x261   : > { %v2811_v33 = vadd.f32 %v7984_v39, %v10708_v53  ;;  %v10935_v20 = vadd.f32 %v10877_v43, %v2808_v3 }
 0x263   : > { %v7985_v26 = vpop.f32.mrb[140].mxu0  ;;  %v10938_v37 = vadd.f32 %v10883_v60, %v2811_v33 }
 0x264   : > { %v7986_v1 = vpop.f32.mrb[141].mxu0 }
 0x265   : > { %v7987_v59 = vadd.f32 %v7986_v1, %v7985_v26  ;;  %v7988_v58 = vpop.f32.mrb[142].mxu0 }
 0x266   : > { %v7989_v35 = vpop.f32.mrb[143].mxu0 }
 0x267   : > { %v2816_v34 = vadd.f32 %v7987_v59, %v10716_v30  ;;  %v7990_v40 = vadd.f32 %v7989_v35, %v7988_v58  ;;  %v12135_v35 = vld [vmem:[#allocation14_spill] sm:$0xff] }
 0x269   : > { %v2819_v6 = vadd.f32 %v7990_v40, %v10722_v2  ;;  %v10943_v53 = vadd.f32 %v10889_v48, %v2816_v34  ;;  %v12132_v2 = vld [vmem:[#allocation16_spill] sm:$0xff] }
 0x26b   : > { %v8641_v43 = vpop.f32.mrb[144].mxu0  ;;  %v10946_v15 = vadd.f32 %v10895_v47, %v2819_v6  ;;  %v9188_v6 = vld [vmem:[#allocation6 + $0x128] sm:$0xff]  }
 0x26c   : > { %v3026_v60 = vadd.f32 %v8641_v43, %v10793_v36  ;;  %v3017_v4 = vpop.f32.mrb[145].mxu0  ;;  %8362 = vmatpush3.bf16.msra.mxu1 %v9188_v6 }
 0x26d   : > { %v3018_v57 = vadd.f32 %v3017_v4, %v10781_v25  ;;  %v8642_v54 = vpop.f32.mrb[146].mxu0  ;;  %v3653_v4 = vld [vmem:[#allocation2 + $0xc] sm:$0xf] }
 0x26e   : > { %v3146_v22 = vmax.f32 %v3026_v60, 0.0  ;;  %v3029_v30 = vadd.f32 %v8642_v54, %v10798_v45  ;;  %v3020_v9 = vpop.f32.mrb[147].mxu0 }
 0x26f   : > { %v3144_v31 = vmax.f32 %v3018_v57, 0.0  ;;  %v3021_v13 = vadd.f32 %v3020_v9, %v12132_v2 }
 0x270   : > { %v7624_v48 = vpack.c.bf16 %v3146_v22, %v3146_v22  ;;  %v3147_v55 = vmax.f32 %v3029_v30, 0.0 }
 0x271   : > { %v7622_v47 = vpack.c.bf16 %v3144_v31, %v3144_v31  ;;  %v3145_v36 = vmax.f32 %v3021_v13, 0.0  ;;  %v3666_v31 = vld [vmem:[#allocation2 + $0x20] sm:$0x1] }
 0x272   : > { %v3347_v29 = vshrl.u32 %v7624_v48, 16  ;;  %v7625_v7 = vpack.c.bf16 %v3147_v55, %v3147_v55  ;;  %v3350_v25 = vshll.u32 %v7624_v48, 16 }
 0x273   : > { %v3330_v49 = vshrl.u32 %v7622_v47, 16  ;;  %v3333_v45 = vshll.u32 %v7622_v47, 16  ;;  %v7623_v21 = vpack.c.bf16 %v3145_v36, %v3145_v36  ;;  %v8645_v19 = vpop.f32.mrb[148].mxu0  ;;  %v3659_v36 = vld [vmem:[#allocation2 + $0x14] sm:$0x1] }
 0x274   : > { %v3349_v51 = vrot.slane %v3347_v29, 7  ;;  %v3355_v3 = vshrl.u32 %v7625_v7, 16  ;;  %v3358_v39 = vshll.u32 %v7625_v7, 16  ;;  %v3042_v33 = vadd.f32 %v8645_v19, %v10818_v23  ;;  %v3033_v26 = vpop.f32.mrb[149].mxu0 }
 0x275   : > { %v3332_v59 = vrot.slane %v3330_v49, 7  ;;  %v3338_v58 = vshrl.u32 %v7623_v21, 16  ;;  %v3341_v12 = vshll.u32 %v7623_v21, 16  ;;  %v3034_v34 = vadd.f32 %v3033_v26, %v12135_v35  ;;  %v8646_v40 = vpop.f32.mrb[150].mxu0  ;;  %v12140_v35 = vld [vmem:[#allocation13_spill] sm:$0xff] }
 0x276   : > { %v3352_v43 = vor.u32 %v3350_v25, %v3349_v51  ;;  %v3353_v60 = vrot.slane %v3349_v51, 4  ;;  %v3357_v57 = vrot.slane %v3355_v3, 7  ;;  %v3150_v54 = vmax.f32 %v3042_v33, 0.0  ;;  %v3036_v22 = vpop.f32.mrb[151].mxu0 }
 0x277   : > { %v3335_v30 = vor.u32 %v3333_v45, %v3332_v59  ;;  %v3336_v9 = vrot.slane %v3332_v59, 4  ;;  %v3340_v2 = vrot.slane %v3338_v58, 7  ;;  %v3148_v13 = vmax.f32 %v3034_v34, 0.0  ;;  %v3676_v58 = vld [vmem:[#allocation2 + $0x30] sm:$0xf] }
 0x278   : > { %v3663_v48 = vsel %vm10955_vm7, %v3352_v43, %v3662_v41  ;;  %v3360_v55 = vor.u32 %v3358_v39, %v3357_v57  ;;  %v3362_v47 = vrot.slane %v3357_v57, 4  ;;  %v7628_v29 = vpack.c.bf16 %v3150_v54, %v3150_v54  ;;  %v3669_v57 = vld [vmem:[#allocation2 + $0x24] sm:$0xf] }
 0x279   : > { %3664 = vst [vmem:[#allocation2 + $0x18] sm:$0xf] %v3663_v48  ;;  %v3654_v7 = vsel %vm10955_vm7, %v3335_v30, %v3653_v4  ;;  %v3343_v25 = vor.u32 %v3341_v12, %v3340_v2  ;;  %v3345_v49 = vrot.slane %v3340_v2, 4  ;;  %v7626_v45 = vpack.c.bf16 %v3148_v13, %v3148_v13 }
 0x27a   : > { %3655 = vst [vmem:[#allocation2 + $0xc] sm:$0xf] %v3654_v7  ;;  %v3361_v21 = vsel %vm10968_vm9, %v3353_v60, %v3360_v55  ;;  %v3667_v19 = vsel %vm10962_vm8, %v3362_v47, %v3666_v31  ;;  %v3381_v51 = vshrl.u32 %v7628_v29, 16  ;;  %v3384_v39 = vshll.u32 %v7628_v29, 16 }
 0x27b   : > { %3665 = vst [vmem:[#allocation2 + $0x1c] sm:$0xf] %v3361_v21  ;;  %3668 = vst [vmem:[#allocation2 + $0x20] sm:$0x1] %v3667_v19  ;;  %v3344_v41 = vsel %vm10968_vm9, %v3336_v9, %v3343_v25  ;;  %v3660_v3 = vsel %vm10962_vm8, %v3345_v49, %v3659_v36  ;;  %v3364_v33 = vshrl.u32 %v7626_v45, 16  ;;  %v8649_v26 = vpop.f32.mrb[152].mxu0  ;;  %v3045_v12 = vadd.f32 %v8646_v40, %v10823_v56 }
 0x27c   : > { %3656 = vst [vmem:[#allocation2 + $0x10] sm:$0xf] %v3344_v41  ;;  %3661 = vst [vmem:[#allocation2 + $0x14] sm:$0x1] %v3660_v3  ;;  %v10984_v59 = vrot.slane %v3381_v51, 7  ;;  %v3037_v34 = vadd.f32 %v3036_v22, %v12140_v35  ;;  %v3058_v6 = vadd.f32 %v8649_v26, %v10845_v50  ;;  %v3049_v43 = vpop.f32.mrb[153].mxu0 }
 0x27d   : > { %v10989_v60 = vrot.slane %v3364_v33, 7  ;;  %v3367_v4 = vshll.u32 %v7626_v45, 16  ;;  %v3050_v54 = vadd.f32 %v3049_v43, %v10833_v44  ;;  %v8650_v30 = vpop.f32.mrb[154].mxu0  ;;  %v3151_v2 = vmax.f32 %v3045_v12, 0.0  ;;  %v9193_v56 = vld [vmem:[#allocation6 + $0x170] sm:$0xff]  }
 0x27e   : > { %v3386_v9 = vor.u32 %v3384_v39, %v10984_v59  ;;  %v3387_v31 = vrot.slane %v10984_v59, 4  ;;  %v3149_v13 = vmax.f32 %v3037_v34, 0.0  ;;  %v3052_v48 = vpop.f32.mrb[155].mxu0  ;;  %v3154_v22 = vmax.f32 %v3058_v6, 0.0  ;;  %8363 = vmatprep.subr.bf16.mxu1 %v9193_v56  ;;  %v3680_v3 = vld [vmem:[#allocation2 + $0x38] sm:$0x1] }
 0x27f   : > { %v3369_v40 = vor.u32 %v3367_v4, %v10989_v60  ;;  %v3370_v50 = vrot.slane %v10989_v60, 4  ;;  %v3152_v55 = vmax.f32 %v3050_v54, 0.0  ;;  %v7629_v36 = vpack.c.bf16 %v3151_v2, %v3151_v2  ;;  %v3673_v39 = vld [vmem:[#allocation2 + $0x2c] sm:$0x1]  ;;  %v3690_v6 = vld [vmem:[#allocation2 + $0x48] sm:$0xf] }
 0x280   : > { %v3677_v47 = vsel %vm10955_vm7, %v3386_v9, %v3676_v58  ;;  %v7627_v44 = vpack.c.bf16 %v3149_v13, %v3149_v13  ;;  %v3061_v29 = vadd.f32 %v8650_v30, %v10850_v28  ;;  %v7632_v25 = vpack.c.bf16 %v3154_v22, %v3154_v22  ;;  %v3683_v43 = vld [vmem:[#allocation2 + $0x3c] sm:$0xf] }
 0x281   : > { %3678 = vst [vmem:[#allocation2 + $0x30] sm:$0xf] %v3677_v47  ;;  %v3670_v7 = vsel %vm10955_vm7, %v3369_v40, %v3669_v57  ;;  %v7630_v49 = vpack.c.bf16 %v3152_v55, %v3152_v55  ;;  %v3053_v45 = vadd.f32 %v3052_v48, %v10838_v42  ;;  %v3389_v21 = vshrl.u32 %v7629_v36, 16 }
 0x282   : > { %3671 = vst [vmem:[#allocation2 + $0x24] sm:$0xf] %v3670_v7  ;;  %v3392_v19 = vshll.u32 %v7629_v36, 16  ;;  %v3372_v51 = vshrl.u32 %v7627_v44, 16  ;;  %v3375_v41 = vshll.u32 %v7627_v44, 16  ;;  %v3415_v33 = vshrl.u32 %v7632_v25, 16 }
 0x283   : > { %v3418_v26 = vshll.u32 %v7632_v25, 16  ;;  %v3398_v59 = vshrl.u32 %v7630_v49, 16  ;;  %v3401_v28 = vshll.u32 %v7630_v49, 16  ;;  %v8653_v58 = vpop.f32.mrb[156].mxu0  ;;  %v9144_v12 = vld [vmem:[#allocation2 + $0xc] sm:$0xff]   ;;  %v3391_v35 = vrot.slane %v3389_v21, 7 }
 0x284   : > { %v3374_v34 = vrot.slane %v3372_v51, 7  ;;  %v3155_v60 = vmax.f32 %v3061_v29, 0.0  ;;  %v3153_v4 = vmax.f32 %v3053_v45, 0.0  ;;  %v3065_v42 = vpop.f32.mrb[157].mxu0  ;;  %v11002_v57 = vrot.slane %v3415_v33, 7  ;;  %5936 = vmatprep.mubr.bf16.mxu0 %v9144_v12  ;;  %v9147_v13 = vld [vmem:[#allocation2 + $0x18] sm:$0xff]  }
 0x285   : > { %v11004_v54 = vrot.slane %v3398_v59, 7  ;;  %v3074_v30 = vadd.f32 %v8653_v58, %v10869_v10  ;;  %v3066_v9 = vadd.f32 %v3065_v42, %v10857_v24  ;;  %v8654_v2 = vpop.f32.mrb[158].mxu0  ;;  %v3394_v48 = vor.u32 %v3392_v19, %v3391_v35  ;;  %5937 = vmatmul.mubr.bf16.vlgmr.msra.gmra.mrb[176].mxu0 %v10826_v16  ;;  %v9196_v25 = vld [vmem:[#allocation6 + $0x130] sm:$0xff]   ;;  %v9197_v19 = vld [vmem:[#allocation6 + $0x1c0] sm:$0xff]   ;;  %v3694_v12 = vld [vmem:[#allocation2 + $0x50] sm:$0x1] }
 0x286   : > { %v3396_v56 = vrot.slane %v3391_v35, 4  ;;  %v3377_v40 = vor.u32 %v3375_v41, %v3374_v34  ;;  %v3379_v22 = vrot.slane %v3374_v34, 4  ;;  %v3068_v55 = vpop.f32.mrb[159].mxu0  ;;  %v3420_v47 = vor.u32 %v3418_v26, %v11002_v57  ;;  %5944 = vmatprep.mubr.bf16.mxu0 %v9147_v13  ;;  %8364 = vmatpush3.bf16.msra.mxu1 %v9196_v25  ;;  %v9199_v58 = vld [vmem:[#allocation6 + $0x180] sm:$0xff]   ;;  %v9201_v13 = vld [vmem:[#allocation6 + $0x188] sm:$0xff]   ;;  %v9209_v25 = vld [vmem:[#allocation6 + $0x178] sm:$0xff]  }
 0x287   : > { %v3421_v36 = vrot.slane %v11002_v57, 4  ;;  %v3403_v44 = vor.u32 %v3401_v28, %v11004_v54  ;;  %v3404_v10 = vrot.slane %v11004_v54, 4  ;;  %v3395_v24 = vsel %vm10968_vm9, %v3387_v31, %v3394_v48  ;;  %8463 = vmatprep.subr.bf16.mxu0 %v9197_v19  ;;  %v9206_v19 = vld [vmem:[#allocation6 + $0x190] sm:$0xff]   ;;  %v9207_v54 = vld [vmem:[#allocation6 + $0x1d8] sm:$0xff]   ;;  %8365 = vmatprep.subr.bf16.mxu1 %v9209_v25 }
 0x288   : > { %v3681_v29 = vsel %vm10962_vm8, %v3396_v56, %v3680_v3  ;;  %v3378_v7 = vsel %vm10968_vm9, %v3370_v50, %v3377_v40  ;;  %v3674_v16 = vsel %vm10962_vm8, %v3379_v22, %v3673_v39  ;;  %3679 = vst [vmem:[#allocation2 + $0x34] sm:$0xf] %v3395_v24  ;;  %v3691_v49 = vsel %vm10955_vm7, %v3420_v47, %v3690_v6  ;;  %v9204_v47 = vld [vmem:[#allocation6 + $0x1d0] sm:$0xff]  }
 0x289   : > { %3682 = vst [vmem:[#allocation2 + $0x38] sm:$0x1] %v3681_v29  ;;  %3672 = vst [vmem:[#allocation2 + $0x28] sm:$0xf] %v3378_v7  ;;  %v3684_v31 = vsel %vm10955_vm7, %v3403_v44, %v3683_v43  ;;  %v7633_v45 = vpack.c.bf16 %v3155_v60, %v3155_v60  ;;  %v7631_v21 = vpack.c.bf16 %v3153_v4, %v3153_v4  ;;  %v3158_v50 = vmax.f32 %v3074_v30, 0.0  ;;  %v9200_v4 = vld [vmem:[#allocation6 + $0x1c8] sm:$0xff]  }
 0x28a   : > { %3675 = vst [vmem:[#allocation2 + $0x2c] sm:$0x1] %v3674_v16  ;;  %3692 = vst [vmem:[#allocation2 + $0x48] sm:$0xf] %v3691_v49  ;;  %v3156_v51 = vmax.f32 %v3066_v9, 0.0  ;;  %v3077_v41 = vadd.f32 %v8654_v2, %v10874_v62  ;;  %v3069_v3 = vadd.f32 %v3068_v55, %v10862_v0  ;;  %8464 = vmatpush3.bf16.msra.mxu0 %v9199_v58 }
 0x28b   : > { %3685 = vst [vmem:[#allocation2 + $0x3c] sm:$0xf] %v3684_v31  ;;  %v3423_v39 = vshrl.u32 %v7633_v45, 16  ;;  %v3426_v33 = vshll.u32 %v7633_v45, 16  ;;  %v3406_v26 = vshrl.u32 %v7631_v21, 16  ;;  %v3409_v59 = vshll.u32 %v7631_v21, 16  ;;  %8465 = vmatprep.subr.bf16.mxu0 %v9200_v4 }
 0x28c   : > { %v8657_v28 = vpop.f32.mrb[160].mxu0  ;;  %v7636_v35 = vpack.c.bf16 %v3158_v50, %v3158_v50  ;;  %v7634_v34 = vpack.c.bf16 %v3156_v51, %v3156_v51  ;;  %v3159_v6 = vmax.f32 %v3077_v41, 0.0  ;;  %v3157_v43 = vmax.f32 %v3069_v3, 0.0  ;;  %v3687_v62 = vld [vmem:[#allocation2 + $0x44] sm:$0x1]  ;;  %v11037_v21 = vld [vmem:[#allocation2 + $0xc] sm:$0xff]  }
 0x28d   : > { %v3081_v60 = vpop.f32.mrb[161].mxu0  ;;  %v3425_v42 = vrot.slane %v3423_v39, 7  ;;  %v3408_v30 = vrot.slane %v3406_v26, 7  ;;  %v11028_v0 = vadd.f32 %v8657_v28, %v10893_v61  ;;  %v3704_v61 = vld [vmem:[#allocation2 + $0x60] sm:$0xf] }
 0x28e   : > { %v11031_v9 = vadd.f32 %v3081_v60, %v10881_v32  ;;  %v8658_v2 = vpop.f32.mrb[162].mxu0  ;;  %v3449_v48 = vshrl.u32 %v7636_v35, 16  ;;  %v3452_v56 = vshll.u32 %v7636_v35, 16  ;;  %v3432_v40 = vshrl.u32 %v7634_v34, 16  ;;  %v3697_v16 = vld [vmem:[#allocation2 + $0x54] sm:$0xf]  ;;  %8466 = vmatpush3.bf16.msra.mxu0 %v9201_v13 }
 0x28f   : > { %v3435_v22 = vshll.u32 %v7634_v34, 16  ;;  %v11033_v55 = vpop.f32.mrb[163].mxu0  ;;  %v3428_v44 = vor.u32 %v3426_v33, %v3425_v42  ;;  %v3430_v24 = vrot.slane %v3425_v42, 4  ;;  %v3411_v29 = vor.u32 %v3409_v59, %v3408_v30  ;;  %v11053_v26 = vld [vmem:[#allocation2 + $0x14] ss:$0 sps:$4 sm:$0x11]   ;;  %8467 = vmatprep.subr.bf16.mxu0 %v9204_v47 }
 0x290   : > { %v3413_v7 = vrot.slane %v3408_v30, 4  ;;  %v3451_v32 = vrot.slane %v3449_v48, 7  ;;  %v11035_v49 = vrot.slane %v3432_v40, 7  ;;  %v7637_v31 = vpack.c.bf16 %v3159_v6, %v3159_v6  ;;  %v3708_v6 = vld [vmem:[#allocation2 + $0x68] sm:$0x1]  ;;  %v9208_v42 = vld [vmem:[#allocation6 + $0x198] sm:$0xff]  }
 0x291   : > { %v7635_v45 = vpack.c.bf16 %v3157_v43, %v3157_v43  ;;  %v3429_v50 = vsel %vm10968_vm9, %v3421_v36, %v3428_v44  ;;  %v3695_v51 = vsel %vm10962_vm8, %v3430_v24, %v3694_v12  ;;  %v3412_v41 = vsel %vm10968_vm9, %v3404_v10, %v3411_v29  ;;  %v3701_v40 = vld [vmem:[#allocation2 + $0x5c] sm:$0x1] }
 0x292   : > { %v3688_v3 = vsel %vm10962_vm8, %v3413_v7, %v3687_v62  ;;  %3693 = vst [vmem:[#allocation2 + $0x4c] sm:$0xf] %v3429_v50  ;;  %3696 = vst [vmem:[#allocation2 + $0x50] sm:$0x1] %v3695_v51  ;;  %v3454_v57 = vor.u32 %v3452_v56, %v3451_v32  ;;  %v3455_v39 = vrot.slane %v3451_v32, 4  ;;  %v3437_v36 = vor.u32 %v3435_v22, %v11035_v49  ;;  %v11071_v44 = vld [vmem:[#allocation2 + $0x18] sm:$0xff]  }
 0x293   : > { %3686 = vst [vmem:[#allocation2 + $0x40] sm:$0xf] %v3412_v41  ;;  %3689 = vst [vmem:[#allocation2 + $0x44] sm:$0x1] %v3688_v3  ;;  %v3438_v33 = vrot.slane %v11035_v49, 4  ;;  %v3457_v10 = vshrl.u32 %v7637_v31, 16  ;;  %v3093_v13 = vadd.f32 %v8658_v2, %v10898_v18  ;;  %8468 = vmatpush3.bf16.msra.mxu0 %v9206_v19 }
 0x294   : > { %v3460_v59 = vshll.u32 %v7637_v31, 16  ;;  %v3440_v28 = vshrl.u32 %v7635_v45, 16  ;;  %v3443_v58 = vshll.u32 %v7635_v45, 16  ;;  %v11055_v12 = vpop.f32.mrb[164].mxu0  ;;  %v3705_v35 = vsel %vm10955_vm7, %v3454_v57, %v3704_v61  ;;  %8469 = vmatprep.subr.bf16.mxu0 %v9207_v54  ;;  %v3718_v51 = vld [vmem:[#allocation2 + $0x78] sm:$0xf] }
 0x295   : > { %v3698_v34 = vsel %vm10955_vm7, %v3437_v36, %v3697_v16  ;;  %v3162_v43 = vmax.f32 %v11028_v0, 0.0  ;;  %v3160_v60 = vmax.f32 %v11031_v9, 0.0  ;;  %v11063_v4 = vpop.f32.mrb[165].mxu0  ;;  %3706 = vst [vmem:[#allocation2 + $0x60] sm:$0xf] %v3705_v35  ;;  %v3459_v30 = vrot.slane %v3457_v10, 7 }
 0x296   : > { %3699 = vst [vmem:[#allocation2 + $0x54] sm:$0xf] %v3698_v34  ;;  %v3442_v62 = vrot.slane %v3440_v28, 7  ;;  %v4069_v48 = vshrl.u32 %v11037_v21, 16  ;;  %v11067_v56 = vpop.f32.mrb[166].mxu0  ;;  %v4071_v0 = vshll.u32 %v11037_v21, 16 }
 0x297   : > { %v7640_v22 = vpack.c.bf16 %v3162_v43, %v3162_v43  ;;  %v7638_v47 = vpack.c.bf16 %v3160_v60, %v3160_v60  ;;  %v4076_v9 = vshll.u32 %v11053_v26, 16  ;;  %v11073_v24 = vpop.f32.mrb[167].mxu0  ;;  %v3462_v29 = vor.u32 %v3460_v59, %v3459_v30  ;;  %v11075_v49 = vld [vmem:[#allocation2 + $0x20] ss:$0 sps:$4 sm:$0x11]   ;;  %8470 = vmatpush3.bf16.msra.mxu0 %v9208_v42 }
 0x298   : > { %v3464_v7 = vrot.slane %v3459_v30, 4  ;;  %v3445_v18 = vor.u32 %v3443_v58, %v3442_v62  ;;  %v3447_v2 = vrot.slane %v3442_v62, 4  ;;  %v3163_v57 = vmax.f32 %v3093_v13, 0.0  ;;  %v3711_v36 = vld [vmem:[#allocation2 + $0x6c] sm:$0xf] }
 0x299   : > { %v3483_v61 = vshrl.u32 %v7640_v22, 16  ;;  %v3486_v16 = vshll.u32 %v7640_v22, 16  ;;  %v3466_v25 = vshrl.u32 %v7638_v47, 16  ;;  %v3469_v32 = vshll.u32 %v7638_v47, 16 }
 0x29a   : > { %v3463_v31 = vsel %vm10968_vm9, %v3455_v39, %v3462_v29  ;;  %v3709_v45 = vsel %vm10962_vm8, %v3464_v7, %v3708_v6  ;;  %v3446_v19 = vsel %vm10968_vm9, %v3438_v33, %v3445_v18  ;;  %v3702_v50 = vsel %vm10962_vm8, %v3447_v2, %v3701_v40  ;;  %v3722_v18 = vld [vmem:[#allocation2 + $0x80] sm:$0x1] }
 0x29b   : > { %3707 = vst [vmem:[#allocation2 + $0x64] sm:$0xf] %v3463_v31  ;;  %3710 = vst [vmem:[#allocation2 + $0x68] sm:$0x1] %v3709_v45  ;;  %v11085_v41 = vrot.slane %v3483_v61, 7  ;;  %v11087_v3 = vrot.slane %v3466_v25, 7  ;;  %v3085_v33 = vadd.f32 %v11033_v55, %v10886_v14  ;;  %v7641_v60 = vpack.c.bf16 %v3163_v57, %v3163_v57 }
 0x29c   : > { %3700 = vst [vmem:[#allocation2 + $0x58] sm:$0xf] %v3446_v19  ;;  %3703 = vst [vmem:[#allocation2 + $0x5c] sm:$0x1] %v3702_v50  ;;  %v4073_v39 = vrot.slane %v4071_v0, 1  ;;  %v4078_v54 = vrot.slane %v4076_v9, 1  ;;  %v3106_v25 = vadd.f32 %v11055_v12, %v10911_v17  ;;  %v3109_v17 = vadd.f32 %v11067_v56, %v10914_v8 }
 0x29d   : > { %v4081_v10 = vshrl.u32 %v11071_v44, 16  ;;  %v4083_v59 = vshll.u32 %v11071_v44, 16  ;;  %v11093_v28 = vpop.f32.mrb[168].mxu0  ;;  %v3488_v58 = vor.u32 %v3486_v16, %v11085_v41  ;;  %v3489_v35 = vrot.slane %v11085_v41, 4  ;;  %v9212_v0 = vld [vmem:[#allocation6 + $0x138] sm:$0xff]   ;;  %v9213_v31 = vld [vmem:[#allocation6 + $0x1e0] sm:$0xff]  }
 0x29e   : > { %v3471_v34 = vor.u32 %v3469_v32, %v11087_v3  ;;  %v3472_v6 = vrot.slane %v11087_v3, 4  ;;  %v11099_v43 = vpop.f32.mrb[169].mxu0  ;;  %v4074_v42 = vor.u32 %v4073_v39, %v4069_v48  ;;  %v3161_v30 = vmax.f32 %v3085_v33, 0.0  ;;  %v11115_v32 = vld [vmem:[#allocation2 + $0x24] sm:$0xff]   ;;  %8366 = vmatpush3.bf16.msra.mxu1 %v9212_v0  ;;  %v3715_v41 = vld [vmem:[#allocation2 + $0x74] sm:$0x1]  ;;  %8471 = vmatprep.subr.bf16.mxu0 %v9213_v31 }
 0x29f   : > { %v4085_v14 = vrot.slane %v4083_v59, 1  ;;  %v11101_v55 = vpop.f32.mrb[170].mxu0  ;;  %v3719_v62 = vsel %vm10955_vm7, %v3488_v58, %v3718_v51  ;;  %v4088_v40 = vshll.u32 %v11075_v49, 16  ;;  %v4267_v22 = vrot.slane %v11037_v21, 1  ;;  %v9152_v39 = vld [vmem:[#allocation2 + $0x24] sm:$0xff]  }
 0x2a0   : > { %v3712_v13 = vsel %vm10955_vm7, %v3471_v34, %v3711_v36  ;;  %v11109_v47 = vpop.f32.mrb[171].mxu0  ;;  %3720 = vst [vmem:[#allocation2 + $0x78] sm:$0xf] %v3719_v62  ;;  %v3491_v48 = vshrl.u32 %v7641_v60, 16  ;;  %v3494_v9 = vshll.u32 %v7641_v60, 16  ;;  %v4079_v29 = vsel %vm650_vm0, %v4074_v42, %v4078_v54 }
 0x2a1   : > { %3713 = vst [vmem:[#allocation2 + $0x6c] sm:$0xf] %v3712_v13  ;;  %v7639_v7 = vpack.c.bf16 %v3161_v30, %v3161_v30  ;;  %5783 = vmatprep.mubr.bf16.mxu1 %v4079_v29  ;;  %v4086_v2 = vor.u32 %v4085_v14, %v4081_v10  ;;  %v4090_v61 = vrot.slane %v4088_v40, 1  ;;  %v4268_v16 = vrot.slane %v11053_v26, 1 }
 0x2a2   : > { %v3493_v45 = vrot.slane %v3491_v48, 7  ;;  %5784 = vmatmul.mubr.bf16.gmra.mrb[116].mxu1 %v11037_v21  ;;  %v3098_v51 = vadd.f32 %v11063_v4, %v10903_v11  ;;  %v3166_v36 = vmax.f32 %v3106_v25, 0.0  ;;  %v3167_v4 = vmax.f32 %v3109_v17, 0.0  ;;  %v11135_v30 = vld [vmem:[#allocation2 + $0x2c] ss:$0 sps:$4 sm:$0x11]  }
 0x2a3   : > { %v3474_v19 = vshrl.u32 %v7639_v7, 16  ;;  %v3477_v50 = vshll.u32 %v7639_v7, 16  ;;  %v4091_v57 = vsel %vm650_vm0, %v4086_v2, %v4090_v61  ;;  %v4269_v26 = vsel %vm859_vm1, %v4267_v22, %v4268_v16  ;;  %v11124_v10 = vpop.f32.mrb[172].mxu0  ;;  %v9215_v22 = vld [vmem:[#allocation6 + $0x1a0] sm:$0xff]   ;;  %v3732_v48 = vld [vmem:[#allocation2 + $0x90] sm:$0xf] }
 0x2a4   : > { %v3496_v12 = vor.u32 %v3494_v9, %v3493_v45  ;;  %v3498_v54 = vrot.slane %v3493_v45, 4  ;;  %5791 = vmatprep.mubr.bf16.mxu1 %v4091_v57  ;;  %5945 = vmatmul.mubr.bf16.gmra.mrb[180].mxu0 %v4269_v26  ;;  %v3164_v21 = vmax.f32 %v3098_v51, 0.0  ;;  %v7644_v11 = vpack.c.bf16 %v3166_v36, %v3166_v36  ;;  %v11129_v34 = vpop.f32.mrb[173].mxu0  ;;  %v3725_v16 = vld [vmem:[#allocation2 + $0x84] sm:$0xf] }
 0x2a5   : > { %v3476_v33 = vrot.slane %v3474_v19, 7  ;;  %5952 = vmatprep.mubr.bf16.mxu0 %v9152_v39  ;;  %v3101_v59 = vadd.f32 %v11073_v24, %v10906_v52  ;;  %v4093_v58 = vshrl.u32 %v11115_v32, 16  ;;  %v11137_v14 = vpop.f32.mrb[174].mxu0  ;;  %v7645_v13 = vpack.c.bf16 %v3167_v4, %v3167_v4  ;;  %8472 = vmatpush3.bf16.msra.mxu0 %v9215_v22  ;;  %v9216_v45 = vld [vmem:[#allocation6 + $0x1e8] sm:$0xff]   ;;  %v3736_v57 = vld [vmem:[#allocation2 + $0x98] sm:$0x1] }
 0x2a6   : > { %v3497_v8 = vsel %vm10968_vm9, %v3489_v35, %v3496_v12  ;;  %v3723_v56 = vsel %vm10962_vm8, %v3498_v54, %v3722_v18  ;;  %v3517_v62 = vshrl.u32 %v7644_v11, 16  ;;  %v3520_v52 = vshll.u32 %v7644_v11, 16  ;;  %v11139_v40 = vpop.f32.mrb[175].mxu0  ;;  %8473 = vmatprep.subr.bf16.mxu0 %v9216_v45  ;;  %v9217_v12 = vld [vmem:[#allocation6 + $0x1a8] sm:$0xff]   ;;  %v3729_v4 = vld [vmem:[#allocation2 + $0x8c] sm:$0x1] }
 0x2a7   : > { %v3479_v60 = vor.u32 %v3477_v50, %v3476_v33  ;;  %v3481_v42 = vrot.slane %v3476_v33, 4  ;;  %3721 = vst [vmem:[#allocation2 + $0x7c] sm:$0xf] %v3497_v8  ;;  %3724 = vst [vmem:[#allocation2 + $0x80] sm:$0x1] %v3723_v56  ;;  %v7642_v24 = vpack.c.bf16 %v3164_v21, %v3164_v21  ;;  %v3165_v9 = vmax.f32 %v3101_v59, 0.0 }
 0x2a8   : > { %v4095_v29 = vshll.u32 %v11115_v32, 16  ;;  %v3519_v7 = vrot.slane %v3517_v62, 7  ;;  %v3525_v61 = vshrl.u32 %v7645_v13, 16  ;;  %v3528_v25 = vshll.u32 %v7645_v13, 16  ;;  %v9219_v59 = vld [vmem:[#allocation6 + $0x1f0] sm:$0xff]   ;;  %v11154_v62 = vld [vmem:[#allocation2 + $0x30] sm:$0xff]  }
 0x2a9   : > { %v3480_v35 = vsel %vm10968_vm9, %v3472_v6, %v3479_v60  ;;  %v3716_v0 = vsel %vm10962_vm8, %v3481_v42, %v3715_v41  ;;  %v3500_v18 = vshrl.u32 %v7642_v24, 16  ;;  %v3503_v2 = vshll.u32 %v7642_v24, 16  ;;  %8474 = vmatpush3.bf16.msra.mxu0 %v9217_v12 }
 0x2aa   : > { %3714 = vst [vmem:[#allocation2 + $0x70] sm:$0xf] %v3480_v35  ;;  %3717 = vst [vmem:[#allocation2 + $0x74] sm:$0x1] %v3716_v0  ;;  %v7643_v3 = vpack.c.bf16 %v3165_v9, %v3165_v9  ;;  %5792 = vmatmul.mubr.bf16.gmra.mrb[120].mxu1 %v11071_v44  ;;  %v4097_v6 = vrot.slane %v4095_v29, 1  ;;  %v4100_v31 = vshll.u32 %v11135_v30, 16  ;;  %v3522_v19 = vor.u32 %v3520_v52, %v3519_v7 }
 0x2ab   : > { %v3523_v50 = vrot.slane %v3519_v7, 4  ;;  %v3502_v51 = vrot.slane %v3500_v18, 7  ;;  %v3527_v41 = vrot.slane %v3525_v61, 7  ;;  %v4270_v42 = vrot.slane %v11071_v44, 1  ;;  %8475 = vmatprep.subr.bf16.mxu0 %v9219_v59  ;;  %v11170_v29 = vld [vmem:[#allocation2 + $0x30] sm:$0xff]  }
 0x2ac   : > { %v3508_v26 = vshrl.u32 %v7643_v3, 16  ;;  %v3511_v39 = vshll.u32 %v7643_v3, 16  ;;  %v4098_v36 = vor.u32 %v4097_v6, %v4093_v58  ;;  %v4102_v17 = vrot.slane %v4100_v31, 1  ;;  %v11156_v58 = vld [vmem:[#allocation2 + $0x38] ss:$0 sps:$4 sm:$0x11]  }
 0x2ad   : > { %v3733_v54 = vsel %vm10955_vm7, %v3522_v19, %v3732_v48  ;;  %v3505_v33 = vor.u32 %v3503_v2, %v3502_v51  ;;  %v3506_v21 = vrot.slane %v3502_v51, 4  ;;  %v3530_v11 = vor.u32 %v3528_v25, %v3527_v41  ;;  %v9220_v2 = vld [vmem:[#allocation6 + $0x1b0] sm:$0xff]   ;;  %v9223_v6 = vld [vmem:[#allocation6 + $0x1f8] sm:$0xff]  }
 0x2ae   : > { %3734 = vst [vmem:[#allocation2 + $0x90] sm:$0xf] %v3733_v54  ;;  %v3532_v8 = vrot.slane %v3527_v41, 4  ;;  %v3510_v56 = vrot.slane %v3508_v26, 7  ;;  %v4103_v60 = vsel %vm650_vm0, %v4098_v36, %v4102_v17  ;;  %v4271_v13 = vrot.slane %v11075_v49, 1  ;;  %8476 = vmatpush3.bf16.msra.mxu0 %v9220_v2 }
 0x2af   : > { %v3726_v52 = vsel %vm10955_vm7, %v3505_v33, %v3725_v16  ;;  %v3531_v24 = vsel %vm10968_vm9, %v3523_v50, %v3530_v11  ;;  %5799 = vmatprep.mubr.bf16.mxu1 %v4103_v60  ;;  %v3122_v22 = vadd.f32 %v11093_v28, %v10927_v38  ;;  %v3114_v48 = vadd.f32 %v11099_v43, %v10919_v5  ;;  %v3746_v51 = vld [vmem:[#allocation2 + $0xa8] sm:$0xf]  ;;  %v3739_v17 = vld [vmem:[#allocation2 + $0x9c] sm:$0xf] }
 0x2b0   : > { %3727 = vst [vmem:[#allocation2 + $0x84] sm:$0xf] %v3726_v52  ;;  %3735 = vst [vmem:[#allocation2 + $0x94] sm:$0xf] %v3531_v24  ;;  %v3737_v44 = vsel %vm10962_vm8, %v3532_v8, %v3736_v57  ;;  %v3513_v35 = vor.u32 %v3511_v39, %v3510_v56  ;;  %v3515_v0 = vrot.slane %v3510_v56, 4  ;;  %v4272_v9 = vsel %vm859_vm1, %v4270_v42, %v4271_v13  ;;  %v11188_v52 = vld [vmem:[#allocation2 + $0x3c] sm:$0xff]  }
 0x2b1   : > { %3738 = vst [vmem:[#allocation2 + $0x98] sm:$0x1] %v3737_v44  ;;  %v3170_v49 = vmax.f32 %v3122_v22, 0.0  ;;  %v3125_v38 = vadd.f32 %v11101_v55, %v10930_v27  ;;  %v3117_v28 = vadd.f32 %v11109_v47, %v10922_v46  ;;  %5953 = vmatmul.mubr.bf16.gmra.mrb[184].mxu0 %v4272_v9  ;;  %v3168_v5 = vmax.f32 %v3114_v48, 0.0  ;;  %8477 = vmatprep.subr.bf16.mxu0 %v9223_v6  ;;  %v3743_v42 = vld [vmem:[#allocation2 + $0xa4] sm:$0x1] }
 0x2b2   : > { %v3514_v7 = vsel %vm10968_vm9, %v3506_v21, %v3513_v35  ;;  %v3730_v18 = vsel %vm10962_vm8, %v3515_v0, %v3729_v4  ;;  %5800 = vmatmul.mubr.bf16.gmra.mrb[124].mxu1 %v11115_v32  ;;  %v4105_v43 = vshrl.u32 %v11154_v62, 16  ;;  %5960 = vmatprep.mubr.bf16.mxu0 %v11170_v29  ;;  %v4107_v47 = vshll.u32 %v11154_v62, 16  ;;  %v3750_v21 = vld [vmem:[#allocation2 + $0xb0] sm:$0x1] }
 0x2b3   : > { %3728 = vst [vmem:[#allocation2 + $0x88] sm:$0xf] %v3514_v7  ;;  %3731 = vst [vmem:[#allocation2 + $0x8c] sm:$0x1] %v3730_v18  ;;  %v7648_v27 = vpack.c.bf16 %v3170_v49, %v3170_v49  ;;  %v3171_v55 = vmax.f32 %v3125_v38, 0.0  ;;  %v3169_v46 = vmax.f32 %v3117_v28, 0.0  ;;  %v7646_v61 = vpack.c.bf16 %v3168_v5, %v3168_v5 }
 0x2b4   : > { %v4112_v16 = vshll.u32 %v11156_v58, 16  ;;  %v4273_v25 = vrot.slane %v11115_v32, 1  ;;  %v4274_v3 = vrot.slane %v11135_v30, 1  ;;  %v4109_v26 = vrot.slane %v4107_v47, 1  ;;  %v11198_v38 = vld [vmem:[#allocation2 + $0x3c] sm:$0xff]  }
 0x2b5   : > { %v3551_v31 = vshrl.u32 %v7648_v27, 16  ;;  %v3554_v45 = vshll.u32 %v7648_v27, 16  ;;  %v7649_v19 = vpack.c.bf16 %v3171_v55, %v3171_v55  ;;  %v7647_v50 = vpack.c.bf16 %v3169_v46, %v3169_v46  ;;  %v11190_v24 = vld [vmem:[#allocation2 + $0x44] ss:$0 sps:$4 sm:$0x11]  }
 0x2b6   : > { %v3534_v41 = vshrl.u32 %v7646_v61, 16  ;;  %v3537_v57 = vshll.u32 %v7646_v61, 16  ;;  %v4114_v39 = vrot.slane %v4112_v16, 1  ;;  %v4110_v11 = vor.u32 %v4109_v26, %v4105_v43 }
 0x2b7   : > { %v3553_v36 = vrot.slane %v3551_v31, 7  ;;  %v3559_v12 = vshrl.u32 %v7649_v19, 16  ;;  %v3562_v54 = vshll.u32 %v7649_v19, 16  ;;  %v3542_v33 = vshrl.u32 %v7647_v50, 16 }
 0x2b8   : > { %v3536_v32 = vrot.slane %v3534_v41, 7  ;;  %v3545_v30 = vshll.u32 %v7647_v50, 16  ;;  %v4275_v4 = vsel %vm859_vm1, %v4273_v25, %v4274_v3  ;;  %v4115_v44 = vsel %vm650_vm0, %v4110_v11, %v4114_v39  ;;  %v11224_v39 = vld [vmem:[#allocation2 + $0x50] ss:$0 sps:$4 sm:$0x11]  }
 0x2b9   : > { %v3556_v59 = vor.u32 %v3554_v45, %v3553_v36  ;;  %v3557_v8 = vrot.slane %v3553_v36, 4  ;;  %v3561_v56 = vrot.slane %v3559_v12, 7  ;;  %v3544_v60 = vrot.slane %v3542_v33, 7  ;;  %5961 = vmatmul.mubr.bf16.gmra.mrb[188].mxu0 %v4275_v4  ;;  %5807 = vmatprep.mubr.bf16.mxu1 %v4115_v44  ;;  %v3760_v45 = vld [vmem:[#allocation2 + $0xc0] sm:$0xf] }
 0x2ba   : > { %v3539_v13 = vor.u32 %v3537_v57, %v3536_v32  ;;  %v3540_v22 = vrot.slane %v3536_v32, 4  ;;  %v3138_v35 = vadd.f32 %v11124_v10, %v10943_v53  ;;  %5968 = vmatprep.mubr.bf16.mxu0 %v11188_v52  ;;  %v3130_v53 = vadd.f32 %v11129_v34, %v10935_v20  ;;  %5808 = vmatmul.mubr.bf16.gmra.mrb[128].mxu1 %v11154_v62  ;;  %v3753_v36 = vld [vmem:[#allocation2 + $0xb4] sm:$0xf]  ;;  %v11227_v32 = vld [vmem:[#allocation2 + $0x48] sm:$0xff]  }
 0x2bb   : > { %v3747_v0 = vsel %vm10955_vm7, %v3556_v59, %v3746_v51  ;;  %v3564_v48 = vor.u32 %v3562_v54, %v3561_v56  ;;  %v3566_v9 = vrot.slane %v3561_v56, 4  ;;  %v3547_v49 = vor.u32 %v3545_v30, %v3544_v60  ;;  %v3764_v11 = vld [vmem:[#allocation2 + $0xc8] sm:$0x1]  ;;  %v3757_v56 = vld [vmem:[#allocation2 + $0xbc] sm:$0x1] }
 0x2bc   : > { %3748 = vst [vmem:[#allocation2 + $0xa8] sm:$0xf] %v3747_v0  ;;  %v3740_v28 = vsel %vm10955_vm7, %v3539_v13, %v3739_v17  ;;  %v3549_v7 = vrot.slane %v3544_v60, 4  ;;  %v3174_v18 = vmax.f32 %v3138_v35, 0.0  ;;  %v3141_v2 = vadd.f32 %v11137_v14, %v10946_v15  ;;  %v9224_v15 = vld [vmem:[#allocation6 + $0x1b8] sm:$0xff]   ;;  %v11220_v14 = vld [vmem:[#allocation6 + $0x200] sm:$0xff]  }
 0x2bd   : > { %3741 = vst [vmem:[#allocation2 + $0x9c] sm:$0xf] %v3740_v28  ;;  %v3565_v10 = vsel %vm10968_vm9, %v3557_v8, %v3564_v48  ;;  %v3751_v5 = vsel %vm10962_vm8, %v3566_v9, %v3750_v21  ;;  %v3548_v43 = vsel %vm10968_vm9, %v3540_v22, %v3547_v49  ;;  %v3172_v27 = vmax.f32 %v3130_v53, 0.0  ;;  %8478 = vmatpush3.bf16.msra.mxu0 %v9224_v15  ;;  %v11231_v13 = vld [vmem:[#allocation2 + $0x48] sm:$0xff]  }
 0x2be   : > { %3749 = vst [vmem:[#allocation2 + $0xac] sm:$0xf] %v3565_v10  ;;  %3752 = vst [vmem:[#allocation2 + $0xb0] sm:$0x1] %v3751_v5  ;;  %v3744_v20 = vsel %vm10962_vm8, %v3549_v7, %v3743_v42  ;;  %v7652_v34 = vpack.c.bf16 %v3174_v18, %v3174_v18  ;;  %v3133_v55 = vadd.f32 %v11139_v40, %v10938_v37  ;;  %v3175_v46 = vmax.f32 %v3141_v2, 0.0  ;;  %v11241_v7 = vld [vmem:[#allocation2 + $0x54] sm:$0xff]  }
 0x2bf   : > { %3742 = vst [vmem:[#allocation2 + $0xa0] sm:$0xf] %v3548_v43  ;;  %3745 = vst [vmem:[#allocation2 + $0xa4] sm:$0x1] %v3744_v20  ;;  %v4117_v47 = vshrl.u32 %v11198_v38, 16  ;;  %v4119_v61 = vshll.u32 %v11198_v38, 16  ;;  %v7650_v6 = vpack.c.bf16 %v3172_v27, %v3172_v27  ;;  %8671 = vmatprep.subr.bf16.mxu1 %v11220_v14 }
 0x2c0   : > { %v4124_v16 = vshll.u32 %v11190_v24, 16  ;;  %v3585_v25 = vshrl.u32 %v7652_v34, 16  ;;  %v3588_v3 = vshll.u32 %v7652_v34, 16  ;;  %v3173_v31 = vmax.f32 %v3133_v55, 0.0  ;;  %v11246_v43 = vld [vmem:[#allocation2 + $0x60] sm:$0xff]  }
 0x2c1   : > { %v7653_v19 = vpack.c.bf16 %v3175_v46, %v3175_v46  ;;  %v4121_v50 = vrot.slane %v4119_v61, 1  ;;  %v4276_v37 = vrot.slane %v11154_v62, 1  ;;  %v3568_v41 = vshrl.u32 %v7650_v6, 16  ;;  %v11233_v22 = vld [vmem:[#allocation2 + $0x5c] ss:$0 sps:$4 sm:$0x11]  }
 0x2c2   : > { %v4126_v51 = vrot.slane %v4124_v16, 1  ;;  %v3587_v40 = vrot.slane %v3585_v25, 7  ;;  %v3571_v57 = vshll.u32 %v7650_v6, 16  ;;  %v7651_v26 = vpack.c.bf16 %v3173_v31, %v3173_v31  ;;  %v9175_v25 = vld [vmem:[#allocation2 + $0x68] ss:$0 sps:$4 sm:$0x11]  }
 0x2c3   : > { %v3593_v17 = vshrl.u32 %v7653_v19, 16  ;;  %v3596_v12 = vshll.u32 %v7653_v19, 16  ;;  %v4122_v54 = vor.u32 %v4121_v50, %v4117_v47  ;;  %v4277_v33 = vrot.slane %v11156_v58, 1  ;;  %v11263_v6 = vld [vmem:[#allocation2 + $0x54] sm:$0xff]   ;;  %v9178_v50 = vld [vmem:[#allocation2 + $0x6c] sm:$0xff]  }
 0x2c4   : > { %v3590_v21 = vor.u32 %v3588_v3, %v3587_v40  ;;  %v3591_v30 = vrot.slane %v3587_v40, 4  ;;  %v3570_v62 = vrot.slane %v3568_v41, 7  ;;  %v3576_v4 = vshrl.u32 %v7651_v26, 16 }
 0x2c5   : > { %v3595_v59 = vrot.slane %v3593_v17, 7  ;;  %v3579_v8 = vshll.u32 %v7651_v26, 16  ;;  %v4127_v60 = vsel %vm650_vm0, %v4122_v54, %v4126_v51  ;;  %v4278_v42 = vsel %vm859_vm1, %v4276_v37, %v4277_v33  ;;  %v9179_v33 = vld [vmem:[#allocation2 + $0x74] ss:$0 sps:$4 sm:$0x11]  }
 0x2c6   : > { %v3761_v58 = vsel %vm10955_vm7, %v3590_v21, %v3760_v45  ;;  %v3573_v44 = vor.u32 %v3571_v57, %v3570_v62  ;;  %v3574_v35 = vrot.slane %v3570_v62, 4  ;;  %v3578_v0 = vrot.slane %v3576_v4, 7  ;;  %5815 = vmatprep.mubr.bf16.mxu1 %v4127_v60  ;;  %5969 = vmatmul.mubr.bf16.gmra.mrb[192].mxu0 %v4278_v42  ;;  %v11278_v21 = vld [vmem:[#allocation2 + $0x78] sm:$0xff]   ;;  %v11284_v60 = vld [vmem:[#allocation2 + $0x6c] sm:$0xff]  }
 0x2c7   : > { %3762 = vst [vmem:[#allocation2 + $0xc0] sm:$0xf] %v3761_v58  ;;  %v3598_v48 = vor.u32 %v3596_v12, %v3595_v59  ;;  %v3600_v9 = vrot.slane %v3595_v59, 4  ;;  %5976 = vmatprep.mubr.bf16.mxu0 %v11231_v13  ;;  %5816 = vmatmul.mubr.bf16.gmra.mrb[132].mxu1 %v11198_v38  ;;  %v4129_v49 = vshrl.u32 %v11227_v32, 16  ;;  %v4131_v28 = vshll.u32 %v11227_v32, 16  ;;  %v11273_v12 = vld [vmem:[#allocation2 + $0x60] sm:$0xff]  }
 0x2c8   : > { %v3754_v18 = vsel %vm10955_vm7, %v3573_v44, %v3753_v36  ;;  %v3581_v53 = vor.u32 %v3579_v8, %v3578_v0  ;;  %v3583_v10 = vrot.slane %v3578_v0, 4  ;;  %v4136_v5 = vshll.u32 %v11224_v39, 16  ;;  %v9183_v58 = vld [vmem:[#allocation2 + $0x80] ss:$0 sps:$4 sm:$0x11]  }
 0x2c9   : > { %3755 = vst [vmem:[#allocation2 + $0xb4] sm:$0xf] %v3754_v18  ;;  %v3599_v2 = vsel %vm10968_vm9, %v3591_v30, %v3598_v48  ;;  %v3765_v20 = vsel %vm10962_vm8, %v3600_v9, %v3764_v11  ;;  %v4133_v34 = vrot.slane %v4131_v28, 1  ;;  %v4279_v27 = vrot.slane %v11198_v38, 1 }
 0x2ca   : > { %3763 = vst [vmem:[#allocation2 + $0xc4] sm:$0xf] %v3599_v2  ;;  %3766 = vst [vmem:[#allocation2 + $0xc8] sm:$0x1] %v3765_v20  ;;  %v3582_v1 = vsel %vm10968_vm9, %v3574_v35, %v3581_v53  ;;  %v3758_v55 = vsel %vm10962_vm8, %v3583_v10, %v3757_v56  ;;  %v4280_v46 = vrot.slane %v11190_v24, 1  ;;  %v4138_v61 = vrot.slane %v4136_v5, 1 }
 0x2cb   : > { %3756 = vst [vmem:[#allocation2 + $0xb8] sm:$0xf] %v3582_v1  ;;  %3759 = vst [vmem:[#allocation2 + $0xbc] sm:$0x1] %v3758_v55  ;;  %v4134_v47 = vor.u32 %v4133_v34, %v4129_v49  ;;  %v4143_v16 = vshll.u32 %v11241_v7, 16  ;;  %v4148_v15 = vshll.u32 %v11233_v22, 16 }
 0x2cc   : > { %v4141_v38 = vshrl.u32 %v11241_v7, 16  ;;  %v4281_v63 = vsel %vm859_vm1, %v4279_v27, %v4280_v46  ;;  %v4155_v24 = vshll.u32 %v11246_v43, 16  ;;  %v4282_v51 = vrot.slane %v11227_v32, 1  ;;  %v11295_v53 = vld [vmem:[#allocation2 + $0x78] sm:$0xff]   ;;  %v11299_v20 = vld [vmem:[#allocation2 + $0x90] sm:$0xff]  }
 0x2cd   : > { %v4139_v3 = vsel %vm650_vm0, %v4134_v47, %v4138_v61  ;;  %v4145_v23 = vrot.slane %v4143_v16, 1  ;;  %v4150_v45 = vrot.slane %v4148_v15, 1  ;;  %v4283_v37 = vrot.slane %v11224_v39, 1  ;;  %v9187_v5 = vld [vmem:[#allocation2 + $0x8c] ss:$0 sps:$4 sm:$0x11]  }
 0x2ce   : > { %5823 = vmatprep.mubr.bf16.mxu1 %v4139_v3  ;;  %5977 = vmatmul.mubr.bf16.gmra.mrb[196].mxu0 %v4281_v63  ;;  %v4157_v19 = vrot.slane %v4155_v24, 1  ;;  %v4153_v41 = vshrl.u32 %v11246_v43, 16  ;;  %v4160_v57 = vshll.u32 %v9175_v25, 16  ;;  %v4167_v36 = vshll.u32 %v9178_v50, 16  ;;  %v11304_v16 = vld [vmem:[#allocation2 + $0x84] sm:$0xff]   ;;  %v11309_v63 = vld [vmem:[#allocation2 + $0x9c] sm:$0xff]  }
 0x2cf   : > { %5984 = vmatprep.mubr.bf16.mxu0 %v11263_v6  ;;  %5824 = vmatmul.mubr.bf16.gmra.mrb[136].mxu1 %v11227_v32  ;;  %v4146_v31 = vor.u32 %v4145_v23, %v4141_v38  ;;  %v4284_v17 = vsel %vm859_vm1, %v4282_v51, %v4283_v37  ;;  %v4285_v30 = vrot.slane %v11241_v7, 1  ;;  %v4286_v62 = vrot.slane %v11233_v22, 1  ;;  %v11289_v22 = vld [vmem:[#allocation2 + $0x84] sm:$0xff]   ;;  %v9191_v38 = vld [vmem:[#allocation2 + $0x98] ss:$0 sps:$4 sm:$0x11]  }
 0x2d0   : > { %v4158_v26 = vor.u32 %v4157_v19, %v4153_v41  ;;  %v4162_v54 = vrot.slane %v4160_v57, 1  ;;  %v4169_v32 = vrot.slane %v4167_v36, 1  ;;  %v4165_v11 = vshrl.u32 %v9178_v50, 16  ;;  %v9195_v37 = vld [vmem:[#allocation2 + $0xa4] ss:$0 sps:$4 sm:$0x11]  }
 0x2d1   : > { %v4151_v40 = vsel %vm650_vm0, %v4146_v31, %v4150_v45  ;;  %v4172_v4 = vshll.u32 %v9179_v33, 16  ;;  %v4179_v8 = vshll.u32 %v11278_v21, 16  ;;  %v4287_v56 = vsel %vm859_vm1, %v4285_v30, %v4286_v62  ;;  %v11317_v41 = vld [vmem:[#allocation2 + $0x90] sm:$0xff]  }
 0x2d2   : > { %5831 = vmatprep.mubr.bf16.mxu1 %v4151_v40  ;;  %v4163_v39 = vsel %vm650_vm0, %v4158_v26, %v4162_v54  ;;  %v4170_v59 = vor.u32 %v4169_v32, %v4165_v11  ;;  %v4288_v0 = vrot.slane %v11246_v43, 1  ;;  %v4289_v48 = vrot.slane %v9175_v25, 1 }
 0x2d3   : > { %v4174_v42 = vrot.slane %v4172_v4, 1  ;;  %v4181_v35 = vrot.slane %v4179_v8, 1  ;;  %v4177_v9 = vshrl.u32 %v11278_v21, 16  ;;  %v4184_v49 = vshll.u32 %v9183_v58, 16  ;;  %v11328_v8 = vld [vmem:[#allocation2 + $0x9c] sm:$0xff]  }
 0x2d4   : > { %v4290_v18 = vsel %vm859_vm1, %v4288_v0, %v4289_v48  ;;  %v4291_v34 = vrot.slane %v9178_v50, 1  ;;  %v4292_v27 = vrot.slane %v9179_v33, 1  ;;  %v4189_v1 = vshrl.u32 %v11289_v22, 16  ;;  %v9203_v4 = vld [vmem:[#allocation2 + $0xb0] ss:$0 sps:$4 sm:$0x11]  }
 0x2d5   : > { %v4175_v44 = vsel %vm650_vm0, %v4170_v59, %v4174_v42  ;;  %v4182_v28 = vor.u32 %v4181_v35, %v4177_v9  ;;  %v4186_v10 = vrot.slane %v4184_v49, 1  ;;  %v4196_v55 = vshll.u32 %v9187_v5, 16 }
 0x2d6   : > { %5985 = vmatmul.mubr.bf16.gmra.mrb[200].mxu0 %v4284_v17  ;;  %v4203_v47 = vshll.u32 %v11299_v20, 16  ;;  %v4293_v61 = vsel %vm859_vm1, %v4291_v34, %v4292_v27  ;;  %v4294_v23 = vrot.slane %v11278_v21, 1  ;;  %v4295_v24 = vrot.slane %v9183_v58, 1  ;;  %v11322_v17 = vld [vmem:[#allocation2 + $0xa8] sm:$0xff]  }
 0x2d7   : > { %5992 = vmatprep.mubr.bf16.mxu0 %v11273_v12  ;;  %5832 = vmatmul.mubr.bf16.gmra.mrb[140].mxu1 %v11241_v7  ;;  %v4191_v7 = vshll.u32 %v11289_v22, 16  ;;  %v4187_v2 = vsel %vm650_vm0, %v4182_v28, %v4186_v10  ;;  %v4198_v15 = vrot.slane %v4196_v55, 1  ;;  %v4201_v31 = vshrl.u32 %v11299_v20, 16 }
 0x2d8   : > { %5839 = vmatprep.mubr.bf16.mxu1 %v4163_v39  ;;  %v4205_v3 = vrot.slane %v4203_v47, 1  ;;  %v4208_v45 = vshll.u32 %v9191_v38, 16  ;;  %v4296_v40 = vsel %vm859_vm1, %v4294_v23, %v4295_v24  ;;  %v4297_v54 = vrot.slane %v11289_v22, 1  ;;  %v11347_v47 = vld [vmem:[#allocation2 + $0xb4] sm:$0xff]  }
 0x2d9   : > { %v4298_v33 = vrot.slane %v9187_v5, 1  ;;  %v4213_v39 = vshrl.u32 %v11309_v63, 16  ;;  %v4220_v32 = vshll.u32 %v9195_v37, 16  ;;  %v4227_v62 = vshll.u32 %v11322_v17, 16 }
 0x2da   : > { %v4206_v19 = vor.u32 %v4205_v3, %v4201_v31  ;;  %v4210_v57 = vrot.slane %v4208_v45, 1  ;;  %v4301_v0 = vrot.slane %v9191_v38, 1  ;;  %v4225_v48 = vshrl.u32 %v11322_v17, 16  ;;  %v9211_v5 = vld [vmem:[#allocation2 + $0xbc] ss:$0 sps:$4 sm:$0x11]  }
 0x2db   : > { %v4299_v59 = vsel %vm859_vm1, %v4297_v54, %v4298_v33  ;;  %v4229_v58 = vrot.slane %v4227_v62, 1  ;;  %v4232_v9 = vshll.u32 %v9203_v4, 16  ;;  %v4304_v34 = vrot.slane %v9195_v37, 1  ;;  %v9326_v31 = vld [vmem:[#allocation2 + $0xc] sm:$0xff]   ;;  %v11366_v54 = vld [vmem:[#allocation2 + $0x24] sm:$0xff]  }
 0x2dc   : > { %v4211_v26 = vsel %vm650_vm0, %v4206_v19, %v4210_v57  ;;  %v4306_v3 = vrot.slane %v11322_v17, 1  ;;  %v4475_v45 = vshll.u32 %v9326_v31, 16  ;;  %v4680_v19 = vrot.slane %v9326_v31, 1  ;;  %v11359_v37 = vld [vmem:[#allocation2 + $0x20] ss:$0 sps:$4 sm:$0x11]  }
 0x2dd   : > { %v4230_v49 = vor.u32 %v4229_v58, %v4225_v48  ;;  %v4234_v10 = vrot.slane %v4232_v9, 1  ;;  %v9226_v33 = vld [vmem:[#allocation2 + $0x20] ss:$0 sps:$4 sm:$0x11]  }
 0x2de   : > { %5993 = vmatmul.mubr.bf16.gmra.mrb[204].mxu0 %v4287_v56  ;;  %v4222_v56 = vrot.slane %v4220_v32, 1  ;;  %v11375_v9 = vld [vmem:[#allocation2 + $0x2c] ss:$0 sps:$4 sm:$0x11]  }
 0x2df   : > { %6000 = vmatprep.mubr.bf16.mxu0 %v11284_v60  ;;  %5840 = vmatmul.mubr.bf16.gmra.mrb[144].mxu1 %v11246_v43  ;;  %v4193_v43 = vrot.slane %v4191_v7, 1  ;;  %v11338_v7 = vld [vmem:[#allocation2 + $0xa8] sm:$0xff]  }
 0x2e0   : > { %5847 = vmatprep.mubr.bf16.mxu1 %v4175_v44  ;;  %v11314_v51 = vpop.f32.mrb[112].mxu1  ;;  %v11333_v44 = vld [vmem:[#allocation2 + $0xb4] sm:$0xff]  }
 0x2e1   : > { %v4194_v46 = vor.u32 %v4193_v43, %v4189_v1  ;;  %v4239_v28 = vshll.u32 %v11333_v44, 16  ;;  %v4237_v27 = vshrl.u32 %v11333_v44, 16  ;;  %v4244_v1 = vshll.u32 %v9211_v5, 16 }
 0x2e2   : > { %v4309_v62 = vrot.slane %v11333_v44, 1 }
 0x2e3   : > { %v4199_v25 = vsel %vm650_vm0, %v4194_v46, %v4198_v15  ;;  %v4241_v43 = vrot.slane %v4239_v28, 1  ;;  %v11349_v15 = vld [vmem:[#allocation2 + $0x18] sm:$0xff]   ;;  %v9232_v28 = vld [vmem:[#allocation6 + $0x208] sm:$0xff]  }
 0x2e4   : > { %v4891_v24 = vshll.u32 %v11349_v15, 16  ;;  %v4889_v32 = vshrl.u32 %v11349_v15, 16 }
 0x2e5   : > { %v4242_v55 = vor.u32 %v4241_v43, %v4237_v27  ;;  %v4908_v27 = vshll.u32 %v11375_v9, 16 }
 0x2e6   : > { %6001 = vmatmul.mubr.bf16.gmra.mrb[208].mxu0 %v4290_v18 }
 0x2e7   : > { %6008 = vmatprep.mubr.bf16.mxu0 %v11295_v53  ;;  %5848 = vmatmul.mubr.bf16.gmra.mrb[148].mxu1 %v9178_v50  ;;  %v4215_v50 = vshll.u32 %v11309_v63, 16 }
 0x2e8   : > { %5855 = vmatprep.mubr.bf16.mxu1 %v4187_v2  ;;  %v4235_v2 = vsel %vm650_vm0, %v4230_v49, %v4234_v10 }
 0x2e9   : > { %v4217_v36 = vrot.slane %v4215_v50, 1 }
 0x2eb   : > { %v4218_v30 = vor.u32 %v4217_v36, %v4213_v39  ;;  %v4893_v36 = vrot.slane %v4891_v24, 1 }
 0x2ed   : > { %v4223_v42 = vsel %vm650_vm0, %v4218_v30, %v4222_v56  ;;  %v4473_v30 = vshrl.u32 %v9326_v31, 16  ;;  %v4903_v56 = vshll.u32 %v11366_v54, 16 }
 0x2ee   : > { %6009 = vmatmul.mubr.bf16.gmra.mrb[212].mxu0 %v4293_v61  ;;  %v4246_v61 = vrot.slane %v4244_v1, 1 }
 0x2ef   : > { %6016 = vmatprep.mubr.bf16.mxu0 %v11304_v16  ;;  %5856 = vmatmul.mubr.bf16.gmra.mrb[152].mxu1 %v11278_v21  ;;  %v8144_v21 = vpop.f32.mrb[113].mxu1  ;;  %v4905_v10 = vrot.slane %v4903_v56, 1 }
 0x2f0   : > { %5863 = vmatprep.mubr.bf16.mxu1 %v4199_v25  ;;  %v8146_v11 = vpop.f32.mrb[114].mxu1  ;;  %v4247_v38 = vsel %vm650_vm0, %v4242_v55, %v4246_v61  ;;  %v9218_v25 = vld [vmem:[#allocation2 + $0x14] ss:$0 sps:$4 sm:$0x11]   ;;  %v11356_v23 = vadd.f32 %v8144_v21, %v11314_v51  ;;  %v4896_v21 = vshll.u32 %v11359_v37, 16  ;;  %v4492_v55 = vshll.u32 %v9226_v33, 16 }
 0x2f1   : > { %v8147_v35 = vpop.f32.mrb[115].mxu1  ;;  %v4681_v50 = vrot.slane %v9218_v25, 1  ;;  %v4480_v39 = vshll.u32 %v9218_v25, 16 }
 0x2f3   : > { %v4682_v51 = vsel %vm859_vm1, %v4680_v19, %v4681_v50  ;;  %v4482_v48 = vrot.slane %v4480_v39, 1  ;;  %v4494_v19 = vrot.slane %v4492_v55, 1  ;;  %v11387_v50 = vld [vmem:[#allocation2 + $0x38] ss:$0 sps:$4 sm:$0x11]   ;;  %v4509_v55 = vshrl.u32 %v11170_v29, 16 }
 0x2f6   : > { %6017 = vmatmul.mubr.bf16.gmra.mrb[216].mxu0 %v4296_v40  ;;  %v11361_v40 = vadd.f32 %v8147_v35, %v8146_v11  ;;  %v4310_v11 = vrot.slane %v9211_v5, 1 }
 0x2f7   : > { %6024 = vmatprep.mubr.bf16.mxu0 %v11317_v41  ;;  %5864 = vmatmul.mubr.bf16.gmra.mrb[156].mxu1 %v11289_v22  ;;  %v4300_v22 = vrot.slane %v11299_v20, 1 }
 0x2f8   : > { %5871 = vmatprep.mubr.bf16.mxu1 %v4211_v26  ;;  %v11364_v26 = vld [vmem:[#allocation2 + $0xc0] sm:$0xff]   ;;  %v4311_v49 = vsel %vm859_vm1, %v4309_v62, %v4310_v11 }
 0x2f9   : > { %v4302_v18 = vsel %vm859_vm1, %v4300_v22, %v4301_v0  ;;  %v4684_v22 = vrot.slane %v9226_v33, 1  ;;  %v4898_v0 = vrot.slane %v4896_v21, 1  ;;  %v11392_v33 = vld [vmem:[#allocation2 + $0x3c] sm:$0xff]  }
 0x2fe   : > { %6025 = vmatmul.mubr.bf16.gmra.mrb[220].mxu0 %v4299_v59 }
 0x2ff   : > { %6032 = vmatprep.mubr.bf16.mxu0 %v11328_v8  ;;  %5872 = vmatmul.mubr.bf16.gmra.mrb[160].mxu1 %v11299_v20  ;;  %v4303_v20 = vrot.slane %v11309_v63, 1 }
 0x300   : > { %5879 = vmatprep.mubr.bf16.mxu1 %v4223_v42  ;;  %v9327_v42 = vld [vmem:[#allocation2 + $0x18] sm:$0xff]  }
 0x301   : > { %v4305_v46 = vsel %vm859_vm1, %v4303_v20, %v4304_v34  ;;  %v4487_v58 = vshll.u32 %v9327_v42, 16  ;;  %v4683_v35 = vrot.slane %v9327_v42, 1  ;;  %v9229_v20 = vld [vmem:[#allocation2 + $0x2c] ss:$0 sps:$4 sm:$0x11]   ;;  %v4901_v34 = vshrl.u32 %v11366_v54, 16 }
 0x302   : > { %v4485_v1 = vshrl.u32 %v9327_v42, 16  ;;  %v4687_v31 = vrot.slane %v9229_v20, 1  ;;  %v4504_v11 = vshll.u32 %v9229_v20, 16  ;;  %v4927_v42 = vshll.u32 %v11392_v33, 16 }
 0x303   : > { %v4489_v5 = vrot.slane %v4487_v58, 1  ;;  %v4685_v43 = vsel %vm859_vm1, %v4683_v35, %v4684_v22  ;;  %v4906_v61 = vor.u32 %v4905_v10, %v4901_v34  ;;  %v4511_v58 = vshll.u32 %v11170_v29, 16  ;;  %v9236_v34 = vld [vmem:[#allocation2 + $0x44] ss:$0 sps:$4 sm:$0x11]  }
 0x304   : > { %v4689_v35 = vrot.slane %v11170_v29, 1  ;;  %v4929_v10 = vrot.slane %v4927_v42, 1  ;;  %v9274_v29 = vld [vmem:[#allocation6 + $0x238] sm:$0xff]  }
 0x306   : > { %6033 = vmatmul.mubr.bf16.gmra.mrb[224].mxu0 %v4302_v18 }
 0x307   : > { %6040 = vmatprep.mubr.bf16.mxu0 %v11338_v7  ;;  %5880 = vmatmul.mubr.bf16.gmra.mrb[164].mxu1 %v11309_v63  ;;  %v4307_v63 = vrot.slane %v9203_v4, 1  ;;  %v4894_v4 = vor.u32 %v4893_v36, %v4889_v32  ;;  %v9233_v32 = vld [vmem:[#allocation2 + $0x38] ss:$0 sps:$4 sm:$0x11]  }
 0x308   : > { %5887 = vmatprep.mubr.bf16.mxu1 %v4235_v2  ;;  %v11380_v2 = vld [vmem:[#allocation2 + $0x30] sm:$0xff]   ;;  %v4690_v22 = vrot.slane %v9233_v32, 1 }
 0x309   : > { %v4308_v57 = vsel %vm859_vm1, %v4306_v3, %v4307_v63  ;;  %v4899_v18 = vsel %vm650_vm0, %v4894_v4, %v4898_v0  ;;  %v4915_v25 = vshll.u32 %v11380_v2, 16  ;;  %v9328_v3 = vld [vmem:[#allocation2 + $0x24] sm:$0xff]   ;;  %v4913_v21 = vshrl.u32 %v11380_v2, 16  ;;  %v9253_v4 = vld [vmem:[#allocation6 + $0x220] sm:$0xff]  }
 0x30a   : > { %v4499_v63 = vshll.u32 %v9328_v3, 16  ;;  %v4686_v24 = vrot.slane %v9328_v3, 1  ;;  %v4497_v62 = vshrl.u32 %v9328_v3, 16  ;;  %v4691_v20 = vsel %vm859_vm1, %v4689_v35, %v4690_v22 }
 0x30b   : > { %v4535_v35 = vshll.u32 %v11231_v13, 16  ;;  %v4695_v22 = vrot.slane %v11231_v13, 1 }
 0x30c   : > { %v4688_v39 = vsel %vm859_vm1, %v4686_v24, %v4687_v31  ;;  %v4692_v24 = vrot.slane %v11188_v52, 1  ;;  %v4693_v31 = vrot.slane %v9236_v34, 1 }
 0x30e   : > { %6041 = vmatmul.mubr.bf16.gmra.mrb[228].mxu0 %v4305_v46  ;;  %v9239_v46 = vld [vmem:[#allocation6 + $0x210] sm:$0xff]  }
 0x30f   : > { %6048 = vmatprep.mubr.bf16.mxu0 %v11347_v47  ;;  %5888 = vmatmul.mubr.bf16.gmra.mrb[168].mxu1 %v11322_v17  ;;  %v4477_v17 = vrot.slane %v4475_v45, 1  ;;  %v4910_v45 = vrot.slane %v4908_v27, 1  ;;  %v4925_v27 = vshrl.u32 %v11392_v33, 16 }
 0x310   : > { %5895 = vmatprep.mubr.bf16.mxu1 %v4247_v38  ;;  %v4490_v38 = vor.u32 %v4489_v5, %v4485_v1  ;;  %v4513_v5 = vrot.slane %v4511_v58, 1 }
 0x311   : > { %v4478_v59 = vor.u32 %v4477_v17, %v4473_v30  ;;  %v4917_v17 = vrot.slane %v4915_v25, 1  ;;  %v4920_v30 = vshll.u32 %v11387_v50, 16 }
 0x312   : > { %v4495_v36 = vsel %vm650_vm0, %v4490_v38, %v4494_v19  ;;  %v4930_v38 = vor.u32 %v4929_v10, %v4925_v27  ;;  %v4514_v25 = vor.u32 %v4513_v5, %v4509_v55  ;;  %v4537_v5 = vrot.slane %v4535_v35, 1  ;;  %v9243_v27 = vld [vmem:[#allocation2 + $0x5c] ss:$0 sps:$4 sm:$0x11]  }
 0x313   : > { %v4922_v0 = vrot.slane %v4920_v30, 1  ;;  %v4559_v35 = vshll.u32 %v11273_v12, 16 }
 0x316   : > { %6049 = vmatmul.mubr.bf16.gmra.mrb[232].mxu0 %v4308_v57  ;;  %v4911_v57 = vsel %vm650_vm0, %v4906_v61, %v4910_v45  ;;  %v9267_v61 = vld [vmem:[#allocation6 + $0x230] sm:$0xff]  }
 0x317   : > { %6056 = vmatprep.mubr.bf16.mxu0 %v11364_v26  ;;  %5896 = vmatmul.mubr.bf16.gmra.mrb[172].mxu1 %v11333_v44  ;;  %v4483_v44 = vsel %vm650_vm0, %v4478_v59, %v4482_v48  ;;  %v4918_v59 = vor.u32 %v4917_v17, %v4913_v21  ;;  %v4506_v48 = vrot.slane %v4504_v11, 1  ;;  %v9240_v21 = vld [vmem:[#allocation2 + $0x50] ss:$0 sps:$4 sm:$0x11]   ;;  %v4521_v11 = vshrl.u32 %v11188_v52, 16 }
 0x318   : > { %6097 = vmatprep.mubr.bf16.mxu1 %v4682_v51  ;;  %v4501_v51 = vrot.slane %v4499_v63, 1  ;;  %v4523_v63 = vshll.u32 %v11188_v52, 16  ;;  %v11433_v52 = vld [vmem:[#allocation2 + $0x5c] ss:$0 sps:$4 sm:$0x11]  }
 0x319   : > { %v4956_v55 = vshll.u32 %v11433_v52, 16 }
 0x31a   : > { %v4502_v56 = vor.u32 %v4501_v51, %v4497_v62  ;;  %v4525_v51 = vrot.slane %v4523_v63, 1  ;;  %v4547_v63 = vshll.u32 %v11263_v6, 16 }
 0x31c   : > { %v4526_v42 = vor.u32 %v4525_v51, %v4521_v11  ;;  %v11453_v51 = vld [vmem:[#allocation2 + $0x6c] sm:$0xff]   ;;  %v4545_v11 = vshrl.u32 %v11263_v6, 16 }
 0x31e   : > { %6057 = vmatmul.mubr.bf16.gmra.mrb[236].mxu0 %v4311_v49  ;;  %v11400_v49 = vld [vmem:[#allocation2 + $0x44] ss:$0 sps:$4 sm:$0x11]  }
 0x31f   : > { %6258 = vmatprep.mubr.bf16.mxu0 %v4899_v18  ;;  %6098 = vmatmul.mubr.bf16.vlgmr.msra.gmra.mrb[176].mxu1 %v4483_v44  ;;  %v4923_v18 = vsel %vm650_vm0, %v4918_v59, %v4922_v0  ;;  %v4507_v44 = vsel %vm650_vm0, %v4502_v56, %v4506_v48  ;;  %v4932_v1 = vshll.u32 %v11400_v49, 16  ;;  %v11428_v59 = vld [vmem:[%s12038_s6] sm:$0xff]   ;;  %v4696_v0 = vrot.slane %v9240_v21, 1 }
 0x320   : > { %6105 = vmatprep.mubr.bf16.mxu1 %v4685_v43  ;;  %8672 = vmatpush3.bf16.msra.mxu1 %v11220_v14  ;;  %v9246_v14 = vld [vmem:[#allocation6 + $0x218] sm:$0xff]   ;;  %v11405_v43 = vld [vmem:[#allocation2 + $0x48] sm:$0xff]  }
 0x321   : > { %8673 = vmatprep.subr.bf16.mxu1 %v9232_v28  ;;  %v4939_v3 = vshll.u32 %v11405_v43, 16  ;;  %v4934_v45 = vrot.slane %v4932_v1, 1  ;;  %v4937_v30 = vshrl.u32 %v11405_v43, 16 }
 0x323   : > { %v4941_v17 = vrot.slane %v4939_v3, 1 }
 0x324   : > { %8674 = vmatpush3.bf16.msra.mxu1 %v9232_v28  ;;  %v9260_v28 = vld [vmem:[#allocation6 + $0x228] sm:$0xff]  }
 0x325   : > { %8675 = vmatprep.subr.bf16.mxu1 %v9239_v46  ;;  %v4942_v56 = vor.u32 %v4941_v17, %v4937_v30  ;;  %v4549_v17 = vrot.slane %v4547_v63, 1 }
 0x326   : > { %6259 = vmatmul.mubr.bf16.vlgmr.msra.gmra.mrb[240].mxu0 %v11349_v15 }
 0x327   : > { %6266 = vmatprep.mubr.bf16.mxu0 %v4911_v57  ;;  %6106 = vmatmul.mubr.bf16.gmra.mrb[180].mxu1 %v4495_v36  ;;  %v4935_v57 = vsel %vm650_vm0, %v4930_v38, %v4934_v45  ;;  %v4958_v45 = vrot.slane %v4956_v55, 1  ;;  %v4973_v55 = vshrl.u32 %v11453_v51, 16 }
 0x328   : > { %6113 = vmatprep.mubr.bf16.mxu1 %v4688_v39  ;;  %8676 = vmatpush3.bf16.msra.mxu1 %v9239_v46  ;;  %v4516_v46 = vshll.u32 %v9233_v32, 16  ;;  %v11419_v39 = vld [vmem:[#allocation2 + $0x54] sm:$0xff]   ;;  %v4694_v32 = vsel %vm859_vm1, %v4692_v24, %v4693_v31  ;;  %v4698_v24 = vrot.slane %v11263_v6, 1  ;;  %v4699_v31 = vrot.slane %v9243_v27, 1 }
 0x329   : > { %8677 = vmatprep.subr.bf16.mxu1 %v9246_v14  ;;  %v4951_v58 = vshll.u32 %v11419_v39, 16  ;;  %v4949_v1 = vshrl.u32 %v11419_v39, 16 }
 0x32a   : > { %v4518_v19 = vrot.slane %v4516_v46, 1  ;;  %v4533_v46 = vshrl.u32 %v11231_v13, 16 }
 0x32b   : > { %v4953_v10 = vrot.slane %v4951_v58, 1  ;;  %v4975_v58 = vshll.u32 %v11453_v51, 16 }
 0x32c   : > { %8678 = vmatpush3.bf16.msra.mxu1 %v9246_v14  ;;  %v11414_v14 = vld [vmem:[#allocation2 + $0x50] ss:$0 sps:$4 sm:$0x11]   ;;  %v4519_v36 = vsel %vm650_vm0, %v4514_v25, %v4518_v19  ;;  %v4538_v25 = vor.u32 %v4537_v5, %v4533_v46 }
 0x32d   : > { %8679 = vmatprep.subr.bf16.mxu1 %v9253_v4  ;;  %v4944_v62 = vshll.u32 %v11414_v14, 16  ;;  %v4954_v38 = vor.u32 %v4953_v10, %v4949_v1  ;;  %v4977_v5 = vrot.slane %v4975_v58, 1  ;;  %v9250_v1 = vld [vmem:[#allocation2 + $0x74] ss:$0 sps:$4 sm:$0x11]  }
 0x32e   : > { %6267 = vmatmul.mubr.bf16.gmra.mrb[244].mxu0 %v11366_v54  ;;  %v11490_v58 = vld [vmem:[%s12037_s5] ss:$0 sm:$0xff] }
 0x32f   : > { %6274 = vmatprep.mubr.bf16.mxu0 %v4923_v18  ;;  %6114 = vmatmul.mubr.bf16.gmra.mrb[184].mxu1 %v4507_v44  ;;  %v4946_v48 = vrot.slane %v4944_v62, 1  ;;  %v4978_v63 = vor.u32 %v4977_v5, %v4973_v55 }
 0x330   : > { %6121 = vmatprep.mubr.bf16.mxu1 %v4691_v20  ;;  %8680 = vmatpush3.bf16.msra.mxu1 %v9253_v4  ;;  %v4528_v4 = vshll.u32 %v9236_v34, 16  ;;  %v11439_v20 = vld [vmem:[#allocation2 + $0x60] sm:$0xff]   ;;  %v4697_v34 = vsel %vm859_vm1, %v4695_v22, %v4696_v0  ;;  %v4701_v22 = vrot.slane %v11273_v12, 1 }
 0x331   : > { %8681 = vmatprep.subr.bf16.mxu1 %v9260_v28  ;;  %v4947_v18 = vsel %vm650_vm0, %v4942_v56, %v4946_v48  ;;  %v4963_v3 = vshll.u32 %v11439_v20, 16  ;;  %v4961_v30 = vshrl.u32 %v11439_v20, 16 }
 0x334   : > { %8682 = vmatpush3.bf16.msra.mxu1 %v9260_v28  ;;  %v4530_v28 = vrot.slane %v4528_v4, 1  ;;  %v4552_v4 = vshll.u32 %v9243_v27, 16 }
 0x335   : > { %8683 = vmatprep.subr.bf16.mxu1 %v9267_v61 }
 0x336   : > { %6275 = vmatmul.mubr.bf16.gmra.mrb[248].mxu0 %v11380_v2  ;;  %v4531_v44 = vsel %vm650_vm0, %v4526_v42, %v4530_v28  ;;  %v4550_v42 = vor.u32 %v4549_v17, %v4545_v11  ;;  %v4554_v28 = vrot.slane %v4552_v4, 1 }
 0x337   : > { %6282 = vmatprep.mubr.bf16.mxu0 %v4935_v57  ;;  %6122 = vmatmul.mubr.bf16.gmra.mrb[188].mxu1 %v4519_v36  ;;  %v4959_v57 = vsel %vm650_vm0, %v4954_v38, %v4958_v45  ;;  %v4965_v36 = vrot.slane %v4963_v3, 1  ;;  %v4571_v3 = vshll.u32 %v11284_v60, 16  ;;  %v4705_v45 = vrot.slane %v9250_v1, 1 }
 0x338   : > { %6129 = vmatprep.mubr.bf16.mxu1 %v4694_v32  ;;  %8684 = vmatpush3.bf16.msra.mxu1 %v9267_v61  ;;  %v4540_v61 = vshll.u32 %v9240_v21, 16  ;;  %v4700_v32 = vsel %vm859_vm1, %v4698_v24, %v4699_v31  ;;  %v9247_v21 = vld [vmem:[#allocation2 + $0x68] ss:$0 sps:$4 sm:$0x11]   ;;  %v4555_v10 = vsel %vm650_vm0, %v4550_v42, %v4554_v28  ;;  %v4704_v31 = vrot.slane %v11284_v60, 1 }
 0x339   : > { %8685 = vmatprep.subr.bf16.mxu1 %v9274_v29  ;;  %v4966_v56 = vor.u32 %v4965_v36, %v4961_v30  ;;  %v4702_v0 = vrot.slane %v9247_v21, 1  ;;  %v4564_v38 = vshll.u32 %v9247_v21, 16  ;;  %v4573_v17 = vrot.slane %v4571_v3, 1 }
 0x33a   : > { %v4542_v19 = vrot.slane %v4540_v61, 1  ;;  %v4557_v61 = vshrl.u32 %v11273_v12, 16  ;;  %v4706_v11 = vsel %vm859_vm1, %v4704_v31, %v4705_v45  ;;  %v4576_v42 = vshll.u32 %v9250_v1, 16  ;;  %v11497_v1 = vld [vmem:[#allocation2 + $0x8c] ss:$0 sps:$4 sm:$0x11]  }
 0x33b   : > { %v4703_v27 = vsel %vm859_vm1, %v4701_v22, %v4702_v0  ;;  %v5778_v28 = vadd.f32 %v11356_v23, %v11490_v58 }
 0x33c   : > { %8686 = vmatpush3.bf16.msra.mxu1 %v9274_v29  ;;  %v11448_v29 = vld [vmem:[#allocation2 + $0x68] ss:$0 sps:$4 sm:$0x11]   ;;  %v4543_v13 = vsel %vm650_vm0, %v4538_v25, %v4542_v19  ;;  %v11476_v19 = vld [vmem:[#allocation2 + $0x80] ss:$0 sps:$4 sm:$0x11]  }
 0x33d   : > { %8719 = vmatprep.subr.bf16.mxu1 %v11428_v59  ;;  %v4968_v62 = vshll.u32 %v11448_v29, 16  ;;  %v4992_v4 = vshll.u32 %v11476_v19, 16  ;;  %v4578_v5 = vrot.slane %v4576_v42, 1  ;;  %v4710_v42 = vrot.slane %v11304_v16, 1 }
 0x33e   : > { %6283 = vmatmul.mubr.bf16.gmra.mrb[252].mxu0 %v11392_v33 }
 0x33f   : > { %6290 = vmatprep.mubr.bf16.mxu0 %v4947_v18  ;;  %6130 = vmatmul.mubr.bf16.gmra.mrb[192].mxu1 %v4531_v44  ;;  %v4970_v48 = vrot.slane %v4968_v62, 1  ;;  %v11462_v18 = vld [vmem:[#allocation2 + $0x74] ss:$0 sps:$4 sm:$0x11]   ;;  %v11464_v44 = vld [vmem:[#allocation2 + $0x78] sm:$0xff]  }
 0x340   : > { %6137 = vmatprep.mubr.bf16.mxu1 %v4697_v34  ;;  %v4561_v34 = vrot.slane %v4559_v35, 1  ;;  %v4980_v46 = vshll.u32 %v11462_v18, 16  ;;  %v4987_v25 = vshll.u32 %v11464_v44, 16  ;;  %v4985_v30 = vshrl.u32 %v11464_v44, 16 }
 0x341   : > { %v4971_v6 = vsel %vm650_vm0, %v4966_v56, %v4970_v48  ;;  %v9254_v62 = vld [vmem:[#allocation2 + $0x80] ss:$0 sps:$4 sm:$0x11]   ;;  %v4569_v56 = vshrl.u32 %v11284_v60, 16  ;;  %v4583_v48 = vshll.u32 %v11295_v53, 16  ;;  %v4707_v60 = vrot.slane %v11295_v53, 1 }
 0x342   : > { %v4562_v24 = vor.u32 %v4561_v34, %v4557_v61  ;;  %v4989_v36 = vrot.slane %v4987_v25, 1  ;;  %v4708_v34 = vrot.slane %v9254_v62, 1 }
 0x343   : > { %v4574_v22 = vor.u32 %v4573_v17, %v4569_v56  ;;  %v4585_v23 = vrot.slane %v4583_v48, 1  ;;  %v5004_v17 = vshll.u32 %v11497_v1, 16  ;;  %v4595_v56 = vshll.u32 %v11304_v16, 16  ;;  %v11517_v48 = vld [vmem:[#allocation2 + $0x98] ss:$0 sps:$4 sm:$0x11]  }
 0x344   : > { %v4990_v35 = vor.u32 %v4989_v36, %v4985_v30  ;;  %v9257_v36 = vld [vmem:[#allocation2 + $0x8c] ss:$0 sps:$4 sm:$0x11]  }
 0x346   : > { %6291 = vmatmul.mubr.bf16.gmra.mrb[0].mxu0 %v11405_v43 }
 0x347   : > { %6298 = vmatprep.mubr.bf16.mxu0 %v4959_v57  ;;  %6138 = vmatmul.mubr.bf16.gmra.mrb[196].mxu1 %v4543_v13  ;;  %v4982_v57 = vrot.slane %v4980_v46, 1  ;;  %v4566_v13 = vrot.slane %v4564_v38, 1  ;;  %v4579_v38 = vsel %vm650_vm0, %v4574_v22, %v4578_v5  ;;  %v5006_v22 = vrot.slane %v5004_v17, 1 }
 0x348   : > { %6145 = vmatprep.mubr.bf16.mxu1 %v4700_v32  ;;  %v11478_v32 = vld [vmem:[#allocation2 + $0x84] sm:$0xff]  }
 0x349   : > { %v4983_v12 = vsel %vm650_vm0, %v4978_v63, %v4982_v57  ;;  %v4567_v21 = vsel %vm650_vm0, %v4562_v24, %v4566_v13  ;;  %v4999_v0 = vshll.u32 %v11478_v32, 16  ;;  %v11502_v63 = vld [vmem:[#allocation2 + $0x90] sm:$0xff]   ;;  %v5781_v24 = vadd.f32 %v11361_v40, %v11490_v58 }
 0x34a   : > { %v4709_v57 = vsel %vm859_vm1, %v4707_v60, %v4708_v34  ;;  %v4997_v13 = vshrl.u32 %v11478_v32, 16  ;;  %v9261_v60 = vld [vmem:[#allocation2 + $0x98] ss:$0 sps:$4 sm:$0x11]   ;;  %v5009_v34 = vshrl.u32 %v11502_v63, 16 }
 0x34b   : > { %v5001_v25 = vrot.slane %v4999_v0, 1 }
 0x34e   : > { %6299 = vmatmul.mubr.bf16.gmra.mrb[4].mxu0 %v11419_v39 }
 0x34f   : > { %6306 = vmatprep.mubr.bf16.mxu0 %v4971_v6  ;;  %6146 = vmatmul.mubr.bf16.gmra.mrb[200].mxu1 %v4555_v10  ;;  %v4994_v10 = vrot.slane %v4992_v4, 1  ;;  %v5011_v4 = vshll.u32 %v11502_v63, 16 }
 0x350   : > { %6153 = vmatprep.mubr.bf16.mxu1 %v4703_v27 }
 0x351   : > { %v4995_v61 = vsel %vm650_vm0, %v4990_v35, %v4994_v10  ;;  %v4711_v35 = vrot.slane %v9257_v36, 1  ;;  %v11522_v10 = vld [vmem:[#allocation2 + $0x9c] sm:$0xff]  }
 0x353   : > { %v4712_v5 = vsel %vm859_vm1, %v4710_v42, %v4711_v35  ;;  %v4605_v42 = vshrl.u32 %v11317_v41, 16  ;;  %v4612_v35 = vshll.u32 %v9261_v60, 16 }
 0x356   : > { %6307 = vmatmul.mubr.bf16.gmra.mrb[8].mxu0 %v11439_v20 }
 0x357   : > { %6314 = vmatprep.mubr.bf16.mxu0 %v4983_v12  ;;  %6154 = vmatmul.mubr.bf16.gmra.mrb[204].mxu1 %v4567_v21  ;;  %v4581_v12 = vshrl.u32 %v11295_v53, 16  ;;  %v4588_v21 = vshll.u32 %v9254_v62, 16 }
 0x358   : > { %6161 = vmatprep.mubr.bf16.mxu1 %v4706_v11  ;;  %v8255_v6 = vpop.f32.mrb[176].mxu0  ;;  %v5002_v11 = vor.u32 %v5001_v25, %v4997_v13  ;;  %v5023_v25 = vshll.u32 %v11522_v10, 16  ;;  %v11531_v13 = vld [vmem:[#allocation2 + $0xa4] ss:$0 sps:$4 sm:$0x11]  }
 0x359   : > { %v8256_v27 = vpop.f32.mrb[177].mxu0  ;;  %v4586_v40 = vor.u32 %v4585_v23, %v4581_v12  ;;  %v4590_v0 = vrot.slane %v4588_v21, 1  ;;  %v4713_v23 = vrot.slane %v11317_v41, 1  ;;  %v11536_v21 = vld [vmem:[#allocation2 + $0xa8] sm:$0xff]  }
 0x35a   : > { %v8257_v55 = vadd.f32 %v8256_v27, %v8255_v6  ;;  %v8258_v46 = vpop.f32.mrb[178].mxu0  ;;  %v5007_v53 = vsel %vm650_vm0, %v5002_v11, %v5006_v22  ;;  %v4597_v6 = vrot.slane %v4595_v56, 1  ;;  %v5016_v27 = vshll.u32 %v11517_v48, 16 }
 0x35b   : > { %v8259_v3 = vpop.f32.mrb[179].mxu0  ;;  %v4591_v62 = vsel %vm650_vm0, %v4586_v40, %v4590_v0  ;;  %v9264_v40 = vld [vmem:[#allocation2 + $0xa4] ss:$0 sps:$4 sm:$0x11]   ;;  %v5028_v56 = vshll.u32 %v11531_v13, 16 }
 0x35c   : > { %v11506_v31 = vadd.f32 %v8257_v55, %v5778_v28  ;;  %v8260_v45 = vadd.f32 %v8259_v3, %v8258_v46  ;;  %v5013_v28 = vrot.slane %v5011_v4, 1  ;;  %v4593_v55 = vshrl.u32 %v11304_v16, 16 }
 0x35d   : > { %v4600_v46 = vshll.u32 %v9257_v36, 16  ;;  %v4607_v3 = vshll.u32 %v11317_v41, 16  ;;  %v5025_v36 = vrot.slane %v5023_v25, 1  ;;  %v5021_v4 = vshrl.u32 %v11522_v10, 16 }
 0x35e   : > { %6315 = vmatmul.mubr.bf16.gmra.mrb[12].mxu0 %v11453_v51  ;;  %12141 = vst [vmem:[#allocation17_spill] sm:$0xff] %v11506_v31  ;;  %v11512_v30 = vadd.f32 %v8260_v45, %v5781_v24  ;;  %v4714_v24 = vrot.slane %v9261_v60, 1  ;;  %v5018_v45 = vrot.slane %v5016_v27, 1  ;;  %v11545_v27 = vld [vmem:[#allocation2 + $0xb0] ss:$0 sps:$4 sm:$0x11]  }
 0x35f   : > { %6322 = vmatprep.mubr.bf16.mxu0 %v4995_v61  ;;  %6162 = vmatmul.mubr.bf16.gmra.mrb[208].mxu1 %v4579_v38  ;;  %v5014_v61 = vor.u32 %v5013_v28, %v5009_v34  ;;  %v4598_v38 = vor.u32 %v4597_v6, %v4593_v55  ;;  %v4609_v12 = vrot.slane %v4607_v3, 1  ;;  %v5026_v22 = vor.u32 %v5025_v36, %v5021_v4 }
 0x360   : > { %6169 = vmatprep.mubr.bf16.mxu1 %v4709_v57  ;;  %12142 = vst [vmem:[#allocation18_spill] sm:$0xff] %v11512_v30  ;;  %v4602_v57 = vrot.slane %v4600_v46, 1  ;;  %v4715_v11 = vsel %vm859_vm1, %v4713_v23, %v4714_v24  ;;  %v4716_v28 = vrot.slane %v11328_v8, 1  ;;  %v4717_v6 = vrot.slane %v9264_v40, 1  ;;  %v11547_v46 = vld [vmem:[#allocation2 + $0xb4] sm:$0xff]  }
 0x361   : > { %v5019_v17 = vsel %vm650_vm0, %v5014_v61, %v5018_v45  ;;  %v4610_v0 = vor.u32 %v4609_v12, %v4605_v42  ;;  %v4614_v34 = vrot.slane %v4612_v35, 1  ;;  %v4624_v4 = vshll.u32 %v9264_v40, 16 }
 0x362   : > { %v4603_v16 = vsel %vm650_vm0, %v4598_v38, %v4602_v57  ;;  %v4718_v3 = vsel %vm859_vm1, %v4716_v28, %v4717_v6  ;;  %v9268_v57 = vld [vmem:[#allocation2 + $0xb0] ss:$0 sps:$4 sm:$0x11]   ;;  %v4719_v6 = vrot.slane %v11338_v7, 1 }
 0x363   : > { %v4615_v60 = vsel %vm650_vm0, %v4610_v0, %v4614_v34  ;;  %v5047_v0 = vshll.u32 %v11547_v46, 16  ;;  %v4720_v40 = vrot.slane %v9268_v57, 1 }
 0x366   : > { %6323 = vmatmul.mubr.bf16.gmra.mrb[16].mxu0 %v11464_v44 }
 0x367   : > { %6330 = vmatprep.mubr.bf16.mxu0 %v5007_v53  ;;  %6170 = vmatmul.mubr.bf16.gmra.mrb[212].mxu1 %v4591_v62  ;;  %v5035_v53 = vshll.u32 %v11536_v21, 16  ;;  %v4619_v62 = vshll.u32 %v11328_v8, 16 }
 0x368   : > { %6177 = vmatprep.mubr.bf16.mxu1 %v4712_v5  ;;  %v5030_v5 = vrot.slane %v5028_v56, 1 }
 0x369   : > { %v5037_v61 = vrot.slane %v5035_v53, 1  ;;  %v4621_v25 = vrot.slane %v4619_v62, 1 }
 0x36a   : > { %v5031_v41 = vsel %vm650_vm0, %v5026_v22, %v5030_v5  ;;  %v4631_v5 = vshll.u32 %v11338_v7, 16 }
 0x36e   : > { %6331 = vmatmul.mubr.bf16.gmra.mrb[20].mxu0 %v11478_v32 }
 0x36f   : > { %6338 = vmatprep.mubr.bf16.mxu0 %v5019_v17  ;;  %6178 = vmatmul.mubr.bf16.gmra.mrb[216].mxu1 %v4603_v16  ;;  %v5033_v17 = vshrl.u32 %v11536_v21, 16  ;;  %v5040_v16 = vshll.u32 %v11545_v27, 16 }
 0x370   : > { %6185 = vmatprep.mubr.bf16.mxu1 %v4715_v11  ;;  %v4617_v11 = vshrl.u32 %v11328_v8, 16 }
 0x371   : > { %v5038_v53 = vor.u32 %v5037_v61, %v5033_v17  ;;  %v4633_v17 = vrot.slane %v4631_v5, 1 }
 0x372   : > { %v4622_v28 = vor.u32 %v4621_v25, %v4617_v11  ;;  %v5045_v11 = vshrl.u32 %v11547_v46, 16 }
 0x375   : > { %v8149_v55 = vpop.f32.mrb[116].mxu1 }
 0x376   : > { %6339 = vmatmul.mubr.bf16.gmra.mrb[24].mxu0 %v11502_v63  ;;  %v8150_v38 = vpop.f32.mrb[117].mxu1 }
 0x377   : > { %6346 = vmatprep.mubr.bf16.mxu0 %v5031_v41  ;;  %6186 = vmatmul.mubr.bf16.gmra.mrb[220].mxu1 %v4615_v60  ;;  %v8151_v23 = vadd.f32 %v8150_v38, %v8149_v55  ;;  %v8261_v24 = vpop.f32.mrb[180].mxu0  ;;  %v8152_v45 = vpop.f32.mrb[118].mxu1  ;;  %v11563_v41 = vld [vmem:[#allocation2 + $0xbc] ss:$0 sps:$4 sm:$0x11]   ;;  %v5042_v60 = vrot.slane %v5040_v16, 1  ;;  %v4721_v16 = vsel %vm859_vm1, %v4719_v6, %v4720_v40 }
 0x378   : > { %6193 = vmatprep.mubr.bf16.mxu1 %v4718_v3  ;;  %v8262_v36 = vpop.f32.mrb[181].mxu0  ;;  %v8153_v12 = vpop.f32.mrb[119].mxu1  ;;  %v4626_v38 = vrot.slane %v4624_v4, 1  ;;  %v5052_v4 = vshll.u32 %v11563_v41, 16  ;;  %v4643_v6 = vshll.u32 %v11347_v47, 16 }
 0x379   : > { %v5786_v56 = vadd.f32 %v8151_v23, %v11490_v58  ;;  %v8263_v42 = vadd.f32 %v8262_v36, %v8261_v24  ;;  %v8154_v35 = vadd.f32 %v8153_v12, %v8152_v45  ;;  %v8264_v22 = vpop.f32.mrb[182].mxu0  ;;  %v5049_v23 = vrot.slane %v5047_v0, 1  ;;  %v9271_v36 = vld [vmem:[#allocation2 + $0xbc] ss:$0 sps:$4 sm:$0x11]   ;;  %v11570_v12 = vld [vmem:[#allocation2 + $0xc0] sm:$0xff]  }
 0x37a   : > { %v8265_v62 = vpop.f32.mrb[183].mxu0  ;;  %v5043_v25 = vsel %vm650_vm0, %v5038_v53, %v5042_v60  ;;  %v4627_v24 = vsel %vm650_vm0, %v4622_v28, %v4626_v38  ;;  %v4636_v0 = vshll.u32 %v9268_v57, 16  ;;  %v4722_v28 = vrot.slane %v11347_v47, 1  ;;  %v11579_v60 = vld [vmem:[#allocation2 + $0xc8] ss:$0 sps:$4 sm:$0x11]  }
 0x37b   : > { %v11560_v34 = vadd.f32 %v8263_v42, %v5786_v56  ;;  %v5789_v55 = vadd.f32 %v8154_v35, %v11490_v58  ;;  %v8266_v8 = vadd.f32 %v8265_v62, %v8264_v22  ;;  %v4629_v22 = vshrl.u32 %v11338_v7, 16 }
 0x37c   : > { %v5050_v53 = vor.u32 %v5049_v23, %v5045_v11  ;;  %v5054_v40 = vrot.slane %v5052_v4, 1  ;;  %v4638_v38 = vrot.slane %v4636_v0, 1 }
 0x37d   : > { %12143 = vst [vmem:[#allocation24_spill] sm:$0xff] %v11560_v34  ;;  %v11565_v3 = vadd.f32 %v8266_v8, %v5789_v55  ;;  %v8155_v61 = vpop.f32.mrb[120].mxu1  ;;  %v4634_v5 = vor.u32 %v4633_v17, %v4629_v22  ;;  %v4723_v55 = vrot.slane %v9271_v36, 1  ;;  %v5059_v8 = vshll.u32 %v11570_v12, 16 }
 0x37e   : > { %6347 = vmatmul.mubr.bf16.gmra.mrb[28].mxu0 %v11522_v10  ;;  %v8156_v45 = vpop.f32.mrb[121].mxu1 }
 0x37f   : > { %12144 = vst [vmem:[#allocation19_spill] sm:$0xff] %v11565_v3  ;;  %6354 = vmatprep.mubr.bf16.mxu0 %v5043_v25  ;;  %6194 = vmatmul.mubr.bf16.gmra.mrb[224].mxu1 %v4627_v24  ;;  %v8157_v56 = vadd.f32 %v8156_v45, %v8155_v61  ;;  %v8158_v42 = vpop.f32.mrb[122].mxu1  ;;  %v11581_v61 = vld [vmem:[#allocation2 + $0xcc] sm:$0xff]   ;;  %v5055_v25 = vsel %vm650_vm0, %v5050_v53, %v5054_v40  ;;  %v11585_v24 = vld [vmem:[#allocation2 + $0xc8] ss:$0 sps:$4 sm:$0x11]  }
 0x380   : > { %6201 = vmatprep.mubr.bf16.mxu1 %v4721_v16  ;;  %v8159_v35 = vpop.f32.mrb[123].mxu1  ;;  %v4639_v17 = vsel %vm650_vm0, %v4634_v5, %v4638_v38  ;;  %v4724_v16 = vsel %vm859_vm1, %v4722_v28, %v4723_v55  ;;  %v5061_v11 = vrot.slane %v5059_v8, 1  ;;  %v11592_v3 = vld [vmem:[#allocation2 + $0xd4] ss:$0 sps:$4 sm:$0x11]   ;;  %v5057_v5 = vshrl.u32 %v11570_v12, 16 }
 0x381   : > { %v8160_v62 = vadd.f32 %v8159_v35, %v8158_v42  ;;  %v5794_v7 = vadd.f32 %v8157_v56, %v11490_v58  ;;  %v4645_v42 = vrot.slane %v4643_v6, 1  ;;  %v5064_v56 = vshll.u32 %v11579_v60, 16 }
 0x382   : > { %v4641_v55 = vshrl.u32 %v11347_v47, 16  ;;  %v4648_v8 = vshll.u32 %v9271_v36, 16  ;;  %v5071_v6 = vshll.u32 %v11581_v61, 16  ;;  %v4726_v30 = vrot.slane %v11585_v24, 1 }
 0x383   : > { %v5797_v22 = vadd.f32 %v8160_v62, %v11490_v58  ;;  %v5069_v47 = vshrl.u32 %v11581_v61, 16 }
 0x384   : > { %v8267_v57 = vpop.f32.mrb[184].mxu0  ;;  %v4650_v31 = vrot.slane %v4648_v8, 1  ;;  %v5073_v36 = vrot.slane %v5071_v6, 1  ;;  %v4653_v6 = vshrl.u32 %v11364_v26, 16 }
 0x385   : > { %v8161_v23 = vpop.f32.mrb[124].mxu1  ;;  %v8268_v45 = vpop.f32.mrb[185].mxu0 }
 0x386   : > { %6355 = vmatmul.mubr.bf16.gmra.mrb[32].mxu0 %v11536_v21  ;;  %v8162_v4 = vpop.f32.mrb[125].mxu1  ;;  %v8269_v35 = vadd.f32 %v8268_v45, %v8267_v57  ;;  %v8270_v0 = vpop.f32.mrb[186].mxu0  ;;  %v5062_v57 = vor.u32 %v5061_v11, %v5057_v5  ;;  %v4646_v45 = vor.u32 %v4645_v42, %v4641_v55 }
 0x387   : > { %6362 = vmatprep.mubr.bf16.mxu0 %v5055_v25  ;;  %6202 = vmatmul.mubr.bf16.gmra.mrb[228].mxu1 %v4639_v17  ;;  %v8163_v53 = vadd.f32 %v8162_v4, %v8161_v23  ;;  %v8164_v40 = vpop.f32.mrb[126].mxu1  ;;  %v8271_v34 = vpop.f32.mrb[187].mxu0  ;;  %v4655_v23 = vshll.u32 %v11364_v26, 16  ;;  %v5066_v4 = vrot.slane %v5064_v56, 1 }
 0x388   : > { %6209 = vmatprep.mubr.bf16.mxu1 %v4724_v16  ;;  %v8165_v28 = vpop.f32.mrb[127].mxu1  ;;  %v11597_v38 = vadd.f32 %v8269_v35, %v5794_v7  ;;  %v8272_v62 = vadd.f32 %v8271_v34, %v8270_v0  ;;  %v4725_v16 = vrot.slane %v11364_v26, 1  ;;  %v5076_v7 = vshll.u32 %v11592_v3, 16 }
 0x389   : > { %v8166_v25 = vadd.f32 %v8165_v28, %v8164_v40  ;;  %v5802_v34 = vadd.f32 %v8163_v53, %v11490_v58  ;;  %v5067_v11 = vsel %vm650_vm0, %v5062_v57, %v5066_v4  ;;  %v4657_v0 = vrot.slane %v4655_v23, 1 }
 0x38a   : > { %v11600_v17 = vadd.f32 %v8272_v62, %v5797_v22  ;;  %v4651_v22 = vsel %vm650_vm0, %v4646_v45, %v4650_v31  ;;  %v4727_v28 = vsel %vm859_vm1, %v4725_v16, %v4726_v30  ;;  %v4660_v62 = vshll.u32 %v11585_v24, 16 }
 0x38b   : > { %v5805_v40 = vadd.f32 %v8166_v25, %v11490_v58  ;;  %v5074_v57 = vor.u32 %v5073_v36, %v5069_v47  ;;  %v5078_v4 = vrot.slane %v5076_v7, 1  ;;  %v5096_v16 = vrot.slane %v11349_v15, 1 }
 0x38c   : > { %v8273_v35 = vpop.f32.mrb[188].mxu0  ;;  %v5099_v15 = vrot.slane %v11366_v54, 1  ;;  %v9279_v54 = vld [vmem:[%s12038_s6 + $0x8] sm:$0xff]  }
 0x38d   : > { %v8274_v42 = vpop.f32.mrb[189].mxu0  ;;  %v8167_v55 = vpop.f32.mrb[128].mxu1  ;;  %v5079_v26 = vsel %vm650_vm0, %v5074_v57, %v5078_v4 }
 0x38e   : > { %6363 = vmatmul.mubr.bf16.gmra.mrb[36].mxu0 %v11547_v46  ;;  %v8275_v56 = vadd.f32 %v8274_v42, %v8273_v35  ;;  %v8276_v5 = vpop.f32.mrb[190].mxu0  ;;  %v8168_v53 = vpop.f32.mrb[129].mxu1 }
 0x38f   : > { %6370 = vmatprep.mubr.bf16.mxu0 %v5067_v11  ;;  %6210 = vmatmul.mubr.bf16.gmra.mrb[232].mxu1 %v4651_v22  ;;  %v8277_v8 = vpop.f32.mrb[191].mxu0  ;;  %v8169_v23 = vadd.f32 %v8168_v53, %v8167_v55  ;;  %v8170_v35 = vpop.f32.mrb[130].mxu1  ;;  %v4658_v11 = vor.u32 %v4657_v0, %v4653_v6  ;;  %v5097_v22 = vrot.slane %v11359_v37, 1  ;;  %v5100_v37 = vrot.slane %v11375_v9, 1 }
 0x390   : > { %6217 = vmatprep.mubr.bf16.mxu1 %v4727_v28  ;;  %v11614_v31 = vadd.f32 %v8275_v56, %v5802_v34  ;;  %v8278_v45 = vadd.f32 %v8277_v8, %v8276_v5  ;;  %v8171_v25 = vpop.f32.mrb[131].mxu1  ;;  %v4662_v28 = vrot.slane %v4660_v62, 1  ;;  %v5102_v8 = vrot.slane %v11380_v2, 1 }
 0x391   : > { %v8172_v30 = vadd.f32 %v8171_v25, %v8170_v35  ;;  %v5098_v47 = vsel %vm859_vm1, %v5096_v16, %v5097_v22  ;;  %v5810_v36 = vadd.f32 %v8169_v23, %v11490_v58  ;;  %v5103_v53 = vrot.slane %v11387_v50, 1 }
 0x392   : > { %v11616_v42 = vadd.f32 %v8278_v45, %v5805_v40  ;;  %v4663_v24 = vsel %vm650_vm0, %v4658_v11, %v4662_v28  ;;  %v5101_v35 = vsel %vm859_vm1, %v5099_v15, %v5100_v37  ;;  %v5105_v28 = vrot.slane %v11392_v33, 1  ;;  %v9281_v33 = vld [vmem:[%s12038_s6 + $0x18] sm:$0xff]  }
 0x393   : > { %v5813_v40 = vadd.f32 %v8172_v30, %v11490_v58  ;;  %v5104_v2 = vsel %vm859_vm1, %v5102_v8, %v5103_v53  ;;  %v9280_v30 = vld [vmem:[%s12038_s6 + $0x10] sm:$0xff]  }
 0x396   : > { %6371 = vmatmul.mubr.bf16.gmra.mrb[40].mxu0 %v11570_v12 }
 0x397   : > { %6218 = vmatmul.mubr.bf16.gmra.mrb[236].mxu1 %v4663_v24  ;;  %6378 = vmatprep.mubr.bf16.mxu0 %v5079_v26  ;;  %v5106_v26 = vrot.slane %v11400_v49, 1 }
 0x398   : > { %8687 = vmatprep.mubr.bf16.mxu1 %v5098_v47 }
 0x399   : > { %v8279_v7 = vpop.f32.mrb[192].mxu0 }
 0x39a   : > { %v8280_v34 = vpop.f32.mrb[193].mxu0  ;;  %v8173_v0 = vpop.f32.mrb[132].mxu1 }
 0x39b   : > { %v8281_v56 = vadd.f32 %v8280_v34, %v8279_v7  ;;  %v8282_v5 = vpop.f32.mrb[194].mxu0  ;;  %v8174_v55 = vpop.f32.mrb[133].mxu1  ;;  %v5109_v34 = vrot.slane %v11414_v14, 1 }
 0x39c   : > { %v8283_v6 = vpop.f32.mrb[195].mxu0  ;;  %v8175_v62 = vadd.f32 %v8174_v55, %v8173_v0  ;;  %v8176_v57 = vpop.f32.mrb[134].mxu1  ;;  %v5107_v55 = vsel %vm859_vm1, %v5105_v28, %v5106_v26 }
 0x39d   : > { %v11630_v4 = vadd.f32 %v8281_v56, %v5810_v36  ;;  %v8284_v45 = vadd.f32 %v8283_v6, %v8282_v5  ;;  %v8177_v23 = vpop.f32.mrb[135].mxu1  ;;  %v9282_v6 = vld [vmem:[%s12038_s6 + $0x20] sm:$0xff]  }
 0x39e   : > { %6379 = vmatmul.mubr.bf16.gmra.mrb[44].mxu0 %v11581_v61  ;;  %v8178_v9 = vadd.f32 %v8177_v23, %v8176_v57  ;;  %v5818_v50 = vadd.f32 %v8175_v62, %v11490_v58  ;;  %v5112_v23 = vrot.slane %v11433_v52, 1 }
 0x39f   : > { %v11637_v25 = vadd.f32 %v8284_v45, %v5813_v40  ;;  %8688 = vmatmul.mubr.bf16.vlgmr.msra.gmra.mrb[240].mxu1 %v5101_v35  ;;  %v5111_v45 = vrot.slane %v11419_v39, 1  ;;  %v9283_v39 = vld [vmem:[%s12038_s6 + $0x28] sm:$0xff]  }
 0x3a0   : > { %8691 = vmatprep.mubr.bf16.mxu1 %v5104_v2  ;;  %8720 = vmatpush3.bf16.msra.mxu1 %v11428_v59  ;;  %v5821_v47 = vadd.f32 %v8178_v9, %v11490_v58  ;;  %v5108_v59 = vrot.slane %v11405_v43, 1 }
 0x3a1   : > { %v8285_v11 = vpop.f32.mrb[196].mxu0  ;;  %8721 = vmatprep.subr.bf16.mxu1 %v9279_v54 }
 0x3a2   : > { %v8286_v16 = vpop.f32.mrb[197].mxu0  ;;  %v8179_v22 = vpop.f32.mrb[136].mxu1  ;;  %v5110_v43 = vsel %vm859_vm1, %v5108_v59, %v5109_v34  ;;  %v9284_v59 = vld [vmem:[%s12038_s6 + $0x30] sm:$0xff]  }
 0x3a3   : > { %v8287_v24 = vadd.f32 %v8286_v16, %v8285_v11  ;;  %v8288_v36 = vpop.f32.mrb[198].mxu0  ;;  %v8180_v7 = vpop.f32.mrb[137].mxu1  ;;  %v5115_v11 = vrot.slane %v11448_v29, 1 }
 0x3a4   : > { %v8289_v0 = vpop.f32.mrb[199].mxu0  ;;  %v8181_v15 = vadd.f32 %v8180_v7, %v8179_v22  ;;  %v8182_v37 = vpop.f32.mrb[138].mxu1  ;;  %8722 = vmatpush3.bf16.msra.mxu1 %v9279_v54 }
 0x3a5   : > { %v11650_v56 = vadd.f32 %v8287_v24, %v5818_v50  ;;  %v8290_v40 = vadd.f32 %v8289_v0, %v8288_v36  ;;  %v8183_v5 = vpop.f32.mrb[139].mxu1  ;;  %8723 = vmatprep.subr.bf16.mxu1 %v9280_v30  ;;  %v5114_v50 = vrot.slane %v11439_v20, 1 }
 0x3a6   : > { %v8184_v49 = vadd.f32 %v8183_v5, %v8182_v37  ;;  %v5826_v14 = vadd.f32 %v8181_v15, %v11490_v58  ;;  %v5117_v15 = vrot.slane %v11453_v51, 1  ;;  %v5118_v37 = vrot.slane %v11462_v18, 1  ;;  %v9285_v51 = vld [vmem:[%s12038_s6 + $0x38] sm:$0xff]  }
 0x3a7   : > { %v11656_v8 = vadd.f32 %v8290_v40, %v5821_v47  ;;  %8692 = vmatmul.mubr.bf16.gmra.mrb[244].mxu1 %v5107_v55  ;;  %v5113_v47 = vsel %vm859_vm1, %v5111_v45, %v5112_v23  ;;  %v5116_v20 = vsel %vm859_vm1, %v5114_v50, %v5115_v11  ;;  %v5120_v55 = vrot.slane %v11464_v44, 1 }
 0x3a8   : > { %8695 = vmatprep.mubr.bf16.mxu1 %v5110_v43  ;;  %8724 = vmatpush3.bf16.msra.mxu1 %v9280_v30  ;;  %v5829_v9 = vadd.f32 %v8184_v49, %v11490_v58  ;;  %v5121_v43 = vrot.slane %v11476_v19, 1  ;;  %v5119_v23 = vsel %vm859_vm1, %v5117_v15, %v5118_v37  ;;  %v5123_v11 = vrot.slane %v11478_v32, 1 }
 0x3a9   : > { %v8291_v53 = vpop.f32.mrb[200].mxu0  ;;  %8725 = vmatprep.subr.bf16.mxu1 %v9281_v33  ;;  %v5130_v15 = vrot.slane %v11531_v13, 1 }
 0x3aa   : > { %v8292_v62 = vpop.f32.mrb[201].mxu0  ;;  %v8185_v57 = vpop.f32.mrb[140].mxu1  ;;  %v5122_v44 = vsel %vm859_vm1, %v5120_v55, %v5121_v43 }
 0x3ab   : > { %v8293_v54 = vadd.f32 %v8292_v62, %v8291_v53  ;;  %v8294_v35 = vpop.f32.mrb[202].mxu0  ;;  %v8186_v2 = vpop.f32.mrb[141].mxu1 }
 0x3ac   : > { %v8295_v30 = vpop.f32.mrb[203].mxu0  ;;  %v8187_v16 = vadd.f32 %v8186_v2, %v8185_v57  ;;  %v8188_v22 = vpop.f32.mrb[142].mxu1  ;;  %8726 = vmatpush3.bf16.msra.mxu1 %v9281_v33 }
 0x3ad   : > { %v11668_v28 = vadd.f32 %v8293_v54, %v5826_v14  ;;  %v8296_v26 = vadd.f32 %v8295_v30, %v8294_v35  ;;  %v8189_v24 = vpop.f32.mrb[143].mxu1  ;;  %8727 = vmatprep.subr.bf16.mxu1 %v9282_v6  ;;  %v5124_v35 = vrot.slane %v11497_v1, 1 }
 0x3ae   : > { %v8190_v52 = vadd.f32 %v8189_v24, %v8188_v22  ;;  %v5834_v29 = vadd.f32 %v8187_v16, %v11490_v58  ;;  %v5126_v24 = vrot.slane %v11502_v63, 1 }
 0x3af   : > { %v11674_v36 = vadd.f32 %v8296_v26, %v5829_v9  ;;  %8696 = vmatmul.mubr.bf16.gmra.mrb[248].mxu1 %v5113_v47  ;;  %v5125_v32 = vsel %vm859_vm1, %v5123_v11, %v5124_v35 }
 0x3b0   : > { %8699 = vmatprep.mubr.bf16.mxu1 %v5116_v20  ;;  %8728 = vmatpush3.bf16.msra.mxu1 %v9282_v6  ;;  %v5837_v5 = vadd.f32 %v8190_v52, %v11490_v58 }
 0x3b1   : > { %v8297_v7 = vpop.f32.mrb[204].mxu0  ;;  %8729 = vmatprep.subr.bf16.mxu1 %v9283_v39 }
 0x3b2   : > { %v8298_v34 = vpop.f32.mrb[205].mxu0  ;;  %v8191_v0 = vpop.f32.mrb[144].mxu1 }
 0x3b3   : > { %v8299_v40 = vadd.f32 %v8298_v34, %v8297_v7  ;;  %v8300_v33 = vpop.f32.mrb[206].mxu0  ;;  %v8192_v49 = vpop.f32.mrb[145].mxu1 }
 0x3b4   : > { %v8301_v14 = vpop.f32.mrb[207].mxu0  ;;  %v8193_v53 = vadd.f32 %v8192_v49, %v8191_v0  ;;  %v8194_v6 = vpop.f32.mrb[146].mxu1  ;;  %8730 = vmatpush3.bf16.msra.mxu1 %v9283_v39  ;;  %v5127_v39 = vrot.slane %v11517_v48, 1 }
 0x3b5   : > { %v11686_v62 = vadd.f32 %v8299_v40, %v5834_v29  ;;  %v8302_v57 = vadd.f32 %v8301_v14, %v8300_v33  ;;  %v8195_v45 = vpop.f32.mrb[147].mxu1  ;;  %8731 = vmatprep.subr.bf16.mxu1 %v9284_v59  ;;  %v5132_v14 = vrot.slane %v11536_v21, 1 }
 0x3b6   : > { %v8196_v18 = vadd.f32 %v8195_v45, %v8194_v6  ;;  %v5842_v19 = vadd.f32 %v8193_v53, %v11490_v58  ;;  %v5128_v0 = vsel %vm859_vm1, %v5126_v24, %v5127_v39  ;;  %v5133_v53 = vrot.slane %v11545_v27, 1 }
 0x3b7   : > { %v11692_v54 = vadd.f32 %v8302_v57, %v5837_v5  ;;  %8700 = vmatmul.mubr.bf16.gmra.mrb[252].mxu1 %v5119_v23  ;;  %v5129_v5 = vrot.slane %v11522_v10, 1  ;;  %v5136_v27 = vrot.slane %v11563_v41, 1  ;;  %v5139_v24 = vrot.slane %v11579_v60, 1 }
 0x3b8   : > { %8703 = vmatprep.mubr.bf16.mxu1 %v5122_v44  ;;  %8732 = vmatpush3.bf16.msra.mxu1 %v9284_v59  ;;  %v5845_v16 = vadd.f32 %v8196_v18, %v11490_v58  ;;  %v5141_v60 = vrot.slane %v11581_v61, 1 }
 0x3b9   : > { %v8303_v9 = vpop.f32.mrb[208].mxu0  ;;  %8733 = vmatprep.subr.bf16.mxu1 %v9285_v51  ;;  %v5131_v44 = vsel %vm859_vm1, %v5129_v5, %v5130_v15 }
 0x3ba   : > { %v8304_v2 = vpop.f32.mrb[209].mxu0  ;;  %v8197_v50 = vpop.f32.mrb[148].mxu1 }
 0x3bb   : > { %v8305_v30 = vadd.f32 %v8304_v2, %v8303_v9  ;;  %v8306_v22 = vpop.f32.mrb[210].mxu0  ;;  %v8198_v26 = vpop.f32.mrb[149].mxu1 }
 0x3bc   : > { %v8307_v52 = vpop.f32.mrb[211].mxu0  ;;  %v8199_v47 = vadd.f32 %v8198_v26, %v8197_v50  ;;  %v8200_v20 = vpop.f32.mrb[150].mxu1  ;;  %8734 = vmatpush3.bf16.msra.mxu1 %v9285_v51  ;;  %v5135_v50 = vrot.slane %v11547_v46, 1  ;;  %v5138_v26 = vrot.slane %v11570_v12, 1  ;;  %v5142_v12 = vrot.slane %v11592_v3, 1 }
 0x3bd   : > { %v11701_v29 = vadd.f32 %v8305_v30, %v5842_v19  ;;  %v8308_v1 = vadd.f32 %v8307_v52, %v8306_v22  ;;  %v8201_v7 = vpop.f32.mrb[151].mxu1  ;;  %v5134_v19 = vsel %vm859_vm1, %v5132_v14, %v5133_v53  ;;  %v9286_v53 = vld [vmem:[%s9662_s17] sm:$0xff]  }
 0x3be   : > { %v8202_v59 = vadd.f32 %v8201_v7, %v8200_v20  ;;  %v5850_v63 = vadd.f32 %v8199_v47, %v11490_v58  ;;  %v5143_v14 = vsel %vm859_vm1, %v5141_v60, %v5142_v12  ;;  %v9289_v60 = vld [vmem:[%s9662_s17 + $0x18] sm:$0xff]  }
 0x3bf   : > { %v11704_v34 = vadd.f32 %v8308_v1, %v5845_v16  ;;  %8704 = vmatmul.mubr.bf16.gmra.mrb[0].mxu1 %v5125_v32  ;;  %v5140_v32 = vsel %vm859_vm1, %v5138_v26, %v5139_v24 }
 0x3c0   : > { %8707 = vmatprep.mubr.bf16.mxu1 %v5128_v0  ;;  %v5853_v49 = vadd.f32 %v8202_v59, %v11490_v58  ;;  %v5137_v59 = vsel %vm859_vm1, %v5135_v50, %v5136_v27 }
 0x3c1   : > { %v8309_v48 = vpop.f32.mrb[212].mxu0 }
 0x3c2   : > { %v8310_v37 = vpop.f32.mrb[213].mxu0  ;;  %v8203_v40 = vpop.f32.mrb[152].mxu1 }
 0x3c3   : > { %v8311_v33 = vadd.f32 %v8310_v37, %v8309_v48  ;;  %v8312_v55 = vpop.f32.mrb[214].mxu0  ;;  %v8204_v43 = vpop.f32.mrb[153].mxu1 }
 0x3c4   : > { %v8313_v6 = vpop.f32.mrb[215].mxu0  ;;  %v8205_v57 = vadd.f32 %v8204_v43, %v8203_v40  ;;  %v8206_v45 = vpop.f32.mrb[154].mxu1 }
 0x3c5   : > { %v11713_v51 = vadd.f32 %v8311_v33, %v5850_v63  ;;  %v8314_v18 = vadd.f32 %v8313_v6, %v8312_v55  ;;  %v8207_v13 = vpop.f32.mrb[155].mxu1 }
 0x3c6   : > { %v8208_v23 = vadd.f32 %v8207_v13, %v8206_v45  ;;  %v5858_v21 = vadd.f32 %v8205_v57, %v11490_v58 }
 0x3c7   : > { %v11716_v10 = vadd.f32 %v8314_v18, %v5853_v49  ;;  %8708 = vmatmul.mubr.bf16.gmra.mrb[4].mxu1 %v5131_v44 }
 0x3c8   : > { %8711 = vmatprep.mubr.bf16.mxu1 %v5134_v19  ;;  %v5861_v30 = vadd.f32 %v8208_v23, %v11490_v58 }
 0x3c9   : > { %v8315_v9 = vpop.f32.mrb[216].mxu0 }
 0x3ca   : > { %v8316_v35 = vpop.f32.mrb[217].mxu0  ;;  %v8209_v2 = vpop.f32.mrb[156].mxu1 }
 0x3cb   : > { %v8317_v11 = vadd.f32 %v8316_v35, %v8315_v9  ;;  %v8318_v16 = vpop.f32.mrb[218].mxu0  ;;  %v8210_v22 = vpop.f32.mrb[157].mxu1  ;;  %v9287_v35 = vld [vmem:[%s9662_s17 + $0x8] sm:$0xff]  }
 0x3cc   : > { %v8319_v39 = vpop.f32.mrb[219].mxu0  ;;  %v8211_v52 = vadd.f32 %v8210_v22, %v8209_v2  ;;  %v8212_v47 = vpop.f32.mrb[158].mxu1 }
 0x3cd   : > { %v11725_v20 = vadd.f32 %v8317_v11, %v5858_v21  ;;  %v8320_v1 = vadd.f32 %v8319_v39, %v8318_v16  ;;  %v8213_v41 = vpop.f32.mrb[159].mxu1 }
 0x3ce   : > { %v8214_v7 = vadd.f32 %v8213_v41, %v8212_v47  ;;  %v5866_v0 = vadd.f32 %v8211_v52, %v11490_v58 }
 0x3cf   : > { %v11728_v46 = vadd.f32 %v8320_v1, %v5861_v30  ;;  %8712 = vmatmul.mubr.bf16.gmra.mrb[8].mxu1 %v5137_v59  ;;  %v9288_v30 = vld [vmem:[%s9662_s17 + $0x10] sm:$0xff]  }
 0x3d0   : > { %8715 = vmatprep.mubr.bf16.mxu1 %v5140_v32  ;;  %v5869_v40 = vadd.f32 %v8214_v7, %v11490_v58 }
 0x3d1   : > { %v8321_v63 = vpop.f32.mrb[220].mxu0 }
 0x3d2   : > { %v8322_v48 = vpop.f32.mrb[221].mxu0  ;;  %v8215_v15 = vpop.f32.mrb[160].mxu1 }
 0x3d3   : > { %v8323_v37 = vadd.f32 %v8322_v48, %v8321_v63  ;;  %v8324_v5 = vpop.f32.mrb[222].mxu0  ;;  %v8216_v33 = vpop.f32.mrb[161].mxu1 }
 0x3d4   : > { %v8325_v49 = vpop.f32.mrb[223].mxu0  ;;  %v8217_v55 = vadd.f32 %v8216_v33, %v8215_v15  ;;  %v8218_v43 = vpop.f32.mrb[162].mxu1  ;;  %v9290_v15 = vld [vmem:[%s9662_s17 + $0x20] sm:$0xff]  }
 0x3d5   : > { %v11737_v3 = vadd.f32 %v8323_v37, %v5866_v0  ;;  %v8326_v61 = vadd.f32 %v8325_v49, %v8324_v5  ;;  %v8219_v6 = vpop.f32.mrb[163].mxu1 }
 0x3d6   : > { %v8220_v57 = vadd.f32 %v8219_v6, %v8218_v43  ;;  %v5874_v18 = vadd.f32 %v8217_v55, %v11490_v58 }
 0x3d7   : > { %v11739_v45 = vadd.f32 %v8326_v61, %v5869_v40  ;;  %8716 = vmatmul.mubr.bf16.gmra.mrb[12].mxu1 %v5143_v14 }
 0x3d8   : > { %8735 = vmatprep.mubr.bf16.mxu1 %v9286_v53  ;;  %v5877_v21 = vadd.f32 %v8220_v57, %v11490_v58 }
 0x3d9   : > { %v8327_v13 = vpop.f32.mrb[224].mxu0 }
 0x3da   : > { %v8328_v23 = vpop.f32.mrb[225].mxu0  ;;  %v8221_v44 = vpop.f32.mrb[164].mxu1 }
 0x3db   : > { %v8329_v19 = vadd.f32 %v8328_v23, %v8327_v13  ;;  %v8330_v9 = vpop.f32.mrb[226].mxu0  ;;  %v8222_v27 = vpop.f32.mrb[165].mxu1  ;;  %v9291_v13 = vld [vmem:[%s9662_s17 + $0x28] sm:$0xff]  }
 0x3dc   : > { %v8331_v2 = vpop.f32.mrb[227].mxu0  ;;  %v8223_v50 = vadd.f32 %v8222_v27, %v8221_v44  ;;  %v8224_v11 = vpop.f32.mrb[166].mxu1 }
 0x3dd   : > { %v11745_v16 = vadd.f32 %v8329_v19, %v5874_v18  ;;  %v8332_v22 = vadd.f32 %v8331_v2, %v8330_v9  ;;  %v8225_v26 = vpop.f32.mrb[167].mxu1 }
 0x3de   : > { %v8226_v24 = vadd.f32 %v8225_v26, %v8224_v11  ;;  %v5882_v52 = vadd.f32 %v8223_v50, %v11490_v58 }
 0x3df   : > { %v11747_v39 = vadd.f32 %v8332_v22, %v5877_v21  ;;  %8736 = vmatmul.mubr.bf16.vlgmr.msra.gmra.mrb[240].mxu1 %v9287_v35  ;;  %v9292_v21 = vld [vmem:[%s9662_s17 + $0x30] sm:$0xff]  }
 0x3e0   : > { %8739 = vmatprep.mubr.bf16.mxu1 %v9288_v30  ;;  %v5885_v59 = vadd.f32 %v8226_v24, %v11490_v58 }
 0x3e1   : > { %v8333_v47 = vpop.f32.mrb[228].mxu0 }
 0x3e2   : > { %v8334_v1 = vpop.f32.mrb[229].mxu0  ;;  %v8227_v41 = vpop.f32.mrb[168].mxu1 }
 0x3e3   : > { %v8335_v7 = vadd.f32 %v8334_v1, %v8333_v47  ;;  %v8336_v32 = vpop.f32.mrb[230].mxu0  ;;  %v8228_v12 = vpop.f32.mrb[169].mxu1 }
 0x3e4   : > { %v8337_v0 = vpop.f32.mrb[231].mxu0  ;;  %v8229_v63 = vadd.f32 %v8228_v12, %v8227_v41  ;;  %v8230_v48 = vpop.f32.mrb[170].mxu1  ;;  %v9293_v41 = vld [vmem:[%s9662_s17 + $0x38] sm:$0xff]   ;;  %v9294_v12 = vld [vmem:[%s9662_s17 + $0x40] sm:$0xff]  }
 0x3e5   : > { %v11753_v37 = vadd.f32 %v8335_v7, %v5882_v52  ;;  %v8338_v40 = vadd.f32 %v8337_v0, %v8336_v32  ;;  %v8231_v5 = vpop.f32.mrb[171].mxu1 }
 0x3e6   : > { %v8232_v33 = vadd.f32 %v8231_v5, %v8230_v48  ;;  %v5890_v55 = vadd.f32 %v8229_v63, %v11490_v58  ;;  %v12145_v48 = vld [vmem:[#allocation17_spill] sm:$0xff] }
 0x3e7   : > { %v11755_v49 = vadd.f32 %v8338_v40, %v5885_v59  ;;  %8740 = vmatmul.mubr.bf16.gmra.mrb[244].mxu1 %v9289_v60 }
 0x3e8   : > { %8743 = vmatprep.mubr.bf16.mxu1 %v9290_v15  ;;  %v5893_v6 = vadd.f32 %v8232_v33, %v11490_v58  ;;  %v9329_v58 = vld [vmem:[%s12037_s5] ss:$0 sm:$0xff] }
 0x3e9   : > { %v8339_v43 = vpop.f32.mrb[232].mxu0  ;;  %v12146_v33 = vld [vmem:[#allocation18_spill] sm:$0xff] }
 0x3ea   : > { %v8340_v14 = vpop.f32.mrb[233].mxu0  ;;  %v8233_v53 = vpop.f32.mrb[172].mxu1 }
 0x3eb   : > { %v8341_v61 = vadd.f32 %v8340_v14, %v8339_v43  ;;  %v8342_v57 = vpop.f32.mrb[234].mxu0  ;;  %v8234_v18 = vpop.f32.mrb[173].mxu1 }
 0x3ec   : > { %v8343_v23 = vpop.f32.mrb[235].mxu0  ;;  %v8235_v44 = vadd.f32 %v8234_v18, %v8233_v53  ;;  %v8236_v19 = vpop.f32.mrb[174].mxu1  ;;  %v9295_v18 = vld [vmem:[%s9662_s17 + $0x48] sm:$0xff]  }
 0x3ed   : > { %v11761_v9 = vadd.f32 %v8341_v61, %v5890_v55  ;;  %v8344_v27 = vadd.f32 %v8343_v23, %v8342_v57  ;;  %v8237_v35 = vpop.f32.mrb[175].mxu1 }
 0x3ee   : > { %v8238_v2 = vadd.f32 %v8237_v35, %v8236_v19  ;;  %v5898_v11 = vadd.f32 %v9329_v58, %v8235_v44  ;;  %v9296_v19 = vld [vmem:[%s9662_s17 + $0x50] sm:$0xff]   ;;  %v12147_v35 = vld [vmem:[#allocation24_spill] sm:$0xff] }
 0x3ef   : > { %v11763_v50 = vadd.f32 %v8344_v27, %v5893_v6  ;;  %8744 = vmatmul.mubr.bf16.gmra.mrb[248].mxu1 %v9291_v13 }
 0x3f0   : > { %8747 = vmatprep.mubr.bf16.mxu1 %v9292_v21  ;;  %v5901_v52 = vadd.f32 %v9329_v58, %v8238_v2 }
 0x3f1   : > { %v8345_v30 = vpop.f32.mrb[236].mxu0 }
 0x3f2   : > { %v8346_v22 = vpop.f32.mrb[237].mxu0  ;;  %v8367_v26 = vpop.f32.mrb[176].mxu1 }
 0x3f3   : > { %v8347_v24 = vadd.f32 %v8346_v22, %v8345_v30  ;;  %v8348_v47 = vpop.f32.mrb[238].mxu0  ;;  %v8368_v1 = vpop.f32.mrb[177].mxu1  ;;  %v12148_v30 = vld [vmem:[#allocation19_spill] sm:$0xff] }
 0x3f4   : > { %v8349_v7 = vpop.f32.mrb[239].mxu0  ;;  %v8369_v59 = vadd.f32 %v8368_v1, %v8367_v26  ;;  %v8370_v32 = vpop.f32.mrb[178].mxu1 }
 0x3f5   : > { %v11770_v60 = vadd.f32 %v8347_v24, %v5898_v11  ;;  %v8350_v0 = vadd.f32 %v8349_v7, %v8348_v47  ;;  %v8371_v63 = vpop.f32.mrb[179].mxu1 }
 0x3f6   : > { %v6100_v15 = vadd.f32 %v8369_v59, %v12145_v48  ;;  %v8372_v40 = vadd.f32 %v8371_v63, %v8370_v32  ;;  %v9297_v59 = vld [vmem:[%s9662_s17 + $0x58] sm:$0xff]   ;;  %v9298_v63 = vld [vmem:[%s9662_s17 + $0x60] sm:$0xff]  }
 0x3f7   : > { %v11773_v5 = vadd.f32 %v8350_v0, %v5901_v52  ;;  %8748 = vmatmul.mubr.bf16.gmra.mrb[252].mxu1 %v9293_v41 }
 0x3f8   : > { %v6103_v55 = vadd.f32 %v8372_v40, %v12146_v33  ;;  %8751 = vmatprep.mubr.bf16.mxu1 %v9294_v12 }
 0x3f9   : > { %v8479_v43 = vpop.f32.mrb[240].mxu0 }
 0x3fa   : > { %v8480_v14 = vpop.f32.mrb[241].mxu0  ;;  %v8373_v53 = vpop.f32.mrb[180].mxu1 }
 0x3fb   : > { %v8481_v61 = vadd.f32 %v8480_v14, %v8479_v43  ;;  %v8482_v6 = vpop.f32.mrb[242].mxu0  ;;  %v8374_v57 = vpop.f32.mrb[181].mxu1 }
 0x3fc   : > { %v8483_v13 = vpop.f32.mrb[243].mxu0  ;;  %v8375_v23 = vadd.f32 %v8374_v57, %v8373_v53  ;;  %v8376_v44 = vpop.f32.mrb[182].mxu1 }
 0x3fd   : > { %v8484_v21 = vadd.f32 %v8483_v13, %v8482_v6  ;;  %v8377_v27 = vpop.f32.mrb[183].mxu1  ;;  %v11782_v47 = vadd.f32 %v8481_v61, %v6100_v15 }
 0x3fe   : > { %v6108_v2 = vadd.f32 %v8375_v23, %v12147_v35  ;;  %v8378_v58 = vadd.f32 %v8377_v27, %v8376_v44  ;;  %v9299_v23 = vld [vmem:[%s9662_s17 + $0x68] sm:$0xff]   ;;  %v9300_v27 = vld [vmem:[%s9662_s17 + $0x70] sm:$0xff]  }
 0x3ff   : > { %v11779_v11 = vadd.f32 %v8484_v21, %v6103_v55  ;;  %8752 = vmatmul.mubr.bf16.gmra.mrb[0].mxu1 %v9295_v18 }
 0x400   : > { %v6111_v22 = vadd.f32 %v8378_v58, %v12148_v30  ;;  %8755 = vmatprep.mubr.bf16.mxu1 %v9296_v19 }
 0x401   : > { %v8485_v26 = vpop.f32.mrb[244].mxu0 }
 0x402   : > { %v8486_v24 = vpop.f32.mrb[245].mxu0  ;;  %v8379_v52 = vpop.f32.mrb[184].mxu1 }
 0x403   : > { %v8487_v1 = vadd.f32 %v8486_v24, %v8485_v26  ;;  %v8488_v41 = vpop.f32.mrb[246].mxu0  ;;  %v8380_v7 = vpop.f32.mrb[185].mxu1 }
 0x404   : > { %v8489_v32 = vpop.f32.mrb[247].mxu0  ;;  %v8381_v12 = vadd.f32 %v8380_v7, %v8379_v52  ;;  %v8382_v0 = vpop.f32.mrb[186].mxu1 }
 0x405   : > { %v8490_v48 = vadd.f32 %v8489_v32, %v8488_v41  ;;  %v8383_v40 = vpop.f32.mrb[187].mxu1  ;;  %v11786_v33 = vadd.f32 %v8487_v1, %v6108_v2 }
 0x406   : > { %v6116_v55 = vadd.f32 %v8381_v12, %v11597_v38  ;;  %v8384_v43 = vadd.f32 %v8383_v40, %v8382_v0 }
 0x407   : > { %v11789_v14 = vadd.f32 %v8490_v48, %v6111_v22  ;;  %8756 = vmatmul.mubr.bf16.gmra.mrb[4].mxu1 %v9297_v59  ;;  %v9301_v59 = vld [vmem:[%s9662_s17 + $0x78] sm:$0xff]  }
 0x408   : > { %v6119_v15 = vadd.f32 %v8384_v43, %v11600_v17  ;;  %8759 = vmatprep.mubr.bf16.mxu1 %v9298_v63 }
 0x409   : > { %v8491_v53 = vpop.f32.mrb[248].mxu0 }
 0x40a   : > { %v8492_v61 = vpop.f32.mrb[249].mxu0  ;;  %v8385_v6 = vpop.f32.mrb[188].mxu1 }
 0x40b   : > { %v8493_v57 = vadd.f32 %v8492_v61, %v8491_v53  ;;  %v8494_v18 = vpop.f32.mrb[250].mxu0  ;;  %v8386_v13 = vpop.f32.mrb[189].mxu1 }
 0x40c   : > { %v8495_v44 = vpop.f32.mrb[251].mxu0  ;;  %v8387_v19 = vadd.f32 %v8386_v13, %v8385_v6  ;;  %v8388_v21 = vpop.f32.mrb[190].mxu1 }
 0x40d   : > { %v11794_v38 = vadd.f32 %v8493_v57, %v6116_v55  ;;  %v8496_v35 = vadd.f32 %v8495_v44, %v8494_v18  ;;  %v8389_v2 = vpop.f32.mrb[191].mxu1 }
 0x40e   : > { %v6124_v58 = vadd.f32 %v8387_v19, %v11614_v31  ;;  %v8390_v17 = vadd.f32 %v8389_v2, %v8388_v21 }
 0x40f   : > { %v11797_v30 = vadd.f32 %v8496_v35, %v6119_v15  ;;  %8760 = vmatmul.mubr.bf16.gmra.mrb[8].mxu1 %v9299_v23 }
 0x410   : > { %v6127_v22 = vadd.f32 %v8390_v17, %v11616_v42  ;;  %8763 = vmatprep.mubr.bf16.mxu1 %v9300_v27 }
 0x411   : > { %v8497_v26 = vpop.f32.mrb[252].mxu0 }
 0x412   : > { %v8498_v24 = vpop.f32.mrb[253].mxu0  ;;  %v8391_v52 = vpop.f32.mrb[192].mxu1 }
 0x413   : > { %v8499_v1 = vadd.f32 %v8498_v24, %v8497_v26  ;;  %v8500_v41 = vpop.f32.mrb[254].mxu0  ;;  %v8392_v7 = vpop.f32.mrb[193].mxu1 }
 0x414   : > { %v8501_v32 = vpop.f32.mrb[255].mxu0  ;;  %v8393_v12 = vadd.f32 %v8392_v7, %v8391_v52  ;;  %v8394_v0 = vpop.f32.mrb[194].mxu1 }
 0x415   : > { %v11801_v63 = vadd.f32 %v8499_v1, %v6124_v58  ;;  %v8502_v31 = vadd.f32 %v8501_v32, %v8500_v41  ;;  %v8395_v48 = vpop.f32.mrb[195].mxu1 }
 0x416   : > { %v6132_v40 = vadd.f32 %v8393_v12, %v11630_v4  ;;  %v8396_v55 = vadd.f32 %v8395_v48, %v8394_v0 }
 0x417   : > { %v11804_v43 = vadd.f32 %v8502_v31, %v6127_v22  ;;  %8764 = vmatmul.mubr.bf16.gmra.mrb[12].mxu1 %v9301_v59 }
 0x418   : > { %v6135_v42 = vadd.f32 %v8396_v55, %v11637_v25 }
 0x419   : > { %v8503_v15 = vpop.f32.mrb[0].mxu0 }
 0x41a   : > { %v8504_v53 = vpop.f32.mrb[1].mxu0  ;;  %v8397_v61 = vpop.f32.mrb[196].mxu1 }
 0x41b   : > { %v8505_v6 = vadd.f32 %v8504_v53, %v8503_v15  ;;  %v8506_v57 = vpop.f32.mrb[2].mxu0  ;;  %v8398_v18 = vpop.f32.mrb[197].mxu1 }
 0x41c   : > { %v8507_v13 = vpop.f32.mrb[3].mxu0  ;;  %v8399_v23 = vadd.f32 %v8398_v18, %v8397_v61  ;;  %v8400_v44 = vpop.f32.mrb[198].mxu1 }
 0x41d   : > { %v11807_v19 = vadd.f32 %v8505_v6, %v6132_v40  ;;  %v8508_v21 = vadd.f32 %v8507_v13, %v8506_v57  ;;  %v8401_v27 = vpop.f32.mrb[199].mxu1 }
 0x41e   : > { %v6140_v4 = vadd.f32 %v8399_v23, %v11650_v56  ;;  %v8402_v35 = vadd.f32 %v8401_v27, %v8400_v44 }
 0x41f   : > { %v11810_v2 = vadd.f32 %v8508_v21, %v6135_v42 }
 0x420   : > { %v6143_v25 = vadd.f32 %v8402_v35, %v11656_v8 }
 0x421   : > { %v8509_v58 = vpop.f32.mrb[4].mxu0 }
 0x422   : > { %v8510_v17 = vpop.f32.mrb[5].mxu0  ;;  %v8403_v22 = vpop.f32.mrb[200].mxu1 }
 0x423   : > { %v8511_v26 = vadd.f32 %v8510_v17, %v8509_v58  ;;  %v8512_v24 = vpop.f32.mrb[6].mxu0  ;;  %v8404_v52 = vpop.f32.mrb[201].mxu1 }
 0x424   : > { %v8513_v1 = vpop.f32.mrb[7].mxu0  ;;  %v8405_v41 = vadd.f32 %v8404_v52, %v8403_v22  ;;  %v8406_v7 = vpop.f32.mrb[202].mxu1 }
 0x425   : > { %v11813_v59 = vadd.f32 %v8511_v26, %v6140_v4  ;;  %v8514_v32 = vadd.f32 %v8513_v1, %v8512_v24  ;;  %v8407_v12 = vpop.f32.mrb[203].mxu1 }
 0x426   : > { %v6148_v56 = vadd.f32 %v8405_v41, %v11668_v28  ;;  %v8408_v0 = vadd.f32 %v8407_v12, %v8406_v7 }
 0x427   : > { %v11816_v31 = vadd.f32 %v8514_v32, %v6143_v25 }
 0x428   : > { %v6151_v8 = vadd.f32 %v8408_v0, %v11674_v36 }
 0x429   : > { %v8515_v48 = vpop.f32.mrb[8].mxu0 }
 0x42a   : > { %v8516_v40 = vpop.f32.mrb[9].mxu0  ;;  %v8409_v55 = vpop.f32.mrb[204].mxu1 }
 0x42b   : > { %v8517_v42 = vadd.f32 %v8516_v40, %v8515_v48  ;;  %v8518_v15 = vpop.f32.mrb[10].mxu0  ;;  %v8410_v53 = vpop.f32.mrb[205].mxu1 }
 0x42c   : > { %v8519_v61 = vpop.f32.mrb[11].mxu0  ;;  %v8411_v6 = vadd.f32 %v8410_v53, %v8409_v55  ;;  %v8412_v57 = vpop.f32.mrb[206].mxu1 }
 0x42d   : > { %v11819_v18 = vadd.f32 %v8517_v42, %v6148_v56  ;;  %v8520_v13 = vadd.f32 %v8519_v61, %v8518_v15  ;;  %v8413_v23 = vpop.f32.mrb[207].mxu1 }
 0x42e   : > { %v6156_v28 = vadd.f32 %v8411_v6, %v11686_v62  ;;  %v8414_v44 = vadd.f32 %v8413_v23, %v8412_v57 }
 0x42f   : > { %v11822_v21 = vadd.f32 %v8520_v13, %v6151_v8 }
 0x430   : > { %v6159_v36 = vadd.f32 %v8414_v44, %v11692_v54 }
 0x431   : > { %v8521_v27 = vpop.f32.mrb[12].mxu0 }
 0x432   : > { %v8522_v4 = vpop.f32.mrb[13].mxu0  ;;  %v8415_v35 = vpop.f32.mrb[208].mxu1 }
 0x433   : > { %v8523_v25 = vadd.f32 %v8522_v4, %v8521_v27  ;;  %v8524_v58 = vpop.f32.mrb[14].mxu0  ;;  %v8416_v17 = vpop.f32.mrb[209].mxu1 }
 0x434   : > { %v8525_v22 = vpop.f32.mrb[15].mxu0  ;;  %v8417_v26 = vadd.f32 %v8416_v17, %v8415_v35  ;;  %v8418_v24 = vpop.f32.mrb[210].mxu1 }
 0x435   : > { %v11825_v52 = vadd.f32 %v8523_v25, %v6156_v28  ;;  %v8526_v1 = vadd.f32 %v8525_v22, %v8524_v58  ;;  %v8419_v41 = vpop.f32.mrb[211].mxu1 }
 0x436   : > { %v6164_v62 = vadd.f32 %v8417_v26, %v11701_v29  ;;  %v8420_v7 = vadd.f32 %v8419_v41, %v8418_v24 }
 0x437   : > { %v11828_v32 = vadd.f32 %v8526_v1, %v6159_v36 }
 0x438   : > { %v6167_v54 = vadd.f32 %v8420_v7, %v11704_v34 }
 0x439   : > { %v8527_v12 = vpop.f32.mrb[16].mxu0 }
 0x43a   : > { %v8528_v56 = vpop.f32.mrb[17].mxu0  ;;  %v8421_v0 = vpop.f32.mrb[212].mxu1 }
 0x43b   : > { %v8529_v8 = vadd.f32 %v8528_v56, %v8527_v12  ;;  %v8530_v48 = vpop.f32.mrb[18].mxu0  ;;  %v8422_v40 = vpop.f32.mrb[213].mxu1 }
 0x43c   : > { %v8531_v55 = vpop.f32.mrb[19].mxu0  ;;  %v8423_v42 = vadd.f32 %v8422_v40, %v8421_v0  ;;  %v8424_v15 = vpop.f32.mrb[214].mxu1 }
 0x43d   : > { %v11831_v53 = vadd.f32 %v8529_v8, %v6164_v62  ;;  %v8532_v61 = vadd.f32 %v8531_v55, %v8530_v48  ;;  %v8425_v6 = vpop.f32.mrb[215].mxu1 }
 0x43e   : > { %v6172_v29 = vadd.f32 %v8423_v42, %v11713_v51  ;;  %v8426_v57 = vadd.f32 %v8425_v6, %v8424_v15 }
 0x43f   : > { %v11834_v13 = vadd.f32 %v8532_v61, %v6167_v54 }
 0x440   : > { %v6175_v34 = vadd.f32 %v8426_v57, %v11716_v10 }
 0x441   : > { %v8533_v23 = vpop.f32.mrb[20].mxu0 }
 0x442   : > { %v8534_v28 = vpop.f32.mrb[21].mxu0  ;;  %v8427_v44 = vpop.f32.mrb[216].mxu1 }
 0x443   : > { %v8535_v36 = vadd.f32 %v8534_v28, %v8533_v23  ;;  %v8536_v27 = vpop.f32.mrb[22].mxu0  ;;  %v8428_v4 = vpop.f32.mrb[217].mxu1 }
 0x444   : > { %v8537_v35 = vpop.f32.mrb[23].mxu0  ;;  %v8429_v25 = vadd.f32 %v8428_v4, %v8427_v44  ;;  %v8430_v58 = vpop.f32.mrb[218].mxu1 }
 0x445   : > { %v11837_v17 = vadd.f32 %v8535_v36, %v6172_v29  ;;  %v8538_v22 = vadd.f32 %v8537_v35, %v8536_v27  ;;  %v8431_v26 = vpop.f32.mrb[219].mxu1 }
 0x446   : > { %v6180_v51 = vadd.f32 %v8429_v25, %v11725_v20  ;;  %v8432_v24 = vadd.f32 %v8431_v26, %v8430_v58 }
 0x447   : > { %v11840_v1 = vadd.f32 %v8538_v22, %v6175_v34 }
 0x448   : > { %v6183_v10 = vadd.f32 %v8432_v24, %v11728_v46 }
 0x449   : > { %v8539_v41 = vpop.f32.mrb[24].mxu0 }
 0x44a   : > { %v8540_v62 = vpop.f32.mrb[25].mxu0  ;;  %v8433_v7 = vpop.f32.mrb[220].mxu1 }
 0x44b   : > { %v8541_v54 = vadd.f32 %v8540_v62, %v8539_v41  ;;  %v8542_v12 = vpop.f32.mrb[26].mxu0  ;;  %v8434_v56 = vpop.f32.mrb[221].mxu1 }
 0x44c   : > { %v8543_v0 = vpop.f32.mrb[27].mxu0  ;;  %v8435_v8 = vadd.f32 %v8434_v56, %v8433_v7  ;;  %v8436_v48 = vpop.f32.mrb[222].mxu1 }
 0x44d   : > { %v11843_v40 = vadd.f32 %v8541_v54, %v6180_v51  ;;  %v8544_v55 = vadd.f32 %v8543_v0, %v8542_v12  ;;  %v8437_v42 = vpop.f32.mrb[223].mxu1 }
 0x44e   : > { %v6188_v20 = vadd.f32 %v8435_v8, %v11737_v3  ;;  %v8438_v15 = vadd.f32 %v8437_v42, %v8436_v48 }
 0x44f   : > { %v11846_v61 = vadd.f32 %v8544_v55, %v6183_v10 }
 0x450   : > { %v6191_v46 = vadd.f32 %v8438_v15, %v11739_v45 }
 0x451   : > { %v8545_v6 = vpop.f32.mrb[28].mxu0 }
 0x452   : > { %v8546_v29 = vpop.f32.mrb[29].mxu0  ;;  %v8439_v57 = vpop.f32.mrb[224].mxu1 }
 0x453   : > { %v8547_v34 = vadd.f32 %v8546_v29, %v8545_v6  ;;  %v8548_v23 = vpop.f32.mrb[30].mxu0  ;;  %v8440_v28 = vpop.f32.mrb[225].mxu1 }
 0x454   : > { %v8549_v44 = vpop.f32.mrb[31].mxu0  ;;  %v8441_v36 = vadd.f32 %v8440_v28, %v8439_v57  ;;  %v8442_v27 = vpop.f32.mrb[226].mxu1 }
 0x455   : > { %v11849_v4 = vadd.f32 %v8547_v34, %v6188_v20  ;;  %v8550_v35 = vadd.f32 %v8549_v44, %v8548_v23  ;;  %v8443_v25 = vpop.f32.mrb[227].mxu1 }
 0x456   : > { %v6196_v3 = vadd.f32 %v8441_v36, %v11745_v16  ;;  %v8444_v58 = vadd.f32 %v8443_v25, %v8442_v27 }
 0x457   : > { %v11852_v22 = vadd.f32 %v8550_v35, %v6191_v46 }
 0x458   : > { %v6199_v45 = vadd.f32 %v8444_v58, %v11747_v39 }
 0x459   : > { %v8551_v26 = vpop.f32.mrb[32].mxu0 }
 0x45a   : > { %v8552_v51 = vpop.f32.mrb[33].mxu0  ;;  %v8445_v24 = vpop.f32.mrb[228].mxu1 }
 0x45b   : > { %v8553_v10 = vadd.f32 %v8552_v51, %v8551_v26  ;;  %v8554_v41 = vpop.f32.mrb[34].mxu0  ;;  %v8446_v62 = vpop.f32.mrb[229].mxu1 }
 0x45c   : > { %v8555_v7 = vpop.f32.mrb[35].mxu0  ;;  %v8447_v54 = vadd.f32 %v8446_v62, %v8445_v24  ;;  %v8448_v12 = vpop.f32.mrb[230].mxu1 }
 0x45d   : > { %v11855_v56 = vadd.f32 %v8553_v10, %v6196_v3  ;;  %v8556_v0 = vadd.f32 %v8555_v7, %v8554_v41  ;;  %v8449_v8 = vpop.f32.mrb[231].mxu1 }
 0x45e   : > { %v6204_v16 = vadd.f32 %v8447_v54, %v11753_v37  ;;  %v8450_v48 = vadd.f32 %v8449_v8, %v8448_v12 }
 0x45f   : > { %v11858_v55 = vadd.f32 %v8556_v0, %v6199_v45 }
 0x460   : > { %v6207_v39 = vadd.f32 %v8450_v48, %v11755_v49 }
 0x461   : > { %v8557_v42 = vpop.f32.mrb[36].mxu0 }
 0x462   : > { %v8558_v20 = vpop.f32.mrb[37].mxu0  ;;  %v8451_v15 = vpop.f32.mrb[232].mxu1 }
 0x463   : > { %v8559_v46 = vadd.f32 %v8558_v20, %v8557_v42  ;;  %v8560_v6 = vpop.f32.mrb[38].mxu0  ;;  %v8452_v29 = vpop.f32.mrb[233].mxu1 }
 0x464   : > { %v8561_v57 = vpop.f32.mrb[39].mxu0  ;;  %v8453_v34 = vadd.f32 %v8452_v29, %v8451_v15  ;;  %v8454_v23 = vpop.f32.mrb[234].mxu1 }
 0x465   : > { %v11861_v28 = vadd.f32 %v8559_v46, %v6204_v16  ;;  %v8562_v44 = vadd.f32 %v8561_v57, %v8560_v6  ;;  %v8455_v36 = vpop.f32.mrb[235].mxu1  ;;  %v11880_v6 = vld [vmem:[%s12039_s7] ss:$0 sm:$0xff] }
 0x466   : > { %v6212_v37 = vadd.f32 %v8453_v34, %v11761_v9  ;;  %v8456_v27 = vadd.f32 %v8455_v36, %v8454_v23  ;;  %v8787_v57 = vadd.f32 %v11880_v6, %v11789_v14  ;;  %v8793_v14 = vadd.f32 %v11880_v6, %v11794_v38 }
 0x467   : > { %v11864_v35 = vadd.f32 %v8562_v44, %v6207_v39  ;;  %v8789_v44 = vadd.f32 %v11880_v6, %v11779_v11  ;;  %v8791_v11 = vadd.f32 %v11880_v6, %v11801_v63  ;;  %v8797_v63 = vadd.f32 %v11880_v6, %v11797_v30 }
 0x468   : > { %v6215_v49 = vadd.f32 %v8456_v27, %v11763_v50  ;;  %v8801_v30 = vadd.f32 %v11880_v6, %v11807_v19 }
 0x469   : > { %v8563_v25 = vpop.f32.mrb[40].mxu0 }
 0x46a   : > { %v8564_v3 = vpop.f32.mrb[41].mxu0  ;;  %v8457_v58 = vpop.f32.mrb[236].mxu1 }
 0x46b   : > { %v8565_v45 = vadd.f32 %v8564_v3, %v8563_v25  ;;  %v8566_v26 = vpop.f32.mrb[42].mxu0  ;;  %v8458_v51 = vpop.f32.mrb[237].mxu1 }
 0x46c   : > { %v8567_v24 = vpop.f32.mrb[43].mxu0  ;;  %v8459_v10 = vadd.f32 %v8458_v51, %v8457_v58  ;;  %v8460_v41 = vpop.f32.mrb[238].mxu1 }
 0x46d   : > { %v11867_v62 = vadd.f32 %v8565_v45, %v6212_v37  ;;  %v8568_v7 = vadd.f32 %v8567_v24, %v8566_v26  ;;  %v8461_v54 = vpop.f32.mrb[239].mxu1  ;;  %v8795_v24 = vadd.f32 %v11880_v6, %v11804_v43 }
 0x46e   : > { %v6220_v9 = vadd.f32 %v8459_v10, %v11770_v60  ;;  %v8462_v12 = vadd.f32 %v8461_v54, %v8460_v41 }
 0x46f   : > { %v11870_v0 = vadd.f32 %v8568_v7, %v6215_v49 }
 0x470   : > { %v6223_v50 = vadd.f32 %v8462_v12, %v11773_v5 }
 0x471   : > { %v8569_v8 = vpop.f32.mrb[44].mxu0 }
 0x472   : > { %v8570_v16 = vpop.f32.mrb[45].mxu0 }
 0x473   : > { %v8571_v48 = vadd.f32 %v8570_v16, %v8569_v8  ;;  %v8572_v39 = vpop.f32.mrb[46].mxu0  ;;  %v8799_v16 = vadd.f32 %v11880_v6, %v11813_v59 }
 0x474   : > { %v8573_v42 = vpop.f32.mrb[47].mxu0 }
 0x475   : > { %v11873_v20 = vadd.f32 %v8571_v48, %v6220_v9  ;;  %v8574_v15 = vadd.f32 %v8573_v42, %v8572_v39  ;;  %v8803_v42 = vadd.f32 %v11880_v6, %v11816_v31 }
 0x477   : > { %v11875_v46 = vadd.f32 %v8574_v15, %v6223_v50 }
 0x4b2   : > { %v8737_v60 = vpop.f32.mrb[240].mxu1 }
 0x4b3   : > { %v8783_v29 = vadd.f32 %v8737_v60, %v11786_v33  ;;  %v6781_v5 = vpop.f32.mrb[241].mxu1 }
 0x4b4   : > { %v8785_v34 = vadd.f32 %v6781_v5, %v11782_v47  ;;  %v8738_v23 = vpop.f32.mrb[242].mxu1 }
 0x4b5   : > { %v8784_v36 = vadd.f32 %v8783_v29, %v11880_v6  ;;  %v8788_v37 = vadd.f32 %v8787_v57, %v8738_v23  ;;  %v6784_v27 = vpop.f32.mrb[243].mxu1  ;;  %v8805_v29 = vadd.f32 %v11880_v6, %v11810_v2  ;;  %v8809_v2 = vadd.f32 %v11880_v6, %v11819_v18 }
 0x4b6   : > { %v8786_v49 = vadd.f32 %v8785_v34, %v11880_v6  ;;  %v8790_v25 = vadd.f32 %v8789_v44, %v6784_v27 }
 0x4b7   : > { %v6942_v3 = vmax.f32 %v8784_v36, 0.0  ;;  %v6943_v58 = vmax.f32 %v8788_v37, 0.0  ;;  %v8807_v36 = vadd.f32 %v11880_v6, %v11825_v52 }
 0x4b8   : > { %v6940_v33 = vmax.f32 %v8786_v49, 0.0  ;;  %v6941_v45 = vmax.f32 %v8790_v25, 0.0  ;;  %v8811_v49 = vadd.f32 %v11880_v6, %v11828_v32 }
 0x4b9   : > { %6974 = vst [vmem:[%s11891_s11 + $0x10] sm:$0xff] %v6942_v3  ;;  %6975 = vst [vmem:[%s11891_s11 + $0x18] sm:$0xff] %v6943_v58  ;;  %v8813_v58 = vadd.f32 %v11880_v6, %v11822_v21  ;;  %v8817_v21 = vadd.f32 %v11880_v6, %v11831_v53 }
 0x4ba   : > { %6972 = vst [vmem:[%s11891_s11] sm:$0xff] %v6940_v33  ;;  %6973 = vst [vmem:[%s11891_s11 + $0x8] sm:$0xff] %v6941_v45  ;;  %v8741_v47 = vpop.f32.mrb[244].mxu1 }
 0x4bb   : > { %v8792_v26 = vadd.f32 %v8791_v11, %v8741_v47  ;;  %v6797_v51 = vpop.f32.mrb[245].mxu1 }
 0x4bc   : > { %v8794_v10 = vadd.f32 %v8793_v14, %v6797_v51  ;;  %v8742_v41 = vpop.f32.mrb[246].mxu1 }
 0x4bd   : > { %v6946_v7 = vmax.f32 %v8792_v26, 0.0  ;;  %v8796_v54 = vadd.f32 %v8795_v24, %v8742_v41  ;;  %v6800_v9 = vpop.f32.mrb[247].mxu1  ;;  %v8815_v26 = vadd.f32 %v11880_v6, %v11837_v17 }
 0x4be   : > { %v6944_v12 = vmax.f32 %v8794_v10, 0.0  ;;  %v8798_v50 = vadd.f32 %v8797_v63, %v6800_v9  ;;  %v8819_v10 = vadd.f32 %v11880_v6, %v11840_v1 }
 0x4bf   : > { %6978 = vst [vmem:[%s11891_s11 + $0x30] sm:$0xff] %v6946_v7  ;;  %v6947_v8 = vmax.f32 %v8796_v54, 0.0  ;;  %v8821_v7 = vadd.f32 %v11880_v6, %v11834_v13  ;;  %v8825_v13 = vadd.f32 %v11880_v6, %v11843_v40 }
 0x4c0   : > { %6976 = vst [vmem:[%s11891_s11 + $0x20] sm:$0xff] %v6944_v12  ;;  %v6945_v38 = vmax.f32 %v8798_v50, 0.0 }
 0x4c1   : > { %6979 = vst [vmem:[%s11891_s11 + $0x38] sm:$0xff] %v6947_v8 }
 0x4c2   : > { %6977 = vst [vmem:[%s11891_s11 + $0x28] sm:$0xff] %v6945_v38  ;;  %v8745_v43 = vpop.f32.mrb[248].mxu1  ;;  %v8823_v38 = vadd.f32 %v11880_v6, %v11849_v4 }
 0x4c3   : > { %v8800_v48 = vadd.f32 %v8799_v16, %v8745_v43  ;;  %v6813_v39 = vpop.f32.mrb[249].mxu1 }
 0x4c4   : > { %v8802_v15 = vadd.f32 %v8801_v30, %v6813_v39  ;;  %v8746_v60 = vpop.f32.mrb[250].mxu1  ;;  %v8827_v30 = vadd.f32 %v11880_v6, %v11852_v22 }
 0x4c5   : > { %v6950_v5 = vmax.f32 %v8800_v48, 0.0  ;;  %v8804_v59 = vadd.f32 %v8803_v42, %v8746_v60  ;;  %v6816_v57 = vpop.f32.mrb[251].mxu1  ;;  %v8829_v42 = vadd.f32 %v11880_v6, %v11846_v61  ;;  %v8833_v61 = vadd.f32 %v11880_v6, %v11855_v56 }
 0x4c6   : > { %v6948_v34 = vmax.f32 %v8802_v15, 0.0  ;;  %v8806_v23 = vadd.f32 %v8805_v29, %v6816_v57  ;;  %v8831_v57 = vadd.f32 %v11880_v6, %v11861_v28 }
 0x4c7   : > { %6982 = vst [vmem:[%s11891_s11 + $0x50] sm:$0xff] %v6950_v5  ;;  %v6951_v44 = vmax.f32 %v8804_v59, 0.0 }
 0x4c8   : > { %6980 = vst [vmem:[%s11891_s11 + $0x40] sm:$0xff] %v6948_v34  ;;  %v6949_v19 = vmax.f32 %v8806_v23, 0.0 }
 0x4c9   : > { %6983 = vst [vmem:[%s11891_s11 + $0x58] sm:$0xff] %v6951_v44  ;;  %v8835_v44 = vadd.f32 %v11880_v6, %v11864_v35  ;;  %v8839_v35 = vadd.f32 %v11880_v6, %v11873_v20 }
 0x4ca   : > { %6981 = vst [vmem:[%s11891_s11 + $0x48] sm:$0xff] %v6949_v19  ;;  %v8749_v31 = vpop.f32.mrb[252].mxu1 }
 0x4cb   : > { %v8808_v37 = vadd.f32 %v8807_v36, %v8749_v31  ;;  %v6829_v27 = vpop.f32.mrb[253].mxu1  ;;  %v8837_v31 = vadd.f32 %v11880_v6, %v11858_v55  ;;  %v8841_v55 = vadd.f32 %v11880_v6, %v11867_v62 }
 0x4cc   : > { %v8810_v25 = vadd.f32 %v8809_v2, %v6829_v27  ;;  %v8750_v3 = vpop.f32.mrb[254].mxu1 }
 0x4cd   : > { %v6954_v33 = vmax.f32 %v8808_v37, 0.0  ;;  %v8812_v52 = vadd.f32 %v8811_v49, %v8750_v3  ;;  %v6832_v45 = vpop.f32.mrb[255].mxu1 }
 0x4ce   : > { %v6952_v11 = vmax.f32 %v8810_v25, 0.0  ;;  %v8814_v47 = vadd.f32 %v8813_v58, %v6832_v45 }
 0x4cf   : > { %6986 = vst [vmem:[%s11891_s11 + $0x70] sm:$0xff] %v6954_v33  ;;  %v6955_v14 = vmax.f32 %v8812_v52, 0.0  ;;  %v8843_v52 = vadd.f32 %v11880_v6, %v11875_v46 }
 0x4d0   : > { %6984 = vst [vmem:[%s11891_s11 + $0x60] sm:$0xff] %v6952_v11  ;;  %v6953_v18 = vmax.f32 %v8814_v47, 0.0  ;;  %v8845_v47 = vadd.f32 %v11880_v6, %v11870_v0 }
 0x4d1   : > { %6987 = vst [vmem:[%s11891_s11 + $0x78] sm:$0xff] %v6955_v14 }
 0x4d2   : > { %6985 = vst [vmem:[%s11891_s11 + $0x68] sm:$0xff] %v6953_v18  ;;  %v8753_v32 = vpop.f32.mrb[0].mxu1 }
 0x4d3   : > { %v8816_v51 = vadd.f32 %v8815_v26, %v8753_v32  ;;  %v6845_v24 = vpop.f32.mrb[1].mxu1 }
 0x4d4   : > { %v8818_v41 = vadd.f32 %v8817_v21, %v6845_v24  ;;  %v8754_v63 = vpop.f32.mrb[2].mxu1 }
 0x4d5   : > { %v6958_v54 = vmax.f32 %v8816_v51, 0.0  ;;  %v8820_v17 = vadd.f32 %v8819_v10, %v8754_v63  ;;  %v6848_v9 = vpop.f32.mrb[3].mxu1 }
 0x4d6   : > { %v6956_v12 = vmax.f32 %v8818_v41, 0.0  ;;  %v8822_v50 = vadd.f32 %v8821_v7, %v6848_v9 }
 0x4d7   : > { %6990 = vst [vmem:[%s11891_s11 + $0x90] sm:$0xff] %v6958_v54  ;;  %v6959_v8 = vmax.f32 %v8820_v17, 0.0 }
 0x4d8   : > { %6988 = vst [vmem:[%s11891_s11 + $0x80] sm:$0xff] %v6956_v12  ;;  %v6957_v53 = vmax.f32 %v8822_v50, 0.0 }
 0x4d9   : > { %6991 = vst [vmem:[%s11891_s11 + $0x98] sm:$0xff] %v6959_v8 }
 0x4da   : > { %6989 = vst [vmem:[%s11891_s11 + $0x88] sm:$0xff] %v6957_v53  ;;  %v8757_v1 = vpop.f32.mrb[4].mxu1 }
 0x4db   : > { %v8824_v16 = vadd.f32 %v8823_v38, %v8757_v1  ;;  %v6861_v43 = vpop.f32.mrb[5].mxu1 }
 0x4dc   : > { %v8826_v48 = vadd.f32 %v8825_v13, %v6861_v43  ;;  %v8758_v39 = vpop.f32.mrb[6].mxu1 }
 0x4dd   : > { %v6962_v15 = vmax.f32 %v8824_v16, 0.0  ;;  %v8828_v4 = vadd.f32 %v8827_v30, %v8758_v39  ;;  %v6864_v60 = vpop.f32.mrb[7].mxu1 }
 0x4de   : > { %v6960_v29 = vmax.f32 %v8826_v48, 0.0  ;;  %v8830_v5 = vadd.f32 %v8829_v42, %v6864_v60 }
 0x4df   : > { %6994 = vst [vmem:[%s11891_s11 + $0xb0] sm:$0xff] %v6962_v15  ;;  %v6963_v59 = vmax.f32 %v8828_v4, 0.0 }
 0x4e0   : > { %6992 = vst [vmem:[%s11891_s11 + $0xa0] sm:$0xff] %v6960_v29  ;;  %v6961_v40 = vmax.f32 %v8830_v5, 0.0 }
 0x4e1   : > { %6995 = vst [vmem:[%s11891_s11 + $0xb8] sm:$0xff] %v6963_v59 }
 0x4e2   : > { %6993 = vst [vmem:[%s11891_s11 + $0xa8] sm:$0xff] %v6961_v40  ;;  %v8761_v22 = vpop.f32.mrb[8].mxu1 }
 0x4e3   : > { %v8832_v34 = vadd.f32 %v8831_v57, %v8761_v22  ;;  %v6877_v23 = vpop.f32.mrb[9].mxu1 }
 0x4e4   : > { %v8834_v19 = vadd.f32 %v8833_v61, %v6877_v23  ;;  %v8762_v36 = vpop.f32.mrb[10].mxu1 }
 0x4e5   : > { %v6966_v2 = vmax.f32 %v8832_v34, 0.0  ;;  %v8836_v28 = vadd.f32 %v8835_v44, %v8762_v36  ;;  %v6880_v37 = vpop.f32.mrb[11].mxu1 }
 0x4e6   : > { %v6964_v27 = vmax.f32 %v8834_v19, 0.0  ;;  %v8838_v49 = vadd.f32 %v8837_v31, %v6880_v37 }
 0x4e7   : > { %6998 = vst [vmem:[%s11891_s11 + $0xd0] sm:$0xff] %v6966_v2  ;;  %v6967_v56 = vmax.f32 %v8836_v28, 0.0 }
 0x4e8   : > { %6996 = vst [vmem:[%s11891_s11 + $0xc0] sm:$0xff] %v6964_v27  ;;  %v6965_v25 = vmax.f32 %v8838_v49, 0.0 }
 0x4e9   : > { %6999 = vst [vmem:[%s11891_s11 + $0xd8] sm:$0xff] %v6967_v56 }
 0x4ea   : > { %6997 = vst [vmem:[%s11891_s11 + $0xc8] sm:$0xff] %v6965_v25  ;;  %v8765_v3 = vpop.f32.mrb[12].mxu1 }
 0x4eb   : > { %v8840_v58 = vadd.f32 %v8839_v35, %v8765_v3  ;;  %v6893_v33 = vpop.f32.mrb[13].mxu1 }
 0x4ec   : > { %v8842_v45 = vadd.f32 %v8841_v55, %v6893_v33  ;;  %v8766_v11 = vpop.f32.mrb[14].mxu1 }
 0x4ed   : > { %v6970_v20 = vmax.f32 %v8840_v58, 0.0  ;;  %v8844_v14 = vadd.f32 %v8843_v52, %v8766_v11  ;;  %v6896_v62 = vpop.f32.mrb[15].mxu1 }
 0x4ee   : > { %v6968_v18 = vmax.f32 %v8842_v45, 0.0  ;;  %v8846_v26 = vadd.f32 %v8845_v47, %v6896_v62 }
 0x4ef   : > { %7002 = vst [vmem:[%s11891_s11 + $0xf0] sm:$0xff] %v6970_v20  ;;  %v6971_v32 = vmax.f32 %v8844_v14, 0.0 }
 0x4f0   : > { %7000 = vst [vmem:[%s11891_s11 + $0xe0] sm:$0xff] %v6968_v18  ;;  %v6969_v0 = vmax.f32 %v8846_v26, 0.0 }
 0x4f1   : > { %7003 = vst [vmem:[%s11891_s11 + $0xf8] sm:$0xff] %v6971_v32 }
 0x4f2   : > { %7001 = vst [vmem:[%s11891_s11 + $0xe8] sm:$0xff] %v6969_v0 }
 0x4f3   : > { %9401 = shalt.err (!%p9398_p9)
}
 0x4f4   : > { %s9402_s17 = scalar_lea.hbm %s11983_s10, 4096  ;;  %s9406_s11 = scalar_lea.hbm %s12040_s8, 8192 }
 0x4f5   : > { %p9403_p1 = scmp.ne.s32.totalorder %s11983_s10, %s9402_s17  ;;  %p9407_p11 = scmp.lt.u32.totalorder %s11983_s10, %s12040_s8 }
 0x4f6   : > { %p9408_p2 = scmp.lt.u32.totalorder %s9406_s11, %s9402_s17  ;;  %p9410_p6 = scmp.lt.u32.totalorder %s9402_s17, %s11983_s10 }
 0x4f7   : > { %p9404_p0 = pnand %p9403_p1, %p9607_p12 }
 0x4f8   : > { %p9409_p4 = por %p9408_p2, %p9407_p11 }
 0x4f9   : > { %p9405_p5 = pneg %p9404_p0 }
 0x4fa   : > { %p9411_p8 = por %p9410_p6, %p9409_p4 }
 0x4fc   : > { %p9412_p10 = pnand %p9411_p8, %p9405_p5 }
 0x4fe   : > { %9415 = shalt.err (!%p9412_p10)
}
 0x4ff   : > { %s9466_s18 = smov 128   ;;  %s9467_s14 = smov 8  }
 0x500   : > { %8886 = dma.vmem_to_hbm [thread:$0]  (%p9607_p12), %s11985_s20, 4096, %s11983_s10, %s7005_s9, %s9466_s18, %s9466_s18, %s9467_s14  }
 0x501 PF: > { %s7033_s16 = sand.u32 1, %s9446_s27   ;;  %p12149_p13 = scmp.ne.s32.totalorder %s12058_s12, 0 }
 0x502   : > { %p12150_p3 = scmp.ge.s32.totalorder %s9458_s30, 2  ;;  %s7034_s13 = scalar_lea.sflag [#allocation5], %s7033_s16 }
 0x504   : > { %p8897_p7 = pnand %p12150_p3, %p12149_p13 }
 0x506   : > { %9441 = dma.done.wait (!%p8897_p7), %s7034_s13, 4096  }
 0x507   : > { %9443 = vsyncadd (!%p8897_p7), %s7034_s13, 4294963200  ;;  %s12151_s30 = sld [smem:[#allocation12_spill]]  ;;  %s12152_s27 = smov %s9450_s28 }
 0x508   : > { %s12153_s28 = smov %s9454_s29  ;;  %s12154_s29 = smov %s9603_s23 }
 0x50d   : > { %p22_p9 = scmp.ge.s32.totalorder %s12151_s30, 4  }
 0x50f   :  { %24 = sbr.rel (!%p22_p9) target bundleno = 6 (0x6), region = 108 }
 0x516   :  { %7039 = vsyncpa [#allocation4], 1 }
 0x517   :  { %7041 = vsyncpa [#allocation4 + $0x1], 1 }
 0x518   :  { %7042 = vsyncpa [#allocation7], 1 }
 0x519   :  { %7043 = vsyncpa [#allocation5], 1 }
 0x51a   :  { %7045 = vsyncpa [#allocation5 + $0x1], 1 }

</bundles_post_ra>
